<compile_context>
chip_gen: v7x
topology: tpu7x:2x2x1
jax: 0.10.0
libtpu: 0.0.40
codegen_flags: <defaults>
</compile_context>

<pallas_src>
import functools

import jax
import jax.numpy as jnp
from jax.experimental import pallas as pl
from jax.experimental.pallas import tpu as pltpu

VMEM_LIMIT = 32 * 1024 * 1024   # safe scoped-VMEM limit on v5e/v6e/v7x
MAX_L_TILE = 1024               # pixels per block for the per-pixel kernels


def _choose_tile(n, mult):
    """Largest divisor of n that is <= MAX_L_TILE and a multiple of `mult`
    (falls back to the full extent -> single block). Divisor choice keeps the
    cross-tile reductions exact (no ragged/garbage rows)."""
    if n <= MAX_L_TILE:
        return n
    for d in range(MAX_L_TILE, mult - 1, -1):
        if n % d == 0 and d % mult == 0:
            return d
    return n


# -----------------------------------------------------------------------------
# Kernel 1: backbone stand-in projections + FusionModule (conv1x1 -> BN -> ReLU)
# -----------------------------------------------------------------------------
def _stage_in_kernel(x_ref, wcat_ref, bcat_ref, wfuse_ref, sc_ref, sh_ref, o_ref):
    # cat = [feat_local | feat_global] = xd @ [w_local|w_global] + [b_local|b_global]
    cat = jnp.dot(x_ref[...], wcat_ref[...], preferred_element_type=jnp.float32)
    cat = cat + bcat_ref[...]
    # FusionModule: conv1x1 (no bias) -> BN(eval) -> ReLU
    x1 = jnp.dot(cat.astype(jnp.bfloat16), wfuse_ref[...],
                 preferred_element_type=jnp.float32)
    x1 = jnp.maximum(x1 * sc_ref[...] + sh_ref[...], 0.0)
    o_ref[...] = x1.astype(o_ref.dtype)


def stage_input(xd_nl3, w_cat, b_cat, w_fuse, fuse_scale, fuse_shift):
    N, L, Kin = xd_nl3.shape
    C2, C = w_fuse.shape
    lt = _choose_tile(L, 8)
    return pl.pallas_call(
        _stage_in_kernel,
        out_shape=jax.ShapeDtypeStruct((N, L, C), jnp.bfloat16),
        grid=(N, L // lt),
        in_specs=[
            pl.BlockSpec((None, lt, Kin), lambda n, l: (n, l, 0)),
            pl.BlockSpec((Kin, C2), lambda n, l: (0, 0)),
            pl.BlockSpec((1, C2), lambda n, l: (0, 0)),
            pl.BlockSpec((C2, C), lambda n, l: (0, 0)),
            pl.BlockSpec((1, C), lambda n, l: (0, 0)),
            pl.BlockSpec((1, C), lambda n, l: (0, 0)),
        ],
        out_specs=pl.BlockSpec((None, lt, C), lambda n, l: (n, l, 0)),
        compiler_params=pltpu.CompilerParams(
            dimension_semantics=("parallel", "parallel"),
            vmem_limit_bytes=VMEM_LIMIT),
    )(xd_nl3, w_cat, b_cat, w_fuse, fuse_scale, fuse_shift)


# -----------------------------------------------------------------------------
# Kernel 2: CBAM channel attention (avg+max pool over L, shared FC, sigmoid)
# -----------------------------------------------------------------------------
def _ca_kernel(x_ref, w1_ref, w2_ref, ca_ref, sum_sc, max_sc, *, inv_l):
    @pl.when(pl.program_id(0) == 0)
    def _():
        sum_sc[...] = jnp.zeros_like(sum_sc)
        max_sc[...] = jnp.full(max_sc.shape, -jnp.inf, dtype=max_sc.dtype)

    xb = x_ref[...].astype(jnp.float32)               # (N, lt, C)
    sum_sc[...] += jnp.sum(xb, axis=1)
    max_sc[...] = jnp.maximum(max_sc[...], jnp.max(xb, axis=1))

    @pl.when(pl.program_id(0) == pl.num_programs(0) - 1)
    def _():
        avg = (sum_sc[...] * inv_l).astype(jnp.bfloat16)
        mx = max_sc[...].astype(jnp.bfloat16)
        h_a = jnp.maximum(jnp.dot(avg, w1_ref[...],
                                  preferred_element_type=jnp.float32), 0.0)
        h_m = jnp.maximum(jnp.dot(mx, w1_ref[...],
                                  preferred_element_type=jnp.float32), 0.0)
        z = (jnp.dot(h_a.astype(jnp.bfloat16), w2_ref[...],
                     preferred_element_type=jnp.float32)
             + jnp.dot(h_m.astype(jnp.bfloat16), w2_ref[...],
                       preferred_element_type=jnp.float32))
        ca_ref[...] = jax.nn.sigmoid(z)


def channel_attention(x1_nlc, w1, w2):
    N, L, C = x1_nlc.shape
    cr = w1.shape[1]
    lt = _choose_tile(L, 8)
    return pl.pallas_call(
        functools.partial(_ca_kernel, inv_l=1.0 / L),
        out_shape=jax.ShapeDtypeStruct((N, C), jnp.float32),
        grid=(L // lt,),
        in_specs=[
            pl.BlockSpec((N, lt, C), lambda l: (0, l, 0)),
            pl.BlockSpec((C, cr), lambda l: (0, 0)),
            pl.BlockSpec((cr, C), lambda l: (0, 0)),
        ],
        out_specs=pl.BlockSpec((N, C), lambda l: (0, 0)),
        scratch_shapes=[pltpu.VMEM((N, C), jnp.float32),
                        pltpu.VMEM((N, C), jnp.float32)],
        compiler_params=pltpu.CompilerParams(
            dimension_semantics=("arbitrary",),
            vmem_limit_bytes=VMEM_LIMIT),
    )(x1_nlc, w1, w2)


# -----------------------------------------------------------------------------
# Kernel 3: x*CA and per-pixel channel mean/max, packed as (N, L, 2)
# -----------------------------------------------------------------------------
def _stats_kernel(x_ref, ca_ref, o_ref):
    x2 = x_ref[...].astype(jnp.float32) * ca_ref[...]          # (N, lt, C)
    o_ref[:, :, 0:1] = jnp.mean(x2, axis=2, keepdims=True)
    o_ref[:, :, 1:2] = jnp.max(x2, axis=2, keepdims=True)


def channel_stats(x1_nlc, ca_n1c):
    N, L, C = x1_nlc.shape
    lt = _choose_tile(L, 8)
    return pl.pallas_call(
        _stats_kernel,
        out_shape=jax.ShapeDtypeStruct((N, L, 2), jnp.float32),
        grid=(L // lt,),
        in_specs=[
            pl.BlockSpec((N, lt, C), lambda l: (0, l, 0)),
            pl.BlockSpec((N, 1, C), lambda l: (0, 0, 0)),
        ],
        out_specs=pl.BlockSpec((N, lt, 2), lambda l: (0, l, 0)),
        compiler_params=pltpu.CompilerParams(
            dimension_semantics=("parallel",),
            vmem_limit_bytes=VMEM_LIMIT),
    )(x1_nlc, ca_n1c)


# -----------------------------------------------------------------------------
# Kernel 4: 7x7 spatial-attention conv as VPU multiply + sublane reduce
#           (lane-dense (N, L) output; avoids an Nout=1 MXU matmul)
# -----------------------------------------------------------------------------
def _sa_kernel(cols_ref, w_ref, o_ref):
    o_ref[...] = jax.nn.sigmoid(jnp.sum(cols_ref[...] * w_ref[...], axis=1))


def spatial_attention(cols_nkl, w_sa_1k1):
    N, K, L = cols_nkl.shape
    lt = _choose_tile(L, 128)
    return pl.pallas_call(
        _sa_kernel,
        out_shape=jax.ShapeDtypeStruct((N, L), jnp.float32),
        grid=(L // lt,),
        in_specs=[
            pl.BlockSpec((N, K, lt), lambda l: (0, 0, l)),
            pl.BlockSpec((1, K, 1), lambda l: (0, 0, 0)),
        ],
        out_specs=pl.BlockSpec((N, lt), lambda l: (0, l)),
        compiler_params=pltpu.CompilerParams(
            dimension_semantics=("parallel",),
            vmem_limit_bytes=VMEM_LIMIT),
    )(cols_nkl, w_sa_1k1)


# -----------------------------------------------------------------------------
# Kernel 5: x*SA, stage BatchNorm2d(eval), FPN lateral 1x1 conv -- fused
# -----------------------------------------------------------------------------
def _lateral_kernel(x_ref, ca_ref, sa_ref, sc_ref, sh_ref, w_ref, b_ref, o_ref):
    x3 = (x_ref[...].astype(jnp.float32) * ca_ref[...]) * sa_ref[...]
    x3 = x3 * sc_ref[...] + sh_ref[...]
    o_ref[...] = jnp.dot(x3.astype(jnp.bfloat16), w_ref[...],
                         preferred_element_type=jnp.float32) + b_ref[...]


def lateral_fused(x1_nlc, ca_n1c, sa_nl1, bn_scale, bn_shift, w_lat, b_lat):
    N, L, C = x1_nlc.shape
    Cf = w_lat.shape[1]
    lt = _choose_tile(L, 8)
    return pl.pallas_call(
        _lateral_kernel,
        out_shape=jax.ShapeDtypeStruct((N, L, Cf), jnp.float32),
        grid=(N, L // lt),
        in_specs=[
            pl.BlockSpec((None, lt, C), lambda n, l: (n, l, 0)),
            pl.BlockSpec((None, 1, C), lambda n, l: (n, 0, 0)),
            pl.BlockSpec((None, lt, 1), lambda n, l: (n, l, 0)),
            pl.BlockSpec((1, C), lambda n, l: (0, 0)),
            pl.BlockSpec((1, C), lambda n, l: (0, 0)),
            pl.BlockSpec((C, Cf), lambda n, l: (0, 0)),
            pl.BlockSpec((1, Cf), lambda n, l: (0, 0)),
        ],
        out_specs=pl.BlockSpec((None, lt, Cf), lambda n, l: (n, l, 0)),
        compiler_params=pltpu.CompilerParams(
            dimension_semantics=("parallel", "parallel"),
            vmem_limit_bytes=VMEM_LIMIT),
    )(x1_nlc, ca_n1c, sa_nl1, bn_scale, bn_shift, w_lat, b_lat)


# -----------------------------------------------------------------------------
# Kernel 6: fused head -- per-stage 3x3-smooth spatial means + MLP + sigmoid
# -----------------------------------------------------------------------------
def _head_kernel(wm_ref, wsm_ref, bsm_ref, w1_ref, s1_ref, t1_ref,
                 w2_ref, s2_ref, t2_ref, w3_ref, b3_ref, o_ref, *, num_stages):
    h = None
    for i in range(num_stages):
        p = jnp.dot(wm_ref[i], wsm_ref[i], preferred_element_type=jnp.float32)
        p = (p + bsm_ref[i]).astype(jnp.bfloat16)          # pooled stage feature
        hi = jnp.dot(p, w1_ref[i], preferred_element_type=jnp.float32)
        h = hi if h is None else h + hi                    # == concat @ w1
    h = jnp.maximum(h * s1_ref[...] + t1_ref[...], 0.0)
    h = jnp.dot(h.astype(jnp.bfloat16), w2_ref[...],
                preferred_element_type=jnp.float32)
    h = jnp.maximum(h * s2_ref[...] + t2_ref[...], 0.0)
    y = jnp.dot(h.astype(jnp.bfloat16), w3_ref[...],
                preferred_element_type=jnp.float32) + b3_ref[...]
    o_ref[...] = jax.nn.sigmoid(y)


def fpn_smooth_pool_mlp(wm_s, wsm_s, bsm_s, mlp):
    S, N, _ = wm_s.shape
    return pl.pallas_call(
        functools.partial(_head_kernel, num_stages=S),
        out_shape=jax.ShapeDtypeStruct((N, 1), jnp.float32),
        compiler_params=pltpu.CompilerParams(vmem_limit_bytes=VMEM_LIMIT),
    )(wm_s, wsm_s, bsm_s, mlp["w1"], mlp["s1"], mlp["t1"],
      mlp["w2"], mlp["s2"], mlp["t2"], mlp["w3"], mlp["b3"])


# -----------------------------------------------------------------------------
# Plain-JAX glue
# -----------------------------------------------------------------------------
def nearest_resize(x_nhwc, h_out, w_out):
    # F.interpolate(mode='nearest'): src = floor(dst * in / out)
    N, H, W, C = x_nhwc.shape
    ih = (jnp.arange(h_out) * H) // h_out
    iw = (jnp.arange(w_out) * W) // w_out
    return x_nhwc[:, ih][:, :, iw]


def sa_im2col(stats_nl2, hi, wi, k=7, pad=3):
    # -> (N, 2*k*k, Hi*Wi); tap order (cin, kh, kw) == PyTorch conv.weight.view(-1)
    N = stats_nl2.shape[0]
    s = jnp.transpose(stats_nl2.reshape(N, hi, wi, 2), (0, 3, 1, 2))  # (N,2,H,W)
    sp = jnp.pad(s, ((0, 0), (0, 0), (pad, pad), (pad, pad)))
    taps = [sp[:, :, di:di + hi, dj:dj + wi]
            for di in range(k) for dj in range(k)]
    cols = jnp.stack(taps, axis=2)                                    # (N,2,49,H,W)
    return cols.reshape(N, 2 * k * k, hi * wi)


def conv3x3_window_means(f_nhwc):
    # spatial-mean(conv3x3_pad1(f)) == concat_tap(window_mean) @ W_flat + b (exact)
    N, H, W, C = f_nhwc.shape
    fp = jnp.pad(f_nhwc, ((0, 0), (1, 1), (1, 1), (0, 0)))
    wms = [jnp.mean(fp[:, di:di + H, dj:dj + W, :], axis=(1, 2))
           for di in range(3) for dj in range(3)]
    return jnp.concatenate(wms, axis=-1)          # (N, 9*C), tap order (kh,kw,cin)


def bn_scale_shift(gamma, beta, mean, var, eps=1e-5):
    scale = gamma / jnp.sqrt(var + eps)
    shift = beta - mean * scale
    return scale, shift


# -----------------------------------------------------------------------------
# Parameters (deterministic synthetic init) + one-time inference preparation
# -----------------------------------------------------------------------------
def _bn_params(key, c, eps=1e-5):
    k1, k2, k3, k4 = jax.random.split(key, 4)
    gamma = 1.0 + 0.1 * jax.random.normal(k1, (c,), jnp.float32)
    beta = 0.1 * jax.random.normal(k2, (c,), jnp.float32)
    mean = 0.1 * jax.random.normal(k3, (c,), jnp.float32)
    var = 1.0 + 0.1 * jnp.abs(jax.random.normal(k4, (c,), jnp.float32))
    return bn_scale_shift(gamma, beta, mean, var, eps)


def init_params(key, channels, fpn_out, hidden, reduction=16):
    def nrm(k, shape, s=0.1):
        return s * jax.random.normal(k, shape, jnp.float32)

    keys = jax.random.split(key, len(channels) + 1)
    stages = []
    for ci, c in enumerate(channels):
        ks = jax.random.split(keys[ci], 16)
        cr = max(c // reduction, 1)
        stages.append(dict(
            w_local=nrm(ks[0], (3, c)), b_local=nrm(ks[1], (c,)),
            w_global=nrm(ks[2], (3, c)), b_global=nrm(ks[3], (c,)),
            w_fuse=nrm(ks[4], (2 * c, c)),
            bn_fuse=_bn_params(ks[5], c),
            w_ca1=nrm(ks[6], (c, cr)),
            w_ca2=nrm(ks[7], (cr, c)),
            w_sa=nrm(ks[8], (2 * 7 * 7,)),
            bn_stage=_bn_params(ks[9], c),
            w_lat=nrm(ks[10], (c, fpn_out)), b_lat=nrm(ks[11], (fpn_out,)),
            w_sm=nrm(ks[12], (9 * fpn_out, fpn_out)), b_sm=nrm(ks[13], (fpn_out,)),
        ))
    km = jax.random.split(keys[-1], 8)
    mlp = dict(
        w1=nrm(km[0], (fpn_out * len(channels), hidden)), b1=nrm(km[1], (hidden,)),
        bn1=_bn_params(km[2], hidden),
        w2=nrm(km[3], (hidden, hidden // 2)), b2=nrm(km[4], (hidden // 2,)),
        bn2=_bn_params(km[5], hidden // 2),
        w3=nrm(km[6], (hidden // 2, 1)), b3=nrm(km[7], (1,)),
    )
    return {"stages": stages, "mlp": mlp}


def prepare_params(params):
    """Fold biases / BatchNorm into scale-shift, pre-cast matmul weights to bf16
    and pre-stack the per-stage FPN-smooth + MLP weights for the fused head."""
    bf16 = jnp.bfloat16
    pstages = []
    for st in params["stages"]:
        c = st["w_fuse"].shape[1]
        fsc, fsh = st["bn_fuse"]
        ssc, ssh = st["bn_stage"]
        pstages.append(dict(
            w_cat=jnp.concatenate([st["w_local"], st["w_global"]],
                                  axis=1).astype(bf16),
            b_cat=jnp.concatenate([st["b_local"],
                                   st["b_global"]]).reshape(1, 2 * c),
            w_fuse=st["w_fuse"].astype(bf16),
            fuse_scale=fsc.reshape(1, c), fuse_shift=fsh.reshape(1, c),
            w_ca1=st["w_ca1"].astype(bf16), w_ca2=st["w_ca2"].astype(bf16),
            w_sa=st["w_sa"].reshape(1, -1, 1).astype(jnp.float32),
            bn_scale=ssc.reshape(1, c), bn_shift=ssh.reshape(1, c),
            w_lat=st["w_lat"].astype(bf16), b_lat=st["b_lat"].reshape(1, -1),
        ))
    num_stages = len(params["stages"])
    wsm_s = jnp.stack([st["w_sm"] for st in params["stages"]]).astype(bf16)
    bsm_s = jnp.stack([st["b_sm"].reshape(1, -1) for st in params["stages"]])
    m = params["mlp"]
    hidden = m["w1"].shape[1]
    s1, t1 = m["bn1"]
    s2, t2 = m["bn2"]
    mlp = dict(
        w1=m["w1"].reshape(num_stages, -1, hidden).astype(bf16),
        s1=s1.reshape(1, -1), t1=(t1 + m["b1"] * s1).reshape(1, -1),
        w2=m["w2"].astype(bf16),
        s2=s2.reshape(1, -1), t2=(t2 + m["b2"] * s2).reshape(1, -1),
        w3=m["w3"].astype(bf16), b3=m["b3"].reshape(1, -1),
    )
    return {"stages": pstages, "wsm_s": wsm_s, "bsm_s": bsm_s, "mlp": mlp}


# -----------------------------------------------------------------------------
# MANIQA forward
# -----------------------------------------------------------------------------
STRIDES = (4, 8, 16, 32)   # MaxViT feature strides for out_indices (1,2,3,4)


def maniqa_forward(x_nchw, pp):
    x = jnp.transpose(x_nchw, (0, 2, 3, 1)).astype(jnp.float32)   # NCHW -> NHWC
    N, H, W, _ = x.shape

    laterals = []
    for i, st in enumerate(pp["stages"]):
        s = STRIDES[i]
        Hi, Wi = H // s, W // s
        L = Hi * Wi
        C = st["w_fuse"].shape[1]

        # ---- backbone stand-in (see TODO(synk)): stride-s average-pool ----
        xd = x.reshape(N, Hi, s, Wi, s, 3).mean(axis=(2, 4))
        xd = xd.reshape(N, L, 3).astype(jnp.bfloat16)

        # ---- stand-in projections + FusionModule (one fused kernel) ----
        x1 = stage_input(xd, st["w_cat"], st["b_cat"], st["w_fuse"],
                         st["fuse_scale"], st["fuse_shift"])       # (N,L,C) bf16

        # ---- CBAM channel attention ----
        ca = channel_attention(x1, st["w_ca1"], st["w_ca2"]).reshape(N, 1, C)

        # ---- CBAM spatial attention ----
        stats = channel_stats(x1, ca)                              # (N, L, 2)
        cols = sa_im2col(stats, Hi, Wi)                            # (N, 98, L)
        sa = spatial_attention(cols, st["w_sa"]).reshape(N, L, 1)

        # ---- x*SA, stage BatchNorm2d (Dropout2d identity), lateral conv ----
        lat = lateral_fused(x1, ca, sa, st["bn_scale"], st["bn_shift"],
                            st["w_lat"], st["b_lat"])              # (N, L, Cf)
        laterals.append(lat.reshape(N, Hi, Wi, -1))

    # ---- FPN top-down pathway (nearest upsample + add), plain-JAX glue ----
    fpn = [None] * len(laterals)
    fpn[-1] = laterals[-1]
    for i in range(len(laterals) - 2, -1, -1):
        up = nearest_resize(fpn[i + 1], laterals[i].shape[1], laterals[i].shape[2])
        fpn[i] = laterals[i] + up

    # ---- 3x3 smooth + upsample-to-finest + concat + global avg pool, folded:
    # smoothed maps are only consumed by the spatial mean and integer-factor
    # nearest upsampling preserves the mean, so the pooled vector equals
    # window_means(fpn_i) @ w_sm_i + b_sm_i (computed in the fused head). ----
    H0, W0 = fpn[0].shape[1], fpn[0].shape[2]
    for f in fpn:
        assert H0 % f.shape[1] == 0 and W0 % f.shape[2] == 0
    wm_s = jnp.stack([conv3x3_window_means(f) for f in fpn]).astype(jnp.bfloat16)

    # ---- smooth means + MLP head (BN1d eval, Dropout identity) + sigmoid ----
    score = fpn_smooth_pool_mlp(wm_s, pp["wsm_s"], pp["bsm_s"], pp["mlp"])
    return score.reshape(N)


# -----------------------------------------------------------------------------
if __name__ == "__main__":
    key = jax.random.PRNGKey(0)
    k_x, k_p = jax.random.split(key)

    # Small shapes: batch=2, RGB 64x64 input -> stage spatial sizes 16/8/4/2.
    channels = [32, 64, 96, 128]     # stand-in stage channels (MaxViT-like)
    fpn_out = 64                     # FPN out_channels (256 in the reference)
    hidden = 32                      # MLP hidden_dim (512 in the reference)

    x = jax.random.normal(k_x, (2, 3, 64, 64), jnp.float32)   # NCHW input
    params = init_params(k_p, channels, fpn_out, hidden)
    pp = prepare_params(params)

    fwd = jax.jit(maniqa_forward)
    out = fwd(x, pp)
    jax.block_until_ready(out)

    assert out.shape == (2,)
    assert bool(jnp.all(jnp.isfinite(out)))
    print("KERNEL_OK")
</pallas_src>

<mosaic_0001>
module attributes {stable_mosaic.version = 11 : i64} {
  func.func @_stage_in_kernel(%arg0: i32, %arg1: i32, %arg2: memref<1x256x3xbf16, #tpu.memory_space<vmem>>, %arg3: memref<3x64xbf16, #tpu.memory_space<vmem>>, %arg4: memref<1x64xf32, #tpu.memory_space<vmem>>, %arg5: memref<64x32xbf16, #tpu.memory_space<vmem>>, %arg6: memref<1x32xf32, #tpu.memory_space<vmem>>, %arg7: memref<1x32xf32, #tpu.memory_space<vmem>>, %arg8: memref<1x256x32xbf16, #tpu.memory_space<vmem>>) attributes {dimension_semantics = [#tpu.dimension_semantics<parallel>, #tpu.dimension_semantics<parallel>], iteration_bounds = array<i64: 2, 1>, scalar_prefetch = 0 : i64, scratch_operands = 0 : i64, tpu.core_type = #tpu.core_type<tc>, window_params = [{transform_indices = @transform_0, window_bounds = array<i64: 1, 256, 3>}, {pipeline_mode = #tpu.pipeline_mode<synchronous>, transform_indices = @transform_1, window_bounds = array<i64: 3, 64>}, {pipeline_mode = #tpu.pipeline_mode<synchronous>, transform_indices = @transform_2, window_bounds = array<i64: 1, 64>}, {pipeline_mode = #tpu.pipeline_mode<synchronous>, transform_indices = @transform_3, window_bounds = array<i64: 64, 32>}, {pipeline_mode = #tpu.pipeline_mode<synchronous>, transform_indices = @transform_4, window_bounds = array<i64: 1, 32>}, {pipeline_mode = #tpu.pipeline_mode<synchronous>, transform_indices = @transform_5, window_bounds = array<i64: 1, 32>}, {transform_indices = @transform_6, window_bounds = array<i64: 1, 256, 32>}]} {
    %c0 = arith.constant 0 : index
    %c0_0 = arith.constant 0 : index
    %c0_1 = arith.constant 0 : index
    %0 = vector.load %arg2[%c0, %c0_0, %c0_1] : memref<1x256x3xbf16, #tpu.memory_space<vmem>>, vector<1x256x3xbf16>
    %1 = vector.shape_cast %0 : vector<1x256x3xbf16> to vector<256x3xbf16>
    %c0_2 = arith.constant 0 : index
    %c0_3 = arith.constant 0 : index
    %2 = vector.load %arg3[%c0_2, %c0_3] : memref<3x64xbf16, #tpu.memory_space<vmem>>, vector<3x64xbf16>
    %cst = arith.constant dense<0.000000e+00> : vector<256x64xf32>
    %3 = tpu.matmul %1, %2, %cst {dimension_numbers = #tpu.dot_dimension_numbers<[1], [0], [0], [1], [0, 0, 1, 1], [], []>} : vector<256x3xbf16>, vector<3x64xbf16>, vector<256x64xf32> -> vector<256x64xf32>
    %c0_4 = arith.constant 0 : index
    %c0_5 = arith.constant 0 : index
    %4 = vector.load %arg4[%c0_4, %c0_5] : memref<1x64xf32, #tpu.memory_space<vmem>>, vector<1x64xf32>
    %5 = vector.broadcast %4 : vector<1x64xf32> to vector<256x64xf32>
    %6 = arith.addf %3, %5 : vector<256x64xf32>
    %7 = arith.truncf %6 : vector<256x64xf32> to vector<256x64xbf16>
    %c0_6 = arith.constant 0 : index
    %c0_7 = arith.constant 0 : index
    %8 = vector.load %arg5[%c0_6, %c0_7] : memref<64x32xbf16, #tpu.memory_space<vmem>>, vector<64x32xbf16>
    %cst_8 = arith.constant dense<0.000000e+00> : vector<256x32xf32>
    %9 = tpu.matmul %7, %8, %cst_8 {dimension_numbers = #tpu.dot_dimension_numbers<[1], [0], [0], [1], [0, 0, 1, 1], [], []>} : vector<256x64xbf16>, vector<64x32xbf16>, vector<256x32xf32> -> vector<256x32xf32>
    %c0_9 = arith.constant 0 : index
    %c0_10 = arith.constant 0 : index
    %10 = vector.load %arg6[%c0_9, %c0_10] : memref<1x32xf32, #tpu.memory_space<vmem>>, vector<1x32xf32>
    %11 = vector.broadcast %10 : vector<1x32xf32> to vector<256x32xf32>
    %12 = arith.mulf %9, %11 : vector<256x32xf32>
    %c0_11 = arith.constant 0 : index
    %c0_12 = arith.constant 0 : index
    %13 = vector.load %arg7[%c0_11, %c0_12] : memref<1x32xf32, #tpu.memory_space<vmem>>, vector<1x32xf32>
    %14 = vector.broadcast %13 : vector<1x32xf32> to vector<256x32xf32>
    %15 = arith.addf %12, %14 : vector<256x32xf32>
    %cst_13 = arith.constant 0.000000e+00 : f32
    %16 = vector.broadcast %cst_13 : f32 to vector<256x32xf32>
    %17 = arith.maximumf %15, %16 : vector<256x32xf32>
    %18 = arith.truncf %17 : vector<256x32xf32> to vector<256x32xbf16>
    %c0_14 = arith.constant 0 : index
    %c0_15 = arith.constant 0 : index
    %c0_16 = arith.constant 0 : index
    %19 = vector.load %arg8[%c0_14, %c0_15, %c0_16] : memref<1x256x32xbf16, #tpu.memory_space<vmem>>, vector<1x256x32xbf16>
    %20 = vector.shape_cast %19 : vector<1x256x32xbf16> to vector<256x32xbf16>
    %21 = vector.shape_cast %18 : vector<256x32xbf16> to vector<1x256x32xbf16>
    tpu.vector_store %arg8[%c0_14, %c0_15, %c0_16], %21 {strides = array<i32>} : memref<1x256x32xbf16, #tpu.memory_space<vmem>>, vector<1x256x32xbf16>,
    return
  }
  func.func @transform_0(%arg0: i32, %arg1: i32) -> (i32, i32, i32) {
    %c0_i32 = arith.constant 0 : i32
    %c0_i32_0 = arith.constant 0 : i32
    return %arg0, %arg1, %c0_i32 : i32, i32, i32
  }
  func.func @transform_1(%arg0: i32, %arg1: i32) -> (i32, i32) {
    %c0_i32 = arith.constant 0 : i32
    %c0_i32_0 = arith.constant 0 : i32
    %c0_i32_1 = arith.constant 0 : i32
    return %c0_i32, %c0_i32_0 : i32, i32
  }
  func.func @transform_2(%arg0: i32, %arg1: i32) -> (i32, i32) {
    %c0_i32 = arith.constant 0 : i32
    %c0_i32_0 = arith.constant 0 : i32
    %c0_i32_1 = arith.constant 0 : i32
    return %c0_i32, %c0_i32_0 : i32, i32
  }
  func.func @transform_3(%arg0: i32, %arg1: i32) -> (i32, i32) {
    %c0_i32 = arith.constant 0 : i32
    %c0_i32_0 = arith.constant 0 : i32
    %c0_i32_1 = arith.constant 0 : i32
    return %c0_i32, %c0_i32_0 : i32, i32
  }
  func.func @transform_4(%arg0: i32, %arg1: i32) -> (i32, i32) {
    %c0_i32 = arith.constant 0 : i32
    %c0_i32_0 = arith.constant 0 : i32
    %c0_i32_1 = arith.constant 0 : i32
    return %c0_i32, %c0_i32_0 : i32, i32
  }
  func.func @transform_5(%arg0: i32, %arg1: i32) -> (i32, i32) {
    %c0_i32 = arith.constant 0 : i32
    %c0_i32_0 = arith.constant 0 : i32
    %c0_i32_1 = arith.constant 0 : i32
    return %c0_i32, %c0_i32_0 : i32, i32
  }
  func.func @transform_6(%arg0: i32, %arg1: i32) -> (i32, i32, i32) {
    %c0_i32 = arith.constant 0 : i32
    %c0_i32_0 = arith.constant 0 : i32
    return %arg0, %arg1, %c0_i32 : i32, i32, i32
  }
}

module attributes {stable_mosaic.version = 11 : i64} {
  func.func @_ca_kernel(%arg0: i32, %arg1: memref<2x256x32xbf16, #tpu.memory_space<vmem>>, %arg2: memref<32x2xbf16, #tpu.memory_space<vmem>>, %arg3: memref<2x32xbf16, #tpu.memory_space<vmem>>, %arg4: memref<2x32xf32, #tpu.memory_space<vmem>>, %arg5: memref<2x32xf32, #tpu.memory_space<vmem>>, %arg6: memref<2x32xf32, #tpu.memory_space<vmem>>) attributes {dimension_semantics = [#tpu.dimension_semantics<arbitrary>], iteration_bounds = array<i64: 1>, scalar_prefetch = 0 : i64, scratch_operands = 2 : i64, tpu.core_type = #tpu.core_type<tc>, window_params = [{transform_indices = @transform_0, window_bounds = array<i64: 2, 256, 32>}, {pipeline_mode = #tpu.pipeline_mode<synchronous>, transform_indices = @transform_1, window_bounds = array<i64: 32, 2>}, {pipeline_mode = #tpu.pipeline_mode<synchronous>, transform_indices = @transform_2, window_bounds = array<i64: 2, 32>}, {pipeline_mode = #tpu.pipeline_mode<synchronous>, transform_indices = @transform_3, window_bounds = array<i64: 2, 32>}]} {
    %c0_i32 = arith.constant 0 : i32
    %0 = arith.cmpi eq, %arg0, %c0_i32 : i32
    %1 = arith.extui %0 : i1 to i32
    %c0_i32_0 = arith.constant 0 : i32
    %2 = arith.cmpi ne, %1, %c0_i32_0 : i32
    scf.if %2 {
      %cst_14 = arith.constant 0.000000e+00 : f32
      %16 = vector.broadcast %cst_14 : f32 to vector<2x32xf32>
      %c0_15 = arith.constant 0 : index
      %c0_16 = arith.constant 0 : index
      %17 = vector.load %arg5[%c0_15, %c0_16] : memref<2x32xf32, #tpu.memory_space<vmem>>, vector<2x32xf32>
      tpu.vector_store %arg5[%c0_15, %c0_16], %16 {strides = array<i32>} : memref<2x32xf32, #tpu.memory_space<vmem>>, vector<2x32xf32>,
      %cst_17 = arith.constant 0xFF800000 : f32
      %18 = vector.broadcast %cst_17 : f32 to vector<2x32xf32>
      %c0_18 = arith.constant 0 : index
      %c0_19 = arith.constant 0 : index
      %19 = vector.load %arg6[%c0_18, %c0_19] : memref<2x32xf32, #tpu.memory_space<vmem>>, vector<2x32xf32>
      tpu.vector_store %arg6[%c0_18, %c0_19], %18 {strides = array<i32>} : memref<2x32xf32, #tpu.memory_space<vmem>>, vector<2x32xf32>,
    } else {
    }
    %c0 = arith.constant 0 : index
    %c0_1 = arith.constant 0 : index
    %c0_2 = arith.constant 0 : index
    %3 = vector.load %arg1[%c0, %c0_1, %c0_2] : memref<2x256x32xbf16, #tpu.memory_space<vmem>>, vector<2x256x32xbf16>
    %4 = arith.extf %3 : vector<2x256x32xbf16> to vector<2x256x32xf32>
    %c0_3 = arith.constant 0 : index
    %c0_4 = arith.constant 0 : index
    %5 = vector.load %arg5[%c0_3, %c0_4] : memref<2x32xf32, #tpu.memory_space<vmem>>, vector<2x32xf32>
    %cst = arith.constant dense<0.000000e+00> : vector<2x32xf32>
    %6 = vector.multi_reduction <add>, %4, %cst [1] : vector<2x256x32xf32> to vector<2x32xf32>
    %7 = arith.addf %5, %6 : vector<2x32xf32>
    %c0_5 = arith.constant 0 : index
    %c0_6 = arith.constant 0 : index
    %8 = vector.load %arg5[%c0_5, %c0_6] : memref<2x32xf32, #tpu.memory_space<vmem>>, vector<2x32xf32>
    tpu.vector_store %arg5[%c0_5, %c0_6], %7 {strides = array<i32>} : memref<2x32xf32, #tpu.memory_space<vmem>>, vector<2x32xf32>,
    %c0_7 = arith.constant 0 : index
    %c0_8 = arith.constant 0 : index
    %9 = vector.load %arg6[%c0_7, %c0_8] : memref<2x32xf32, #tpu.memory_space<vmem>>, vector<2x32xf32>
    %cst_9 = arith.constant dense<0xFF800000> : vector<2x32xf32>
    %10 = vector.multi_reduction <maximumf>, %4, %cst_9 [1] : vector<2x256x32xf32> to vector<2x32xf32>
    %11 = arith.maximumf %9, %10 : vector<2x32xf32>
    %c0_10 = arith.constant 0 : index
    %c0_11 = arith.constant 0 : index
    %12 = vector.load %arg6[%c0_10, %c0_11] : memref<2x32xf32, #tpu.memory_space<vmem>>, vector<2x32xf32>
    tpu.vector_store %arg6[%c0_10, %c0_11], %11 {strides = array<i32>} : memref<2x32xf32, #tpu.memory_space<vmem>>, vector<2x32xf32>,
    %c0_i32_12 = arith.constant 0 : i32
    %13 = arith.cmpi eq, %arg0, %c0_i32_12 : i32
    %14 = arith.extui %13 : i1 to i32
    %c0_i32_13 = arith.constant 0 : i32
    %15 = arith.cmpi ne, %14, %c0_i32_13 : i32
    scf.if %15 {
      %c0_14 = arith.constant 0 : index
      %c0_15 = arith.constant 0 : index
      %16 = vector.load %arg5[%c0_14, %c0_15] : memref<2x32xf32, #tpu.memory_space<vmem>>, vector<2x32xf32>
      %cst_16 = arith.constant 3.906250e-03 : f32
      %17 = vector.broadcast %cst_16 : f32 to vector<2x32xf32>
      %18 = arith.mulf %16, %17 : vector<2x32xf32>
      %19 = arith.truncf %18 : vector<2x32xf32> to vector<2x32xbf16>
      %c0_17 = arith.constant 0 : index
      %c0_18 = arith.constant 0 : index
      %20 = vector.load %arg6[%c0_17, %c0_18] : memref<2x32xf32, #tpu.memory_space<vmem>>, vector<2x32xf32>
      %21 = arith.truncf %20 : vector<2x32xf32> to vector<2x32xbf16>
      %c0_19 = arith.constant 0 : index
      %c0_20 = arith.constant 0 : index
      %22 = vector.load %arg2[%c0_19, %c0_20] : memref<32x2xbf16, #tpu.memory_space<vmem>>, vector<32x2xbf16>
      %cst_21 = arith.constant dense<0.000000e+00> : vector<2x2xf32>
      %23 = tpu.matmul %19, %22, %cst_21 {dimension_numbers = #tpu.dot_dimension_numbers<[1], [0], [0], [1], [0, 0, 1, 1], [], []>} : vector<2x32xbf16>, vector<32x2xbf16>, vector<2x2xf32> -> vector<2x2xf32>
      %cst_22 = arith.constant 0.000000e+00 : f32
      %24 = vector.broadcast %cst_22 : f32 to vector<2x2xf32>
      %25 = arith.maximumf %23, %24 : vector<2x2xf32>
      %c0_23 = arith.constant 0 : index
      %c0_24 = arith.constant 0 : index
      %26 = vector.load %arg2[%c0_23, %c0_24] : memref<32x2xbf16, #tpu.memory_space<vmem>>, vector<32x2xbf16>
      %cst_25 = arith.constant dense<0.000000e+00> : vector<2x2xf32>
      %27 = tpu.matmul %21, %26, %cst_25 {dimension_numbers = #tpu.dot_dimension_numbers<[1], [0], [0], [1], [0, 0, 1, 1], [], []>} : vector<2x32xbf16>, vector<32x2xbf16>, vector<2x2xf32> -> vector<2x2xf32>
      %cst_26 = arith.constant 0.000000e+00 : f32
      %28 = vector.broadcast %cst_26 : f32 to vector<2x2xf32>
      %29 = arith.maximumf %27, %28 : vector<2x2xf32>
      %30 = arith.truncf %25 : vector<2x2xf32> to vector<2x2xbf16>
      %c0_27 = arith.constant 0 : index
      %c0_28 = arith.constant 0 : index
      %31 = vector.load %arg3[%c0_27, %c0_28] : memref<2x32xbf16, #tpu.memory_space<vmem>>, vector<2x32xbf16>
      %cst_29 = arith.constant dense<0.000000e+00> : vector<2x32xf32>
      %32 = tpu.matmul %30, %31, %cst_29 {dimension_numbers = #tpu.dot_dimension_numbers<[1], [0], [0], [1], [0, 0, 1, 1], [], []>} : vector<2x2xbf16>, vector<2x32xbf16>, vector<2x32xf32> -> vector<2x32xf32>
      %33 = arith.truncf %29 : vector<2x2xf32> to vector<2x2xbf16>
      %c0_30 = arith.constant 0 : index
      %c0_31 = arith.constant 0 : index
      %34 = vector.load %arg3[%c0_30, %c0_31] : memref<2x32xbf16, #tpu.memory_space<vmem>>, vector<2x32xbf16>
      %cst_32 = arith.constant dense<0.000000e+00> : vector<2x32xf32>
      %35 = tpu.matmul %33, %34, %cst_32 {dimension_numbers = #tpu.dot_dimension_numbers<[1], [0], [0], [1], [0, 0, 1, 1], [], []>} : vector<2x2xbf16>, vector<2x32xbf16>, vector<2x32xf32> -> vector<2x32xf32>
      %36 = arith.addf %32, %35 : vector<2x32xf32>
      %37 = arith.negf %36 : vector<2x32xf32>
      %38 = math.exp %37 : vector<2x32xf32>
      %cst_33 = arith.constant 1.000000e+00 : f32
      %39 = vector.broadcast %cst_33 : f32 to vector<2x32xf32>
      %40 = arith.addf %39, %38 : vector<2x32xf32>
      %41 = arith.divf %39, %40 : vector<2x32xf32>
      %c0_34 = arith.constant 0 : index
      %c0_35 = arith.constant 0 : index
      %42 = vector.load %arg4[%c0_34, %c0_35] : memref<2x32xf32, #tpu.memory_space<vmem>>, vector<2x32xf32>
      tpu.vector_store %arg4[%c0_34, %c0_35], %41 {strides = array<i32>} : memref<2x32xf32, #tpu.memory_space<vmem>>, vector<2x32xf32>,
    } else {
    }
    return
  }
  func.func @transform_0(%arg0: i32) -> (i32, i32, i32) {
    %c0_i32 = arith.constant 0 : i32
    %c0_i32_0 = arith.constant 0 : i32
    %c0_i32_1 = arith.constant 0 : i32
    return %c0_i32, %arg0, %c0_i32_0 : i32, i32, i32
  }
  func.func @transform_1(%arg0: i32) -> (i32, i32) {
    %c0_i32 = arith.constant 0 : i32
    %c0_i32_0 = arith.constant 0 : i32
    %c0_i32_1 = arith.constant 0 : i32
    return %c0_i32, %c0_i32_0 : i32, i32
  }
  func.func @transform_2(%arg0: i32) -> (i32, i32) {
    %c0_i32 = arith.constant 0 : i32
    %c0_i32_0 = arith.constant 0 : i32
    %c0_i32_1 = arith.constant 0 : i32
    return %c0_i32, %c0_i32_0 : i32, i32
  }
  func.func @transform_3(%arg0: i32) -> (i32, i32) {
    %c0_i32 = arith.constant 0 : i32
    %c0_i32_0 = arith.constant 0 : i32
    %c0_i32_1 = arith.constant 0 : i32
    return %c0_i32, %c0_i32_0 : i32, i32
  }
}

module attributes {stable_mosaic.version = 11 : i64} {
  func.func @_stats_kernel(%arg0: i32, %arg1: memref<2x256x32xbf16, #tpu.memory_space<vmem>>, %arg2: memref<2x1x32xf32, #tpu.memory_space<vmem>>, %arg3: memref<2x256x2xf32, #tpu.memory_space<vmem>>) attributes {dimension_semantics = [#tpu.dimension_semantics<parallel>], iteration_bounds = array<i64: 1>, scalar_prefetch = 0 : i64, scratch_operands = 0 : i64, tpu.core_type = #tpu.core_type<tc>, window_params = [{transform_indices = @transform_0, window_bounds = array<i64: 2, 256, 32>}, {pipeline_mode = #tpu.pipeline_mode<synchronous>, transform_indices = @transform_1, window_bounds = array<i64: 2, 1, 32>}, {transform_indices = @transform_2, window_bounds = array<i64: 2, 256, 2>}]} {
    %c0 = arith.constant 0 : index
    %c0_0 = arith.constant 0 : index
    %c0_1 = arith.constant 0 : index
    %0 = vector.load %arg1[%c0, %c0_0, %c0_1] : memref<2x256x32xbf16, #tpu.memory_space<vmem>>, vector<2x256x32xbf16>
    %1 = arith.extf %0 : vector<2x256x32xbf16> to vector<2x256x32xf32>
    %c0_2 = arith.constant 0 : index
    %c0_3 = arith.constant 0 : index
    %c0_4 = arith.constant 0 : index
    %2 = vector.load %arg2[%c0_2, %c0_3, %c0_4] : memref<2x1x32xf32, #tpu.memory_space<vmem>>, vector<2x1x32xf32>
    %3 = vector.broadcast %2 : vector<2x1x32xf32> to vector<2x256x32xf32>
    %4 = arith.mulf %1, %3 : vector<2x256x32xf32>
    %cst = arith.constant dense<0.000000e+00> : vector<2x256xf32>
    %5 = vector.multi_reduction <add>, %4, %cst [2] : vector<2x256x32xf32> to vector<2x256xf32>
    %6 = vector.shape_cast %5 : vector<2x256xf32> to vector<2x256x1xf32>
    %cst_5 = arith.constant 3.200000e+01 : f32
    %7 = vector.broadcast %cst_5 : f32 to vector<2x256x1xf32>
    %8 = arith.divf %6, %7 : vector<2x256x1xf32>
    %c0_6 = arith.constant 0 : index
    %c0_7 = arith.constant 0 : index
    %c0_8 = arith.constant 0 : index
    %9 = vector.load %arg3[%c0_6, %c0_7, %c0_8] : memref<2x256x2xf32, #tpu.memory_space<vmem>>, vector<2x256x1xf32>
    tpu.vector_store %arg3[%c0_6, %c0_7, %c0_8], %8 {strides = array<i32>} : memref<2x256x2xf32, #tpu.memory_space<vmem>>, vector<2x256x1xf32>,
    %cst_9 = arith.constant dense<0xFF800000> : vector<2x256xf32>
    %10 = vector.multi_reduction <maximumf>, %4, %cst_9 [2] : vector<2x256x32xf32> to vector<2x256xf32>
    %11 = vector.shape_cast %10 : vector<2x256xf32> to vector<2x256x1xf32>
    %c0_10 = arith.constant 0 : index
    %c0_11 = arith.constant 0 : index
    %c1 = arith.constant 1 : index
    %12 = vector.load %arg3[%c0_10, %c0_11, %c1] : memref<2x256x2xf32, #tpu.memory_space<vmem>>, vector<2x256x1xf32>
    tpu.vector_store %arg3[%c0_10, %c0_11, %c1], %11 {strides = array<i32>} : memref<2x256x2xf32, #tpu.memory_space<vmem>>, vector<2x256x1xf32>,
    return
  }
  func.func @transform_0(%arg0: i32) -> (i32, i32, i32) {
    %c0_i32 = arith.constant 0 : i32
    %c0_i32_0 = arith.constant 0 : i32
    %c0_i32_1 = arith.constant 0 : i32
    return %c0_i32, %arg0, %c0_i32_0 : i32, i32, i32
  }
  func.func @transform_1(%arg0: i32) -> (i32, i32, i32) {
    %c0_i32 = arith.constant 0 : i32
    %c0_i32_0 = arith.constant 0 : i32
    %c0_i32_1 = arith.constant 0 : i32
    %c0_i32_2 = arith.constant 0 : i32
    return %c0_i32, %c0_i32_0, %c0_i32_1 : i32, i32, i32
  }
  func.func @transform_2(%arg0: i32) -> (i32, i32, i32) {
    %c0_i32 = arith.constant 0 : i32
    %c0_i32_0 = arith.constant 0 : i32
    %c0_i32_1 = arith.constant 0 : i32
    return %c0_i32, %arg0, %c0_i32_0 : i32, i32, i32
  }
}

module attributes {stable_mosaic.version = 11 : i64} {
  func.func @_lateral_kernel(%arg0: i32, %arg1: i32, %arg2: memref<1x256x32xbf16, #tpu.memory_space<vmem>>, %arg3: memref<1x1x32xf32, #tpu.memory_space<vmem>>, %arg4: memref<1x256x1xf32, #tpu.memory_space<vmem>>, %arg5: memref<1x32xf32, #tpu.memory_space<vmem>>, %arg6: memref<1x32xf32, #tpu.memory_space<vmem>>, %arg7: memref<32x64xbf16, #tpu.memory_space<vmem>>, %arg8: memref<1x64xf32, #tpu.memory_space<vmem>>, %arg9: memref<1x256x64xf32, #tpu.memory_space<vmem>>) attributes {dimension_semantics = [#tpu.dimension_semantics<parallel>, #tpu.dimension_semantics<parallel>], iteration_bounds = array<i64: 2, 1>, scalar_prefetch = 0 : i64, scratch_operands = 0 : i64, tpu.core_type = #tpu.core_type<tc>, window_params = [{transform_indices = @transform_0, window_bounds = array<i64: 1, 256, 32>}, {transform_indices = @transform_1, window_bounds = array<i64: 1, 1, 32>}, {transform_indices = @transform_2, window_bounds = array<i64: 1, 256, 1>}, {pipeline_mode = #tpu.pipeline_mode<synchronous>, transform_indices = @transform_3, window_bounds = array<i64: 1, 32>}, {pipeline_mode = #tpu.pipeline_mode<synchronous>, transform_indices = @transform_4, window_bounds = array<i64: 1, 32>}, {pipeline_mode = #tpu.pipeline_mode<synchronous>, transform_indices = @transform_5, window_bounds = array<i64: 32, 64>}, {pipeline_mode = #tpu.pipeline_mode<synchronous>, transform_indices = @transform_6, window_bounds = array<i64: 1, 64>}, {transform_indices = @transform_7, window_bounds = array<i64: 1, 256, 64>}]} {
    %c0 = arith.constant 0 : index
    %c0_0 = arith.constant 0 : index
    %c0_1 = arith.constant 0 : index
    %0 = vector.load %arg2[%c0, %c0_0, %c0_1] : memref<1x256x32xbf16, #tpu.memory_space<vmem>>, vector<1x256x32xbf16>
    %1 = vector.shape_cast %0 : vector<1x256x32xbf16> to vector<256x32xbf16>
    %2 = arith.extf %1 : vector<256x32xbf16> to vector<256x32xf32>
    %c0_2 = arith.constant 0 : index
    %c0_3 = arith.constant 0 : index
    %c0_4 = arith.constant 0 : index
    %3 = vector.load %arg3[%c0_2, %c0_3, %c0_4] : memref<1x1x32xf32, #tpu.memory_space<vmem>>, vector<1x1x32xf32>
    %4 = vector.shape_cast %3 : vector<1x1x32xf32> to vector<1x32xf32>
    %5 = vector.broadcast %4 : vector<1x32xf32> to vector<256x32xf32>
    %6 = arith.mulf %2, %5 : vector<256x32xf32>
    %c0_5 = arith.constant 0 : index
    %c0_6 = arith.constant 0 : index
    %c0_7 = arith.constant 0 : index
    %7 = vector.load %arg4[%c0_5, %c0_6, %c0_7] : memref<1x256x1xf32, #tpu.memory_space<vmem>>, vector<1x256x1xf32>
    %8 = vector.shape_cast %7 : vector<1x256x1xf32> to vector<256x1xf32>
    %9 = vector.broadcast %8 : vector<256x1xf32> to vector<256x32xf32>
    %10 = arith.mulf %6, %9 : vector<256x32xf32>
    %c0_8 = arith.constant 0 : index
    %c0_9 = arith.constant 0 : index
    %11 = vector.load %arg5[%c0_8, %c0_9] : memref<1x32xf32, #tpu.memory_space<vmem>>, vector<1x32xf32>
    %12 = vector.broadcast %11 : vector<1x32xf32> to vector<256x32xf32>
    %13 = arith.mulf %10, %12 : vector<256x32xf32>
    %c0_10 = arith.constant 0 : index
    %c0_11 = arith.constant 0 : index
    %14 = vector.load %arg6[%c0_10, %c0_11] : memref<1x32xf32, #tpu.memory_space<vmem>>, vector<1x32xf32>
    %15 = vector.broadcast %14 : vector<1x32xf32> to vector<256x32xf32>
    %16 = arith.addf %13, %15 : vector<256x32xf32>
    %17 = arith.truncf %16 : vector<256x32xf32> to vector<256x32xbf16>
    %c0_12 = arith.constant 0 : index
    %c0_13 = arith.constant 0 : index
    %18 = vector.load %arg7[%c0_12, %c0_13] : memref<32x64xbf16, #tpu.memory_space<vmem>>, vector<32x64xbf16>
    %cst = arith.constant dense<0.000000e+00> : vector<256x64xf32>
    %19 = tpu.matmul %17, %18, %cst {dimension_numbers = #tpu.dot_dimension_numbers<[1], [0], [0], [1], [0, 0, 1, 1], [], []>} : vector<256x32xbf16>, vector<32x64xbf16>, vector<256x64xf32> -> vector<256x64xf32>
    %c0_14 = arith.constant 0 : index
    %c0_15 = arith.constant 0 : index
    %20 = vector.load %arg8[%c0_14, %c0_15] : memref<1x64xf32, #tpu.memory_space<vmem>>, vector<1x64xf32>
    %21 = vector.broadcast %20 : vector<1x64xf32> to vector<256x64xf32>
    %22 = arith.addf %19, %21 : vector<256x64xf32>
    %c0_16 = arith.constant 0 : index
    %c0_17 = arith.constant 0 : index
    %c0_18 = arith.constant 0 : index
    %23 = vector.load %arg9[%c0_16, %c0_17, %c0_18] : memref<1x256x64xf32, #tpu.memory_space<vmem>>, vector<1x256x64xf32>
    %24 = vector.shape_cast %23 : vector<1x256x64xf32> to vector<256x64xf32>
    %25 = vector.shape_cast %22 : vector<256x64xf32> to vector<1x256x64xf32>
    tpu.vector_store %arg9[%c0_16, %c0_17, %c0_18], %25 {strides = array<i32>} : memref<1x256x64xf32, #tpu.memory_space<vmem>>, vector<1x256x64xf32>,
    return
  }
  func.func @transform_0(%arg0: i32, %arg1: i32) -> (i32, i32, i32) {
    %c0_i32 = arith.constant 0 : i32
    %c0_i32_0 = arith.constant 0 : i32
    return %arg0, %arg1, %c0_i32 : i32, i32, i32
  }
  func.func @transform_1(%arg0: i32, %arg1: i32) -> (i32, i32, i32) {
    %c0_i32 = arith.constant 0 : i32
    %c0_i32_0 = arith.constant 0 : i32
    %c0_i32_1 = arith.constant 0 : i32
    return %arg0, %c0_i32, %c0_i32_0 : i32, i32, i32
  }
  func.func @transform_2(%arg0: i32, %arg1: i32) -> (i32, i32, i32) {
    %c0_i32 = arith.constant 0 : i32
    %c0_i32_0 = arith.constant 0 : i32
    return %arg0, %arg1, %c0_i32 : i32, i32, i32
  }
  func.func @transform_3(%arg0: i32, %arg1: i32) -> (i32, i32) {
    %c0_i32 = arith.constant 0 : i32
    %c0_i32_0 = arith.constant 0 : i32
    %c0_i32_1 = arith.constant 0 : i32
    return %c0_i32, %c0_i32_0 : i32, i32
  }
  func.func @transform_4(%arg0: i32, %arg1: i32) -> (i32, i32) {
    %c0_i32 = arith.constant 0 : i32
    %c0_i32_0 = arith.constant 0 : i32
    %c0_i32_1 = arith.constant 0 : i32
    return %c0_i32, %c0_i32_0 : i32, i32
  }
  func.func @transform_5(%arg0: i32, %arg1: i32) -> (i32, i32) {
    %c0_i32 = arith.constant 0 : i32
    %c0_i32_0 = arith.constant 0 : i32
    %c0_i32_1 = arith.constant 0 : i32
    return %c0_i32, %c0_i32_0 : i32, i32
  }
  func.func @transform_6(%arg0: i32, %arg1: i32) -> (i32, i32) {
    %c0_i32 = arith.constant 0 : i32
    %c0_i32_0 = arith.constant 0 : i32
    %c0_i32_1 = arith.constant 0 : i32
    return %c0_i32, %c0_i32_0 : i32, i32
  }
  func.func @transform_7(%arg0: i32, %arg1: i32) -> (i32, i32, i32) {
    %c0_i32 = arith.constant 0 : i32
    %c0_i32_0 = arith.constant 0 : i32
    return %arg0, %arg1, %c0_i32 : i32, i32, i32
  }
}

module attributes {stable_mosaic.version = 11 : i64} {
  func.func @_sa_kernel(%arg0: i32, %arg1: memref<2x98x256xf32, #tpu.memory_space<vmem>>, %arg2: memref<1x98x1xf32, #tpu.memory_space<vmem>>, %arg3: memref<2x256xf32, #tpu.memory_space<vmem>>) attributes {dimension_semantics = [#tpu.dimension_semantics<parallel>], iteration_bounds = array<i64: 1>, scalar_prefetch = 0 : i64, scratch_operands = 0 : i64, tpu.core_type = #tpu.core_type<tc>, window_params = [{transform_indices = @transform_0, window_bounds = array<i64: 2, 98, 256>}, {pipeline_mode = #tpu.pipeline_mode<synchronous>, transform_indices = @transform_1, window_bounds = array<i64: 1, 98, 1>}, {transform_indices = @transform_2, window_bounds = array<i64: 2, 256>}]} {
    %c0 = arith.constant 0 : index
    %c0_0 = arith.constant 0 : index
    %c0_1 = arith.constant 0 : index
    %0 = vector.load %arg1[%c0, %c0_0, %c0_1] : memref<2x98x256xf32, #tpu.memory_space<vmem>>, vector<2x98x256xf32>
    %c0_2 = arith.constant 0 : index
    %c0_3 = arith.constant 0 : index
    %c0_4 = arith.constant 0 : index
    %1 = vector.load %arg2[%c0_2, %c0_3, %c0_4] : memref<1x98x1xf32, #tpu.memory_space<vmem>>, vector<1x98x1xf32>
    %2 = vector.broadcast %1 : vector<1x98x1xf32> to vector<2x98x256xf32>
    %3 = arith.mulf %0, %2 : vector<2x98x256xf32>
    %cst = arith.constant dense<0.000000e+00> : vector<2x256xf32>
    %4 = vector.multi_reduction <add>, %3, %cst [1] : vector<2x98x256xf32> to vector<2x256xf32>
    %5 = arith.negf %4 : vector<2x256xf32>
    %6 = math.exp %5 : vector<2x256xf32>
    %cst_5 = arith.constant 1.000000e+00 : f32
    %7 = vector.broadcast %cst_5 : f32 to vector<2x256xf32>
    %8 = arith.addf %7, %6 : vector<2x256xf32>
    %9 = arith.divf %7, %8 : vector<2x256xf32>
    %c0_6 = arith.constant 0 : index
    %c0_7 = arith.constant 0 : index
    %10 = vector.load %arg3[%c0_6, %c0_7] : memref<2x256xf32, #tpu.memory_space<vmem>>, vector<2x256xf32>
    tpu.vector_store %arg3[%c0_6, %c0_7], %9 {strides = array<i32>} : memref<2x256xf32, #tpu.memory_space<vmem>>, vector<2x256xf32>,
    return
  }
  func.func @transform_0(%arg0: i32) -> (i32, i32, i32) {
    %c0_i32 = arith.constant 0 : i32
    %c0_i32_0 = arith.constant 0 : i32
    %c0_i32_1 = arith.constant 0 : i32
    return %c0_i32, %c0_i32_0, %arg0 : i32, i32, i32
  }
  func.func @transform_1(%arg0: i32) -> (i32, i32, i32) {
    %c0_i32 = arith.constant 0 : i32
    %c0_i32_0 = arith.constant 0 : i32
    %c0_i32_1 = arith.constant 0 : i32
    %c0_i32_2 = arith.constant 0 : i32
    return %c0_i32, %c0_i32_0, %c0_i32_1 : i32, i32, i32
  }
  func.func @transform_2(%arg0: i32) -> (i32, i32) {
    %c0_i32 = arith.constant 0 : i32
    %c0_i32_0 = arith.constant 0 : i32
    return %c0_i32, %arg0 : i32, i32
  }
}

module attributes {stable_mosaic.version = 11 : i64} {
  func.func @_stage_in_kernel(%arg0: i32, %arg1: i32, %arg2: memref<1x64x3xbf16, #tpu.memory_space<vmem>>, %arg3: memref<3x128xbf16, #tpu.memory_space<vmem>>, %arg4: memref<1x128xf32, #tpu.memory_space<vmem>>, %arg5: memref<128x64xbf16, #tpu.memory_space<vmem>>, %arg6: memref<1x64xf32, #tpu.memory_space<vmem>>, %arg7: memref<1x64xf32, #tpu.memory_space<vmem>>, %arg8: memref<1x64x64xbf16, #tpu.memory_space<vmem>>) attributes {dimension_semantics = [#tpu.dimension_semantics<parallel>, #tpu.dimension_semantics<parallel>], iteration_bounds = array<i64: 2, 1>, scalar_prefetch = 0 : i64, scratch_operands = 0 : i64, tpu.core_type = #tpu.core_type<tc>, window_params = [{transform_indices = @transform_0, window_bounds = array<i64: 1, 64, 3>}, {pipeline_mode = #tpu.pipeline_mode<synchronous>, transform_indices = @transform_1, window_bounds = array<i64: 3, 128>}, {pipeline_mode = #tpu.pipeline_mode<synchronous>, transform_indices = @transform_2, window_bounds = array<i64: 1, 128>}, {pipeline_mode = #tpu.pipeline_mode<synchronous>, transform_indices = @transform_3, window_bounds = array<i64: 128, 64>}, {pipeline_mode = #tpu.pipeline_mode<synchronous>, transform_indices = @transform_4, window_bounds = array<i64: 1, 64>}, {pipeline_mode = #tpu.pipeline_mode<synchronous>, transform_indices = @transform_5, window_bounds = array<i64: 1, 64>}, {transform_indices = @transform_6, window_bounds = array<i64: 1, 64, 64>}]} {
    %c0 = arith.constant 0 : index
    %c0_0 = arith.constant 0 : index
    %c0_1 = arith.constant 0 : index
    %0 = vector.load %arg2[%c0, %c0_0, %c0_1] : memref<1x64x3xbf16, #tpu.memory_space<vmem>>, vector<1x64x3xbf16>
    %1 = vector.shape_cast %0 : vector<1x64x3xbf16> to vector<64x3xbf16>
    %c0_2 = arith.constant 0 : index
    %c0_3 = arith.constant 0 : index
    %2 = vector.load %arg3[%c0_2, %c0_3] : memref<3x128xbf16, #tpu.memory_space<vmem>>, vector<3x128xbf16>
    %cst = arith.constant dense<0.000000e+00> : vector<64x128xf32>
    %3 = tpu.matmul %1, %2, %cst {dimension_numbers = #tpu.dot_dimension_numbers<[1], [0], [0], [1], [0, 0, 1, 1], [], []>} : vector<64x3xbf16>, vector<3x128xbf16>, vector<64x128xf32> -> vector<64x128xf32>
    %c0_4 = arith.constant 0 : index
    %c0_5 = arith.constant 0 : index
    %4 = vector.load %arg4[%c0_4, %c0_5] : memref<1x128xf32, #tpu.memory_space<vmem>>, vector<1x128xf32>
    %5 = vector.broadcast %4 : vector<1x128xf32> to vector<64x128xf32>
    %6 = arith.addf %3, %5 : vector<64x128xf32>
    %7 = arith.truncf %6 : vector<64x128xf32> to vector<64x128xbf16>
    %c0_6 = arith.constant 0 : index
    %c0_7 = arith.constant 0 : index
    %8 = vector.load %arg5[%c0_6, %c0_7] : memref<128x64xbf16, #tpu.memory_space<vmem>>, vector<128x64xbf16>
    %cst_8 = arith.constant dense<0.000000e+00> : vector<64x64xf32>
    %9 = tpu.matmul %7, %8, %cst_8 {dimension_numbers = #tpu.dot_dimension_numbers<[1], [0], [0], [1], [0, 0, 1, 1], [], []>} : vector<64x128xbf16>, vector<128x64xbf16>, vector<64x64xf32> -> vector<64x64xf32>
    %c0_9 = arith.constant 0 : index
    %c0_10 = arith.constant 0 : index
    %10 = vector.load %arg6[%c0_9, %c0_10] : memref<1x64xf32, #tpu.memory_space<vmem>>, vector<1x64xf32>
    %11 = vector.broadcast %10 : vector<1x64xf32> to vector<64x64xf32>
    %12 = arith.mulf %9, %11 : vector<64x64xf32>
    %c0_11 = arith.constant 0 : index
    %c0_12 = arith.constant 0 : index
    %13 = vector.load %arg7[%c0_11, %c0_12] : memref<1x64xf32, #tpu.memory_space<vmem>>, vector<1x64xf32>
    %14 = vector.broadcast %13 : vector<1x64xf32> to vector<64x64xf32>
    %15 = arith.addf %12, %14 : vector<64x64xf32>
    %cst_13 = arith.constant 0.000000e+00 : f32
    %16 = vector.broadcast %cst_13 : f32 to vector<64x64xf32>
    %17 = arith.maximumf %15, %16 : vector<64x64xf32>
    %18 = arith.truncf %17 : vector<64x64xf32> to vector<64x64xbf16>
    %c0_14 = arith.constant 0 : index
    %c0_15 = arith.constant 0 : index
    %c0_16 = arith.constant 0 : index
    %19 = vector.load %arg8[%c0_14, %c0_15, %c0_16] : memref<1x64x64xbf16, #tpu.memory_space<vmem>>, vector<1x64x64xbf16>
    %20 = vector.shape_cast %19 : vector<1x64x64xbf16> to vector<64x64xbf16>
    %21 = vector.shape_cast %18 : vector<64x64xbf16> to vector<1x64x64xbf16>
    tpu.vector_store %arg8[%c0_14, %c0_15, %c0_16], %21 {strides = array<i32>} : memref<1x64x64xbf16, #tpu.memory_space<vmem>>, vector<1x64x64xbf16>,
    return
  }
  func.func @transform_0(%arg0: i32, %arg1: i32) -> (i32, i32, i32) {
    %c0_i32 = arith.constant 0 : i32
    %c0_i32_0 = arith.constant 0 : i32
    return %arg0, %arg1, %c0_i32 : i32, i32, i32
  }
  func.func @transform_1(%arg0: i32, %arg1: i32) -> (i32, i32) {
    %c0_i32 = arith.constant 0 : i32
    %c0_i32_0 = arith.constant 0 : i32
    %c0_i32_1 = arith.constant 0 : i32
    return %c0_i32, %c0_i32_0 : i32, i32
  }
  func.func @transform_2(%arg0: i32, %arg1: i32) -> (i32, i32) {
    %c0_i32 = arith.constant 0 : i32
    %c0_i32_0 = arith.constant 0 : i32
    %c0_i32_1 = arith.constant 0 : i32
    return %c0_i32, %c0_i32_0 : i32, i32
  }
  func.func @transform_3(%arg0: i32, %arg1: i32) -> (i32, i32) {
    %c0_i32 = arith.constant 0 : i32
    %c0_i32_0 = arith.constant 0 : i32
    %c0_i32_1 = arith.constant 0 : i32
    return %c0_i32, %c0_i32_0 : i32, i32
  }
  func.func @transform_4(%arg0: i32, %arg1: i32) -> (i32, i32) {
    %c0_i32 = arith.constant 0 : i32
    %c0_i32_0 = arith.constant 0 : i32
    %c0_i32_1 = arith.constant 0 : i32
    return %c0_i32, %c0_i32_0 : i32, i32
  }
  func.func @transform_5(%arg0: i32, %arg1: i32) -> (i32, i32) {
    %c0_i32 = arith.constant 0 : i32
    %c0_i32_0 = arith.constant 0 : i32
    %c0_i32_1 = arith.constant 0 : i32
    return %c0_i32, %c0_i32_0 : i32, i32
  }
  func.func @transform_6(%arg0: i32, %arg1: i32) -> (i32, i32, i32) {
    %c0_i32 = arith.constant 0 : i32
    %c0_i32_0 = arith.constant 0 : i32
    return %arg0, %arg1, %c0_i32 : i32, i32, i32
  }
}

module attributes {stable_mosaic.version = 11 : i64} {
  func.func @_ca_kernel(%arg0: i32, %arg1: memref<2x64x64xbf16, #tpu.memory_space<vmem>>, %arg2: memref<64x4xbf16, #tpu.memory_space<vmem>>, %arg3: memref<4x64xbf16, #tpu.memory_space<vmem>>, %arg4: memref<2x64xf32, #tpu.memory_space<vmem>>, %arg5: memref<2x64xf32, #tpu.memory_space<vmem>>, %arg6: memref<2x64xf32, #tpu.memory_space<vmem>>) attributes {dimension_semantics = [#tpu.dimension_semantics<arbitrary>], iteration_bounds = array<i64: 1>, scalar_prefetch = 0 : i64, scratch_operands = 2 : i64, tpu.core_type = #tpu.core_type<tc>, window_params = [{transform_indices = @transform_0, window_bounds = array<i64: 2, 64, 64>}, {pipeline_mode = #tpu.pipeline_mode<synchronous>, transform_indices = @transform_1, window_bounds = array<i64: 64, 4>}, {pipeline_mode = #tpu.pipeline_mode<synchronous>, transform_indices = @transform_2, window_bounds = array<i64: 4, 64>}, {pipeline_mode = #tpu.pipeline_mode<synchronous>, transform_indices = @transform_3, window_bounds = array<i64: 2, 64>}]} {
    %c0_i32 = arith.constant 0 : i32
    %0 = arith.cmpi eq, %arg0, %c0_i32 : i32
    %1 = arith.extui %0 : i1 to i32
    %c0_i32_0 = arith.constant 0 : i32
    %2 = arith.cmpi ne, %1, %c0_i32_0 : i32
    scf.if %2 {
      %cst_14 = arith.constant 0.000000e+00 : f32
      %16 = vector.broadcast %cst_14 : f32 to vector<2x64xf32>
      %c0_15 = arith.constant 0 : index
      %c0_16 = arith.constant 0 : index
      %17 = vector.load %arg5[%c0_15, %c0_16] : memref<2x64xf32, #tpu.memory_space<vmem>>, vector<2x64xf32>
      tpu.vector_store %arg5[%c0_15, %c0_16], %16 {strides = array<i32>} : memref<2x64xf32, #tpu.memory_space<vmem>>, vector<2x64xf32>,
      %cst_17 = arith.constant 0xFF800000 : f32
      %18 = vector.broadcast %cst_17 : f32 to vector<2x64xf32>
      %c0_18 = arith.constant 0 : index
      %c0_19 = arith.constant 0 : index
      %19 = vector.load %arg6[%c0_18, %c0_19] : memref<2x64xf32, #tpu.memory_space<vmem>>, vector<2x64xf32>
      tpu.vector_store %arg6[%c0_18, %c0_19], %18 {strides = array<i32>} : memref<2x64xf32, #tpu.memory_space<vmem>>, vector<2x64xf32>,
    } else {
    }
    %c0 = arith.constant 0 : index
    %c0_1 = arith.constant 0 : index
    %c0_2 = arith.constant 0 : index
    %3 = vector.load %arg1[%c0, %c0_1, %c0_2] : memref<2x64x64xbf16, #tpu.memory_space<vmem>>, vector<2x64x64xbf16>
    %4 = arith.extf %3 : vector<2x64x64xbf16> to vector<2x64x64xf32>
    %c0_3 = arith.constant 0 : index
    %c0_4 = arith.constant 0 : index
    %5 = vector.load %arg5[%c0_3, %c0_4] : memref<2x64xf32, #tpu.memory_space<vmem>>, vector<2x64xf32>
    %cst = arith.constant dense<0.000000e+00> : vector<2x64xf32>
    %6 = vector.multi_reduction <add>, %4, %cst [1] : vector<2x64x64xf32> to vector<2x64xf32>
    %7 = arith.addf %5, %6 : vector<2x64xf32>
    %c0_5 = arith.constant 0 : index
    %c0_6 = arith.constant 0 : index
    %8 = vector.load %arg5[%c0_5, %c0_6] : memref<2x64xf32, #tpu.memory_space<vmem>>, vector<2x64xf32>
    tpu.vector_store %arg5[%c0_5, %c0_6], %7 {strides = array<i32>} : memref<2x64xf32, #tpu.memory_space<vmem>>, vector<2x64xf32>,
    %c0_7 = arith.constant 0 : index
    %c0_8 = arith.constant 0 : index
    %9 = vector.load %arg6[%c0_7, %c0_8] : memref<2x64xf32, #tpu.memory_space<vmem>>, vector<2x64xf32>
    %cst_9 = arith.constant dense<0xFF800000> : vector<2x64xf32>
    %10 = vector.multi_reduction <maximumf>, %4, %cst_9 [1] : vector<2x64x64xf32> to vector<2x64xf32>
    %11 = arith.maximumf %9, %10 : vector<2x64xf32>
    %c0_10 = arith.constant 0 : index
    %c0_11 = arith.constant 0 : index
    %12 = vector.load %arg6[%c0_10, %c0_11] : memref<2x64xf32, #tpu.memory_space<vmem>>, vector<2x64xf32>
    tpu.vector_store %arg6[%c0_10, %c0_11], %11 {strides = array<i32>} : memref<2x64xf32, #tpu.memory_space<vmem>>, vector<2x64xf32>,
    %c0_i32_12 = arith.constant 0 : i32
    %13 = arith.cmpi eq, %arg0, %c0_i32_12 : i32
    %14 = arith.extui %13 : i1 to i32
    %c0_i32_13 = arith.constant 0 : i32
    %15 = arith.cmpi ne, %14, %c0_i32_13 : i32
    scf.if %15 {
      %c0_14 = arith.constant 0 : index
      %c0_15 = arith.constant 0 : index
      %16 = vector.load %arg5[%c0_14, %c0_15] : memref<2x64xf32, #tpu.memory_space<vmem>>, vector<2x64xf32>
      %cst_16 = arith.constant 1.562500e-02 : f32
      %17 = vector.broadcast %cst_16 : f32 to vector<2x64xf32>
      %18 = arith.mulf %16, %17 : vector<2x64xf32>
      %19 = arith.truncf %18 : vector<2x64xf32> to vector<2x64xbf16>
      %c0_17 = arith.constant 0 : index
      %c0_18 = arith.constant 0 : index
      %20 = vector.load %arg6[%c0_17, %c0_18] : memref<2x64xf32, #tpu.memory_space<vmem>>, vector<2x64xf32>
      %21 = arith.truncf %20 : vector<2x64xf32> to vector<2x64xbf16>
      %c0_19 = arith.constant 0 : index
      %c0_20 = arith.constant 0 : index
      %22 = vector.load %arg2[%c0_19, %c0_20] : memref<64x4xbf16, #tpu.memory_space<vmem>>, vector<64x4xbf16>
      %cst_21 = arith.constant dense<0.000000e+00> : vector<2x4xf32>
      %23 = tpu.matmul %19, %22, %cst_21 {dimension_numbers = #tpu.dot_dimension_numbers<[1], [0], [0], [1], [0, 0, 1, 1], [], []>} : vector<2x64xbf16>, vector<64x4xbf16>, vector<2x4xf32> -> vector<2x4xf32>
      %cst_22 = arith.constant 0.000000e+00 : f32
      %24 = vector.broadcast %cst_22 : f32 to vector<2x4xf32>
      %25 = arith.maximumf %23, %24 : vector<2x4xf32>
      %c0_23 = arith.constant 0 : index
      %c0_24 = arith.constant 0 : index
      %26 = vector.load %arg2[%c0_23, %c0_24] : memref<64x4xbf16, #tpu.memory_space<vmem>>, vector<64x4xbf16>
      %cst_25 = arith.constant dense<0.000000e+00> : vector<2x4xf32>
      %27 = tpu.matmul %21, %26, %cst_25 {dimension_numbers = #tpu.dot_dimension_numbers<[1], [0], [0], [1], [0, 0, 1, 1], [], []>} : vector<2x64xbf16>, vector<64x4xbf16>, vector<2x4xf32> -> vector<2x4xf32>
      %cst_26 = arith.constant 0.000000e+00 : f32
      %28 = vector.broadcast %cst_26 : f32 to vector<2x4xf32>
      %29 = arith.maximumf %27, %28 : vector<2x4xf32>
      %30 = arith.truncf %25 : vector<2x4xf32> to vector<2x4xbf16>
      %c0_27 = arith.constant 0 : index
      %c0_28 = arith.constant 0 : index
      %31 = vector.load %arg3[%c0_27, %c0_28] : memref<4x64xbf16, #tpu.memory_space<vmem>>, vector<4x64xbf16>
      %cst_29 = arith.constant dense<0.000000e+00> : vector<2x64xf32>
      %32 = tpu.matmul %30, %31, %cst_29 {dimension_numbers = #tpu.dot_dimension_numbers<[1], [0], [0], [1], [0, 0, 1, 1], [], []>} : vector<2x4xbf16>, vector<4x64xbf16>, vector<2x64xf32> -> vector<2x64xf32>
      %33 = arith.truncf %29 : vector<2x4xf32> to vector<2x4xbf16>
      %c0_30 = arith.constant 0 : index
      %c0_31 = arith.constant 0 : index
      %34 = vector.load %arg3[%c0_30, %c0_31] : memref<4x64xbf16, #tpu.memory_space<vmem>>, vector<4x64xbf16>
      %cst_32 = arith.constant dense<0.000000e+00> : vector<2x64xf32>
      %35 = tpu.matmul %33, %34, %cst_32 {dimension_numbers = #tpu.dot_dimension_numbers<[1], [0], [0], [1], [0, 0, 1, 1], [], []>} : vector<2x4xbf16>, vector<4x64xbf16>, vector<2x64xf32> -> vector<2x64xf32>
      %36 = arith.addf %32, %35 : vector<2x64xf32>
      %37 = arith.negf %36 : vector<2x64xf32>
      %38 = math.exp %37 : vector<2x64xf32>
      %cst_33 = arith.constant 1.000000e+00 : f32
      %39 = vector.broadcast %cst_33 : f32 to vector<2x64xf32>
      %40 = arith.addf %39, %38 : vector<2x64xf32>
      %41 = arith.divf %39, %40 : vector<2x64xf32>
      %c0_34 = arith.constant 0 : index
      %c0_35 = arith.constant 0 : index
      %42 = vector.load %arg4[%c0_34, %c0_35] : memref<2x64xf32, #tpu.memory_space<vmem>>, vector<2x64xf32>
      tpu.vector_store %arg4[%c0_34, %c0_35], %41 {strides = array<i32>} : memref<2x64xf32, #tpu.memory_space<vmem>>, vector<2x64xf32>,
    } else {
    }
    return
  }
  func.func @transform_0(%arg0: i32) -> (i32, i32, i32) {
    %c0_i32 = arith.constant 0 : i32
    %c0_i32_0 = arith.constant 0 : i32
    %c0_i32_1 = arith.constant 0 : i32
    return %c0_i32, %arg0, %c0_i32_0 : i32, i32, i32
  }
  func.func @transform_1(%arg0: i32) -> (i32, i32) {
    %c0_i32 = arith.constant 0 : i32
    %c0_i32_0 = arith.constant 0 : i32
    %c0_i32_1 = arith.constant 0 : i32
    return %c0_i32, %c0_i32_0 : i32, i32
  }
  func.func @transform_2(%arg0: i32) -> (i32, i32) {
    %c0_i32 = arith.constant 0 : i32
    %c0_i32_0 = arith.constant 0 : i32
    %c0_i32_1 = arith.constant 0 : i32
    return %c0_i32, %c0_i32_0 : i32, i32
  }
  func.func @transform_3(%arg0: i32) -> (i32, i32) {
    %c0_i32 = arith.constant 0 : i32
    %c0_i32_0 = arith.constant 0 : i32
    %c0_i32_1 = arith.constant 0 : i32
    return %c0_i32, %c0_i32_0 : i32, i32
  }
}

module attributes {stable_mosaic.version = 11 : i64} {
  func.func @_stats_kernel(%arg0: i32, %arg1: memref<2x64x64xbf16, #tpu.memory_space<vmem>>, %arg2: memref<2x1x64xf32, #tpu.memory_space<vmem>>, %arg3: memref<2x64x2xf32, #tpu.memory_space<vmem>>) attributes {dimension_semantics = [#tpu.dimension_semantics<parallel>], iteration_bounds = array<i64: 1>, scalar_prefetch = 0 : i64, scratch_operands = 0 : i64, tpu.core_type = #tpu.core_type<tc>, window_params = [{transform_indices = @transform_0, window_bounds = array<i64: 2, 64, 64>}, {pipeline_mode = #tpu.pipeline_mode<synchronous>, transform_indices = @transform_1, window_bounds = array<i64: 2, 1, 64>}, {transform_indices = @transform_2, window_bounds = array<i64: 2, 64, 2>}]} {
    %c0 = arith.constant 0 : index
    %c0_0 = arith.constant 0 : index
    %c0_1 = arith.constant 0 : index
    %0 = vector.load %arg1[%c0, %c0_0, %c0_1] : memref<2x64x64xbf16, #tpu.memory_space<vmem>>, vector<2x64x64xbf16>
    %1 = arith.extf %0 : vector<2x64x64xbf16> to vector<2x64x64xf32>
    %c0_2 = arith.constant 0 : index
    %c0_3 = arith.constant 0 : index
    %c0_4 = arith.constant 0 : index
    %2 = vector.load %arg2[%c0_2, %c0_3, %c0_4] : memref<2x1x64xf32, #tpu.memory_space<vmem>>, vector<2x1x64xf32>
    %3 = vector.broadcast %2 : vector<2x1x64xf32> to vector<2x64x64xf32>
    %4 = arith.mulf %1, %3 : vector<2x64x64xf32>
    %cst = arith.constant dense<0.000000e+00> : vector<2x64xf32>
    %5 = vector.multi_reduction <add>, %4, %cst [2] : vector<2x64x64xf32> to vector<2x64xf32>
    %6 = vector.shape_cast %5 : vector<2x64xf32> to vector<2x64x1xf32>
    %cst_5 = arith.constant 6.400000e+01 : f32
    %7 = vector.broadcast %cst_5 : f32 to vector<2x64x1xf32>
    %8 = arith.divf %6, %7 : vector<2x64x1xf32>
    %c0_6 = arith.constant 0 : index
    %c0_7 = arith.constant 0 : index
    %c0_8 = arith.constant 0 : index
    %9 = vector.load %arg3[%c0_6, %c0_7, %c0_8] : memref<2x64x2xf32, #tpu.memory_space<vmem>>, vector<2x64x1xf32>
    tpu.vector_store %arg3[%c0_6, %c0_7, %c0_8], %8 {strides = array<i32>} : memref<2x64x2xf32, #tpu.memory_space<vmem>>, vector<2x64x1xf32>,
    %cst_9 = arith.constant dense<0xFF800000> : vector<2x64xf32>
    %10 = vector.multi_reduction <maximumf>, %4, %cst_9 [2] : vector<2x64x64xf32> to vector<2x64xf32>
    %11 = vector.shape_cast %10 : vector<2x64xf32> to vector<2x64x1xf32>
    %c0_10 = arith.constant 0 : index
    %c0_11 = arith.constant 0 : index
    %c1 = arith.constant 1 : index
    %12 = vector.load %arg3[%c0_10, %c0_11, %c1] : memref<2x64x2xf32, #tpu.memory_space<vmem>>, vector<2x64x1xf32>
    tpu.vector_store %arg3[%c0_10, %c0_11, %c1], %11 {strides = array<i32>} : memref<2x64x2xf32, #tpu.memory_space<vmem>>, vector<2x64x1xf32>,
    return
  }
  func.func @transform_0(%arg0: i32) -> (i32, i32, i32) {
    %c0_i32 = arith.constant 0 : i32
    %c0_i32_0 = arith.constant 0 : i32
    %c0_i32_1 = arith.constant 0 : i32
    return %c0_i32, %arg0, %c0_i32_0 : i32, i32, i32
  }
  func.func @transform_1(%arg0: i32) -> (i32, i32, i32) {
    %c0_i32 = arith.constant 0 : i32
    %c0_i32_0 = arith.constant 0 : i32
    %c0_i32_1 = arith.constant 0 : i32
    %c0_i32_2 = arith.constant 0 : i32
    return %c0_i32, %c0_i32_0, %c0_i32_1 : i32, i32, i32
  }
  func.func @transform_2(%arg0: i32) -> (i32, i32, i32) {
    %c0_i32 = arith.constant 0 : i32
    %c0_i32_0 = arith.constant 0 : i32
    %c0_i32_1 = arith.constant 0 : i32
    return %c0_i32, %arg0, %c0_i32_0 : i32, i32, i32
  }
}

module attributes {stable_mosaic.version = 11 : i64} {
  func.func @_sa_kernel(%arg0: i32, %arg1: memref<2x98x64xf32, #tpu.memory_space<vmem>>, %arg2: memref<1x98x1xf32, #tpu.memory_space<vmem>>, %arg3: memref<2x64xf32, #tpu.memory_space<vmem>>) attributes {dimension_semantics = [#tpu.dimension_semantics<parallel>], iteration_bounds = array<i64: 1>, scalar_prefetch = 0 : i64, scratch_operands = 0 : i64, tpu.core_type = #tpu.core_type<tc>, window_params = [{transform_indices = @transform_0, window_bounds = array<i64: 2, 98, 64>}, {pipeline_mode = #tpu.pipeline_mode<synchronous>, transform_indices = @transform_1, window_bounds = array<i64: 1, 98, 1>}, {transform_indices = @transform_2, window_bounds = array<i64: 2, 64>}]} {
    %c0 = arith.constant 0 : index
    %c0_0 = arith.constant 0 : index
    %c0_1 = arith.constant 0 : index
    %0 = vector.load %arg1[%c0, %c0_0, %c0_1] : memref<2x98x64xf32, #tpu.memory_space<vmem>>, vector<2x98x64xf32>
    %c0_2 = arith.constant 0 : index
    %c0_3 = arith.constant 0 : index
    %c0_4 = arith.constant 0 : index
    %1 = vector.load %arg2[%c0_2, %c0_3, %c0_4] : memref<1x98x1xf32, #tpu.memory_space<vmem>>, vector<1x98x1xf32>
    %2 = vector.broadcast %1 : vector<1x98x1xf32> to vector<2x98x64xf32>
    %3 = arith.mulf %0, %2 : vector<2x98x64xf32>
    %cst = arith.constant dense<0.000000e+00> : vector<2x64xf32>
    %4 = vector.multi_reduction <add>, %3, %cst [1] : vector<2x98x64xf32> to vector<2x64xf32>
    %5 = arith.negf %4 : vector<2x64xf32>
    %6 = math.exp %5 : vector<2x64xf32>
    %cst_5 = arith.constant 1.000000e+00 : f32
    %7 = vector.broadcast %cst_5 : f32 to vector<2x64xf32>
    %8 = arith.addf %7, %6 : vector<2x64xf32>
    %9 = arith.divf %7, %8 : vector<2x64xf32>
    %c0_6 = arith.constant 0 : index
    %c0_7 = arith.constant 0 : index
    %10 = vector.load %arg3[%c0_6, %c0_7] : memref<2x64xf32, #tpu.memory_space<vmem>>, vector<2x64xf32>
    tpu.vector_store %arg3[%c0_6, %c0_7], %9 {strides = array<i32>} : memref<2x64xf32, #tpu.memory_space<vmem>>, vector<2x64xf32>,
    return
  }
  func.func @transform_0(%arg0: i32) -> (i32, i32, i32) {
    %c0_i32 = arith.constant 0 : i32
    %c0_i32_0 = arith.constant 0 : i32
    %c0_i32_1 = arith.constant 0 : i32
    return %c0_i32, %c0_i32_0, %arg0 : i32, i32, i32
  }
  func.func @transform_1(%arg0: i32) -> (i32, i32, i32) {
    %c0_i32 = arith.constant 0 : i32
    %c0_i32_0 = arith.constant 0 : i32
    %c0_i32_1 = arith.constant 0 : i32
    %c0_i32_2 = arith.constant 0 : i32
    return %c0_i32, %c0_i32_0, %c0_i32_1 : i32, i32, i32
  }
  func.func @transform_2(%arg0: i32) -> (i32, i32) {
    %c0_i32 = arith.constant 0 : i32
    %c0_i32_0 = arith.constant 0 : i32
    return %c0_i32, %arg0 : i32, i32
  }
}

module attributes {stable_mosaic.version = 11 : i64} {
  func.func @_lateral_kernel(%arg0: i32, %arg1: i32, %arg2: memref<1x64x64xbf16, #tpu.memory_space<vmem>>, %arg3: memref<1x1x64xf32, #tpu.memory_space<vmem>>, %arg4: memref<1x64x1xf32, #tpu.memory_space<vmem>>, %arg5: memref<1x64xf32, #tpu.memory_space<vmem>>, %arg6: memref<1x64xf32, #tpu.memory_space<vmem>>, %arg7: memref<64x64xbf16, #tpu.memory_space<vmem>>, %arg8: memref<1x64xf32, #tpu.memory_space<vmem>>, %arg9: memref<1x64x64xf32, #tpu.memory_space<vmem>>) attributes {dimension_semantics = [#tpu.dimension_semantics<parallel>, #tpu.dimension_semantics<parallel>], iteration_bounds = array<i64: 2, 1>, scalar_prefetch = 0 : i64, scratch_operands = 0 : i64, tpu.core_type = #tpu.core_type<tc>, window_params = [{transform_indices = @transform_0, window_bounds = array<i64: 1, 64, 64>}, {transform_indices = @transform_1, window_bounds = array<i64: 1, 1, 64>}, {transform_indices = @transform_2, window_bounds = array<i64: 1, 64, 1>}, {pipeline_mode = #tpu.pipeline_mode<synchronous>, transform_indices = @transform_3, window_bounds = array<i64: 1, 64>}, {pipeline_mode = #tpu.pipeline_mode<synchronous>, transform_indices = @transform_4, window_bounds = array<i64: 1, 64>}, {pipeline_mode = #tpu.pipeline_mode<synchronous>, transform_indices = @transform_5, window_bounds = array<i64: 64, 64>}, {pipeline_mode = #tpu.pipeline_mode<synchronous>, transform_indices = @transform_6, window_bounds = array<i64: 1, 64>}, {transform_indices = @transform_7, window_bounds = array<i64: 1, 64, 64>}]} {
    %c0 = arith.constant 0 : index
    %c0_0 = arith.constant 0 : index
    %c0_1 = arith.constant 0 : index
    %0 = vector.load %arg2[%c0, %c0_0, %c0_1] : memref<1x64x64xbf16, #tpu.memory_space<vmem>>, vector<1x64x64xbf16>
    %1 = vector.shape_cast %0 : vector<1x64x64xbf16> to vector<64x64xbf16>
    %2 = arith.extf %1 : vector<64x64xbf16> to vector<64x64xf32>
    %c0_2 = arith.constant 0 : index
    %c0_3 = arith.constant 0 : index
    %c0_4 = arith.constant 0 : index
    %3 = vector.load %arg3[%c0_2, %c0_3, %c0_4] : memref<1x1x64xf32, #tpu.memory_space<vmem>>, vector<1x1x64xf32>
    %4 = vector.shape_cast %3 : vector<1x1x64xf32> to vector<1x64xf32>
    %5 = vector.broadcast %4 : vector<1x64xf32> to vector<64x64xf32>
    %6 = arith.mulf %2, %5 : vector<64x64xf32>
    %c0_5 = arith.constant 0 : index
    %c0_6 = arith.constant 0 : index
    %c0_7 = arith.constant 0 : index
    %7 = vector.load %arg4[%c0_5, %c0_6, %c0_7] : memref<1x64x1xf32, #tpu.memory_space<vmem>>, vector<1x64x1xf32>
    %8 = vector.shape_cast %7 : vector<1x64x1xf32> to vector<64x1xf32>
    %9 = vector.broadcast %8 : vector<64x1xf32> to vector<64x64xf32>
    %10 = arith.mulf %6, %9 : vector<64x64xf32>
    %c0_8 = arith.constant 0 : index
    %c0_9 = arith.constant 0 : index
    %11 = vector.load %arg5[%c0_8, %c0_9] : memref<1x64xf32, #tpu.memory_space<vmem>>, vector<1x64xf32>
    %12 = vector.broadcast %11 : vector<1x64xf32> to vector<64x64xf32>
    %13 = arith.mulf %10, %12 : vector<64x64xf32>
    %c0_10 = arith.constant 0 : index
    %c0_11 = arith.constant 0 : index
    %14 = vector.load %arg6[%c0_10, %c0_11] : memref<1x64xf32, #tpu.memory_space<vmem>>, vector<1x64xf32>
    %15 = vector.broadcast %14 : vector<1x64xf32> to vector<64x64xf32>
    %16 = arith.addf %13, %15 : vector<64x64xf32>
    %17 = arith.truncf %16 : vector<64x64xf32> to vector<64x64xbf16>
    %c0_12 = arith.constant 0 : index
    %c0_13 = arith.constant 0 : index
    %18 = vector.load %arg7[%c0_12, %c0_13] : memref<64x64xbf16, #tpu.memory_space<vmem>>, vector<64x64xbf16>
    %cst = arith.constant dense<0.000000e+00> : vector<64x64xf32>
    %19 = tpu.matmul %17, %18, %cst {dimension_numbers = #tpu.dot_dimension_numbers<[1], [0], [0], [1], [0, 0, 1, 1], [], []>} : vector<64x64xbf16>, vector<64x64xbf16>, vector<64x64xf32> -> vector<64x64xf32>
    %c0_14 = arith.constant 0 : index
    %c0_15 = arith.constant 0 : index
    %20 = vector.load %arg8[%c0_14, %c0_15] : memref<1x64xf32, #tpu.memory_space<vmem>>, vector<1x64xf32>
    %21 = vector.broadcast %20 : vector<1x64xf32> to vector<64x64xf32>
    %22 = arith.addf %19, %21 : vector<64x64xf32>
    %c0_16 = arith.constant 0 : index
    %c0_17 = arith.constant 0 : index
    %c0_18 = arith.constant 0 : index
    %23 = vector.load %arg9[%c0_16, %c0_17, %c0_18] : memref<1x64x64xf32, #tpu.memory_space<vmem>>, vector<1x64x64xf32>
    %24 = vector.shape_cast %23 : vector<1x64x64xf32> to vector<64x64xf32>
    %25 = vector.shape_cast %22 : vector<64x64xf32> to vector<1x64x64xf32>
    tpu.vector_store %arg9[%c0_16, %c0_17, %c0_18], %25 {strides = array<i32>} : memref<1x64x64xf32, #tpu.memory_space<vmem>>, vector<1x64x64xf32>,
    return
  }
  func.func @transform_0(%arg0: i32, %arg1: i32) -> (i32, i32, i32) {
    %c0_i32 = arith.constant 0 : i32
    %c0_i32_0 = arith.constant 0 : i32
    return %arg0, %arg1, %c0_i32 : i32, i32, i32
  }
  func.func @transform_1(%arg0: i32, %arg1: i32) -> (i32, i32, i32) {
    %c0_i32 = arith.constant 0 : i32
    %c0_i32_0 = arith.constant 0 : i32
    %c0_i32_1 = arith.constant 0 : i32
    return %arg0, %c0_i32, %c0_i32_0 : i32, i32, i32
  }
  func.func @transform_2(%arg0: i32, %arg1: i32) -> (i32, i32, i32) {
    %c0_i32 = arith.constant 0 : i32
    %c0_i32_0 = arith.constant 0 : i32
    return %arg0, %arg1, %c0_i32 : i32, i32, i32
  }
  func.func @transform_3(%arg0: i32, %arg1: i32) -> (i32, i32) {
    %c0_i32 = arith.constant 0 : i32
    %c0_i32_0 = arith.constant 0 : i32
    %c0_i32_1 = arith.constant 0 : i32
    return %c0_i32, %c0_i32_0 : i32, i32
  }
  func.func @transform_4(%arg0: i32, %arg1: i32) -> (i32, i32) {
    %c0_i32 = arith.constant 0 : i32
    %c0_i32_0 = arith.constant 0 : i32
    %c0_i32_1 = arith.constant 0 : i32
    return %c0_i32, %c0_i32_0 : i32, i32
  }
  func.func @transform_5(%arg0: i32, %arg1: i32) -> (i32, i32) {
    %c0_i32 = arith.constant 0 : i32
    %c0_i32_0 = arith.constant 0 : i32
    %c0_i32_1 = arith.constant 0 : i32
    return %c0_i32, %c0_i32_0 : i32, i32
  }
  func.func @transform_6(%arg0: i32, %arg1: i32) -> (i32, i32) {
    %c0_i32 = arith.constant 0 : i32
    %c0_i32_0 = arith.constant 0 : i32
    %c0_i32_1 = arith.constant 0 : i32
    return %c0_i32, %c0_i32_0 : i32, i32
  }
  func.func @transform_7(%arg0: i32, %arg1: i32) -> (i32, i32, i32) {
    %c0_i32 = arith.constant 0 : i32
    %c0_i32_0 = arith.constant 0 : i32
    return %arg0, %arg1, %c0_i32 : i32, i32, i32
  }
}

module attributes {stable_mosaic.version = 11 : i64} {
  func.func @_stage_in_kernel(%arg0: i32, %arg1: i32, %arg2: memref<1x16x3xbf16, #tpu.memory_space<vmem>>, %arg3: memref<3x192xbf16, #tpu.memory_space<vmem>>, %arg4: memref<1x192xf32, #tpu.memory_space<vmem>>, %arg5: memref<192x96xbf16, #tpu.memory_space<vmem>>, %arg6: memref<1x96xf32, #tpu.memory_space<vmem>>, %arg7: memref<1x96xf32, #tpu.memory_space<vmem>>, %arg8: memref<1x16x96xbf16, #tpu.memory_space<vmem>>) attributes {dimension_semantics = [#tpu.dimension_semantics<parallel>, #tpu.dimension_semantics<parallel>], iteration_bounds = array<i64: 2, 1>, scalar_prefetch = 0 : i64, scratch_operands = 0 : i64, tpu.core_type = #tpu.core_type<tc>, window_params = [{transform_indices = @transform_0, window_bounds = array<i64: 1, 16, 3>}, {pipeline_mode = #tpu.pipeline_mode<synchronous>, transform_indices = @transform_1, window_bounds = array<i64: 3, 192>}, {pipeline_mode = #tpu.pipeline_mode<synchronous>, transform_indices = @transform_2, window_bounds = array<i64: 1, 192>}, {pipeline_mode = #tpu.pipeline_mode<synchronous>, transform_indices = @transform_3, window_bounds = array<i64: 192, 96>}, {pipeline_mode = #tpu.pipeline_mode<synchronous>, transform_indices = @transform_4, window_bounds = array<i64: 1, 96>}, {pipeline_mode = #tpu.pipeline_mode<synchronous>, transform_indices = @transform_5, window_bounds = array<i64: 1, 96>}, {transform_indices = @transform_6, window_bounds = array<i64: 1, 16, 96>}]} {
    %c0 = arith.constant 0 : index
    %c0_0 = arith.constant 0 : index
    %c0_1 = arith.constant 0 : index
    %0 = vector.load %arg2[%c0, %c0_0, %c0_1] : memref<1x16x3xbf16, #tpu.memory_space<vmem>>, vector<1x16x3xbf16>
    %1 = vector.shape_cast %0 : vector<1x16x3xbf16> to vector<16x3xbf16>
    %c0_2 = arith.constant 0 : index
    %c0_3 = arith.constant 0 : index
    %2 = vector.load %arg3[%c0_2, %c0_3] : memref<3x192xbf16, #tpu.memory_space<vmem>>, vector<3x192xbf16>
    %cst = arith.constant dense<0.000000e+00> : vector<16x192xf32>
    %3 = tpu.matmul %1, %2, %cst {dimension_numbers = #tpu.dot_dimension_numbers<[1], [0], [0], [1], [0, 0, 1, 1], [], []>} : vector<16x3xbf16>, vector<3x192xbf16>, vector<16x192xf32> -> vector<16x192xf32>
    %c0_4 = arith.constant 0 : index
    %c0_5 = arith.constant 0 : index
    %4 = vector.load %arg4[%c0_4, %c0_5] : memref<1x192xf32, #tpu.memory_space<vmem>>, vector<1x192xf32>
    %5 = vector.broadcast %4 : vector<1x192xf32> to vector<16x192xf32>
    %6 = arith.addf %3, %5 : vector<16x192xf32>
    %7 = arith.truncf %6 : vector<16x192xf32> to vector<16x192xbf16>
    %c0_6 = arith.constant 0 : index
    %c0_7 = arith.constant 0 : index
    %8 = vector.load %arg5[%c0_6, %c0_7] : memref<192x96xbf16, #tpu.memory_space<vmem>>, vector<192x96xbf16>
    %cst_8 = arith.constant dense<0.000000e+00> : vector<16x96xf32>
    %9 = tpu.matmul %7, %8, %cst_8 {dimension_numbers = #tpu.dot_dimension_numbers<[1], [0], [0], [1], [0, 0, 1, 1], [], []>} : vector<16x192xbf16>, vector<192x96xbf16>, vector<16x96xf32> -> vector<16x96xf32>
    %c0_9 = arith.constant 0 : index
    %c0_10 = arith.constant 0 : index
    %10 = vector.load %arg6[%c0_9, %c0_10] : memref<1x96xf32, #tpu.memory_space<vmem>>, vector<1x96xf32>
    %11 = vector.broadcast %10 : vector<1x96xf32> to vector<16x96xf32>
    %12 = arith.mulf %9, %11 : vector<16x96xf32>
    %c0_11 = arith.constant 0 : index
    %c0_12 = arith.constant 0 : index
    %13 = vector.load %arg7[%c0_11, %c0_12] : memref<1x96xf32, #tpu.memory_space<vmem>>, vector<1x96xf32>
    %14 = vector.broadcast %13 : vector<1x96xf32> to vector<16x96xf32>
    %15 = arith.addf %12, %14 : vector<16x96xf32>
    %cst_13 = arith.constant 0.000000e+00 : f32
    %16 = vector.broadcast %cst_13 : f32 to vector<16x96xf32>
    %17 = arith.maximumf %15, %16 : vector<16x96xf32>
    %18 = arith.truncf %17 : vector<16x96xf32> to vector<16x96xbf16>
    %c0_14 = arith.constant 0 : index
    %c0_15 = arith.constant 0 : index
    %c0_16 = arith.constant 0 : index
    %19 = vector.load %arg8[%c0_14, %c0_15, %c0_16] : memref<1x16x96xbf16, #tpu.memory_space<vmem>>, vector<1x16x96xbf16>
    %20 = vector.shape_cast %19 : vector<1x16x96xbf16> to vector<16x96xbf16>
    %21 = vector.shape_cast %18 : vector<16x96xbf16> to vector<1x16x96xbf16>
    tpu.vector_store %arg8[%c0_14, %c0_15, %c0_16], %21 {strides = array<i32>} : memref<1x16x96xbf16, #tpu.memory_space<vmem>>, vector<1x16x96xbf16>,
    return
  }
  func.func @transform_0(%arg0: i32, %arg1: i32) -> (i32, i32, i32) {
    %c0_i32 = arith.constant 0 : i32
    %c0_i32_0 = arith.constant 0 : i32
    return %arg0, %arg1, %c0_i32 : i32, i32, i32
  }
  func.func @transform_1(%arg0: i32, %arg1: i32) -> (i32, i32) {
    %c0_i32 = arith.constant 0 : i32
    %c0_i32_0 = arith.constant 0 : i32
    %c0_i32_1 = arith.constant 0 : i32
    return %c0_i32, %c0_i32_0 : i32, i32
  }
  func.func @transform_2(%arg0: i32, %arg1: i32) -> (i32, i32) {
    %c0_i32 = arith.constant 0 : i32
    %c0_i32_0 = arith.constant 0 : i32
    %c0_i32_1 = arith.constant 0 : i32
    return %c0_i32, %c0_i32_0 : i32, i32
  }
  func.func @transform_3(%arg0: i32, %arg1: i32) -> (i32, i32) {
    %c0_i32 = arith.constant 0 : i32
    %c0_i32_0 = arith.constant 0 : i32
    %c0_i32_1 = arith.constant 0 : i32
    return %c0_i32, %c0_i32_0 : i32, i32
  }
  func.func @transform_4(%arg0: i32, %arg1: i32) -> (i32, i32) {
    %c0_i32 = arith.constant 0 : i32
    %c0_i32_0 = arith.constant 0 : i32
    %c0_i32_1 = arith.constant 0 : i32
    return %c0_i32, %c0_i32_0 : i32, i32
  }
  func.func @transform_5(%arg0: i32, %arg1: i32) -> (i32, i32) {
    %c0_i32 = arith.constant 0 : i32
    %c0_i32_0 = arith.constant 0 : i32
    %c0_i32_1 = arith.constant 0 : i32
    return %c0_i32, %c0_i32_0 : i32, i32
  }
  func.func @transform_6(%arg0: i32, %arg1: i32) -> (i32, i32, i32) {
    %c0_i32 = arith.constant 0 : i32
    %c0_i32_0 = arith.constant 0 : i32
    return %arg0, %arg1, %c0_i32 : i32, i32, i32
  }
}

module attributes {stable_mosaic.version = 11 : i64} {
  func.func @_stats_kernel(%arg0: i32, %arg1: memref<2x16x96xbf16, #tpu.memory_space<vmem>>, %arg2: memref<2x1x96xf32, #tpu.memory_space<vmem>>, %arg3: memref<2x16x2xf32, #tpu.memory_space<vmem>>) attributes {dimension_semantics = [#tpu.dimension_semantics<parallel>], iteration_bounds = array<i64: 1>, scalar_prefetch = 0 : i64, scratch_operands = 0 : i64, tpu.core_type = #tpu.core_type<tc>, window_params = [{transform_indices = @transform_0, window_bounds = array<i64: 2, 16, 96>}, {pipeline_mode = #tpu.pipeline_mode<synchronous>, transform_indices = @transform_1, window_bounds = array<i64: 2, 1, 96>}, {transform_indices = @transform_2, window_bounds = array<i64: 2, 16, 2>}]} {
    %c0 = arith.constant 0 : index
    %c0_0 = arith.constant 0 : index
    %c0_1 = arith.constant 0 : index
    %0 = vector.load %arg1[%c0, %c0_0, %c0_1] : memref<2x16x96xbf16, #tpu.memory_space<vmem>>, vector<2x16x96xbf16>
    %1 = arith.extf %0 : vector<2x16x96xbf16> to vector<2x16x96xf32>
    %c0_2 = arith.constant 0 : index
    %c0_3 = arith.constant 0 : index
    %c0_4 = arith.constant 0 : index
    %2 = vector.load %arg2[%c0_2, %c0_3, %c0_4] : memref<2x1x96xf32, #tpu.memory_space<vmem>>, vector<2x1x96xf32>
    %3 = vector.broadcast %2 : vector<2x1x96xf32> to vector<2x16x96xf32>
    %4 = arith.mulf %1, %3 : vector<2x16x96xf32>
    %cst = arith.constant dense<0.000000e+00> : vector<2x16xf32>
    %5 = vector.multi_reduction <add>, %4, %cst [2] : vector<2x16x96xf32> to vector<2x16xf32>
    %6 = vector.shape_cast %5 : vector<2x16xf32> to vector<2x16x1xf32>
    %cst_5 = arith.constant 9.600000e+01 : f32
    %7 = vector.broadcast %cst_5 : f32 to vector<2x16x1xf32>
    %8 = arith.divf %6, %7 : vector<2x16x1xf32>
    %c0_6 = arith.constant 0 : index
    %c0_7 = arith.constant 0 : index
    %c0_8 = arith.constant 0 : index
    %9 = vector.load %arg3[%c0_6, %c0_7, %c0_8] : memref<2x16x2xf32, #tpu.memory_space<vmem>>, vector<2x16x1xf32>
    tpu.vector_store %arg3[%c0_6, %c0_7, %c0_8], %8 {strides = array<i32>} : memref<2x16x2xf32, #tpu.memory_space<vmem>>, vector<2x16x1xf32>,
    %cst_9 = arith.constant dense<0xFF800000> : vector<2x16xf32>
    %10 = vector.multi_reduction <maximumf>, %4, %cst_9 [2] : vector<2x16x96xf32> to vector<2x16xf32>
    %11 = vector.shape_cast %10 : vector<2x16xf32> to vector<2x16x1xf32>
    %c0_10 = arith.constant 0 : index
    %c0_11 = arith.constant 0 : index
    %c1 = arith.constant 1 : index
    %12 = vector.load %arg3[%c0_10, %c0_11, %c1] : memref<2x16x2xf32, #tpu.memory_space<vmem>>, vector<2x16x1xf32>
    tpu.vector_store %arg3[%c0_10, %c0_11, %c1], %11 {strides = array<i32>} : memref<2x16x2xf32, #tpu.memory_space<vmem>>, vector<2x16x1xf32>,
    return
  }
  func.func @transform_0(%arg0: i32) -> (i32, i32, i32) {
    %c0_i32 = arith.constant 0 : i32
    %c0_i32_0 = arith.constant 0 : i32
    %c0_i32_1 = arith.constant 0 : i32
    return %c0_i32, %arg0, %c0_i32_0 : i32, i32, i32
  }
  func.func @transform_1(%arg0: i32) -> (i32, i32, i32) {
    %c0_i32 = arith.constant 0 : i32
    %c0_i32_0 = arith.constant 0 : i32
    %c0_i32_1 = arith.constant 0 : i32
    %c0_i32_2 = arith.constant 0 : i32
    return %c0_i32, %c0_i32_0, %c0_i32_1 : i32, i32, i32
  }
  func.func @transform_2(%arg0: i32) -> (i32, i32, i32) {
    %c0_i32 = arith.constant 0 : i32
    %c0_i32_0 = arith.constant 0 : i32
    %c0_i32_1 = arith.constant 0 : i32
    return %c0_i32, %arg0, %c0_i32_0 : i32, i32, i32
  }
}

module attributes {stable_mosaic.version = 11 : i64} {
  func.func @_ca_kernel(%arg0: i32, %arg1: memref<2x16x96xbf16, #tpu.memory_space<vmem>>, %arg2: memref<96x6xbf16, #tpu.memory_space<vmem>>, %arg3: memref<6x96xbf16, #tpu.memory_space<vmem>>, %arg4: memref<2x96xf32, #tpu.memory_space<vmem>>, %arg5: memref<2x96xf32, #tpu.memory_space<vmem>>, %arg6: memref<2x96xf32, #tpu.memory_space<vmem>>) attributes {dimension_semantics = [#tpu.dimension_semantics<arbitrary>], iteration_bounds = array<i64: 1>, scalar_prefetch = 0 : i64, scratch_operands = 2 : i64, tpu.core_type = #tpu.core_type<tc>, window_params = [{transform_indices = @transform_0, window_bounds = array<i64: 2, 16, 96>}, {pipeline_mode = #tpu.pipeline_mode<synchronous>, transform_indices = @transform_1, window_bounds = array<i64: 96, 6>}, {pipeline_mode = #tpu.pipeline_mode<synchronous>, transform_indices = @transform_2, window_bounds = array<i64: 6, 96>}, {pipeline_mode = #tpu.pipeline_mode<synchronous>, transform_indices = @transform_3, window_bounds = array<i64: 2, 96>}]} {
    %c0_i32 = arith.constant 0 : i32
    %0 = arith.cmpi eq, %arg0, %c0_i32 : i32
    %1 = arith.extui %0 : i1 to i32
    %c0_i32_0 = arith.constant 0 : i32
    %2 = arith.cmpi ne, %1, %c0_i32_0 : i32
    scf.if %2 {
      %cst_14 = arith.constant 0.000000e+00 : f32
      %16 = vector.broadcast %cst_14 : f32 to vector<2x96xf32>
      %c0_15 = arith.constant 0 : index
      %c0_16 = arith.constant 0 : index
      %17 = vector.load %arg5[%c0_15, %c0_16] : memref<2x96xf32, #tpu.memory_space<vmem>>, vector<2x96xf32>
      tpu.vector_store %arg5[%c0_15, %c0_16], %16 {strides = array<i32>} : memref<2x96xf32, #tpu.memory_space<vmem>>, vector<2x96xf32>,
      %cst_17 = arith.constant 0xFF800000 : f32
      %18 = vector.broadcast %cst_17 : f32 to vector<2x96xf32>
      %c0_18 = arith.constant 0 : index
      %c0_19 = arith.constant 0 : index
      %19 = vector.load %arg6[%c0_18, %c0_19] : memref<2x96xf32, #tpu.memory_space<vmem>>, vector<2x96xf32>
      tpu.vector_store %arg6[%c0_18, %c0_19], %18 {strides = array<i32>} : memref<2x96xf32, #tpu.memory_space<vmem>>, vector<2x96xf32>,
    } else {
    }
    %c0 = arith.constant 0 : index
    %c0_1 = arith.constant 0 : index
    %c0_2 = arith.constant 0 : index
    %3 = vector.load %arg1[%c0, %c0_1, %c0_2] : memref<2x16x96xbf16, #tpu.memory_space<vmem>>, vector<2x16x96xbf16>
    %4 = arith.extf %3 : vector<2x16x96xbf16> to vector<2x16x96xf32>
    %c0_3 = arith.constant 0 : index
    %c0_4 = arith.constant 0 : index
    %5 = vector.load %arg5[%c0_3, %c0_4] : memref<2x96xf32, #tpu.memory_space<vmem>>, vector<2x96xf32>
    %cst = arith.constant dense<0.000000e+00> : vector<2x96xf32>
    %6 = vector.multi_reduction <add>, %4, %cst [1] : vector<2x16x96xf32> to vector<2x96xf32>
    %7 = arith.addf %5, %6 : vector<2x96xf32>
    %c0_5 = arith.constant 0 : index
    %c0_6 = arith.constant 0 : index
    %8 = vector.load %arg5[%c0_5, %c0_6] : memref<2x96xf32, #tpu.memory_space<vmem>>, vector<2x96xf32>
    tpu.vector_store %arg5[%c0_5, %c0_6], %7 {strides = array<i32>} : memref<2x96xf32, #tpu.memory_space<vmem>>, vector<2x96xf32>,
    %c0_7 = arith.constant 0 : index
    %c0_8 = arith.constant 0 : index
    %9 = vector.load %arg6[%c0_7, %c0_8] : memref<2x96xf32, #tpu.memory_space<vmem>>, vector<2x96xf32>
    %cst_9 = arith.constant dense<0xFF800000> : vector<2x96xf32>
    %10 = vector.multi_reduction <maximumf>, %4, %cst_9 [1] : vector<2x16x96xf32> to vector<2x96xf32>
    %11 = arith.maximumf %9, %10 : vector<2x96xf32>
    %c0_10 = arith.constant 0 : index
    %c0_11 = arith.constant 0 : index
    %12 = vector.load %arg6[%c0_10, %c0_11] : memref<2x96xf32, #tpu.memory_space<vmem>>, vector<2x96xf32>
    tpu.vector_store %arg6[%c0_10, %c0_11], %11 {strides = array<i32>} : memref<2x96xf32, #tpu.memory_space<vmem>>, vector<2x96xf32>,
    %c0_i32_12 = arith.constant 0 : i32
    %13 = arith.cmpi eq, %arg0, %c0_i32_12 : i32
    %14 = arith.extui %13 : i1 to i32
    %c0_i32_13 = arith.constant 0 : i32
    %15 = arith.cmpi ne, %14, %c0_i32_13 : i32
    scf.if %15 {
      %c0_14 = arith.constant 0 : index
      %c0_15 = arith.constant 0 : index
      %16 = vector.load %arg5[%c0_14, %c0_15] : memref<2x96xf32, #tpu.memory_space<vmem>>, vector<2x96xf32>
      %cst_16 = arith.constant 6.250000e-02 : f32
      %17 = vector.broadcast %cst_16 : f32 to vector<2x96xf32>
      %18 = arith.mulf %16, %17 : vector<2x96xf32>
      %19 = arith.truncf %18 : vector<2x96xf32> to vector<2x96xbf16>
      %c0_17 = arith.constant 0 : index
      %c0_18 = arith.constant 0 : index
      %20 = vector.load %arg6[%c0_17, %c0_18] : memref<2x96xf32, #tpu.memory_space<vmem>>, vector<2x96xf32>
      %21 = arith.truncf %20 : vector<2x96xf32> to vector<2x96xbf16>
      %c0_19 = arith.constant 0 : index
      %c0_20 = arith.constant 0 : index
      %22 = vector.load %arg2[%c0_19, %c0_20] : memref<96x6xbf16, #tpu.memory_space<vmem>>, vector<96x6xbf16>
      %cst_21 = arith.constant dense<0.000000e+00> : vector<2x6xf32>
      %23 = tpu.matmul %19, %22, %cst_21 {dimension_numbers = #tpu.dot_dimension_numbers<[1], [0], [0], [1], [0, 0, 1, 1], [], []>} : vector<2x96xbf16>, vector<96x6xbf16>, vector<2x6xf32> -> vector<2x6xf32>
      %cst_22 = arith.constant 0.000000e+00 : f32
      %24 = vector.broadcast %cst_22 : f32 to vector<2x6xf32>
      %25 = arith.maximumf %23, %24 : vector<2x6xf32>
      %c0_23 = arith.constant 0 : index
      %c0_24 = arith.constant 0 : index
      %26 = vector.load %arg2[%c0_23, %c0_24] : memref<96x6xbf16, #tpu.memory_space<vmem>>, vector<96x6xbf16>
      %cst_25 = arith.constant dense<0.000000e+00> : vector<2x6xf32>
      %27 = tpu.matmul %21, %26, %cst_25 {dimension_numbers = #tpu.dot_dimension_numbers<[1], [0], [0], [1], [0, 0, 1, 1], [], []>} : vector<2x96xbf16>, vector<96x6xbf16>, vector<2x6xf32> -> vector<2x6xf32>
      %cst_26 = arith.constant 0.000000e+00 : f32
      %28 = vector.broadcast %cst_26 : f32 to vector<2x6xf32>
      %29 = arith.maximumf %27, %28 : vector<2x6xf32>
      %30 = arith.truncf %25 : vector<2x6xf32> to vector<2x6xbf16>
      %c0_27 = arith.constant 0 : index
      %c0_28 = arith.constant 0 : index
      %31 = vector.load %arg3[%c0_27, %c0_28] : memref<6x96xbf16, #tpu.memory_space<vmem>>, vector<6x96xbf16>
      %cst_29 = arith.constant dense<0.000000e+00> : vector<2x96xf32>
      %32 = tpu.matmul %30, %31, %cst_29 {dimension_numbers = #tpu.dot_dimension_numbers<[1], [0], [0], [1], [0, 0, 1, 1], [], []>} : vector<2x6xbf16>, vector<6x96xbf16>, vector<2x96xf32> -> vector<2x96xf32>
      %33 = arith.truncf %29 : vector<2x6xf32> to vector<2x6xbf16>
      %c0_30 = arith.constant 0 : index
      %c0_31 = arith.constant 0 : index
      %34 = vector.load %arg3[%c0_30, %c0_31] : memref<6x96xbf16, #tpu.memory_space<vmem>>, vector<6x96xbf16>
      %cst_32 = arith.constant dense<0.000000e+00> : vector<2x96xf32>
      %35 = tpu.matmul %33, %34, %cst_32 {dimension_numbers = #tpu.dot_dimension_numbers<[1], [0], [0], [1], [0, 0, 1, 1], [], []>} : vector<2x6xbf16>, vector<6x96xbf16>, vector<2x96xf32> -> vector<2x96xf32>
      %36 = arith.addf %32, %35 : vector<2x96xf32>
      %37 = arith.negf %36 : vector<2x96xf32>
      %38 = math.exp %37 : vector<2x96xf32>
      %cst_33 = arith.constant 1.000000e+00 : f32
      %39 = vector.broadcast %cst_33 : f32 to vector<2x96xf32>
      %40 = arith.addf %39, %38 : vector<2x96xf32>
      %41 = arith.divf %39, %40 : vector<2x96xf32>
      %c0_34 = arith.constant 0 : index
      %c0_35 = arith.constant 0 : index
      %42 = vector.load %arg4[%c0_34, %c0_35] : memref<2x96xf32, #tpu.memory_space<vmem>>, vector<2x96xf32>
      tpu.vector_store %arg4[%c0_34, %c0_35], %41 {strides = array<i32>} : memref<2x96xf32, #tpu.memory_space<vmem>>, vector<2x96xf32>,
    } else {
    }
    return
  }
  func.func @transform_0(%arg0: i32) -> (i32, i32, i32) {
    %c0_i32 = arith.constant 0 : i32
    %c0_i32_0 = arith.constant 0 : i32
    %c0_i32_1 = arith.constant 0 : i32
    return %c0_i32, %arg0, %c0_i32_0 : i32, i32, i32
  }
  func.func @transform_1(%arg0: i32) -> (i32, i32) {
    %c0_i32 = arith.constant 0 : i32
    %c0_i32_0 = arith.constant 0 : i32
    %c0_i32_1 = arith.constant 0 : i32
    return %c0_i32, %c0_i32_0 : i32, i32
  }
  func.func @transform_2(%arg0: i32) -> (i32, i32) {
    %c0_i32 = arith.constant 0 : i32
    %c0_i32_0 = arith.constant 0 : i32
    %c0_i32_1 = arith.constant 0 : i32
    return %c0_i32, %c0_i32_0 : i32, i32
  }
  func.func @transform_3(%arg0: i32) -> (i32, i32) {
    %c0_i32 = arith.constant 0 : i32
    %c0_i32_0 = arith.constant 0 : i32
    %c0_i32_1 = arith.constant 0 : i32
    return %c0_i32, %c0_i32_0 : i32, i32
  }
}

module attributes {stable_mosaic.version = 11 : i64} {
  func.func @_sa_kernel(%arg0: i32, %arg1: memref<2x98x16xf32, #tpu.memory_space<vmem>>, %arg2: memref<1x98x1xf32, #tpu.memory_space<vmem>>, %arg3: memref<2x16xf32, #tpu.memory_space<vmem>>) attributes {dimension_semantics = [#tpu.dimension_semantics<parallel>], iteration_bounds = array<i64: 1>, scalar_prefetch = 0 : i64, scratch_operands = 0 : i64, tpu.core_type = #tpu.core_type<tc>, window_params = [{transform_indices = @transform_0, window_bounds = array<i64: 2, 98, 16>}, {pipeline_mode = #tpu.pipeline_mode<synchronous>, transform_indices = @transform_1, window_bounds = array<i64: 1, 98, 1>}, {transform_indices = @transform_2, window_bounds = array<i64: 2, 16>}]} {
    %c0 = arith.constant 0 : index
    %c0_0 = arith.constant 0 : index
    %c0_1 = arith.constant 0 : index
    %0 = vector.load %arg1[%c0, %c0_0, %c0_1] : memref<2x98x16xf32, #tpu.memory_space<vmem>>, vector<2x98x16xf32>
    %c0_2 = arith.constant 0 : index
    %c0_3 = arith.constant 0 : index
    %c0_4 = arith.constant 0 : index
    %1 = vector.load %arg2[%c0_2, %c0_3, %c0_4] : memref<1x98x1xf32, #tpu.memory_space<vmem>>, vector<1x98x1xf32>
    %2 = vector.broadcast %1 : vector<1x98x1xf32> to vector<2x98x16xf32>
    %3 = arith.mulf %0, %2 : vector<2x98x16xf32>
    %cst = arith.constant dense<0.000000e+00> : vector<2x16xf32>
    %4 = vector.multi_reduction <add>, %3, %cst [1] : vector<2x98x16xf32> to vector<2x16xf32>
    %5 = arith.negf %4 : vector<2x16xf32>
    %6 = math.exp %5 : vector<2x16xf32>
    %cst_5 = arith.constant 1.000000e+00 : f32
    %7 = vector.broadcast %cst_5 : f32 to vector<2x16xf32>
    %8 = arith.addf %7, %6 : vector<2x16xf32>
    %9 = arith.divf %7, %8 : vector<2x16xf32>
    %c0_6 = arith.constant 0 : index
    %c0_7 = arith.constant 0 : index
    %10 = vector.load %arg3[%c0_6, %c0_7] : memref<2x16xf32, #tpu.memory_space<vmem>>, vector<2x16xf32>
    tpu.vector_store %arg3[%c0_6, %c0_7], %9 {strides = array<i32>} : memref<2x16xf32, #tpu.memory_space<vmem>>, vector<2x16xf32>,
    return
  }
  func.func @transform_0(%arg0: i32) -> (i32, i32, i32) {
    %c0_i32 = arith.constant 0 : i32
    %c0_i32_0 = arith.constant 0 : i32
    %c0_i32_1 = arith.constant 0 : i32
    return %c0_i32, %c0_i32_0, %arg0 : i32, i32, i32
  }
  func.func @transform_1(%arg0: i32) -> (i32, i32, i32) {
    %c0_i32 = arith.constant 0 : i32
    %c0_i32_0 = arith.constant 0 : i32
    %c0_i32_1 = arith.constant 0 : i32
    %c0_i32_2 = arith.constant 0 : i32
    return %c0_i32, %c0_i32_0, %c0_i32_1 : i32, i32, i32
  }
  func.func @transform_2(%arg0: i32) -> (i32, i32) {
    %c0_i32 = arith.constant 0 : i32
    %c0_i32_0 = arith.constant 0 : i32
    return %c0_i32, %arg0 : i32, i32
  }
}

module attributes {stable_mosaic.version = 11 : i64} {
  func.func @_lateral_kernel(%arg0: i32, %arg1: i32, %arg2: memref<1x16x96xbf16, #tpu.memory_space<vmem>>, %arg3: memref<1x1x96xf32, #tpu.memory_space<vmem>>, %arg4: memref<1x16x1xf32, #tpu.memory_space<vmem>>, %arg5: memref<1x96xf32, #tpu.memory_space<vmem>>, %arg6: memref<1x96xf32, #tpu.memory_space<vmem>>, %arg7: memref<96x64xbf16, #tpu.memory_space<vmem>>, %arg8: memref<1x64xf32, #tpu.memory_space<vmem>>, %arg9: memref<1x16x64xf32, #tpu.memory_space<vmem>>) attributes {dimension_semantics = [#tpu.dimension_semantics<parallel>, #tpu.dimension_semantics<parallel>], iteration_bounds = array<i64: 2, 1>, scalar_prefetch = 0 : i64, scratch_operands = 0 : i64, tpu.core_type = #tpu.core_type<tc>, window_params = [{transform_indices = @transform_0, window_bounds = array<i64: 1, 16, 96>}, {transform_indices = @transform_1, window_bounds = array<i64: 1, 1, 96>}, {transform_indices = @transform_2, window_bounds = array<i64: 1, 16, 1>}, {pipeline_mode = #tpu.pipeline_mode<synchronous>, transform_indices = @transform_3, window_bounds = array<i64: 1, 96>}, {pipeline_mode = #tpu.pipeline_mode<synchronous>, transform_indices = @transform_4, window_bounds = array<i64: 1, 96>}, {pipeline_mode = #tpu.pipeline_mode<synchronous>, transform_indices = @transform_5, window_bounds = array<i64: 96, 64>}, {pipeline_mode = #tpu.pipeline_mode<synchronous>, transform_indices = @transform_6, window_bounds = array<i64: 1, 64>}, {transform_indices = @transform_7, window_bounds = array<i64: 1, 16, 64>}]} {
    %c0 = arith.constant 0 : index
    %c0_0 = arith.constant 0 : index
    %c0_1 = arith.constant 0 : index
    %0 = vector.load %arg2[%c0, %c0_0, %c0_1] : memref<1x16x96xbf16, #tpu.memory_space<vmem>>, vector<1x16x96xbf16>
    %1 = vector.shape_cast %0 : vector<1x16x96xbf16> to vector<16x96xbf16>
    %2 = arith.extf %1 : vector<16x96xbf16> to vector<16x96xf32>
    %c0_2 = arith.constant 0 : index
    %c0_3 = arith.constant 0 : index
    %c0_4 = arith.constant 0 : index
    %3 = vector.load %arg3[%c0_2, %c0_3, %c0_4] : memref<1x1x96xf32, #tpu.memory_space<vmem>>, vector<1x1x96xf32>
    %4 = vector.shape_cast %3 : vector<1x1x96xf32> to vector<1x96xf32>
    %5 = vector.broadcast %4 : vector<1x96xf32> to vector<16x96xf32>
    %6 = arith.mulf %2, %5 : vector<16x96xf32>
    %c0_5 = arith.constant 0 : index
    %c0_6 = arith.constant 0 : index
    %c0_7 = arith.constant 0 : index
    %7 = vector.load %arg4[%c0_5, %c0_6, %c0_7] : memref<1x16x1xf32, #tpu.memory_space<vmem>>, vector<1x16x1xf32>
    %8 = vector.shape_cast %7 : vector<1x16x1xf32> to vector<16x1xf32>
    %9 = vector.broadcast %8 : vector<16x1xf32> to vector<16x96xf32>
    %10 = arith.mulf %6, %9 : vector<16x96xf32>
    %c0_8 = arith.constant 0 : index
    %c0_9 = arith.constant 0 : index
    %11 = vector.load %arg5[%c0_8, %c0_9] : memref<1x96xf32, #tpu.memory_space<vmem>>, vector<1x96xf32>
    %12 = vector.broadcast %11 : vector<1x96xf32> to vector<16x96xf32>
    %13 = arith.mulf %10, %12 : vector<16x96xf32>
    %c0_10 = arith.constant 0 : index
    %c0_11 = arith.constant 0 : index
    %14 = vector.load %arg6[%c0_10, %c0_11] : memref<1x96xf32, #tpu.memory_space<vmem>>, vector<1x96xf32>
    %15 = vector.broadcast %14 : vector<1x96xf32> to vector<16x96xf32>
    %16 = arith.addf %13, %15 : vector<16x96xf32>
    %17 = arith.truncf %16 : vector<16x96xf32> to vector<16x96xbf16>
    %c0_12 = arith.constant 0 : index
    %c0_13 = arith.constant 0 : index
    %18 = vector.load %arg7[%c0_12, %c0_13] : memref<96x64xbf16, #tpu.memory_space<vmem>>, vector<96x64xbf16>
    %cst = arith.constant dense<0.000000e+00> : vector<16x64xf32>
    %19 = tpu.matmul %17, %18, %cst {dimension_numbers = #tpu.dot_dimension_numbers<[1], [0], [0], [1], [0, 0, 1, 1], [], []>} : vector<16x96xbf16>, vector<96x64xbf16>, vector<16x64xf32> -> vector<16x64xf32>
    %c0_14 = arith.constant 0 : index
    %c0_15 = arith.constant 0 : index
    %20 = vector.load %arg8[%c0_14, %c0_15] : memref<1x64xf32, #tpu.memory_space<vmem>>, vector<1x64xf32>
    %21 = vector.broadcast %20 : vector<1x64xf32> to vector<16x64xf32>
    %22 = arith.addf %19, %21 : vector<16x64xf32>
    %c0_16 = arith.constant 0 : index
    %c0_17 = arith.constant 0 : index
    %c0_18 = arith.constant 0 : index
    %23 = vector.load %arg9[%c0_16, %c0_17, %c0_18] : memref<1x16x64xf32, #tpu.memory_space<vmem>>, vector<1x16x64xf32>
    %24 = vector.shape_cast %23 : vector<1x16x64xf32> to vector<16x64xf32>
    %25 = vector.shape_cast %22 : vector<16x64xf32> to vector<1x16x64xf32>
    tpu.vector_store %arg9[%c0_16, %c0_17, %c0_18], %25 {strides = array<i32>} : memref<1x16x64xf32, #tpu.memory_space<vmem>>, vector<1x16x64xf32>,
    return
  }
  func.func @transform_0(%arg0: i32, %arg1: i32) -> (i32, i32, i32) {
    %c0_i32 = arith.constant 0 : i32
    %c0_i32_0 = arith.constant 0 : i32
    return %arg0, %arg1, %c0_i32 : i32, i32, i32
  }
  func.func @transform_1(%arg0: i32, %arg1: i32) -> (i32, i32, i32) {
    %c0_i32 = arith.constant 0 : i32
    %c0_i32_0 = arith.constant 0 : i32
    %c0_i32_1 = arith.constant 0 : i32
    return %arg0, %c0_i32, %c0_i32_0 : i32, i32, i32
  }
  func.func @transform_2(%arg0: i32, %arg1: i32) -> (i32, i32, i32) {
    %c0_i32 = arith.constant 0 : i32
    %c0_i32_0 = arith.constant 0 : i32
    return %arg0, %arg1, %c0_i32 : i32, i32, i32
  }
  func.func @transform_3(%arg0: i32, %arg1: i32) -> (i32, i32) {
    %c0_i32 = arith.constant 0 : i32
    %c0_i32_0 = arith.constant 0 : i32
    %c0_i32_1 = arith.constant 0 : i32
    return %c0_i32, %c0_i32_0 : i32, i32
  }
  func.func @transform_4(%arg0: i32, %arg1: i32) -> (i32, i32) {
    %c0_i32 = arith.constant 0 : i32
    %c0_i32_0 = arith.constant 0 : i32
    %c0_i32_1 = arith.constant 0 : i32
    return %c0_i32, %c0_i32_0 : i32, i32
  }
  func.func @transform_5(%arg0: i32, %arg1: i32) -> (i32, i32) {
    %c0_i32 = arith.constant 0 : i32
    %c0_i32_0 = arith.constant 0 : i32
    %c0_i32_1 = arith.constant 0 : i32
    return %c0_i32, %c0_i32_0 : i32, i32
  }
  func.func @transform_6(%arg0: i32, %arg1: i32) -> (i32, i32) {
    %c0_i32 = arith.constant 0 : i32
    %c0_i32_0 = arith.constant 0 : i32
    %c0_i32_1 = arith.constant 0 : i32
    return %c0_i32, %c0_i32_0 : i32, i32
  }
  func.func @transform_7(%arg0: i32, %arg1: i32) -> (i32, i32, i32) {
    %c0_i32 = arith.constant 0 : i32
    %c0_i32_0 = arith.constant 0 : i32
    return %arg0, %arg1, %c0_i32 : i32, i32, i32
  }
}

module attributes {stable_mosaic.version = 11 : i64} {
  func.func @_stage_in_kernel(%arg0: i32, %arg1: i32, %arg2: memref<1x4x3xbf16, #tpu.memory_space<vmem>>, %arg3: memref<3x256xbf16, #tpu.memory_space<vmem>>, %arg4: memref<1x256xf32, #tpu.memory_space<vmem>>, %arg5: memref<256x128xbf16, #tpu.memory_space<vmem>>, %arg6: memref<1x128xf32, #tpu.memory_space<vmem>>, %arg7: memref<1x128xf32, #tpu.memory_space<vmem>>, %arg8: memref<1x4x128xbf16, #tpu.memory_space<vmem>>) attributes {dimension_semantics = [#tpu.dimension_semantics<parallel>, #tpu.dimension_semantics<parallel>], iteration_bounds = array<i64: 2, 1>, scalar_prefetch = 0 : i64, scratch_operands = 0 : i64, tpu.core_type = #tpu.core_type<tc>, window_params = [{transform_indices = @transform_0, window_bounds = array<i64: 1, 4, 3>}, {pipeline_mode = #tpu.pipeline_mode<synchronous>, transform_indices = @transform_1, window_bounds = array<i64: 3, 256>}, {pipeline_mode = #tpu.pipeline_mode<synchronous>, transform_indices = @transform_2, window_bounds = array<i64: 1, 256>}, {pipeline_mode = #tpu.pipeline_mode<synchronous>, transform_indices = @transform_3, window_bounds = array<i64: 256, 128>}, {pipeline_mode = #tpu.pipeline_mode<synchronous>, transform_indices = @transform_4, window_bounds = array<i64: 1, 128>}, {pipeline_mode = #tpu.pipeline_mode<synchronous>, transform_indices = @transform_5, window_bounds = array<i64: 1, 128>}, {transform_indices = @transform_6, window_bounds = array<i64: 1, 4, 128>}]} {
    %c0 = arith.constant 0 : index
    %c0_0 = arith.constant 0 : index
    %c0_1 = arith.constant 0 : index
    %0 = vector.load %arg2[%c0, %c0_0, %c0_1] : memref<1x4x3xbf16, #tpu.memory_space<vmem>>, vector<1x4x3xbf16>
    %1 = vector.shape_cast %0 : vector<1x4x3xbf16> to vector<4x3xbf16>
    %c0_2 = arith.constant 0 : index
    %c0_3 = arith.constant 0 : index
    %2 = vector.load %arg3[%c0_2, %c0_3] : memref<3x256xbf16, #tpu.memory_space<vmem>>, vector<3x256xbf16>
    %cst = arith.constant dense<0.000000e+00> : vector<4x256xf32>
    %3 = tpu.matmul %1, %2, %cst {dimension_numbers = #tpu.dot_dimension_numbers<[1], [0], [0], [1], [0, 0, 1, 1], [], []>} : vector<4x3xbf16>, vector<3x256xbf16>, vector<4x256xf32> -> vector<4x256xf32>
    %c0_4 = arith.constant 0 : index
    %c0_5 = arith.constant 0 : index
    %4 = vector.load %arg4[%c0_4, %c0_5] : memref<1x256xf32, #tpu.memory_space<vmem>>, vector<1x256xf32>
    %5 = vector.broadcast %4 : vector<1x256xf32> to vector<4x256xf32>
    %6 = arith.addf %3, %5 : vector<4x256xf32>
    %7 = arith.truncf %6 : vector<4x256xf32> to vector<4x256xbf16>
    %c0_6 = arith.constant 0 : index
    %c0_7 = arith.constant 0 : index
    %8 = vector.load %arg5[%c0_6, %c0_7] : memref<256x128xbf16, #tpu.memory_space<vmem>>, vector<256x128xbf16>
    %cst_8 = arith.constant dense<0.000000e+00> : vector<4x128xf32>
    %9 = tpu.matmul %7, %8, %cst_8 {dimension_numbers = #tpu.dot_dimension_numbers<[1], [0], [0], [1], [0, 0, 1, 1], [], []>} : vector<4x256xbf16>, vector<256x128xbf16>, vector<4x128xf32> -> vector<4x128xf32>
    %c0_9 = arith.constant 0 : index
    %c0_10 = arith.constant 0 : index
    %10 = vector.load %arg6[%c0_9, %c0_10] : memref<1x128xf32, #tpu.memory_space<vmem>>, vector<1x128xf32>
    %11 = vector.broadcast %10 : vector<1x128xf32> to vector<4x128xf32>
    %12 = arith.mulf %9, %11 : vector<4x128xf32>
    %c0_11 = arith.constant 0 : index
    %c0_12 = arith.constant 0 : index
    %13 = vector.load %arg7[%c0_11, %c0_12] : memref<1x128xf32, #tpu.memory_space<vmem>>, vector<1x128xf32>
    %14 = vector.broadcast %13 : vector<1x128xf32> to vector<4x128xf32>
    %15 = arith.addf %12, %14 : vector<4x128xf32>
    %cst_13 = arith.constant 0.000000e+00 : f32
    %16 = vector.broadcast %cst_13 : f32 to vector<4x128xf32>
    %17 = arith.maximumf %15, %16 : vector<4x128xf32>
    %18 = arith.truncf %17 : vector<4x128xf32> to vector<4x128xbf16>
    %c0_14 = arith.constant 0 : index
    %c0_15 = arith.constant 0 : index
    %c0_16 = arith.constant 0 : index
    %19 = vector.load %arg8[%c0_14, %c0_15, %c0_16] : memref<1x4x128xbf16, #tpu.memory_space<vmem>>, vector<1x4x128xbf16>
    %20 = vector.shape_cast %19 : vector<1x4x128xbf16> to vector<4x128xbf16>
    %21 = vector.shape_cast %18 : vector<4x128xbf16> to vector<1x4x128xbf16>
    tpu.vector_store %arg8[%c0_14, %c0_15, %c0_16], %21 {strides = array<i32>} : memref<1x4x128xbf16, #tpu.memory_space<vmem>>, vector<1x4x128xbf16>,
    return
  }
  func.func @transform_0(%arg0: i32, %arg1: i32) -> (i32, i32, i32) {
    %c0_i32 = arith.constant 0 : i32
    %c0_i32_0 = arith.constant 0 : i32
    return %arg0, %arg1, %c0_i32 : i32, i32, i32
  }
  func.func @transform_1(%arg0: i32, %arg1: i32) -> (i32, i32) {
    %c0_i32 = arith.constant 0 : i32
    %c0_i32_0 = arith.constant 0 : i32
    %c0_i32_1 = arith.constant 0 : i32
    return %c0_i32, %c0_i32_0 : i32, i32
  }
  func.func @transform_2(%arg0: i32, %arg1: i32) -> (i32, i32) {
    %c0_i32 = arith.constant 0 : i32
    %c0_i32_0 = arith.constant 0 : i32
    %c0_i32_1 = arith.constant 0 : i32
    return %c0_i32, %c0_i32_0 : i32, i32
  }
  func.func @transform_3(%arg0: i32, %arg1: i32) -> (i32, i32) {
    %c0_i32 = arith.constant 0 : i32
    %c0_i32_0 = arith.constant 0 : i32
    %c0_i32_1 = arith.constant 0 : i32
    return %c0_i32, %c0_i32_0 : i32, i32
  }
  func.func @transform_4(%arg0: i32, %arg1: i32) -> (i32, i32) {
    %c0_i32 = arith.constant 0 : i32
    %c0_i32_0 = arith.constant 0 : i32
    %c0_i32_1 = arith.constant 0 : i32
    return %c0_i32, %c0_i32_0 : i32, i32
  }
  func.func @transform_5(%arg0: i32, %arg1: i32) -> (i32, i32) {
    %c0_i32 = arith.constant 0 : i32
    %c0_i32_0 = arith.constant 0 : i32
    %c0_i32_1 = arith.constant 0 : i32
    return %c0_i32, %c0_i32_0 : i32, i32
  }
  func.func @transform_6(%arg0: i32, %arg1: i32) -> (i32, i32, i32) {
    %c0_i32 = arith.constant 0 : i32
    %c0_i32_0 = arith.constant 0 : i32
    return %arg0, %arg1, %c0_i32 : i32, i32, i32
  }
}

module attributes {stable_mosaic.version = 11 : i64} {
  func.func @_stats_kernel(%arg0: i32, %arg1: memref<2x4x128xbf16, #tpu.memory_space<vmem>>, %arg2: memref<2x1x128xf32, #tpu.memory_space<vmem>>, %arg3: memref<2x4x2xf32, #tpu.memory_space<vmem>>) attributes {dimension_semantics = [#tpu.dimension_semantics<parallel>], iteration_bounds = array<i64: 1>, scalar_prefetch = 0 : i64, scratch_operands = 0 : i64, tpu.core_type = #tpu.core_type<tc>, window_params = [{transform_indices = @transform_0, window_bounds = array<i64: 2, 4, 128>}, {pipeline_mode = #tpu.pipeline_mode<synchronous>, transform_indices = @transform_1, window_bounds = array<i64: 2, 1, 128>}, {transform_indices = @transform_2, window_bounds = array<i64: 2, 4, 2>}]} {
    %c0 = arith.constant 0 : index
    %c0_0 = arith.constant 0 : index
    %c0_1 = arith.constant 0 : index
    %0 = vector.load %arg1[%c0, %c0_0, %c0_1] : memref<2x4x128xbf16, #tpu.memory_space<vmem>>, vector<2x4x128xbf16>
    %1 = arith.extf %0 : vector<2x4x128xbf16> to vector<2x4x128xf32>
    %c0_2 = arith.constant 0 : index
    %c0_3 = arith.constant 0 : index
    %c0_4 = arith.constant 0 : index
    %2 = vector.load %arg2[%c0_2, %c0_3, %c0_4] : memref<2x1x128xf32, #tpu.memory_space<vmem>>, vector<2x1x128xf32>
    %3 = vector.broadcast %2 : vector<2x1x128xf32> to vector<2x4x128xf32>
    %4 = arith.mulf %1, %3 : vector<2x4x128xf32>
    %cst = arith.constant dense<0.000000e+00> : vector<2x4xf32>
    %5 = vector.multi_reduction <add>, %4, %cst [2] : vector<2x4x128xf32> to vector<2x4xf32>
    %6 = vector.shape_cast %5 : vector<2x4xf32> to vector<2x4x1xf32>
    %cst_5 = arith.constant 1.280000e+02 : f32
    %7 = vector.broadcast %cst_5 : f32 to vector<2x4x1xf32>
    %8 = arith.divf %6, %7 : vector<2x4x1xf32>
    %c0_6 = arith.constant 0 : index
    %c0_7 = arith.constant 0 : index
    %c0_8 = arith.constant 0 : index
    %9 = vector.load %arg3[%c0_6, %c0_7, %c0_8] : memref<2x4x2xf32, #tpu.memory_space<vmem>>, vector<2x4x1xf32>
    tpu.vector_store %arg3[%c0_6, %c0_7, %c0_8], %8 {strides = array<i32>} : memref<2x4x2xf32, #tpu.memory_space<vmem>>, vector<2x4x1xf32>,
    %cst_9 = arith.constant dense<0xFF800000> : vector<2x4xf32>
    %10 = vector.multi_reduction <maximumf>, %4, %cst_9 [2] : vector<2x4x128xf32> to vector<2x4xf32>
    %11 = vector.shape_cast %10 : vector<2x4xf32> to vector<2x4x1xf32>
    %c0_10 = arith.constant 0 : index
    %c0_11 = arith.constant 0 : index
    %c1 = arith.constant 1 : index
    %12 = vector.load %arg3[%c0_10, %c0_11, %c1] : memref<2x4x2xf32, #tpu.memory_space<vmem>>, vector<2x4x1xf32>
    tpu.vector_store %arg3[%c0_10, %c0_11, %c1], %11 {strides = array<i32>} : memref<2x4x2xf32, #tpu.memory_space<vmem>>, vector<2x4x1xf32>,
    return
  }
  func.func @transform_0(%arg0: i32) -> (i32, i32, i32) {
    %c0_i32 = arith.constant 0 : i32
    %c0_i32_0 = arith.constant 0 : i32
    %c0_i32_1 = arith.constant 0 : i32
    return %c0_i32, %arg0, %c0_i32_0 : i32, i32, i32
  }
  func.func @transform_1(%arg0: i32) -> (i32, i32, i32) {
    %c0_i32 = arith.constant 0 : i32
    %c0_i32_0 = arith.constant 0 : i32
    %c0_i32_1 = arith.constant 0 : i32
    %c0_i32_2 = arith.constant 0 : i32
    return %c0_i32, %c0_i32_0, %c0_i32_1 : i32, i32, i32
  }
  func.func @transform_2(%arg0: i32) -> (i32, i32, i32) {
    %c0_i32 = arith.constant 0 : i32
    %c0_i32_0 = arith.constant 0 : i32
    %c0_i32_1 = arith.constant 0 : i32
    return %c0_i32, %arg0, %c0_i32_0 : i32, i32, i32
  }
}

module attributes {stable_mosaic.version = 11 : i64} {
  func.func @_ca_kernel(%arg0: i32, %arg1: memref<2x4x128xbf16, #tpu.memory_space<vmem>>, %arg2: memref<128x8xbf16, #tpu.memory_space<vmem>>, %arg3: memref<8x128xbf16, #tpu.memory_space<vmem>>, %arg4: memref<2x128xf32, #tpu.memory_space<vmem>>, %arg5: memref<2x128xf32, #tpu.memory_space<vmem>>, %arg6: memref<2x128xf32, #tpu.memory_space<vmem>>) attributes {dimension_semantics = [#tpu.dimension_semantics<arbitrary>], iteration_bounds = array<i64: 1>, scalar_prefetch = 0 : i64, scratch_operands = 2 : i64, tpu.core_type = #tpu.core_type<tc>, window_params = [{transform_indices = @transform_0, window_bounds = array<i64: 2, 4, 128>}, {pipeline_mode = #tpu.pipeline_mode<synchronous>, transform_indices = @transform_1, window_bounds = array<i64: 128, 8>}, {pipeline_mode = #tpu.pipeline_mode<synchronous>, transform_indices = @transform_2, window_bounds = array<i64: 8, 128>}, {pipeline_mode = #tpu.pipeline_mode<synchronous>, transform_indices = @transform_3, window_bounds = array<i64: 2, 128>}]} {
    %c0_i32 = arith.constant 0 : i32
    %0 = arith.cmpi eq, %arg0, %c0_i32 : i32
    %1 = arith.extui %0 : i1 to i32
    %c0_i32_0 = arith.constant 0 : i32
    %2 = arith.cmpi ne, %1, %c0_i32_0 : i32
    scf.if %2 {
      %cst_14 = arith.constant 0.000000e+00 : f32
      %16 = vector.broadcast %cst_14 : f32 to vector<2x128xf32>
      %c0_15 = arith.constant 0 : index
      %c0_16 = arith.constant 0 : index
      %17 = vector.load %arg5[%c0_15, %c0_16] : memref<2x128xf32, #tpu.memory_space<vmem>>, vector<2x128xf32>
      tpu.vector_store %arg5[%c0_15, %c0_16], %16 {strides = array<i32>} : memref<2x128xf32, #tpu.memory_space<vmem>>, vector<2x128xf32>,
      %cst_17 = arith.constant 0xFF800000 : f32
      %18 = vector.broadcast %cst_17 : f32 to vector<2x128xf32>
      %c0_18 = arith.constant 0 : index
      %c0_19 = arith.constant 0 : index
      %19 = vector.load %arg6[%c0_18, %c0_19] : memref<2x128xf32, #tpu.memory_space<vmem>>, vector<2x128xf32>
      tpu.vector_store %arg6[%c0_18, %c0_19], %18 {strides = array<i32>} : memref<2x128xf32, #tpu.memory_space<vmem>>, vector<2x128xf32>,
    } else {
    }
    %c0 = arith.constant 0 : index
    %c0_1 = arith.constant 0 : index
    %c0_2 = arith.constant 0 : index
    %3 = vector.load %arg1[%c0, %c0_1, %c0_2] : memref<2x4x128xbf16, #tpu.memory_space<vmem>>, vector<2x4x128xbf16>
    %4 = arith.extf %3 : vector<2x4x128xbf16> to vector<2x4x128xf32>
    %c0_3 = arith.constant 0 : index
    %c0_4 = arith.constant 0 : index
    %5 = vector.load %arg5[%c0_3, %c0_4] : memref<2x128xf32, #tpu.memory_space<vmem>>, vector<2x128xf32>
    %cst = arith.constant dense<0.000000e+00> : vector<2x128xf32>
    %6 = vector.multi_reduction <add>, %4, %cst [1] : vector<2x4x128xf32> to vector<2x128xf32>
    %7 = arith.addf %5, %6 : vector<2x128xf32>
    %c0_5 = arith.constant 0 : index
    %c0_6 = arith.constant 0 : index
    %8 = vector.load %arg5[%c0_5, %c0_6] : memref<2x128xf32, #tpu.memory_space<vmem>>, vector<2x128xf32>
    tpu.vector_store %arg5[%c0_5, %c0_6], %7 {strides = array<i32>} : memref<2x128xf32, #tpu.memory_space<vmem>>, vector<2x128xf32>,
    %c0_7 = arith.constant 0 : index
    %c0_8 = arith.constant 0 : index
    %9 = vector.load %arg6[%c0_7, %c0_8] : memref<2x128xf32, #tpu.memory_space<vmem>>, vector<2x128xf32>
    %cst_9 = arith.constant dense<0xFF800000> : vector<2x128xf32>
    %10 = vector.multi_reduction <maximumf>, %4, %cst_9 [1] : vector<2x4x128xf32> to vector<2x128xf32>
    %11 = arith.maximumf %9, %10 : vector<2x128xf32>
    %c0_10 = arith.constant 0 : index
    %c0_11 = arith.constant 0 : index
    %12 = vector.load %arg6[%c0_10, %c0_11] : memref<2x128xf32, #tpu.memory_space<vmem>>, vector<2x128xf32>
    tpu.vector_store %arg6[%c0_10, %c0_11], %11 {strides = array<i32>} : memref<2x128xf32, #tpu.memory_space<vmem>>, vector<2x128xf32>,
    %c0_i32_12 = arith.constant 0 : i32
    %13 = arith.cmpi eq, %arg0, %c0_i32_12 : i32
    %14 = arith.extui %13 : i1 to i32
    %c0_i32_13 = arith.constant 0 : i32
    %15 = arith.cmpi ne, %14, %c0_i32_13 : i32
    scf.if %15 {
      %c0_14 = arith.constant 0 : index
      %c0_15 = arith.constant 0 : index
      %16 = vector.load %arg5[%c0_14, %c0_15] : memref<2x128xf32, #tpu.memory_space<vmem>>, vector<2x128xf32>
      %cst_16 = arith.constant 2.500000e-01 : f32
      %17 = vector.broadcast %cst_16 : f32 to vector<2x128xf32>
      %18 = arith.mulf %16, %17 : vector<2x128xf32>
      %19 = arith.truncf %18 : vector<2x128xf32> to vector<2x128xbf16>
      %c0_17 = arith.constant 0 : index
      %c0_18 = arith.constant 0 : index
      %20 = vector.load %arg6[%c0_17, %c0_18] : memref<2x128xf32, #tpu.memory_space<vmem>>, vector<2x128xf32>
      %21 = arith.truncf %20 : vector<2x128xf32> to vector<2x128xbf16>
      %c0_19 = arith.constant 0 : index
      %c0_20 = arith.constant 0 : index
      %22 = vector.load %arg2[%c0_19, %c0_20] : memref<128x8xbf16, #tpu.memory_space<vmem>>, vector<128x8xbf16>
      %cst_21 = arith.constant dense<0.000000e+00> : vector<2x8xf32>
      %23 = tpu.matmul %19, %22, %cst_21 {dimension_numbers = #tpu.dot_dimension_numbers<[1], [0], [0], [1], [0, 0, 1, 1], [], []>} : vector<2x128xbf16>, vector<128x8xbf16>, vector<2x8xf32> -> vector<2x8xf32>
      %cst_22 = arith.constant 0.000000e+00 : f32
      %24 = vector.broadcast %cst_22 : f32 to vector<2x8xf32>
      %25 = arith.maximumf %23, %24 : vector<2x8xf32>
      %c0_23 = arith.constant 0 : index
      %c0_24 = arith.constant 0 : index
      %26 = vector.load %arg2[%c0_23, %c0_24] : memref<128x8xbf16, #tpu.memory_space<vmem>>, vector<128x8xbf16>
      %cst_25 = arith.constant dense<0.000000e+00> : vector<2x8xf32>
      %27 = tpu.matmul %21, %26, %cst_25 {dimension_numbers = #tpu.dot_dimension_numbers<[1], [0], [0], [1], [0, 0, 1, 1], [], []>} : vector<2x128xbf16>, vector<128x8xbf16>, vector<2x8xf32> -> vector<2x8xf32>
      %cst_26 = arith.constant 0.000000e+00 : f32
      %28 = vector.broadcast %cst_26 : f32 to vector<2x8xf32>
      %29 = arith.maximumf %27, %28 : vector<2x8xf32>
      %30 = arith.truncf %25 : vector<2x8xf32> to vector<2x8xbf16>
      %c0_27 = arith.constant 0 : index
      %c0_28 = arith.constant 0 : index
      %31 = vector.load %arg3[%c0_27, %c0_28] : memref<8x128xbf16, #tpu.memory_space<vmem>>, vector<8x128xbf16>
      %cst_29 = arith.constant dense<0.000000e+00> : vector<2x128xf32>
      %32 = tpu.matmul %30, %31, %cst_29 {dimension_numbers = #tpu.dot_dimension_numbers<[1], [0], [0], [1], [0, 0, 1, 1], [], []>} : vector<2x8xbf16>, vector<8x128xbf16>, vector<2x128xf32> -> vector<2x128xf32>
      %33 = arith.truncf %29 : vector<2x8xf32> to vector<2x8xbf16>
      %c0_30 = arith.constant 0 : index
      %c0_31 = arith.constant 0 : index
      %34 = vector.load %arg3[%c0_30, %c0_31] : memref<8x128xbf16, #tpu.memory_space<vmem>>, vector<8x128xbf16>
      %cst_32 = arith.constant dense<0.000000e+00> : vector<2x128xf32>
      %35 = tpu.matmul %33, %34, %cst_32 {dimension_numbers = #tpu.dot_dimension_numbers<[1], [0], [0], [1], [0, 0, 1, 1], [], []>} : vector<2x8xbf16>, vector<8x128xbf16>, vector<2x128xf32> -> vector<2x128xf32>
      %36 = arith.addf %32, %35 : vector<2x128xf32>
      %37 = arith.negf %36 : vector<2x128xf32>
      %38 = math.exp %37 : vector<2x128xf32>
      %cst_33 = arith.constant 1.000000e+00 : f32
      %39 = vector.broadcast %cst_33 : f32 to vector<2x128xf32>
      %40 = arith.addf %39, %38 : vector<2x128xf32>
      %41 = arith.divf %39, %40 : vector<2x128xf32>
      %c0_34 = arith.constant 0 : index
      %c0_35 = arith.constant 0 : index
      %42 = vector.load %arg4[%c0_34, %c0_35] : memref<2x128xf32, #tpu.memory_space<vmem>>, vector<2x128xf32>
      tpu.vector_store %arg4[%c0_34, %c0_35], %41 {strides = array<i32>} : memref<2x128xf32, #tpu.memory_space<vmem>>, vector<2x128xf32>,
    } else {
    }
    return
  }
  func.func @transform_0(%arg0: i32) -> (i32, i32, i32) {
    %c0_i32 = arith.constant 0 : i32
    %c0_i32_0 = arith.constant 0 : i32
    %c0_i32_1 = arith.constant 0 : i32
    return %c0_i32, %arg0, %c0_i32_0 : i32, i32, i32
  }
  func.func @transform_1(%arg0: i32) -> (i32, i32) {
    %c0_i32 = arith.constant 0 : i32
    %c0_i32_0 = arith.constant 0 : i32
    %c0_i32_1 = arith.constant 0 : i32
    return %c0_i32, %c0_i32_0 : i32, i32
  }
  func.func @transform_2(%arg0: i32) -> (i32, i32) {
    %c0_i32 = arith.constant 0 : i32
    %c0_i32_0 = arith.constant 0 : i32
    %c0_i32_1 = arith.constant 0 : i32
    return %c0_i32, %c0_i32_0 : i32, i32
  }
  func.func @transform_3(%arg0: i32) -> (i32, i32) {
    %c0_i32 = arith.constant 0 : i32
    %c0_i32_0 = arith.constant 0 : i32
    %c0_i32_1 = arith.constant 0 : i32
    return %c0_i32, %c0_i32_0 : i32, i32
  }
}

module attributes {stable_mosaic.version = 11 : i64} {
  func.func @_sa_kernel(%arg0: i32, %arg1: memref<2x98x4xf32, #tpu.memory_space<vmem>>, %arg2: memref<1x98x1xf32, #tpu.memory_space<vmem>>, %arg3: memref<2x4xf32, #tpu.memory_space<vmem>>) attributes {dimension_semantics = [#tpu.dimension_semantics<parallel>], iteration_bounds = array<i64: 1>, scalar_prefetch = 0 : i64, scratch_operands = 0 : i64, tpu.core_type = #tpu.core_type<tc>, window_params = [{transform_indices = @transform_0, window_bounds = array<i64: 2, 98, 4>}, {pipeline_mode = #tpu.pipeline_mode<synchronous>, transform_indices = @transform_1, window_bounds = array<i64: 1, 98, 1>}, {transform_indices = @transform_2, window_bounds = array<i64: 2, 4>}]} {
    %c0 = arith.constant 0 : index
    %c0_0 = arith.constant 0 : index
    %c0_1 = arith.constant 0 : index
    %0 = vector.load %arg1[%c0, %c0_0, %c0_1] : memref<2x98x4xf32, #tpu.memory_space<vmem>>, vector<2x98x4xf32>
    %c0_2 = arith.constant 0 : index
    %c0_3 = arith.constant 0 : index
    %c0_4 = arith.constant 0 : index
    %1 = vector.load %arg2[%c0_2, %c0_3, %c0_4] : memref<1x98x1xf32, #tpu.memory_space<vmem>>, vector<1x98x1xf32>
    %2 = vector.broadcast %1 : vector<1x98x1xf32> to vector<2x98x4xf32>
    %3 = arith.mulf %0, %2 : vector<2x98x4xf32>
    %cst = arith.constant dense<0.000000e+00> : vector<2x4xf32>
    %4 = vector.multi_reduction <add>, %3, %cst [1] : vector<2x98x4xf32> to vector<2x4xf32>
    %5 = arith.negf %4 : vector<2x4xf32>
    %6 = math.exp %5 : vector<2x4xf32>
    %cst_5 = arith.constant 1.000000e+00 : f32
    %7 = vector.broadcast %cst_5 : f32 to vector<2x4xf32>
    %8 = arith.addf %7, %6 : vector<2x4xf32>
    %9 = arith.divf %7, %8 : vector<2x4xf32>
    %c0_6 = arith.constant 0 : index
    %c0_7 = arith.constant 0 : index
    %10 = vector.load %arg3[%c0_6, %c0_7] : memref<2x4xf32, #tpu.memory_space<vmem>>, vector<2x4xf32>
    tpu.vector_store %arg3[%c0_6, %c0_7], %9 {strides = array<i32>} : memref<2x4xf32, #tpu.memory_space<vmem>>, vector<2x4xf32>,
    return
  }
  func.func @transform_0(%arg0: i32) -> (i32, i32, i32) {
    %c0_i32 = arith.constant 0 : i32
    %c0_i32_0 = arith.constant 0 : i32
    %c0_i32_1 = arith.constant 0 : i32
    return %c0_i32, %c0_i32_0, %arg0 : i32, i32, i32
  }
  func.func @transform_1(%arg0: i32) -> (i32, i32, i32) {
    %c0_i32 = arith.constant 0 : i32
    %c0_i32_0 = arith.constant 0 : i32
    %c0_i32_1 = arith.constant 0 : i32
    %c0_i32_2 = arith.constant 0 : i32
    return %c0_i32, %c0_i32_0, %c0_i32_1 : i32, i32, i32
  }
  func.func @transform_2(%arg0: i32) -> (i32, i32) {
    %c0_i32 = arith.constant 0 : i32
    %c0_i32_0 = arith.constant 0 : i32
    return %c0_i32, %arg0 : i32, i32
  }
}

module attributes {stable_mosaic.version = 11 : i64} {
  func.func @_lateral_kernel(%arg0: i32, %arg1: i32, %arg2: memref<1x4x128xbf16, #tpu.memory_space<vmem>>, %arg3: memref<1x1x128xf32, #tpu.memory_space<vmem>>, %arg4: memref<1x4x1xf32, #tpu.memory_space<vmem>>, %arg5: memref<1x128xf32, #tpu.memory_space<vmem>>, %arg6: memref<1x128xf32, #tpu.memory_space<vmem>>, %arg7: memref<128x64xbf16, #tpu.memory_space<vmem>>, %arg8: memref<1x64xf32, #tpu.memory_space<vmem>>, %arg9: memref<1x4x64xf32, #tpu.memory_space<vmem>>) attributes {dimension_semantics = [#tpu.dimension_semantics<parallel>, #tpu.dimension_semantics<parallel>], iteration_bounds = array<i64: 2, 1>, scalar_prefetch = 0 : i64, scratch_operands = 0 : i64, tpu.core_type = #tpu.core_type<tc>, window_params = [{transform_indices = @transform_0, window_bounds = array<i64: 1, 4, 128>}, {transform_indices = @transform_1, window_bounds = array<i64: 1, 1, 128>}, {transform_indices = @transform_2, window_bounds = array<i64: 1, 4, 1>}, {pipeline_mode = #tpu.pipeline_mode<synchronous>, transform_indices = @transform_3, window_bounds = array<i64: 1, 128>}, {pipeline_mode = #tpu.pipeline_mode<synchronous>, transform_indices = @transform_4, window_bounds = array<i64: 1, 128>}, {pipeline_mode = #tpu.pipeline_mode<synchronous>, transform_indices = @transform_5, window_bounds = array<i64: 128, 64>}, {pipeline_mode = #tpu.pipeline_mode<synchronous>, transform_indices = @transform_6, window_bounds = array<i64: 1, 64>}, {transform_indices = @transform_7, window_bounds = array<i64: 1, 4, 64>}]} {
    %c0 = arith.constant 0 : index
    %c0_0 = arith.constant 0 : index
    %c0_1 = arith.constant 0 : index
    %0 = vector.load %arg2[%c0, %c0_0, %c0_1] : memref<1x4x128xbf16, #tpu.memory_space<vmem>>, vector<1x4x128xbf16>
    %1 = vector.shape_cast %0 : vector<1x4x128xbf16> to vector<4x128xbf16>
    %2 = arith.extf %1 : vector<4x128xbf16> to vector<4x128xf32>
    %c0_2 = arith.constant 0 : index
    %c0_3 = arith.constant 0 : index
    %c0_4 = arith.constant 0 : index
    %3 = vector.load %arg3[%c0_2, %c0_3, %c0_4] : memref<1x1x128xf32, #tpu.memory_space<vmem>>, vector<1x1x128xf32>
    %4 = vector.shape_cast %3 : vector<1x1x128xf32> to vector<1x128xf32>
    %5 = vector.broadcast %4 : vector<1x128xf32> to vector<4x128xf32>
    %6 = arith.mulf %2, %5 : vector<4x128xf32>
    %c0_5 = arith.constant 0 : index
    %c0_6 = arith.constant 0 : index
    %c0_7 = arith.constant 0 : index
    %7 = vector.load %arg4[%c0_5, %c0_6, %c0_7] : memref<1x4x1xf32, #tpu.memory_space<vmem>>, vector<1x4x1xf32>
    %8 = vector.shape_cast %7 : vector<1x4x1xf32> to vector<4x1xf32>
    %9 = vector.broadcast %8 : vector<4x1xf32> to vector<4x128xf32>
    %10 = arith.mulf %6, %9 : vector<4x128xf32>
    %c0_8 = arith.constant 0 : index
    %c0_9 = arith.constant 0 : index
    %11 = vector.load %arg5[%c0_8, %c0_9] : memref<1x128xf32, #tpu.memory_space<vmem>>, vector<1x128xf32>
    %12 = vector.broadcast %11 : vector<1x128xf32> to vector<4x128xf32>
    %13 = arith.mulf %10, %12 : vector<4x128xf32>
    %c0_10 = arith.constant 0 : index
    %c0_11 = arith.constant 0 : index
    %14 = vector.load %arg6[%c0_10, %c0_11] : memref<1x128xf32, #tpu.memory_space<vmem>>, vector<1x128xf32>
    %15 = vector.broadcast %14 : vector<1x128xf32> to vector<4x128xf32>
    %16 = arith.addf %13, %15 : vector<4x128xf32>
    %17 = arith.truncf %16 : vector<4x128xf32> to vector<4x128xbf16>
    %c0_12 = arith.constant 0 : index
    %c0_13 = arith.constant 0 : index
    %18 = vector.load %arg7[%c0_12, %c0_13] : memref<128x64xbf16, #tpu.memory_space<vmem>>, vector<128x64xbf16>
    %cst = arith.constant dense<0.000000e+00> : vector<4x64xf32>
    %19 = tpu.matmul %17, %18, %cst {dimension_numbers = #tpu.dot_dimension_numbers<[1], [0], [0], [1], [0, 0, 1, 1], [], []>} : vector<4x128xbf16>, vector<128x64xbf16>, vector<4x64xf32> -> vector<4x64xf32>
    %c0_14 = arith.constant 0 : index
    %c0_15 = arith.constant 0 : index
    %20 = vector.load %arg8[%c0_14, %c0_15] : memref<1x64xf32, #tpu.memory_space<vmem>>, vector<1x64xf32>
    %21 = vector.broadcast %20 : vector<1x64xf32> to vector<4x64xf32>
    %22 = arith.addf %19, %21 : vector<4x64xf32>
    %c0_16 = arith.constant 0 : index
    %c0_17 = arith.constant 0 : index
    %c0_18 = arith.constant 0 : index
    %23 = vector.load %arg9[%c0_16, %c0_17, %c0_18] : memref<1x4x64xf32, #tpu.memory_space<vmem>>, vector<1x4x64xf32>
    %24 = vector.shape_cast %23 : vector<1x4x64xf32> to vector<4x64xf32>
    %25 = vector.shape_cast %22 : vector<4x64xf32> to vector<1x4x64xf32>
    tpu.vector_store %arg9[%c0_16, %c0_17, %c0_18], %25 {strides = array<i32>} : memref<1x4x64xf32, #tpu.memory_space<vmem>>, vector<1x4x64xf32>,
    return
  }
  func.func @transform_0(%arg0: i32, %arg1: i32) -> (i32, i32, i32) {
    %c0_i32 = arith.constant 0 : i32
    %c0_i32_0 = arith.constant 0 : i32
    return %arg0, %arg1, %c0_i32 : i32, i32, i32
  }
  func.func @transform_1(%arg0: i32, %arg1: i32) -> (i32, i32, i32) {
    %c0_i32 = arith.constant 0 : i32
    %c0_i32_0 = arith.constant 0 : i32
    %c0_i32_1 = arith.constant 0 : i32
    return %arg0, %c0_i32, %c0_i32_0 : i32, i32, i32
  }
  func.func @transform_2(%arg0: i32, %arg1: i32) -> (i32, i32, i32) {
    %c0_i32 = arith.constant 0 : i32
    %c0_i32_0 = arith.constant 0 : i32
    return %arg0, %arg1, %c0_i32 : i32, i32, i32
  }
  func.func @transform_3(%arg0: i32, %arg1: i32) -> (i32, i32) {
    %c0_i32 = arith.constant 0 : i32
    %c0_i32_0 = arith.constant 0 : i32
    %c0_i32_1 = arith.constant 0 : i32
    return %c0_i32, %c0_i32_0 : i32, i32
  }
  func.func @transform_4(%arg0: i32, %arg1: i32) -> (i32, i32) {
    %c0_i32 = arith.constant 0 : i32
    %c0_i32_0 = arith.constant 0 : i32
    %c0_i32_1 = arith.constant 0 : i32
    return %c0_i32, %c0_i32_0 : i32, i32
  }
  func.func @transform_5(%arg0: i32, %arg1: i32) -> (i32, i32) {
    %c0_i32 = arith.constant 0 : i32
    %c0_i32_0 = arith.constant 0 : i32
    %c0_i32_1 = arith.constant 0 : i32
    return %c0_i32, %c0_i32_0 : i32, i32
  }
  func.func @transform_6(%arg0: i32, %arg1: i32) -> (i32, i32) {
    %c0_i32 = arith.constant 0 : i32
    %c0_i32_0 = arith.constant 0 : i32
    %c0_i32_1 = arith.constant 0 : i32
    return %c0_i32, %c0_i32_0 : i32, i32
  }
  func.func @transform_7(%arg0: i32, %arg1: i32) -> (i32, i32, i32) {
    %c0_i32 = arith.constant 0 : i32
    %c0_i32_0 = arith.constant 0 : i32
    return %arg0, %arg1, %c0_i32 : i32, i32, i32
  }
}

module attributes {stable_mosaic.version = 11 : i64} {
  func.func @_head_kernel(%arg0: memref<4x2x576xbf16, #tpu.memory_space<vmem>>, %arg1: memref<4x576x64xbf16, #tpu.memory_space<vmem>>, %arg2: memref<4x1x64xf32, #tpu.memory_space<vmem>>, %arg3: memref<4x64x32xbf16, #tpu.memory_space<vmem>>, %arg4: memref<1x32xf32, #tpu.memory_space<vmem>>, %arg5: memref<1x32xf32, #tpu.memory_space<vmem>>, %arg6: memref<32x16xbf16, #tpu.memory_space<vmem>>, %arg7: memref<1x16xf32, #tpu.memory_space<vmem>>, %arg8: memref<1x16xf32, #tpu.memory_space<vmem>>, %arg9: memref<16x1xbf16, #tpu.memory_space<vmem>>, %arg10: memref<1x1xf32, #tpu.memory_space<vmem>>, %arg11: memref<2x1xf32, #tpu.memory_space<vmem>>) attributes {dimension_semantics = [], scalar_prefetch = 0 : i64, scratch_operands = 0 : i64, tpu.core_type = #tpu.core_type<tc>} {
    %c0 = arith.constant 0 : index
    %c0_0 = arith.constant 0 : index
    %c0_1 = arith.constant 0 : index
    %0 = vector.load %arg0[%c0, %c0_0, %c0_1] : memref<4x2x576xbf16, #tpu.memory_space<vmem>>, vector<1x2x576xbf16>
    %1 = vector.shape_cast %0 : vector<1x2x576xbf16> to vector<2x576xbf16>
    %c0_2 = arith.constant 0 : index
    %c0_3 = arith.constant 0 : index
    %c0_4 = arith.constant 0 : index
    %2 = vector.load %arg1[%c0_2, %c0_3, %c0_4] : memref<4x576x64xbf16, #tpu.memory_space<vmem>>, vector<1x576x64xbf16>
    %3 = vector.shape_cast %2 : vector<1x576x64xbf16> to vector<576x64xbf16>
    %cst = arith.constant dense<0.000000e+00> : vector<2x64xf32>
    %4 = tpu.matmul %1, %3, %cst {dimension_numbers = #tpu.dot_dimension_numbers<[1], [0], [0], [1], [0, 0, 1, 1], [], []>} : vector<2x576xbf16>, vector<576x64xbf16>, vector<2x64xf32> -> vector<2x64xf32>
    %c0_5 = arith.constant 0 : index
    %c0_6 = arith.constant 0 : index
    %c0_7 = arith.constant 0 : index
    %5 = vector.load %arg2[%c0_5, %c0_6, %c0_7] : memref<4x1x64xf32, #tpu.memory_space<vmem>>, vector<1x1x64xf32>
    %6 = vector.shape_cast %5 : vector<1x1x64xf32> to vector<1x64xf32>
    %7 = vector.broadcast %6 : vector<1x64xf32> to vector<2x64xf32>
    %8 = arith.addf %4, %7 : vector<2x64xf32>
    %9 = arith.truncf %8 : vector<2x64xf32> to vector<2x64xbf16>
    %c0_8 = arith.constant 0 : index
    %c0_9 = arith.constant 0 : index
    %c0_10 = arith.constant 0 : index
    %10 = vector.load %arg3[%c0_8, %c0_9, %c0_10] : memref<4x64x32xbf16, #tpu.memory_space<vmem>>, vector<1x64x32xbf16>
    %11 = vector.shape_cast %10 : vector<1x64x32xbf16> to vector<64x32xbf16>
    %cst_11 = arith.constant dense<0.000000e+00> : vector<2x32xf32>
    %12 = tpu.matmul %9, %11, %cst_11 {dimension_numbers = #tpu.dot_dimension_numbers<[1], [0], [0], [1], [0, 0, 1, 1], [], []>} : vector<2x64xbf16>, vector<64x32xbf16>, vector<2x32xf32> -> vector<2x32xf32>
    %c1 = arith.constant 1 : index
    %c0_12 = arith.constant 0 : index
    %c0_13 = arith.constant 0 : index
    %13 = vector.load %arg0[%c1, %c0_12, %c0_13] : memref<4x2x576xbf16, #tpu.memory_space<vmem>>, vector<1x2x576xbf16>
    %14 = vector.shape_cast %13 : vector<1x2x576xbf16> to vector<2x576xbf16>
    %c1_14 = arith.constant 1 : index
    %c0_15 = arith.constant 0 : index
    %c0_16 = arith.constant 0 : index
    %15 = vector.load %arg1[%c1_14, %c0_15, %c0_16] : memref<4x576x64xbf16, #tpu.memory_space<vmem>>, vector<1x576x64xbf16>
    %16 = vector.shape_cast %15 : vector<1x576x64xbf16> to vector<576x64xbf16>
    %cst_17 = arith.constant dense<0.000000e+00> : vector<2x64xf32>
    %17 = tpu.matmul %14, %16, %cst_17 {dimension_numbers = #tpu.dot_dimension_numbers<[1], [0], [0], [1], [0, 0, 1, 1], [], []>} : vector<2x576xbf16>, vector<576x64xbf16>, vector<2x64xf32> -> vector<2x64xf32>
    %c1_18 = arith.constant 1 : index
    %c0_19 = arith.constant 0 : index
    %c0_20 = arith.constant 0 : index
    %18 = vector.load %arg2[%c1_18, %c0_19, %c0_20] : memref<4x1x64xf32, #tpu.memory_space<vmem>>, vector<1x1x64xf32>
    %19 = vector.shape_cast %18 : vector<1x1x64xf32> to vector<1x64xf32>
    %20 = vector.broadcast %19 : vector<1x64xf32> to vector<2x64xf32>
    %21 = arith.addf %17, %20 : vector<2x64xf32>
    %22 = arith.truncf %21 : vector<2x64xf32> to vector<2x64xbf16>
    %c1_21 = arith.constant 1 : index
    %c0_22 = arith.constant 0 : index
    %c0_23 = arith.constant 0 : index
    %23 = vector.load %arg3[%c1_21, %c0_22, %c0_23] : memref<4x64x32xbf16, #tpu.memory_space<vmem>>, vector<1x64x32xbf16>
    %24 = vector.shape_cast %23 : vector<1x64x32xbf16> to vector<64x32xbf16>
    %cst_24 = arith.constant dense<0.000000e+00> : vector<2x32xf32>
    %25 = tpu.matmul %22, %24, %cst_24 {dimension_numbers = #tpu.dot_dimension_numbers<[1], [0], [0], [1], [0, 0, 1, 1], [], []>} : vector<2x64xbf16>, vector<64x32xbf16>, vector<2x32xf32> -> vector<2x32xf32>
    %26 = arith.addf %12, %25 : vector<2x32xf32>
    %c2 = arith.constant 2 : index
    %c0_25 = arith.constant 0 : index
    %c0_26 = arith.constant 0 : index
    %27 = vector.load %arg0[%c2, %c0_25, %c0_26] : memref<4x2x576xbf16, #tpu.memory_space<vmem>>, vector<1x2x576xbf16>
    %28 = vector.shape_cast %27 : vector<1x2x576xbf16> to vector<2x576xbf16>
    %c2_27 = arith.constant 2 : index
    %c0_28 = arith.constant 0 : index
    %c0_29 = arith.constant 0 : index
    %29 = vector.load %arg1[%c2_27, %c0_28, %c0_29] : memref<4x576x64xbf16, #tpu.memory_space<vmem>>, vector<1x576x64xbf16>
    %30 = vector.shape_cast %29 : vector<1x576x64xbf16> to vector<576x64xbf16>
    %cst_30 = arith.constant dense<0.000000e+00> : vector<2x64xf32>
    %31 = tpu.matmul %28, %30, %cst_30 {dimension_numbers = #tpu.dot_dimension_numbers<[1], [0], [0], [1], [0, 0, 1, 1], [], []>} : vector<2x576xbf16>, vector<576x64xbf16>, vector<2x64xf32> -> vector<2x64xf32>
    %c2_31 = arith.constant 2 : index
    %c0_32 = arith.constant 0 : index
    %c0_33 = arith.constant 0 : index
    %32 = vector.load %arg2[%c2_31, %c0_32, %c0_33] : memref<4x1x64xf32, #tpu.memory_space<vmem>>, vector<1x1x64xf32>
    %33 = vector.shape_cast %32 : vector<1x1x64xf32> to vector<1x64xf32>
    %34 = vector.broadcast %33 : vector<1x64xf32> to vector<2x64xf32>
    %35 = arith.addf %31, %34 : vector<2x64xf32>
    %36 = arith.truncf %35 : vector<2x64xf32> to vector<2x64xbf16>
    %c2_34 = arith.constant 2 : index
    %c0_35 = arith.constant 0 : index
    %c0_36 = arith.constant 0 : index
    %37 = vector.load %arg3[%c2_34, %c0_35, %c0_36] : memref<4x64x32xbf16, #tpu.memory_space<vmem>>, vector<1x64x32xbf16>
    %38 = vector.shape_cast %37 : vector<1x64x32xbf16> to vector<64x32xbf16>
    %cst_37 = arith.constant dense<0.000000e+00> : vector<2x32xf32>
    %39 = tpu.matmul %36, %38, %cst_37 {dimension_numbers = #tpu.dot_dimension_numbers<[1], [0], [0], [1], [0, 0, 1, 1], [], []>} : vector<2x64xbf16>, vector<64x32xbf16>, vector<2x32xf32> -> vector<2x32xf32>
    %40 = arith.addf %26, %39 : vector<2x32xf32>
    %c3 = arith.constant 3 : index
    %c0_38 = arith.constant 0 : index
    %c0_39 = arith.constant 0 : index
    %41 = vector.load %arg0[%c3, %c0_38, %c0_39] : memref<4x2x576xbf16, #tpu.memory_space<vmem>>, vector<1x2x576xbf16>
    %42 = vector.shape_cast %41 : vector<1x2x576xbf16> to vector<2x576xbf16>
    %c3_40 = arith.constant 3 : index
    %c0_41 = arith.constant 0 : index
    %c0_42 = arith.constant 0 : index
    %43 = vector.load %arg1[%c3_40, %c0_41, %c0_42] : memref<4x576x64xbf16, #tpu.memory_space<vmem>>, vector<1x576x64xbf16>
    %44 = vector.shape_cast %43 : vector<1x576x64xbf16> to vector<576x64xbf16>
    %cst_43 = arith.constant dense<0.000000e+00> : vector<2x64xf32>
    %45 = tpu.matmul %42, %44, %cst_43 {dimension_numbers = #tpu.dot_dimension_numbers<[1], [0], [0], [1], [0, 0, 1, 1], [], []>} : vector<2x576xbf16>, vector<576x64xbf16>, vector<2x64xf32> -> vector<2x64xf32>
    %c3_44 = arith.constant 3 : index
    %c0_45 = arith.constant 0 : index
    %c0_46 = arith.constant 0 : index
    %46 = vector.load %arg2[%c3_44, %c0_45, %c0_46] : memref<4x1x64xf32, #tpu.memory_space<vmem>>, vector<1x1x64xf32>
    %47 = vector.shape_cast %46 : vector<1x1x64xf32> to vector<1x64xf32>
    %48 = vector.broadcast %47 : vector<1x64xf32> to vector<2x64xf32>
    %49 = arith.addf %45, %48 : vector<2x64xf32>
    %50 = arith.truncf %49 : vector<2x64xf32> to vector<2x64xbf16>
    %c3_47 = arith.constant 3 : index
    %c0_48 = arith.constant 0 : index
    %c0_49 = arith.constant 0 : index
    %51 = vector.load %arg3[%c3_47, %c0_48, %c0_49] : memref<4x64x32xbf16, #tpu.memory_space<vmem>>, vector<1x64x32xbf16>
    %52 = vector.shape_cast %51 : vector<1x64x32xbf16> to vector<64x32xbf16>
    %cst_50 = arith.constant dense<0.000000e+00> : vector<2x32xf32>
    %53 = tpu.matmul %50, %52, %cst_50 {dimension_numbers = #tpu.dot_dimension_numbers<[1], [0], [0], [1], [0, 0, 1, 1], [], []>} : vector<2x64xbf16>, vector<64x32xbf16>, vector<2x32xf32> -> vector<2x32xf32>
    %54 = arith.addf %40, %53 : vector<2x32xf32>
    %c0_51 = arith.constant 0 : index
    %c0_52 = arith.constant 0 : index
    %55 = vector.load %arg4[%c0_51, %c0_52] : memref<1x32xf32, #tpu.memory_space<vmem>>, vector<1x32xf32>
    %56 = vector.broadcast %55 : vector<1x32xf32> to vector<2x32xf32>
    %57 = arith.mulf %54, %56 : vector<2x32xf32>
    %c0_53 = arith.constant 0 : index
    %c0_54 = arith.constant 0 : index
    %58 = vector.load %arg5[%c0_53, %c0_54] : memref<1x32xf32, #tpu.memory_space<vmem>>, vector<1x32xf32>
    %59 = vector.broadcast %58 : vector<1x32xf32> to vector<2x32xf32>
    %60 = arith.addf %57, %59 : vector<2x32xf32>
    %cst_55 = arith.constant 0.000000e+00 : f32
    %61 = vector.broadcast %cst_55 : f32 to vector<2x32xf32>
    %62 = arith.maximumf %60, %61 : vector<2x32xf32>
    %63 = arith.truncf %62 : vector<2x32xf32> to vector<2x32xbf16>
    %c0_56 = arith.constant 0 : index
    %c0_57 = arith.constant 0 : index
    %64 = vector.load %arg6[%c0_56, %c0_57] : memref<32x16xbf16, #tpu.memory_space<vmem>>, vector<32x16xbf16>
    %cst_58 = arith.constant dense<0.000000e+00> : vector<2x16xf32>
    %65 = tpu.matmul %63, %64, %cst_58 {dimension_numbers = #tpu.dot_dimension_numbers<[1], [0], [0], [1], [0, 0, 1, 1], [], []>} : vector<2x32xbf16>, vector<32x16xbf16>, vector<2x16xf32> -> vector<2x16xf32>
    %c0_59 = arith.constant 0 : index
    %c0_60 = arith.constant 0 : index
    %66 = vector.load %arg7[%c0_59, %c0_60] : memref<1x16xf32, #tpu.memory_space<vmem>>, vector<1x16xf32>
    %67 = vector.broadcast %66 : vector<1x16xf32> to vector<2x16xf32>
    %68 = arith.mulf %65, %67 : vector<2x16xf32>
    %c0_61 = arith.constant 0 : index
    %c0_62 = arith.constant 0 : index
    %69 = vector.load %arg8[%c0_61, %c0_62] : memref<1x16xf32, #tpu.memory_space<vmem>>, vector<1x16xf32>
    %70 = vector.broadcast %69 : vector<1x16xf32> to vector<2x16xf32>
    %71 = arith.addf %68, %70 : vector<2x16xf32>
    %cst_63 = arith.constant 0.000000e+00 : f32
    %72 = vector.broadcast %cst_63 : f32 to vector<2x16xf32>
    %73 = arith.maximumf %71, %72 : vector<2x16xf32>
    %74 = arith.truncf %73 : vector<2x16xf32> to vector<2x16xbf16>
    %c0_64 = arith.constant 0 : index
    %c0_65 = arith.constant 0 : index
    %75 = vector.load %arg9[%c0_64, %c0_65] : memref<16x1xbf16, #tpu.memory_space<vmem>>, vector<16x1xbf16>
    %cst_66 = arith.constant dense<0.000000e+00> : vector<2x1xf32>
    %76 = tpu.matmul %74, %75, %cst_66 {dimension_numbers = #tpu.dot_dimension_numbers<[1], [0], [0], [1], [0, 0, 1, 1], [], []>} : vector<2x16xbf16>, vector<16x1xbf16>, vector<2x1xf32> -> vector<2x1xf32>
    %c0_67 = arith.constant 0 : index
    %c0_68 = arith.constant 0 : index
    %77 = vector.load %arg10[%c0_67, %c0_68] : memref<1x1xf32, #tpu.memory_space<vmem>>, vector<1x1xf32>
    %78 = vector.broadcast %77 : vector<1x1xf32> to vector<2x1xf32>
    %79 = arith.addf %76, %78 : vector<2x1xf32>
    %80 = arith.negf %79 : vector<2x1xf32>
    %81 = math.exp %80 : vector<2x1xf32>
    %cst_69 = arith.constant 1.000000e+00 : f32
    %82 = vector.broadcast %cst_69 : f32 to vector<2x1xf32>
    %83 = arith.addf %82, %81 : vector<2x1xf32>
    %84 = arith.divf %82, %83 : vector<2x1xf32>
    %c0_70 = arith.constant 0 : index
    %c0_71 = arith.constant 0 : index
    %85 = vector.load %arg11[%c0_70, %c0_71] : memref<2x1xf32, #tpu.memory_space<vmem>>, vector<2x1xf32>
    tpu.vector_store %arg11[%c0_70, %c0_71], %84 {strides = array<i32>} : memref<2x1xf32, #tpu.memory_space<vmem>>, vector<2x1xf32>,
    return
  }
}

</mosaic_0001>

<bundles_post_ra>
// kernel: maniqa_forward.21
= control target key start
LH: loop header
LB: loop body
LE: loop exit
PB: predicated region body
PF: predicated region fallthrough
CT: control target
= control target key end

     0   :  { %s1593_s21 = smov 0   ;;  %s1595_s22 = smov 0   ;;  %s1875_s0 = inlined_call_operand.vmem [shape: bf16[2,256,3], index: 0, kind: input, shape index: {}]   ;;  %s1876_s1 = inlined_call_operand.vmem [shape: bf16[3,64], index: 1, kind: input, shape index: {}]   ;;  %s1877_s2 = inlined_call_operand.vmem [shape: f32[1,64], index: 2, kind: input, shape index: {}]   ;;  %s1878_s3 = inlined_call_operand.vmem [shape: bf16[64,32], index: 3, kind: input, shape index: {}]   ;;  %s1879_s4 = inlined_call_operand.vmem [shape: f32[1,32], index: 4, kind: input, shape index: {}]   ;;  %s1880_s5 = inlined_call_operand.vmem [shape: f32[1,32], index: 5, kind: input, shape index: {}]   ;;  %s1881_s6 = inlined_call_operand.vmem [shape: bf16[2,256,32], index: 6, kind: output, shape index: {}]  }
   0x1   :  { %s1597_s23 = smov 0  }
   0x2 LB: > { %s28_s24 = sadd.s32 1, %s1551_s22  ;;  %p1249_p0 = scmp.ge.s32.totalorder %s1555_s23, 1  ;;  %s1555_s23 = sphi %s1597_s23, %s16_s23   ;;  %s1551_s22 = sphi %s1595_s22, %s1883_s22   ;;  %s1547_s21 = sphi %s1593_s21, %s1882_s21  }
   0x3   : > { %p30_p1 = scmp.ge.s32.totalorder %s28_s24, 2  ;;  %p233_p2 = scmp.lt.s32.totalorder %s1555_s23, 3 }
   0x5   : > { %s1885_s24 = smov (%p30_p1, %s28_s24), 0  ;;  %p234_p3 = pnand %p1249_p0, %p233_p2 }
   0x6   : > { %v324_v0 = vld [vmem:[%s1876_s1] sm:$0x3] (!%p234_p3)  ;;  %vm461_vm0 = vcmask (!%p234_p3), 1040384   ;;  %vm462_vm1 = vcmask (!%p234_p3), 1041408   ;;  %p272_p4 = scmp.lt.s32.totalorder (!%p234_p3), %s1547_s21, 1  ;;  %v1557_v1 = vmov (!%p234_p3), 65535  }
   0x7   : > { %237 = sbr.rel (%p234_p3) target bundleno = 519 (0x207), region = 44  ;;  %v463_v2 = vsel (!%p234_p3), %vm461_vm0, 4294967295, %v1557_v1  ;;  %v1529_v4 = vld [vmem:[%s1878_s3] sm:$0xff] (!%p234_p3)   ;;  %v1530_v5 = vld [vmem:[%s1878_s3 + $0x8] sm:$0xff] (!%p234_p3)   ;;  %vm412_vm2 = vcmask (!%p234_p3), 23552   ;;  %v1531_v23 = vld [vmem:[%s1878_s3 + $0x10] sm:$0xff] (!%p234_p3)  }
   0x8   : > { %v464_v3 = vsel (!%p234_p3), %vm462_vm1, %v463_v2, 0  ;;  %1448 = vmatprep.subr.bf16.mxu1 (!%p234_p3), %v1529_v4  ;;  %v1532_v24 = vld [vmem:[%s1878_s3 + $0x18] sm:$0xff] (!%p234_p3)   ;;  %v1671_v26 = vld [vmem:[%s1877_s2] ss:$0 sm:$0xff] (!%p234_p3)  ;;  %vm677_vm3 = vcmask (!%p234_p3), 523264   ;;  %vm1125_vm4 = vcmask (!%p234_p3), 257024  }
   0x9   : > { %v466_v6 = vand.u32 (!%p234_p3), %v464_v3, %v324_v0  ;;  %1449 = vmatpush3.bf16.msra.mxu1 (!%p234_p3), %v1529_v4 }
   0xa   : > { %1450 = vmatprep.subr.bf16.mxu1 (!%p234_p3), %v1530_v5 }
   0xb   : > { %1414 = vmatprep.subr.bf16.mxu0 (!%p234_p3), %v466_v6 }
   0xc   : > { %1415 = vmatpush3.bf16.msra.mxu0 (!%p234_p3), %v466_v6 }
   0xd   : > { %1451 = vmatpush3.bf16.msra.mxu1 (!%p234_p3), %v1530_v5 }
   0xe   : > { %s1887_s21 = smov (!%p272_p4, %s1547_s21), 1  ;;  %1452 = vmatprep.subr.bf16.mxu1 %v1531_v23 }
   0xf   : > { %s1343_s7 = sshll.u32 %s1887_s21, 7 }
  0x10   : > { %s1628_s10 = scalar_lea.vmem %s1875_s0, %s1343_s7  ;;  %s1743_s27 = scalar_lea.vmem %s1881_s6, %s1343_s7 }
  0x11   : > { %v1513_v7 = vld [vmem:[%s1628_s10] sm:$0xff]   ;;  %v1514_v8 = vld [vmem:[%s1628_s10 + $0x8] sm:$0xff]   ;;  %v1515_v9 = vld [vmem:[%s1628_s10 + $0x10] sm:$0xff]   ;;  %1453 = vmatpush3.bf16.msra.mxu1 %v1531_v23 }
  0x12   : > { %1416 = vmatprep.mubr.msk.bf16.mxu0 %vm412_vm2, %v1513_v7  ;;  %v1516_v10 = vld [vmem:[%s1628_s10 + $0x18] sm:$0xff]   ;;  %v1517_v11 = vld [vmem:[%s1628_s10 + $0x20] sm:$0xff]   ;;  %v1518_v12 = vld [vmem:[%s1628_s10 + $0x28] sm:$0xff]   ;;  %1454 = vmatprep.subr.bf16.mxu1 %v1532_v24 }
  0x13   : > { %1417 = vmatmul.mubr.msk.bf16.vlgmr.msra.gmra.mrb[0].mxu0 %vm412_vm2, %v1514_v8  ;;  %v1519_v13 = vld [vmem:[%s1628_s10 + $0x30] sm:$0xff]   ;;  %v1520_v14 = vld [vmem:[%s1628_s10 + $0x38] sm:$0xff]   ;;  %v1521_v15 = vld [vmem:[%s1628_s10 + $0x40] sm:$0xff]  }
  0x14   : > { %1420 = vmatprep.mubr.msk.bf16.mxu0 %vm412_vm2, %v1515_v9  ;;  %v1522_v16 = vld [vmem:[%s1628_s10 + $0x48] sm:$0xff]   ;;  %v1523_v17 = vld [vmem:[%s1628_s10 + $0x50] sm:$0xff]   ;;  %v1524_v18 = vld [vmem:[%s1628_s10 + $0x58] sm:$0xff]  }
  0x15   : > { %v1525_v19 = vld [vmem:[%s1628_s10 + $0x60] sm:$0xff]   ;;  %v1526_v20 = vld [vmem:[%s1628_s10 + $0x68] sm:$0xff]   ;;  %v1527_v21 = vld [vmem:[%s1628_s10 + $0x70] sm:$0xff]   ;;  %1455 = vmatpush3.bf16.msra.mxu1 %v1532_v24 }
  0x16   : > { %v1528_v22 = vld [vmem:[%s1628_s10 + $0x78] sm:$0xff]  }
  0x1b   : > { %1421 = vmatmul.mubr.msk.bf16.gmra.mrb[4].mxu0 %vm412_vm2, %v1516_v10 }
  0x1c   : > { %1424 = vmatprep.mubr.msk.bf16.mxu0 %vm412_vm2, %v1517_v11 }
  0x23   : > { %1425 = vmatmul.mubr.msk.bf16.gmra.mrb[8].mxu0 %vm412_vm2, %v1518_v12 }
  0x24   : > { %1428 = vmatprep.mubr.msk.bf16.mxu0 %vm412_vm2, %v1519_v13 }
  0x2b   : > { %1429 = vmatmul.mubr.msk.bf16.gmra.mrb[12].mxu0 %vm412_vm2, %v1520_v14 }
  0x2c   : > { %1432 = vmatprep.mubr.msk.bf16.mxu0 %vm412_vm2, %v1521_v15 }
  0x33   : > { %1433 = vmatmul.mubr.msk.bf16.gmra.mrb[16].mxu0 %vm412_vm2, %v1522_v16 }
  0x34   : > { %1436 = vmatprep.mubr.msk.bf16.mxu0 %vm412_vm2, %v1523_v17 }
  0x3b   : > { %1437 = vmatmul.mubr.msk.bf16.gmra.mrb[20].mxu0 %vm412_vm2, %v1524_v18 }
  0x3c   : > { %1440 = vmatprep.mubr.msk.bf16.mxu0 %vm412_vm2, %v1525_v19 }
  0x43   : > { %1441 = vmatmul.mubr.msk.bf16.gmra.mrb[24].mxu0 %vm412_vm2, %v1526_v20 }
  0x44   : > { %1444 = vmatprep.mubr.msk.bf16.mxu0 %vm412_vm2, %v1527_v21 }
  0x4b   : > { %1445 = vmatmul.mubr.msk.bf16.gmra.mrb[28].mxu0 %vm412_vm2, %v1528_v22 }
  0xe6   : > { %v1418_v25 = vpop.f32.mrb[0].mxu0 }
  0xe7   : > { %v502_v27 = vpop.f32.mrb[1].mxu0  ;;  %v511_v29 = vadd.f32 %v1418_v25, %v1671_v26 }
  0xe8   : > { %v1419_v28 = vpop.f32.mrb[2].mxu0  ;;  %v503_v32 = vadd.f32 %v1671_v26, %v502_v27 }
  0xe9   : > { %v514_v30 = vadd.f32 %v1419_v28, %v1671_v26  ;;  %v505_v31 = vpop.f32.mrb[3].mxu0 }
  0xea   : > { %v506_v33 = vadd.f32 %v1671_v26, %v505_v31 }
  0xeb   : > { %v630_v34 = vpack.c.bf16 %v514_v30, %v511_v29 }
  0xec   : > { %v629_v35 = vpack.c.bf16 %v506_v33, %v503_v32 }
  0xee   : > { %v1422_v36 = vpop.f32.mrb[4].mxu0  ;;  %1456 = vmatprep.mubr.msk.bf16.mxu1 %vm677_vm3, %v629_v35 }
  0xef   : > { %v518_v37 = vpop.f32.mrb[5].mxu0  ;;  %1457 = vmatmul.mubr.msk.bf16.vlgmr.msra.gmra.mrb[0].mxu1 %vm677_vm3, %v630_v34  ;;  %v527_v39 = vadd.f32 %v1422_v36, %v1671_v26 }
  0xf0   : > { %v1423_v38 = vpop.f32.mrb[6].mxu0  ;;  %v519_v42 = vadd.f32 %v1671_v26, %v518_v37 }
  0xf1   : > { %v530_v40 = vadd.f32 %v1423_v38, %v1671_v26  ;;  %v521_v41 = vpop.f32.mrb[7].mxu0 }
  0xf2   : > { %v522_v43 = vadd.f32 %v1671_v26, %v521_v41 }
  0xf3   : > { %v632_v44 = vpack.c.bf16 %v530_v40, %v527_v39 }
  0xf4   : > { %v631_v45 = vpack.c.bf16 %v522_v43, %v519_v42  ;;  %v1724_v43 = vld [vmem:[%s1879_s4] ss:$0 sm:$0xff] }
  0xf6   : > { %v1426_v46 = vpop.f32.mrb[8].mxu0  ;;  %1460 = vmatprep.mubr.msk.bf16.mxu1 %vm677_vm3, %v631_v45  ;;  %v1729_v45 = vld [vmem:[%s1880_s5] ss:$0 sm:$0xff] }
  0xf7   : > { %v534_v47 = vpop.f32.mrb[9].mxu0  ;;  %1461 = vmatmul.mubr.msk.bf16.gmra.mrb[4].mxu1 %vm677_vm3, %v632_v44  ;;  %v543_v49 = vadd.f32 %v1426_v46, %v1671_v26 }
  0xf8   : > { %v1427_v48 = vpop.f32.mrb[10].mxu0  ;;  %v535_v52 = vadd.f32 %v1671_v26, %v534_v47 }
  0xf9   : > { %v546_v50 = vadd.f32 %v1427_v48, %v1671_v26  ;;  %v537_v51 = vpop.f32.mrb[11].mxu0 }
  0xfa   : > { %v538_v53 = vadd.f32 %v1671_v26, %v537_v51 }
  0xfb   : > { %v634_v54 = vpack.c.bf16 %v546_v50, %v543_v49 }
  0xfc   : > { %v633_v55 = vpack.c.bf16 %v538_v53, %v535_v52 }
  0xfe   : > { %v1430_v56 = vpop.f32.mrb[12].mxu0  ;;  %1464 = vmatprep.mubr.msk.bf16.mxu1 %vm677_vm3, %v633_v55 }
  0xff   : > { %v550_v57 = vpop.f32.mrb[13].mxu0  ;;  %1465 = vmatmul.mubr.msk.bf16.gmra.mrb[8].mxu1 %vm677_vm3, %v634_v54  ;;  %v559_v59 = vadd.f32 %v1430_v56, %v1671_v26 }
 0x100   : > { %v1431_v58 = vpop.f32.mrb[14].mxu0  ;;  %v551_v62 = vadd.f32 %v1671_v26, %v550_v57 }
 0x101   : > { %v562_v60 = vadd.f32 %v1431_v58, %v1671_v26  ;;  %v553_v61 = vpop.f32.mrb[15].mxu0 }
 0x102   : > { %v554_v63 = vadd.f32 %v1671_v26, %v553_v61 }
 0x103   : > { %v636_v0 = vpack.c.bf16 %v562_v60, %v559_v59 }
 0x104   : > { %v635_v1 = vpack.c.bf16 %v554_v63, %v551_v62 }
 0x106   : > { %v1434_v2 = vpop.f32.mrb[16].mxu0  ;;  %1468 = vmatprep.mubr.msk.bf16.mxu1 %vm677_vm3, %v635_v1 }
 0x107   : > { %v566_v3 = vpop.f32.mrb[17].mxu0  ;;  %1469 = vmatmul.mubr.msk.bf16.gmra.mrb[12].mxu1 %vm677_vm3, %v636_v0  ;;  %v575_v5 = vadd.f32 %v1434_v2, %v1671_v26 }
 0x108   : > { %v1435_v4 = vpop.f32.mrb[18].mxu0  ;;  %v567_v8 = vadd.f32 %v1671_v26, %v566_v3 }
 0x109   : > { %v578_v6 = vadd.f32 %v1435_v4, %v1671_v26  ;;  %v569_v7 = vpop.f32.mrb[19].mxu0 }
 0x10a   : > { %v570_v9 = vadd.f32 %v1671_v26, %v569_v7 }
 0x10b   : > { %v638_v10 = vpack.c.bf16 %v578_v6, %v575_v5 }
 0x10c   : > { %v637_v11 = vpack.c.bf16 %v570_v9, %v567_v8 }
 0x10e   : > { %v1438_v12 = vpop.f32.mrb[20].mxu0  ;;  %1472 = vmatprep.mubr.msk.bf16.mxu1 %vm677_vm3, %v637_v11 }
 0x10f   : > { %v582_v13 = vpop.f32.mrb[21].mxu0  ;;  %1473 = vmatmul.mubr.msk.bf16.gmra.mrb[16].mxu1 %vm677_vm3, %v638_v10  ;;  %v591_v15 = vadd.f32 %v1438_v12, %v1671_v26 }
 0x110   : > { %v1439_v14 = vpop.f32.mrb[22].mxu0  ;;  %v583_v18 = vadd.f32 %v1671_v26, %v582_v13 }
 0x111   : > { %v594_v16 = vadd.f32 %v1439_v14, %v1671_v26  ;;  %v585_v17 = vpop.f32.mrb[23].mxu0 }
 0x112   : > { %v586_v19 = vadd.f32 %v1671_v26, %v585_v17 }
 0x113   : > { %v640_v20 = vpack.c.bf16 %v594_v16, %v591_v15 }
 0x114   : > { %v639_v21 = vpack.c.bf16 %v586_v19, %v583_v18 }
 0x116   : > { %v1442_v22 = vpop.f32.mrb[24].mxu0  ;;  %1476 = vmatprep.mubr.msk.bf16.mxu1 %vm677_vm3, %v639_v21 }
 0x117   : > { %v598_v23 = vpop.f32.mrb[25].mxu0  ;;  %1477 = vmatmul.mubr.msk.bf16.gmra.mrb[20].mxu1 %vm677_vm3, %v640_v20  ;;  %v607_v25 = vadd.f32 %v1442_v22, %v1671_v26 }
 0x118   : > { %v1443_v24 = vpop.f32.mrb[26].mxu0  ;;  %v599_v29 = vadd.f32 %v1671_v26, %v598_v23 }
 0x119   : > { %v610_v27 = vadd.f32 %v1443_v24, %v1671_v26  ;;  %v601_v28 = vpop.f32.mrb[27].mxu0 }
 0x11a   : > { %v602_v30 = vadd.f32 %v1671_v26, %v601_v28 }
 0x11b   : > { %v642_v31 = vpack.c.bf16 %v610_v27, %v607_v25 }
 0x11c   : > { %v641_v32 = vpack.c.bf16 %v602_v30, %v599_v29 }
 0x11e   : > { %v1446_v33 = vpop.f32.mrb[28].mxu0  ;;  %1480 = vmatprep.mubr.msk.bf16.mxu1 %vm677_vm3, %v641_v32 }
 0x11f   : > { %v614_v34 = vpop.f32.mrb[29].mxu0  ;;  %1481 = vmatmul.mubr.msk.bf16.gmra.mrb[24].mxu1 %vm677_vm3, %v642_v31  ;;  %v623_v36 = vadd.f32 %v1446_v33, %v1671_v26 }
 0x120   : > { %v1447_v35 = vpop.f32.mrb[30].mxu0  ;;  %v615_v39 = vadd.f32 %v1671_v26, %v614_v34 }
 0x121   : > { %v626_v37 = vadd.f32 %v1447_v35, %v1671_v26  ;;  %v617_v38 = vpop.f32.mrb[31].mxu0 }
 0x122   : > { %v618_v40 = vadd.f32 %v1671_v26, %v617_v38 }
 0x123   : > { %v644_v41 = vpack.c.bf16 %v626_v37, %v623_v36 }
 0x124   : > { %v643_v42 = vpack.c.bf16 %v618_v40, %v615_v39 }
 0x126   : > { %1484 = vmatprep.mubr.msk.bf16.mxu1 %vm677_vm3, %v643_v42 }
 0x127   : > { %1485 = vmatmul.mubr.msk.bf16.gmra.mrb[28].mxu1 %vm677_vm3, %v644_v41 }
 0x1c2   : > { %v1458_v44 = vpop.f32.mrb[0].mxu1 }
 0x1c3   : > { %v896_v26 = vmul.f32 %v1458_v44, %v1724_v43  ;;  %v760_v46 = vpop.f32.mrb[1].mxu1 }
 0x1c4   : > { %v894_v47 = vmul.f32 %v1724_v43, %v760_v46  ;;  %v1459_v48 = vpop.f32.mrb[2].mxu1 }
 0x1c5   : > { %v935_v49 = vadd.f32 %v1729_v45, %v896_v26  ;;  %v897_v50 = vmul.f32 %v1459_v48, %v1724_v43  ;;  %v763_v51 = vpop.f32.mrb[3].mxu1 }
 0x1c6   : > { %v933_v52 = vadd.f32 %v1729_v45, %v894_v47  ;;  %v895_v53 = vmul.f32 %v1724_v43, %v763_v51 }
 0x1c7   : > { %v967_v54 = vmax.f32 %v935_v49, 0.0  ;;  %v936_v55 = vadd.f32 %v1729_v45, %v897_v50 }
 0x1c8   : > { %v965_v56 = vmax.f32 %v933_v52, 0.0  ;;  %v934_v57 = vadd.f32 %v1729_v45, %v895_v53 }
 0x1c9   : > { %v1347_v58 = vpack.c.bf16 %v967_v54, %v967_v54  ;;  %v968_v59 = vmax.f32 %v936_v55, 0.0 }
 0x1ca   : > { %v1345_v60 = vpack.c.bf16 %v965_v56, %v965_v56  ;;  %v966_v61 = vmax.f32 %v934_v57, 0.0  ;;  %v1462_v62 = vpop.f32.mrb[4].mxu1 }
 0x1cb   : > { %1128 = vst.msk [vmem:[%s1743_s27 + $0x8] sm:$0xf] %vm1125_vm4, %v1347_v58  ;;  %v1348_v63 = vpack.c.bf16 %v968_v59, %v968_v59  ;;  %v900_v0 = vmul.f32 %v1462_v62, %v1724_v43  ;;  %v776_v1 = vpop.f32.mrb[5].mxu1 }
 0x1cc   : > { %1126 = vst.msk [vmem:[%s1743_s27] sm:$0xf] %vm1125_vm4, %v1345_v60  ;;  %v1346_v2 = vpack.c.bf16 %v966_v61, %v966_v61  ;;  %v898_v3 = vmul.f32 %v1724_v43, %v776_v1  ;;  %v1463_v4 = vpop.f32.mrb[6].mxu1 }
 0x1cd   : > { %1129 = vst.msk [vmem:[%s1743_s27 + $0xc] sm:$0xf] %vm1125_vm4, %v1348_v63  ;;  %v939_v5 = vadd.f32 %v1729_v45, %v900_v0  ;;  %v901_v6 = vmul.f32 %v1463_v4, %v1724_v43  ;;  %v779_v7 = vpop.f32.mrb[7].mxu1 }
 0x1ce   : > { %1127 = vst.msk [vmem:[%s1743_s27 + $0x4] sm:$0xf] %vm1125_vm4, %v1346_v2  ;;  %v937_v8 = vadd.f32 %v1729_v45, %v898_v3  ;;  %v899_v9 = vmul.f32 %v1724_v43, %v779_v7 }
 0x1cf   : > { %v971_v10 = vmax.f32 %v939_v5, 0.0  ;;  %v940_v11 = vadd.f32 %v1729_v45, %v901_v6 }
 0x1d0   : > { %v969_v12 = vmax.f32 %v937_v8, 0.0  ;;  %v938_v13 = vadd.f32 %v1729_v45, %v899_v9 }
 0x1d1   : > { %v1351_v14 = vpack.c.bf16 %v971_v10, %v971_v10  ;;  %v972_v15 = vmax.f32 %v940_v11, 0.0 }
 0x1d2   : > { %v1349_v16 = vpack.c.bf16 %v969_v12, %v969_v12  ;;  %v970_v17 = vmax.f32 %v938_v13, 0.0  ;;  %v1466_v18 = vpop.f32.mrb[8].mxu1 }
 0x1d3   : > { %1132 = vst.msk [vmem:[%s1743_s27 + $0x18] sm:$0xf] %vm1125_vm4, %v1351_v14  ;;  %v1352_v19 = vpack.c.bf16 %v972_v15, %v972_v15  ;;  %v904_v20 = vmul.f32 %v1466_v18, %v1724_v43  ;;  %v792_v21 = vpop.f32.mrb[9].mxu1 }
 0x1d4   : > { %1130 = vst.msk [vmem:[%s1743_s27 + $0x10] sm:$0xf] %vm1125_vm4, %v1349_v16  ;;  %v1350_v22 = vpack.c.bf16 %v970_v17, %v970_v17  ;;  %v902_v23 = vmul.f32 %v1724_v43, %v792_v21  ;;  %v1467_v24 = vpop.f32.mrb[10].mxu1 }
 0x1d5   : > { %1133 = vst.msk [vmem:[%s1743_s27 + $0x1c] sm:$0xf] %vm1125_vm4, %v1352_v19  ;;  %v943_v25 = vadd.f32 %v1729_v45, %v904_v20  ;;  %v905_v27 = vmul.f32 %v1467_v24, %v1724_v43  ;;  %v795_v28 = vpop.f32.mrb[11].mxu1 }
 0x1d6   : > { %1131 = vst.msk [vmem:[%s1743_s27 + $0x14] sm:$0xf] %vm1125_vm4, %v1350_v22  ;;  %v941_v29 = vadd.f32 %v1729_v45, %v902_v23  ;;  %v903_v30 = vmul.f32 %v1724_v43, %v795_v28 }
 0x1d7   : > { %v975_v31 = vmax.f32 %v943_v25, 0.0  ;;  %v944_v32 = vadd.f32 %v1729_v45, %v905_v27 }
 0x1d8   : > { %v973_v33 = vmax.f32 %v941_v29, 0.0  ;;  %v942_v34 = vadd.f32 %v1729_v45, %v903_v30 }
 0x1d9   : > { %v1355_v35 = vpack.c.bf16 %v975_v31, %v975_v31  ;;  %v976_v36 = vmax.f32 %v944_v32, 0.0 }
 0x1da   : > { %v1353_v37 = vpack.c.bf16 %v973_v33, %v973_v33  ;;  %v974_v38 = vmax.f32 %v942_v34, 0.0  ;;  %v1470_v39 = vpop.f32.mrb[12].mxu1 }
 0x1db   : > { %1136 = vst.msk [vmem:[%s1743_s27 + $0x28] sm:$0xf] %vm1125_vm4, %v1355_v35  ;;  %v1356_v40 = vpack.c.bf16 %v976_v36, %v976_v36  ;;  %v908_v41 = vmul.f32 %v1470_v39, %v1724_v43  ;;  %v808_v42 = vpop.f32.mrb[13].mxu1 }
 0x1dc   : > { %1134 = vst.msk [vmem:[%s1743_s27 + $0x20] sm:$0xf] %vm1125_vm4, %v1353_v37  ;;  %v1354_v44 = vpack.c.bf16 %v974_v38, %v974_v38  ;;  %v906_v26 = vmul.f32 %v1724_v43, %v808_v42  ;;  %v1471_v46 = vpop.f32.mrb[14].mxu1 }
 0x1dd   : > { %1137 = vst.msk [vmem:[%s1743_s27 + $0x2c] sm:$0xf] %vm1125_vm4, %v1356_v40  ;;  %v947_v47 = vadd.f32 %v1729_v45, %v908_v41  ;;  %v909_v48 = vmul.f32 %v1471_v46, %v1724_v43  ;;  %v811_v49 = vpop.f32.mrb[15].mxu1 }
 0x1de   : > { %1135 = vst.msk [vmem:[%s1743_s27 + $0x24] sm:$0xf] %vm1125_vm4, %v1354_v44  ;;  %v945_v50 = vadd.f32 %v1729_v45, %v906_v26  ;;  %v907_v51 = vmul.f32 %v1724_v43, %v811_v49 }
 0x1df   : > { %v979_v52 = vmax.f32 %v947_v47, 0.0  ;;  %v948_v53 = vadd.f32 %v1729_v45, %v909_v48 }
 0x1e0   : > { %v977_v54 = vmax.f32 %v945_v50, 0.0  ;;  %v946_v55 = vadd.f32 %v1729_v45, %v907_v51 }
 0x1e1   : > { %v1359_v56 = vpack.c.bf16 %v979_v52, %v979_v52  ;;  %v980_v57 = vmax.f32 %v948_v53, 0.0 }
 0x1e2   : > { %v1357_v58 = vpack.c.bf16 %v977_v54, %v977_v54  ;;  %v978_v59 = vmax.f32 %v946_v55, 0.0  ;;  %v1474_v60 = vpop.f32.mrb[16].mxu1 }
 0x1e3   : > { %1140 = vst.msk [vmem:[%s1743_s27 + $0x38] sm:$0xf] %vm1125_vm4, %v1359_v56  ;;  %v1360_v61 = vpack.c.bf16 %v980_v57, %v980_v57  ;;  %v912_v62 = vmul.f32 %v1474_v60, %v1724_v43  ;;  %v824_v63 = vpop.f32.mrb[17].mxu1 }
 0x1e4   : > { %1138 = vst.msk [vmem:[%s1743_s27 + $0x30] sm:$0xf] %vm1125_vm4, %v1357_v58  ;;  %v1358_v0 = vpack.c.bf16 %v978_v59, %v978_v59  ;;  %v910_v1 = vmul.f32 %v1724_v43, %v824_v63  ;;  %v1475_v2 = vpop.f32.mrb[18].mxu1 }
 0x1e5   : > { %1141 = vst.msk [vmem:[%s1743_s27 + $0x3c] sm:$0xf] %vm1125_vm4, %v1360_v61  ;;  %v951_v3 = vadd.f32 %v1729_v45, %v912_v62  ;;  %v913_v4 = vmul.f32 %v1475_v2, %v1724_v43  ;;  %v827_v5 = vpop.f32.mrb[19].mxu1 }
 0x1e6   : > { %1139 = vst.msk [vmem:[%s1743_s27 + $0x34] sm:$0xf] %vm1125_vm4, %v1358_v0  ;;  %v949_v6 = vadd.f32 %v1729_v45, %v910_v1  ;;  %v911_v7 = vmul.f32 %v1724_v43, %v827_v5 }
 0x1e7   : > { %v983_v8 = vmax.f32 %v951_v3, 0.0  ;;  %v952_v9 = vadd.f32 %v1729_v45, %v913_v4 }
 0x1e8   : > { %v981_v10 = vmax.f32 %v949_v6, 0.0  ;;  %v950_v11 = vadd.f32 %v1729_v45, %v911_v7 }
 0x1e9   : > { %v1363_v12 = vpack.c.bf16 %v983_v8, %v983_v8  ;;  %v984_v13 = vmax.f32 %v952_v9, 0.0 }
 0x1ea   : > { %v1361_v14 = vpack.c.bf16 %v981_v10, %v981_v10  ;;  %v982_v15 = vmax.f32 %v950_v11, 0.0  ;;  %v1478_v16 = vpop.f32.mrb[20].mxu1 }
 0x1eb   : > { %1144 = vst.msk [vmem:[%s1743_s27 + $0x48] sm:$0xf] %vm1125_vm4, %v1363_v12  ;;  %v1364_v17 = vpack.c.bf16 %v984_v13, %v984_v13  ;;  %v916_v18 = vmul.f32 %v1478_v16, %v1724_v43  ;;  %v840_v19 = vpop.f32.mrb[21].mxu1 }
 0x1ec   : > { %1142 = vst.msk [vmem:[%s1743_s27 + $0x40] sm:$0xf] %vm1125_vm4, %v1361_v14  ;;  %v1362_v20 = vpack.c.bf16 %v982_v15, %v982_v15  ;;  %v914_v21 = vmul.f32 %v1724_v43, %v840_v19  ;;  %v1479_v22 = vpop.f32.mrb[22].mxu1 }
 0x1ed   : > { %1145 = vst.msk [vmem:[%s1743_s27 + $0x4c] sm:$0xf] %vm1125_vm4, %v1364_v17  ;;  %v955_v23 = vadd.f32 %v1729_v45, %v916_v18  ;;  %v917_v24 = vmul.f32 %v1479_v22, %v1724_v43  ;;  %v843_v25 = vpop.f32.mrb[23].mxu1 }
 0x1ee   : > { %1143 = vst.msk [vmem:[%s1743_s27 + $0x44] sm:$0xf] %vm1125_vm4, %v1362_v20  ;;  %v953_v27 = vadd.f32 %v1729_v45, %v914_v21  ;;  %v915_v28 = vmul.f32 %v1724_v43, %v843_v25 }
 0x1ef   : > { %v987_v29 = vmax.f32 %v955_v23, 0.0  ;;  %v956_v30 = vadd.f32 %v1729_v45, %v917_v24 }
 0x1f0   : > { %v985_v31 = vmax.f32 %v953_v27, 0.0  ;;  %v954_v32 = vadd.f32 %v1729_v45, %v915_v28 }
 0x1f1   : > { %v1367_v33 = vpack.c.bf16 %v987_v29, %v987_v29  ;;  %v988_v34 = vmax.f32 %v956_v30, 0.0 }
 0x1f2   : > { %v1365_v35 = vpack.c.bf16 %v985_v31, %v985_v31  ;;  %v986_v36 = vmax.f32 %v954_v32, 0.0  ;;  %v1482_v37 = vpop.f32.mrb[24].mxu1 }
 0x1f3   : > { %1148 = vst.msk [vmem:[%s1743_s27 + $0x58] sm:$0xf] %vm1125_vm4, %v1367_v33  ;;  %v1368_v38 = vpack.c.bf16 %v988_v34, %v988_v34  ;;  %v920_v39 = vmul.f32 %v1482_v37, %v1724_v43  ;;  %v856_v40 = vpop.f32.mrb[25].mxu1 }
 0x1f4   : > { %1146 = vst.msk [vmem:[%s1743_s27 + $0x50] sm:$0xf] %vm1125_vm4, %v1365_v35  ;;  %v1366_v41 = vpack.c.bf16 %v986_v36, %v986_v36  ;;  %v918_v42 = vmul.f32 %v1724_v43, %v856_v40  ;;  %v1483_v44 = vpop.f32.mrb[26].mxu1 }
 0x1f5   : > { %1149 = vst.msk [vmem:[%s1743_s27 + $0x5c] sm:$0xf] %vm1125_vm4, %v1368_v38  ;;  %v959_v26 = vadd.f32 %v1729_v45, %v920_v39  ;;  %v921_v46 = vmul.f32 %v1483_v44, %v1724_v43  ;;  %v859_v47 = vpop.f32.mrb[27].mxu1 }
 0x1f6   : > { %1147 = vst.msk [vmem:[%s1743_s27 + $0x54] sm:$0xf] %vm1125_vm4, %v1366_v41  ;;  %v957_v48 = vadd.f32 %v1729_v45, %v918_v42  ;;  %v919_v49 = vmul.f32 %v1724_v43, %v859_v47 }
 0x1f7   : > { %v991_v50 = vmax.f32 %v959_v26, 0.0  ;;  %v960_v51 = vadd.f32 %v1729_v45, %v921_v46 }
 0x1f8   : > { %v989_v52 = vmax.f32 %v957_v48, 0.0  ;;  %v958_v53 = vadd.f32 %v1729_v45, %v919_v49 }
 0x1f9   : > { %v1371_v54 = vpack.c.bf16 %v991_v50, %v991_v50  ;;  %v992_v55 = vmax.f32 %v960_v51, 0.0 }
 0x1fa   : > { %v1369_v56 = vpack.c.bf16 %v989_v52, %v989_v52  ;;  %v990_v57 = vmax.f32 %v958_v53, 0.0  ;;  %v1486_v58 = vpop.f32.mrb[28].mxu1 }
 0x1fb   : > { %1152 = vst.msk [vmem:[%s1743_s27 + $0x68] sm:$0xf] %vm1125_vm4, %v1371_v54  ;;  %v1372_v59 = vpack.c.bf16 %v992_v55, %v992_v55  ;;  %v924_v60 = vmul.f32 %v1486_v58, %v1724_v43  ;;  %v872_v61 = vpop.f32.mrb[29].mxu1 }
 0x1fc   : > { %1150 = vst.msk [vmem:[%s1743_s27 + $0x60] sm:$0xf] %vm1125_vm4, %v1369_v56  ;;  %v1370_v62 = vpack.c.bf16 %v990_v57, %v990_v57  ;;  %v922_v63 = vmul.f32 %v1724_v43, %v872_v61  ;;  %v1487_v0 = vpop.f32.mrb[30].mxu1 }
 0x1fd   : > { %1153 = vst.msk [vmem:[%s1743_s27 + $0x6c] sm:$0xf] %vm1125_vm4, %v1372_v59  ;;  %v963_v1 = vadd.f32 %v1729_v45, %v924_v60  ;;  %v925_v2 = vmul.f32 %v1487_v0, %v1724_v43  ;;  %v875_v3 = vpop.f32.mrb[31].mxu1 }
 0x1fe   : > { %1151 = vst.msk [vmem:[%s1743_s27 + $0x64] sm:$0xf] %vm1125_vm4, %v1370_v62  ;;  %v961_v4 = vadd.f32 %v1729_v45, %v922_v63  ;;  %v923_v5 = vmul.f32 %v1724_v43, %v875_v3 }
 0x1ff   : > { %v995_v6 = vmax.f32 %v963_v1, 0.0  ;;  %v964_v7 = vadd.f32 %v1729_v45, %v925_v2 }
 0x200   : > { %v993_v8 = vmax.f32 %v961_v4, 0.0  ;;  %v962_v9 = vadd.f32 %v1729_v45, %v923_v5 }
 0x201   : > { %v1375_v10 = vpack.c.bf16 %v995_v6, %v995_v6  ;;  %v996_v11 = vmax.f32 %v964_v7, 0.0 }
 0x202   : > { %v1373_v12 = vpack.c.bf16 %v993_v8, %v993_v8  ;;  %v994_v13 = vmax.f32 %v962_v9, 0.0 }
 0x203   : > { %1156 = vst.msk [vmem:[%s1743_s27 + $0x78] sm:$0xf] %vm1125_vm4, %v1375_v10  ;;  %v1376_v14 = vpack.c.bf16 %v996_v11, %v996_v11 }
 0x204   : > { %1154 = vst.msk [vmem:[%s1743_s27 + $0x70] sm:$0xf] %vm1125_vm4, %v1373_v12  ;;  %v1374_v15 = vpack.c.bf16 %v994_v13, %v994_v13 }
 0x205   : > { %1157 = vst.msk [vmem:[%s1743_s27 + $0x7c] sm:$0xf] %vm1125_vm4, %v1376_v14 }
 0x206   : > { %1155 = vst.msk [vmem:[%s1743_s27 + $0x74] sm:$0xf] %vm1125_vm4, %v1374_v15 }
 0x207 PF: > { %s16_s23 = sadd.s32 1, %s1555_s23   ;;  %s1882_s21 = smov %s1551_s22 }
 0x208   : > { %p13_p5 = scmp.ge.s32.totalorder %s16_s23, 4   ;;  %s1883_s22 = smov %s1885_s24 }
 0x20a   :  { %15 = sbr.rel (!%p13_p5) target bundleno = 2 (0x2), region = 74 }

// kernel: maniqa_forward.22
= control target key start
LH: loop header
LB: loop body
LE: loop exit
PB: predicated region body
PF: predicated region fallthrough
CT: control target
= control target key end

     0   :  { %vm19_vm0 = vcmask 254976   ;;  %v1649_v0 = vmov 0.0   ;;  %vm878_vm1 = vmmov 0   ;;  %v879_v4 = vmov -inf   ;;  %s1645_s1 = inlined_call_operand.vmem [shape: bf16[32,2], index: 1, kind: input, shape index: {}]   ;;  %s1646_s0 = inlined_call_operand.vmem [shape: bf16[2,256,32], index: 0, kind: input, shape index: {}]   ;;  %s1647_s2 = inlined_call_operand.vmem [shape: bf16[2,32], index: 2, kind: input, shape index: {}]   ;;  %s1648_s3 = inlined_call_operand.vmem [shape: f32[2,32], index: 3, kind: output, shape index: {}]  }
   0x1   :  { %836 = vmatprep.subr.bf16.mxu1 %v1649_v0  ;;  %v904_v1 = vld [vmem:[%s1645_s1] sm:$0xff]   ;;  %840 = vmatprep.mubr.msk.bf16.mxu1 %vm878_vm1, %v1649_v0  ;;  %20 = vst.msk [vmem:[#allocation2] sm:$0x3] %vm19_vm0, %v1649_v0  ;;  %v917_v2 = vld [vmem:[%s1645_s1 + $0x8] sm:$0xff]   ;;  %21 = vst.msk [vmem:[#allocation3] sm:$0x3] %vm19_vm0, %v879_v4 }
   0x2   :  { %1691 = vst [vmem:[#allocation4_spill] sm:$0xff] %v904_v1  ;;  %852 = vmatprep.subr.bf16.mxu0 %v1649_v0  ;;  %854 = vmatprep.mubr.msk.bf16.mxu0 %vm878_vm1, %v1649_v0  ;;  %1692 = vst [vmem:[#allocation5_spill] sm:$0xff] %v917_v2  ;;  %v922_v3 = vld [vmem:[%s1646_s0] sm:$0xff]   ;;  %v929_v5 = vld [vmem:[%s1646_s0 + $0x8] sm:$0xff]   ;;  %vm151_vm2 = vcmask 261120   ;;  %vm292_vm3 = vcmask 1041409  }
   0x3   :  { %837 = vmatpush3.bf16.msra.mxu1 %v904_v1  ;;  %v934_v6 = vld [vmem:[%s1646_s0 + $0x10] sm:$0xff]   ;;  %v939_v7 = vld [vmem:[%s1646_s0 + $0x18] sm:$0xff]   ;;  %v944_v8 = vld [vmem:[%s1646_s0 + $0x20] sm:$0xff]   ;;  %v1651_v9 = vunpack.c.l.bf16 %v922_v3  ;;  %v1652_v12 = vunpack.c.h.bf16 %v922_v3  ;;  %v1653_v13 = vunpack.c.l.bf16 %v929_v5  ;;  %v1670_v14 = vunpack.c.h.bf16 %v929_v5 }
   0x4   :  { %838 = vmatprep.subr.bf16.mxu1 %v1649_v0  ;;  %v950_v10 = vld [vmem:[%s1646_s0 + $0x28] sm:$0xff]   ;;  %v955_v11 = vld [vmem:[%s1646_s0 + $0x30] sm:$0xff]   ;;  %v1669_v15 = vunpack.c.l.bf16 %v934_v6  ;;  %v965_v16 = vld [vmem:[%s1646_s0 + $0x38] sm:$0xff]   ;;  %v1668_v18 = vunpack.c.h.bf16 %v934_v6  ;;  %v1667_v19 = vunpack.c.l.bf16 %v939_v7  ;;  %v1666_v20 = vunpack.c.h.bf16 %v939_v7 }
   0x5   :  { %v970_v17 = vld [vmem:[%s1646_s0 + $0x40] sm:$0xff]   ;;  %v1664_v21 = vunpack.c.l.bf16 %v944_v8  ;;  %v980_v22 = vld [vmem:[%s1646_s0 + $0x48] sm:$0xff]   ;;  %v985_v23 = vld [vmem:[%s1646_s0 + $0x50] sm:$0xff]   ;;  %v1662_v24 = vunpack.c.h.bf16 %v944_v8  ;;  %v1661_v25 = vunpack.c.l.bf16 %v950_v10  ;;  %v1654_v26 = vunpack.c.h.bf16 %v950_v10 }
   0x6   :  { %v1655_v27 = vunpack.c.l.bf16 %v955_v11  ;;  %v994_v28 = vld [vmem:[%s1646_s0 + $0x58] sm:$0xff]   ;;  %v999_v29 = vld [vmem:[%s1646_s0 + $0x60] sm:$0xff]   ;;  %v1656_v30 = vunpack.c.h.bf16 %v955_v11  ;;  %v1657_v31 = vunpack.c.l.bf16 %v965_v16  ;;  %v1659_v32 = vunpack.c.h.bf16 %v965_v16  ;;  %v1008_v34 = vld [vmem:[%s1646_s0 + $0x68] sm:$0xff]  }
   0x7   :  { %839 = vmatpush3.bf16.msra.mxu1 %v917_v2  ;;  %v1658_v33 = vunpack.c.l.bf16 %v970_v17  ;;  %v1013_v35 = vld [vmem:[%s1646_s0 + $0x70] sm:$0xff]   ;;  %v1660_v36 = vunpack.c.h.bf16 %v970_v17  ;;  %v1663_v37 = vunpack.c.l.bf16 %v980_v22  ;;  %v1665_v38 = vunpack.c.h.bf16 %v980_v22  ;;  %v1022_v40 = vld [vmem:[%s1646_s0 + $0x78] sm:$0xff]   ;;  %v1027_v41 = vld [vmem:[%s1646_s0 + $0x80] sm:$0xff]  }
   0x8   :  { %844 = vmatprep.subr.bf16.mxu1 %v1649_v0  ;;  %v1036_v46 = vld [vmem:[%s1646_s0 + $0x88] sm:$0xff]   ;;  %v1041_v47 = vld [vmem:[%s1646_s0 + $0x90] sm:$0xff]   ;;  %v1050_v52 = vld [vmem:[%s1646_s0 + $0x98] sm:$0xff]   ;;  %v152_v48 = vsel %vm151_vm2, %v1651_v9, 0.0  ;;  %v153_v49 = vsel %vm151_vm2, %v1652_v12, 0.0  ;;  %v155_v55 = vsel %vm151_vm2, %v1653_v13, 0.0 }
   0x9   :  { %v1055_v53 = vld [vmem:[%s1646_s0 + $0xa0] sm:$0xff]   ;;  %v1064_v58 = vld [vmem:[%s1646_s0 + $0xa8] sm:$0xff]   ;;  %v1069_v59 = vld [vmem:[%s1646_s0 + $0xb0] sm:$0xff]   ;;  %v154_v60 = vadd.f32 %v153_v49, %v152_v48  ;;  %v157_v12 = vsel %vm151_vm2, %v1670_v14, 0.0  ;;  %v159_v48 = vsel %vm151_vm2, %v1669_v15, 0.0  ;;  %v161_v49 = vsel %vm151_vm2, %v1668_v18, 0.0 }
   0xa   :  { %v1078_v4 = vld [vmem:[%s1646_s0 + $0xb8] sm:$0xff]   ;;  %v1083_v0 = vld [vmem:[%s1646_s0 + $0xc0] sm:$0xff]   ;;  %v1092_v63 = vld [vmem:[%s1646_s0 + $0xc8] sm:$0xff]   ;;  %v163_v9 = vsel %vm151_vm2, %v1667_v19, 0.0  ;;  %v165_v39 = vsel %vm151_vm2, %v1666_v20, 0.0  ;;  %v171_v54 = vsel %vm151_vm2, %v1661_v25, 0.0  ;;  %v1706_v20 = vunpack.c.l.bf16 %v1036_v46 }
   0xb   :  { %1693 = vst [vmem:[#allocation6_spill] sm:$0xff] %v1078_v4  ;;  %1694 = vst [vmem:[#allocation7_spill] sm:$0xff] %v1083_v0  ;;  %v1097_v50 = vld [vmem:[%s1646_s0 + $0xd0] sm:$0xff]   ;;  %v1110_v44 = vld [vmem:[%s1646_s0 + $0xd8] sm:$0xff]   ;;  %v156_v43 = vadd.f32 %v155_v55, %v154_v60  ;;  %v167_v55 = vsel %vm151_vm2, %v1664_v21, 0.0  ;;  %v169_v60 = vsel %vm151_vm2, %v1662_v24, 0.0  ;;  %v1704_v24 = vunpack.c.l.bf16 %v1027_v41 }
   0xc   :  { %1695 = vst [vmem:[#allocation8_spill] sm:$0xff] %v1092_v63  ;;  %1696 = vst [vmem:[#allocation9_spill] sm:$0xff] %v1097_v50  ;;  %v1115_v56 = vld [vmem:[%s1646_s0 + $0xe0] sm:$0xff]   ;;  %v1124_v45 = vld [vmem:[%s1646_s0 + $0xe8] sm:$0xff]   ;;  %v173_v42 = vsel %vm151_vm2, %v1654_v26, 0.0  ;;  %v1195_v57 = vsel %vm151_vm2, %v1657_v31, 0.0  ;;  %v1705_v21 = vunpack.c.h.bf16 %v1027_v41  ;;  %v1711_v14 = vunpack.c.h.bf16 %v999_v29 }
   0xd   :  { %1697 = vst [vmem:[#allocation10_spill] sm:$0xff] %v1110_v44  ;;  %1698 = vst [vmem:[#allocation11_spill] sm:$0xff] %v1115_v56  ;;  %v1130_v62 = vld [vmem:[%s1646_s0 + $0xf0] sm:$0xff]   ;;  %v1135_v51 = vld [vmem:[%s1646_s0 + $0xf8] sm:$0xff]   ;;  %v158_v13 = vadd.f32 %v157_v12, %v156_v43  ;;  %v1185_v12 = vsel %vm151_vm2, %v1655_v27, 0.0  ;;  %v1190_v43 = vsel %vm151_vm2, %v1656_v30, 0.0  ;;  %v1726_v56 = vunpack.c.l.bf16 %v1050_v52 }
   0xe   :  { %1699 = vst [vmem:[#allocation12_spill] sm:$0xff] %v1124_v45  ;;  %1700 = vst [vmem:[#allocation13_spill] sm:$0xff] %v1130_v62  ;;  %v1200_v26 = vsel %vm151_vm2, %v1659_v32, 0.0  ;;  %v1205_v27 = vsel %vm151_vm2, %v1658_v33, 0.0  ;;  %v1210_v30 = vsel %vm151_vm2, %v1660_v36, 0.0  ;;  %v1215_v31 = vsel %vm151_vm2, %v1663_v37, 0.0 }
   0xf   :  { %1701 = vst [vmem:[#allocation14_spill] sm:$0xff] %v1135_v51  ;;  %v160_v61 = vadd.f32 %v159_v48, %v158_v13  ;;  %v1220_v13 = vsel %vm151_vm2, %v1665_v38, 0.0  ;;  %v1702_v48 = vunpack.c.l.bf16 %v985_v23  ;;  %v1703_v32 = vunpack.c.h.bf16 %v985_v23 }
  0x10   :  { %v221_v37 = vsel %vm151_vm2, %v1704_v24, 0.0  ;;  %v222_v38 = vsel %vm151_vm2, %v1705_v21, 0.0  ;;  %v224_v19 = vsel %vm151_vm2, %v1706_v20, 0.0  ;;  %v1709_v24 = vunpack.c.l.bf16 %v999_v29 }
  0x11   :  { %v1225_v33 = vsel %vm151_vm2, %v1702_v48, 0.0  ;;  %v1230_v36 = vsel %vm151_vm2, %v1703_v32, 0.0  ;;  %v162_v25 = vadd.f32 %v161_v49, %v160_v61  ;;  %v1707_v48 = vunpack.c.l.bf16 %v994_v28 }
  0x12   :  { %v1708_v32 = vunpack.c.h.bf16 %v994_v28  ;;  %v1254_v49 = vsel %vm151_vm2, %v1709_v24, 0.0  ;;  %v223_v21 = vadd.f32 %v222_v38, %v221_v37  ;;  %v1259_v20 = vsel %vm151_vm2, %v1711_v14, 0.0 }
  0x13   :  { %v1244_v18 = vsel %vm151_vm2, %v1707_v48, 0.0  ;;  %1710 = vst [vmem:[#allocation15_spill] sm:$0xff] %v1254_v49  ;;  %v164_v15 = vadd.f32 %v163_v9, %v162_v25  ;;  %1712 = vst [vmem:[#allocation16_spill] sm:$0xff] %v1259_v20  ;;  %v1713_v48 = vunpack.c.l.bf16 %v1008_v34  ;;  %v1716_v62 = vunpack.c.h.bf16 %v1008_v34 }
  0x14   :  { %v1249_v61 = vsel %vm151_vm2, %v1708_v32, 0.0  ;;  %v1715_v32 = vunpack.c.h.bf16 %v1036_v46  ;;  %v1718_v9 = vunpack.c.l.bf16 %v1013_v35  ;;  %v1720_v14 = vunpack.c.h.bf16 %v1013_v35 }
  0x15   :  { %v1264_v2 = vsel %vm151_vm2, %v1713_v48, 0.0  ;;  %v1272_v24 = vsel %vm151_vm2, %v1716_v62, 0.0  ;;  %v225_v38 = vadd.f32 %v224_v19, %v223_v21  ;;  %v166_v48 = vadd.f32 %v165_v39, %v164_v15 }
  0x16   :  { %1714 = vst [vmem:[#allocation17_spill] sm:$0xff] %v1264_v2  ;;  %v226_v1 = vsel %vm151_vm2, %v1715_v32, 0.0  ;;  %1717 = vst [vmem:[#allocation18_spill] sm:$0xff] %v1272_v24  ;;  %v1277_v25 = vsel %vm151_vm2, %v1718_v9, 0.0  ;;  %v1282_v37 = vsel %vm151_vm2, %v1720_v14, 0.0  ;;  %v1722_v51 = vunpack.c.l.bf16 %v1022_v40 }
  0x17   :  { %1719 = vst [vmem:[#allocation19_spill] sm:$0xff] %v1277_v25  ;;  %1721 = vst [vmem:[#allocation20_spill] sm:$0xff] %v1282_v37  ;;  %v1724_v62 = vunpack.c.l.bf16 %v1041_v47  ;;  %v1725_v24 = vunpack.c.h.bf16 %v1041_v47  ;;  %v227_v25 = vadd.f32 %v226_v1, %v225_v38  ;;  %v232_v14 = vsel %vm151_vm2, %v1726_v56, 0.0 }
  0x18   :  { %v1287_v32 = vsel %vm151_vm2, %v1722_v51, 0.0  ;;  %v1727_v15 = vunpack.c.h.bf16 %v1050_v52  ;;  %v1728_v39 = vunpack.c.l.bf16 %v1055_v53  ;;  %v168_v21 = vadd.f32 %v167_v55, %v166_v48 }
  0x19   :  { %1723 = vst [vmem:[#allocation21_spill] sm:$0xff] %v1287_v32  ;;  %v228_v45 = vsel %vm151_vm2, %v1724_v62, 0.0  ;;  %v230_v9 = vsel %vm151_vm2, %v1725_v24, 0.0  ;;  %v1729_v62 = vunpack.c.h.bf16 %v1055_v53  ;;  %v1730_v24 = vunpack.c.l.bf16 %v1064_v58 }
  0x1a   :  { %v234_v19 = vsel %vm151_vm2, %v1727_v15, 0.0  ;;  %v236_v51 = vsel %vm151_vm2, %v1728_v39, 0.0  ;;  %v1731_v38 = vunpack.c.h.bf16 %v1064_v58  ;;  %v229_v37 = vadd.f32 %v228_v45, %v227_v25 }
  0x1b   :  { %v238_v32 = vsel %vm151_vm2, %v1729_v62, 0.0  ;;  %v240_v1 = vsel %vm151_vm2, %v1730_v24, 0.0  ;;  %v1732_v15 = vunpack.c.l.bf16 %v1069_v59  ;;  %v1733_v55 = vunpack.c.h.bf16 %v1069_v59 }
  0x1c   :  { %v242_v56 = vsel %vm151_vm2, %v1731_v38, 0.0  ;;  %v1734_v39 = vunpack.c.l.bf16 %v1078_v4  ;;  %v170_v24 = vadd.f32 %v169_v60, %v168_v21  ;;  %v1735_v20 = vunpack.c.h.bf16 %v1078_v4 }
  0x1d   :  { %v1316_v2 = vsel %vm151_vm2, %v1732_v15, 0.0  ;;  %v1321_v48 = vsel %vm151_vm2, %v1733_v55, 0.0  ;;  %v1736_v25 = vunpack.c.l.bf16 %v1083_v0  ;;  %v1737_v15 = vunpack.c.h.bf16 %v1083_v0 }
  0x1e   :  { %v1326_v62 = vsel %vm151_vm2, %v1734_v39, 0.0  ;;  %v1331_v45 = vsel %vm151_vm2, %v1735_v20, 0.0  ;;  %v231_v49 = vadd.f32 %v230_v9, %v229_v37  ;;  %v1738_v39 = vunpack.c.l.bf16 %v1092_v63 }
  0x1f   :  { %v1336_v38 = vsel %vm151_vm2, %v1736_v25, 0.0  ;;  %v1341_v55 = vsel %vm151_vm2, %v1737_v15, 0.0  ;;  %v1739_v21 = vunpack.c.h.bf16 %v1092_v63  ;;  %v1741_v4 = vunpack.c.l.bf16 %v1097_v50 }
  0x20   :  { %v1346_v60 = vsel %vm151_vm2, %v1738_v39, 0.0  ;;  %v172_v0 = vadd.f32 %v171_v54, %v170_v24  ;;  %v1743_v15 = vunpack.c.h.bf16 %v1097_v50  ;;  %v1745_v9 = vunpack.c.l.bf16 %v1110_v44 }
  0x21   :  { %v1351_v20 = vsel %vm151_vm2, %v1739_v21, 0.0  ;;  %v1356_v25 = vsel %vm151_vm2, %v1741_v4, 0.0  ;;  %v1747_v63 = vunpack.c.h.bf16 %v1110_v44  ;;  %v1749_v4 = vunpack.c.h.bf16 %v1022_v40 }
  0x22   :  { %1740 = vst [vmem:[#allocation22_spill] sm:$0xff] %v1351_v20  ;;  %1742 = vst [vmem:[#allocation23_spill] sm:$0xff] %v1356_v25  ;;  %v1361_v37 = vsel %vm151_vm2, %v1743_v15, 0.0  ;;  %v1366_v39 = vsel %vm151_vm2, %v1745_v9, 0.0  ;;  %v233_v20 = vadd.f32 %v232_v14, %v231_v49  ;;  %v1751_v24 = vunpack.c.l.bf16 %v922_v3 }
  0x23   :  { %1744 = vst [vmem:[#allocation24_spill] sm:$0xff] %v1361_v37  ;;  %1746 = vst [vmem:[#allocation25_spill] sm:$0xff] %v1366_v39  ;;  %v1371_v21 = vsel %vm151_vm2, %v1747_v63, 0.0  ;;  %v1376_v54 = vsel %vm151_vm2, %v1749_v4, -inf  ;;  %v1752_v50 = vunpack.c.h.bf16 %v922_v3  ;;  %v174_v39 = vadd.f32 %v173_v42, %v172_v0 }
  0x24   :  { %1748 = vst [vmem:[#allocation26_spill] sm:$0xff] %v1371_v21  ;;  %1750 = vst [vmem:[#allocation27_spill] sm:$0xff] %v1376_v54  ;;  %v299_v15 = vsel %vm151_vm2, %v1751_v24, -inf  ;;  %v1753_v44 = vunpack.c.l.bf16 %v929_v5  ;;  %v1754_v49 = vunpack.c.h.bf16 %v929_v5  ;;  %v1755_v4 = vunpack.c.l.bf16 %v934_v6 }
  0x25   :  { %v300_v9 = vsel %vm151_vm2, %v1752_v50, -inf  ;;  %v235_v54 = vadd.f32 %v234_v19, %v233_v20  ;;  %v1756_v3 = vunpack.c.h.bf16 %v934_v6  ;;  %v176_v0 = vadd.f32 %v1185_v12, %v174_v39 }
  0x26   :  { %v301_v63 = vsel %vm151_vm2, %v1753_v44, -inf  ;;  %v303_v14 = vsel %vm151_vm2, %v1754_v49, -inf  ;;  %v305_v21 = vsel %vm151_vm2, %v1755_v4, -inf  ;;  %v1757_v42 = vunpack.c.l.bf16 %v939_v7 }
  0x27   :  { %v302_v37 = vmax.f32 %v299_v15, %v301_v63  ;;  %v304_v24 = vmax.f32 %v300_v9, %v303_v14  ;;  %v307_v50 = vsel %vm151_vm2, %v1756_v3, -inf  ;;  %v1758_v5 = vunpack.c.h.bf16 %v939_v7 }
  0x28   :  { %v309_v44 = vsel %vm151_vm2, %v1757_v42, -inf  ;;  %v1759_v25 = vunpack.c.l.bf16 %v944_v8  ;;  %v237_v20 = vadd.f32 %v236_v51, %v235_v54  ;;  %v1760_v6 = vunpack.c.h.bf16 %v944_v8 }
  0x29   :  { %v311_v49 = vsel %vm151_vm2, %v1758_v5, -inf  ;;  %v306_v15 = vmax.f32 %v302_v37, %v305_v21  ;;  %v308_v9 = vmax.f32 %v304_v24, %v307_v50  ;;  %v178_v12 = vadd.f32 %v1190_v43, %v176_v0 }
  0x2a   :  { %v313_v19 = vsel %vm151_vm2, %v1759_v25, -inf  ;;  %v315_v63 = vsel %vm151_vm2, %v1760_v6, -inf  ;;  %v1761_v39 = vunpack.c.l.bf16 %v950_v10  ;;  %v1762_v7 = vunpack.c.h.bf16 %v950_v10 }
  0x2b   :  { %v1763_v3 = vunpack.c.l.bf16 %v955_v11  ;;  %v239_v25 = vadd.f32 %v238_v32, %v237_v20  ;;  %v310_v37 = vmax.f32 %v306_v15, %v309_v44  ;;  %v312_v21 = vmax.f32 %v308_v9, %v311_v49 }
  0x2c   :  { %v317_v14 = vsel %vm151_vm2, %v1761_v39, -inf  ;;  %v319_v4 = vsel %vm151_vm2, %v1762_v7, -inf  ;;  %v1764_v8 = vunpack.c.h.bf16 %v955_v11  ;;  %v180_v43 = vadd.f32 %v1195_v57, %v178_v12 }
  0x2d   :  { %v321_v51 = vsel %vm151_vm2, %v1763_v3, -inf  ;;  %v1765_v24 = vunpack.c.l.bf16 %v965_v16  ;;  %v1766_v10 = vunpack.c.h.bf16 %v965_v16  ;;  %v1767_v42 = vunpack.c.l.bf16 %v970_v17 }
  0x2e   :  { %v323_v54 = vsel %vm151_vm2, %v1764_v8, -inf  ;;  %v241_v44 = vadd.f32 %v240_v1, %v239_v25  ;;  %v314_v5 = vmax.f32 %v310_v37, %v313_v19  ;;  %v316_v49 = vmax.f32 %v312_v21, %v315_v63 }
  0x2f   :  { %v325_v50 = vsel %vm151_vm2, %v1765_v24, -inf  ;;  %v327_v0 = vsel %vm151_vm2, %v1766_v10, -inf  ;;  %v329_v32 = vsel %vm151_vm2, %v1767_v42, -inf  ;;  %v1768_v11 = vunpack.c.h.bf16 %v970_v17 }
  0x30   :  { %v182_v57 = vadd.f32 %v1200_v26, %v180_v43  ;;  %v1769_v15 = vunpack.c.l.bf16 %v980_v22  ;;  %v1770_v16 = vunpack.c.h.bf16 %v980_v22  ;;  %v1771_v12 = vunpack.c.l.bf16 %v985_v23 }
  0x31   :  { %v331_v20 = vsel %vm151_vm2, %v1768_v11, -inf  ;;  %v243_v19 = vadd.f32 %v242_v56, %v241_v44  ;;  %v318_v63 = vmax.f32 %v314_v5, %v317_v14  ;;  %v320_v39 = vmax.f32 %v316_v49, %v319_v4 }
  0x32   :  { %v333_v9 = vsel %vm151_vm2, %v1769_v15, -inf  ;;  %v335_v6 = vsel %vm151_vm2, %v1770_v16, -inf  ;;  %v337_v1 = vsel %vm151_vm2, %v1771_v12, -inf  ;;  %v1772_v17 = vunpack.c.h.bf16 %v985_v23 }
  0x33   :  { %v184_v26 = vadd.f32 %v1205_v27, %v182_v57  ;;  %v1773_v3 = vunpack.c.l.bf16 %v994_v28  ;;  %v1774_v22 = vunpack.c.h.bf16 %v994_v28  ;;  %v1775_v21 = vunpack.c.l.bf16 %v999_v29 }
  0x34   :  { %v339_v7 = vsel %vm151_vm2, %v1772_v17, -inf  ;;  %v245_v14 = vadd.f32 %v1316_v2, %v243_v19  ;;  %v322_v4 = vmax.f32 %v318_v63, %v321_v51  ;;  %v324_v23 = vmax.f32 %v320_v39, %v323_v54 }
  0x35   :  { %v341_v25 = vsel %vm151_vm2, %v1773_v3, -inf  ;;  %v343_v37 = vsel %vm151_vm2, %v1774_v22, -inf  ;;  %v345_v56 = vsel %vm151_vm2, %v1775_v21, -inf  ;;  %v1776_v8 = vunpack.c.h.bf16 %v999_v29 }
  0x36   :  { %v186_v43 = vadd.f32 %v1210_v30, %v184_v26  ;;  %v1777_v24 = vunpack.c.l.bf16 %v1008_v34  ;;  %v1778_v10 = vunpack.c.h.bf16 %v1008_v34  ;;  %v1779_v44 = vunpack.c.l.bf16 %v1013_v35 }
  0x37   :  { %v347_v27 = vsel %vm151_vm2, %v1776_v8, -inf  ;;  %v247_v51 = vadd.f32 %v1321_v48, %v245_v14  ;;  %v326_v54 = vmax.f32 %v322_v4, %v325_v50  ;;  %v328_v29 = vmax.f32 %v324_v23, %v327_v0 }
  0x38   :  { %v349_v28 = vsel %vm151_vm2, %v1777_v24, -inf  ;;  %v351_v42 = vsel %vm151_vm2, %v1778_v10, -inf  ;;  %v353_v2 = vsel %vm151_vm2, %v1779_v44, -inf  ;;  %v1780_v5 = vunpack.c.h.bf16 %v1013_v35 }
  0x39   :  { %v188_v49 = vadd.f32 %v1215_v31, %v186_v43  ;;  %v1781_v11 = vunpack.c.l.bf16 %v1022_v40  ;;  %v1782_v57 = vunpack.c.l.bf16 %v1027_v41  ;;  %v1783_v16 = vunpack.c.h.bf16 %v1027_v41 }
  0x3a   :  { %v355_v30 = vsel %vm151_vm2, %v1780_v5, -inf  ;;  %v249_v50 = vadd.f32 %v1326_v62, %v247_v51  ;;  %v330_v35 = vmax.f32 %v326_v54, %v329_v32  ;;  %v332_v0 = vmax.f32 %v328_v29, %v331_v20 }
  0x3b   :  { %v1480_v34 = vsel %vm151_vm2, %v1781_v11, -inf  ;;  %v368_v15 = vsel %vm151_vm2, %v1782_v57, -inf  ;;  %v369_v48 = vsel %vm151_vm2, %v1783_v16, -inf  ;;  %v1784_v12 = vunpack.c.l.bf16 %v1036_v46 }
  0x3c   :  { %v190_v19 = vadd.f32 %v1220_v13, %v188_v49  ;;  %v1785_v39 = vunpack.c.h.bf16 %v1036_v46  ;;  %v1786_v26 = vunpack.c.l.bf16 %v1041_v47  ;;  %v251_v3 = vadd.f32 %v1331_v45, %v249_v50 }
  0x3d   :  { %v370_v31 = vsel %vm151_vm2, %v1784_v12, -inf  ;;  %v334_v62 = vmax.f32 %v330_v35, %v333_v9  ;;  %v336_v32 = vmax.f32 %v332_v0, %v335_v6  ;;  %v1787_v14 = vunpack.c.h.bf16 %v1041_v47 }
  0x3e   :  { %v371_v63 = vmax.f32 %v368_v15, %v370_v31  ;;  %v372_v17 = vsel %vm151_vm2, %v1785_v39, -inf  ;;  %v374_v41 = vsel %vm151_vm2, %v1786_v26, -inf  ;;  %v192_v22 = vadd.f32 %v1225_v33, %v190_v19  ;;  %v1798_v19 = vld [vmem:[#allocation6_spill] sm:$0xff]  ;;  %v1800_v39 = vld [vmem:[#allocation23_spill] sm:$0xff] }
  0x3f   :  { %v373_v20 = vmax.f32 %v369_v48, %v372_v17  ;;  %v376_v13 = vsel %vm151_vm2, %v1787_v14, -inf  ;;  %v1788_v46 = vunpack.c.l.bf16 %v1050_v52  ;;  %v253_v23 = vadd.f32 %v1336_v38, %v251_v3  ;;  %v1795_v48 = vld [vmem:[#allocation22_spill] sm:$0xff]  ;;  %v1805_v14 = vld [vmem:[#allocation24_spill] sm:$0xff] }
  0x40   :  { %v375_v21 = vmax.f32 %v371_v63, %v374_v41  ;;  %v338_v8 = vmax.f32 %v334_v62, %v337_v1  ;;  %v340_v43 = vmax.f32 %v336_v32, %v339_v7  ;;  %v194_v45 = vadd.f32 %v1230_v36, %v192_v22  ;;  %v1801_v62 = vld [vmem:[#allocation16_spill] sm:$0xff]  ;;  %v1803_v22 = vld [vmem:[#allocation7_spill] sm:$0xff] }
  0x41   :  { %v378_v4 = vsel %vm151_vm2, %v1788_v46, -inf  ;;  %v377_v24 = vmax.f32 %v373_v20, %v376_v13  ;;  %v1789_v6 = vunpack.c.h.bf16 %v1050_v52  ;;  %v1790_v47 = vunpack.c.l.bf16 %v1055_v53 }
  0x42   :  { %v379_v9 = vmax.f32 %v375_v21, %v378_v4  ;;  %v255_v44 = vadd.f32 %v1341_v55, %v253_v23  ;;  %v342_v51 = vmax.f32 %v338_v8, %v341_v25  ;;  %v344_v54 = vmax.f32 %v340_v43, %v343_v37  ;;  %v1806_v4 = vld [vmem:[#allocation27_spill] sm:$0xff] }
  0x43   :  { %v380_v33 = vsel %vm151_vm2, %v1789_v6, -inf  ;;  %v382_v10 = vsel %vm151_vm2, %v1790_v47, -inf  ;;  %v196_v38 = vadd.f32 %v1244_v18, %v194_v45  ;;  %v1791_v7 = vunpack.c.h.bf16 %v1055_v53  ;;  %v1811_v47 = vld [vmem:[#allocation25_spill] sm:$0xff] }
  0x44   :  { %v381_v29 = vmax.f32 %v377_v24, %v380_v33  ;;  %v383_v1 = vmax.f32 %v379_v9, %v382_v10  ;;  %v1792_v52 = vunpack.c.l.bf16 %v1064_v58  ;;  %v257_v49 = vadd.f32 %v1346_v60, %v255_v44  ;;  %v1796_v60 = vld [vmem:[#allocation15_spill] sm:$0xff]  ;;  %v1809_v9 = vld [vmem:[#allocation8_spill] sm:$0xff] }
  0x45   :  { %v384_v36 = vsel %vm151_vm2, %v1791_v7, -inf  ;;  %v346_v11 = vmax.f32 %v342_v51, %v345_v56  ;;  %v348_v57 = vmax.f32 %v344_v54, %v347_v27  ;;  %v198_v55 = vadd.f32 %v1249_v61, %v196_v38  ;;  %v1812_v44 = vld [vmem:[#allocation11_spill] sm:$0xff] }
  0x46   :  { %v386_v5 = vsel %vm151_vm2, %v1792_v52, -inf  ;;  %v385_v15 = vmax.f32 %v381_v29, %v384_v36  ;;  %v1793_v37 = vunpack.c.h.bf16 %v1064_v58  ;;  %v1794_v53 = vunpack.c.l.bf16 %v1069_v59  ;;  %v1816_v52 = vld [vmem:[#allocation9_spill] sm:$0xff] }
  0x47   :  { %v387_v25 = vmax.f32 %v383_v1, %v386_v5  ;;  %v259_v50 = vadd.f32 %v1795_v48, %v257_v49  ;;  %v350_v35 = vmax.f32 %v346_v11, %v349_v28  ;;  %v352_v0 = vmax.f32 %v348_v57, %v351_v42  ;;  %v1815_v1 = vld [vmem:[#allocation18_spill] sm:$0xff]  ;;  %v1822_v48 = vld [vmem:[#allocation19_spill] sm:$0xff] }
  0x48   :  { %v388_v18 = vsel %vm151_vm2, %v1793_v37, -inf  ;;  %v390_v16 = vsel %vm151_vm2, %v1794_v53, -inf  ;;  %v200_v56 = vadd.f32 %v1796_v60, %v198_v55  ;;  %v1797_v31 = vunpack.c.h.bf16 %v1069_v59 }
  0x49   :  { %v389_v12 = vmax.f32 %v385_v15, %v388_v18  ;;  %v391_v27 = vmax.f32 %v387_v25, %v390_v16  ;;  %v1799_v58 = vunpack.c.l.bf16 %v1798_v19  ;;  %v261_v17 = vadd.f32 %v1800_v39, %v259_v50  ;;  %v1819_v15 = vld [vmem:[#allocation26_spill] sm:$0xff]  ;;  %v1827_v39 = vld [vmem:[#allocation20_spill] sm:$0xff] }
  0x4a   :  { %v392_v61 = vsel %vm151_vm2, %v1797_v31, -inf  ;;  %v354_v26 = vmax.f32 %v350_v35, %v353_v2  ;;  %v356_v41 = vmax.f32 %v352_v0, %v355_v30  ;;  %v202_v28 = vadd.f32 %v1801_v62, %v200_v56  ;;  %v1807_v30 = vld [vmem:[#allocation17_spill] sm:$0xff]  ;;  %v1820_v18 = vld [vmem:[#allocation10_spill] sm:$0xff] }
  0x4b   :  { %v394_v63 = vsel %vm151_vm2, %v1799_v58, -inf  ;;  %v393_v3 = vmax.f32 %v389_v12, %v392_v61  ;;  %v1802_v32 = vunpack.c.h.bf16 %v1798_v19  ;;  %v1804_v59 = vunpack.c.l.bf16 %v1803_v22 }
  0x4c   :  { %v395_v42 = vmax.f32 %v391_v27, %v394_v63  ;;  %v263_v13 = vadd.f32 %v1805_v14, %v261_v17  ;;  %v358_v46 = vmax.f32 %v354_v26, %v1480_v34  ;;  %v360_v23 = vmax.f32 %v356_v41, %v1806_v4  ;;  %v1828_v26 = vld [vmem:[#allocation12_spill] sm:$0xff] }
  0x4d   :  { %v396_v20 = vsel %vm151_vm2, %v1802_v32, -inf  ;;  %v398_v21 = vsel %vm151_vm2, %v1804_v59, -inf  ;;  %v204_v8 = vadd.f32 %v1807_v30, %v202_v28  ;;  %v1808_v24 = vunpack.c.h.bf16 %v1803_v22  ;;  %v1835_v30 = vld [vmem:[#allocation14_spill] sm:$0xff] }
  0x4e   :  { %v397_v2 = vmax.f32 %v393_v3, %v396_v20  ;;  %v399_v43 = vmax.f32 %v395_v42, %v398_v21  ;;  %v1810_v6 = vunpack.c.l.bf16 %v1809_v9  ;;  %v265_v10 = vadd.f32 %v1811_v47, %v263_v13  ;;  %v1832_v21 = vld [vmem:[#allocation21_spill] sm:$0xff] }
  0x4f   :  { %v400_v45 = vsel %vm151_vm2, %v1808_v24, -inf  ;;  %v1813_v51 = vunpack.c.l.bf16 %v1812_v44  ;;  %v1814_v29 = vunpack.c.h.bf16 %v1809_v9  ;;  %v206_v7 = vadd.f32 %v1815_v1, %v204_v8 }
  0x50   :  { %v402_v33 = vsel %vm151_vm2, %v1810_v6, -inf  ;;  %v401_v54 = vmax.f32 %v397_v2, %v400_v45  ;;  %v1817_v5 = vunpack.c.l.bf16 %v1816_v52  ;;  %v1818_v11 = vunpack.c.h.bf16 %v1816_v52  ;;  %v1836_v45 = vld [vmem:[#allocation13_spill] sm:$0xff] }
  0x51   :  { %v268_v34 = vsel %vm151_vm2, %v1813_v51, 0.0  ;;  %v404_v38 = vsel %vm151_vm2, %v1814_v29, -inf  ;;  %v403_v36 = vmax.f32 %v399_v43, %v402_v33  ;;  %v267_v55 = vadd.f32 %v1819_v15, %v265_v10 }
  0x52   :  { %v406_v49 = vsel %vm151_vm2, %v1817_v5, -inf  ;;  %v408_v57 = vsel %vm151_vm2, %v1818_v11, -inf  ;;  %v361_v25 = vmax.f32 %v358_v46, %v360_v23  ;;  %v405_v37 = vmax.f32 %v401_v54, %v404_v38 }
  0x53   :  { %v1821_v53 = vunpack.c.l.bf16 %v1820_v18  ;;  %v208_v50 = vadd.f32 %v1822_v48, %v206_v7  ;;  %v1823_v35 = vunpack.c.h.bf16 %v1812_v44  ;;  %v407_v12 = vmax.f32 %v403_v36, %v406_v49 }
  0x54   :  { %v1824_v60 = vunpack.c.h.bf16 %v1820_v18  ;;  %v1825_v27 = vunpack.c.h.bf16 %v1022_v40  ;;  %v269_v61 = vadd.f32 %v268_v34, %v267_v55  ;;  %v409_v19 = vmax.f32 %v405_v37, %v408_v57 }
  0x55   :  { %v410_v16 = vsel %vm151_vm2, %v1821_v53, -inf  ;;  %v270_v0 = vsel %vm151_vm2, %v1823_v35, 0.0  ;;  %v1826_v58 = vmov %v1813_v51  ;;  %v210_v17 = vadd.f32 %v1827_v39, %v208_v50 }
  0x56   :  { %v412_v56 = vsel %vm151_vm2, %v1824_v60, -inf  ;;  %v213_v31 = vsel %vm151_vm2, %v1825_v27, 0.0  ;;  %v414_v63 = vsel %vm151_vm2, %v1826_v58, -inf  ;;  %v1829_v41 = vunpack.c.l.bf16 %v1828_v26 }
  0x57   :  { %v411_v62 = vmax.f32 %v407_v12, %v410_v16  ;;  %v1830_v28 = vmov %v1823_v35  ;;  %v271_v40 = vadd.f32 %v270_v0, %v269_v61  ;;  %v362_v32 = vrot.slane %v361_v25, 4 }
  0x58   :  { %v272_v3 = vsel %vm151_vm2, %v1829_v41, 0.0  ;;  %v416_v42 = vsel %vm151_vm2, %v1830_v28, -inf  ;;  %v413_v20 = vmax.f32 %v409_v19, %v412_v56  ;;  %v1831_v22 = vmov %v1829_v41 }
  0x59   :  { %v418_v59 = vsel %vm151_vm2, %v1831_v22, -inf  ;;  %v212_v14 = vadd.f32 %v1832_v21, %v210_v17  ;;  %v1833_v13 = vunpack.c.h.bf16 %v1828_v26  ;;  %v415_v4 = vmax.f32 %v411_v62, %v414_v63  ;;  %v150_v22 = vld [vmem:[#allocation2] sm:$0x3] }
  0x5a   :  { %v794_v8 = vunpack.c.h.bf16 %v1835_v30  ;;  %v273_v43 = vadd.f32 %v272_v3, %v271_v40  ;;  %v417_v24 = vmax.f32 %v413_v20, %v416_v42  ;;  %v1837_v9 = vunpack.c.l.bf16 %v1836_v45 }
  0x5b   :  { %v274_v46 = vsel %vm151_vm2, %v1833_v13, 0.0  ;;  %v1834_v23 = vmov %v1833_v13  ;;  %v214_v33 = vadd.f32 %v213_v31, %v212_v14  ;;  %v419_v44 = vmax.f32 %v415_v4, %v418_v59 }
  0x5c   :  { %v420_v2 = vsel %vm151_vm2, %v1834_v23, -inf  ;;  %v422_v6 = vsel %vm151_vm2, %v1837_v9, -inf  ;;  %v1838_v47 = vmov %v1837_v9  ;;  %v1839_v51 = vunpack.c.h.bf16 %v1836_v45  ;;  %v1845_v45 = vld [vmem:[#allocation5_spill] sm:$0xff]  ;;  %v556_v9 = vld [vmem:[%s1647_s2] sm:$0x1] }
  0x5d   :  { %v276_v10 = vsel %vm151_vm2, %v1838_v47, 0.0  ;;  %v275_v54 = vadd.f32 %v274_v46, %v273_v43  ;;  %v363_v29 = vmax.f32 %v361_v25, %v362_v32  ;;  %v421_v38 = vmax.f32 %v417_v24, %v420_v2  ;;  %v298_v32 = vld [vmem:[#allocation3] sm:$0x3] }
  0x5e   :  { %v424_v34 = vsel %vm151_vm2, %v1839_v51, -inf  ;;  %v1840_v1 = vunpack.c.l.bf16 %v1835_v30  ;;  %v215_v36 = vrot.slane %v214_v33, 4  ;;  %v1841_v52 = vmov %v1839_v51  ;;  %v1843_v30 = vld [vmem:[#allocation4_spill] sm:$0xff] }
  0x5f   :  { %v278_v5 = vsel %vm151_vm2, %v1841_v52, 0.0  ;;  %v428_v49 = vsel %vm151_vm2, %v794_v8, -inf  ;;  %v423_v11 = vmax.f32 %v419_v44, %v422_v6  ;;  %v277_v57 = vadd.f32 %v276_v10, %v275_v54 }
  0x60   :  { %v426_v7 = vsel %vm151_vm2, %v1840_v1, -inf  ;;  %v425_v15 = vmax.f32 %v421_v38, %v424_v34  ;;  %v216_v55 = vadd.f32 %v215_v36, %v214_v33  ;;  %v1842_v37 = vmov %v1840_v1 }
  0x61   :  { %v280_v25 = vsel %vm151_vm2, %v1842_v37, 0.0  ;;  %v427_v18 = vmax.f32 %v423_v11, %v426_v7  ;;  %v279_v53 = vadd.f32 %v278_v5, %v277_v57  ;;  %v364_v16 = vrot.slane %v363_v29, 2 }
  0x62   :  { %v429_v48 = vmax.f32 %v425_v15, %v428_v49  ;;  %v282_v50 = vsel %vm151_vm2, %v794_v8, 0.0  ;;  %v217_v35 = vrot.slane %v216_v55, 2  ;;  %v1844_v8 = vmov 0.0  }
  0x63   :  { %v281_v0 = vadd.f32 %v280_v25, %v279_v53  ;;  %v365_v56 = vmax.f32 %v363_v29, %v364_v16  ;;  %vm562_vm4 = vcmask 1040384   ;;  %vm558_vm5 = vcmask 15360  }
  0x64   :  { %v430_v12 = vmax.f32 %v427_v18, %v429_v48  ;;  %v218_v31 = vadd.f32 %v217_v35, %v216_v55  ;;  %v564_v6 = vsel %vm562_vm4, %v556_v9, 0 }
  0x65   :  { %v283_v60 = vadd.f32 %v282_v50, %v281_v0  ;;  %v366_v63 = vrot.slane %v365_v56, 1  ;;  %853 = vmatpush3.bf16.msra.mxu0 %v564_v6 }
  0x66   :  { %v431_v27 = vrot.slane %v430_v12, 4  ;;  %v219_v17 = vrot.slane %v218_v31, 1  ;;  %858 = vmatprep.subr.bf16.mxu0 %v1844_v8 }
  0x67   :  { %v284_v61 = vrot.slane %v283_v60, 4  ;;  %v367_v62 = vmax.f32 %v365_v56, %v366_v63 }
  0x68   :  { %v432_v19 = vmax.f32 %v430_v12, %v431_v27  ;;  %v220_v42 = vadd.f32 %v219_v17, %v218_v31 }
  0x69   :  { %v285_v58 = vadd.f32 %v284_v61, %v283_v60 }
  0x6a   :  { %v433_v39 = vrot.slane %v432_v19, 2 }
  0x6b   :  { %v286_v26 = vrot.slane %v285_v58, 2 }
  0x6c   :  { %v434_v41 = vmax.f32 %v432_v19, %v433_v39 }
  0x6d   :  { %v287_v3 = vadd.f32 %v286_v26, %v285_v58 }
  0x6e   :  { %v435_v28 = vrot.slane %v434_v41, 1 }
  0x6f   :  { %v288_v40 = vrot.slane %v287_v3, 1 }
  0x70   :  { %v436_v20 = vmax.f32 %v434_v41, %v435_v28 }
  0x71   :  { %v289_v59 = vadd.f32 %v288_v40, %v287_v3 }
  0x72   :  { %v439_v21 = vsel %vm292_vm3, %v436_v20, %v367_v62 }
  0x73   :  { %v441_v14 = vmax.f32 %v298_v32, %v439_v21  ;;  %v293_v13 = vsel %vm292_vm3, %v289_v59, %v220_v42 }
  0x74   :  { %v295_v46 = vadd.f32 %v293_v13, %v150_v22 }
  0x75   :  { %442 = vst.msk [vmem:[#allocation3] sm:$0x3] %vm19_vm0, %v441_v14 }
  0x76   :  { %297 = vst.msk [vmem:[#allocation2] sm:$0x3] %vm19_vm0, %v295_v46 }
  0x7c   :  { %v449_v43 = vld [vmem:[#allocation3] sm:$0x3] }
  0x7d   :  { %v446_v4 = vld [vmem:[#allocation2] sm:$0x3]  ;;  %v450_v24 = vpack.c.bf16 %v449_v43, %v449_v43 }
  0x7e   :  { %v447_v23 = vmul.f32 0.00390625, %v446_v4 }
  0x80   :  { %v448_v2 = vpack.c.bf16 %v447_v23, %v447_v23 }
  0x82   :  { %841 = vmatmul.mubr.msk.bf16.vlgmr.msra.gmra.mrb[0].mxu1 %vm151_vm2, %v448_v2 }
  0x83   :  { %845 = vmatpush3.bf16.msra.mxu1 %v1843_v30  ;;  %848 = vmatprep.mubr.msk.bf16.mxu1 %vm878_vm1, %v1844_v8 }
  0x84   :  { %846 = vmatprep.subr.bf16.mxu1 %v1844_v8 }
  0x87   :  { %847 = vmatpush3.bf16.msra.mxu1 %v1845_v45 }
  0x8a   :  { %849 = vmatmul.mubr.msk.bf16.vlgmr.msra.gmra.mrb[4].mxu1 %vm151_vm2, %v450_v24 }
 0x155   :  { %v504_v33 = vpop.f32.mrb[0].mxu1 }
 0x156   :  { %v842_v47 = vpop.f32.mrb[1].mxu1  ;;  %v510_v7 = vmax.f32 %v504_v33, 0.0 }
 0x157   :  { %v507_v10 = vpop.f32.mrb[2].mxu1 }
 0x158   :  { %v843_v44 = vpop.f32.mrb[3].mxu1  ;;  %v555_v36 = vpack.c.bf16 %v510_v7, %v510_v7 }
 0x15d   :  { %v548_v51 = vpop.f32.mrb[4].mxu1 }
 0x15e   :  { %v554_v34 = vmax.f32 %v548_v51, 0.0  ;;  %v850_v54 = vpop.f32.mrb[5].mxu1 }
 0x15f   :  { %v551_v29 = vpop.f32.mrb[6].mxu1 }
 0x160   :  { %v557_v38 = vpack.c.bf16 %v554_v34, %v554_v34  ;;  %v851_v1 = vpop.f32.mrb[7].mxu1 }
 0x162   :  { %855 = vmatmul.mubr.msk.bf16.vlgmr.msra.gmra.mrb[0].mxu0 %vm558_vm5, %v557_v38 }
 0x163   :  { %859 = vmatpush3.bf16.msra.mxu0 %v564_v6  ;;  %860 = vmatprep.mubr.msk.bf16.mxu0 %vm878_vm1, %v1844_v8 }
 0x16e   :  { %861 = vmatmul.mubr.msk.bf16.vlgmr.msra.gmra.mrb[0].mxu0 %vm558_vm5, %v555_v36 }
 0x241   :  { %v643_v52 = vpop.f32.mrb[0].mxu0 }
 0x242   :  { %v666_v5 = vmul.f32 -1.442695, %v643_v52  ;;  %v862_v49 = vpop.f32.mrb[1].mxu0 }
 0x243   :  { %v646_v11 = vpop.f32.mrb[2].mxu0 }
 0x244   :  { %873 = vpow2.f32 %v666_v5  ;;  %v863_v57 = vpop.f32.mrb[3].mxu0 }
 0x24e   :  { %v874_v15 = vpop.eup %873 }
 0x24f   :  { %v652_v55 = vadd.f32 1.0, %v874_v15 }
 0x251   :  { %875 = vrcp.f32 %v652_v55 }
 0x25b   :  { %v876_v37 = vpop.eup %875 }
 0x25c   :  { %655 = vst.msk [vmem:[%s1648_s3] sm:$0x3] %vm19_vm0, %v876_v37 }

// kernel: maniqa_forward.23
= control target key start
LH: loop header
LB: loop body
LE: loop exit
PB: predicated region body
PF: predicated region fallthrough
CT: control target
= control target key end

     0   :  { %vm217_vm0 = vcmask 261120   ;;  %vm475_vm1 = vcmask 7168   ;;  %vm732_vm2 = vcmask 15368   ;;  %s2047_s0 = inlined_call_operand.vmem [shape: bf16[2,256,32], index: 0, kind: input, shape index: {}]   ;;  %s2048_s1 = inlined_call_operand.vmem [shape: f32[2,1,32], index: 1, kind: input, shape index: {}]   ;;  %s2049_s2 = inlined_call_operand.vmem [shape: f32[2,256,2], index: 2, kind: output, shape index: {}]  }
   0x1   :  { %v931_v0 = vld [vmem:[%s2047_s0 + $0x8] sm:$0xff]   ;;  %v983_v1 = vld [vmem:[%s2048_s1] ss:$0 sm:$0xff]  ;;  %v932_v7 = vld [vmem:[%s2047_s0 + $0x10] sm:$0xff]  }
   0x2   :  { %v804_v2 = vld [vmem:[%s2047_s0] sm:$0xff]   ;;  %v809_v3 = vunpack.c.l.bf16 %v931_v0  ;;  %v810_v5 = vunpack.c.h.bf16 %v931_v0  ;;  %v814_v8 = vunpack.c.h.bf16 %v932_v7  ;;  %v813_v9 = vunpack.c.l.bf16 %v932_v7  ;;  %v933_v14 = vld [vmem:[%s2047_s0 + $0x18] sm:$0xff]   ;;  %v935_v30 = vld [vmem:[%s2047_s0 + $0x28] sm:$0xff]  }
   0x3   :  { %v805_v4 = vunpack.c.l.bf16 %v804_v2  ;;  %v806_v6 = vunpack.c.h.bf16 %v804_v2  ;;  %v818_v17 = vunpack.c.h.bf16 %v933_v14  ;;  %v817_v18 = vunpack.c.l.bf16 %v933_v14  ;;  %v934_v23 = vld [vmem:[%s2047_s0 + $0x20] sm:$0xff]   ;;  %v936_v31 = vld [vmem:[%s2047_s0 + $0x30] sm:$0xff]   ;;  %v937_v32 = vld [vmem:[%s2047_s0 + $0x38] sm:$0xff]  }
   0x4   :  { %v992_v10 = vmul.f32 %v809_v3, %v983_v1  ;;  %v998_v12 = vmul.f32 %v810_v5, %v983_v1  ;;  %v1015_v21 = vmul.f32 %v814_v8, %v983_v1  ;;  %v1018_v22 = vmul.f32 %v813_v9, %v983_v1  ;;  %v938_v42 = vld [vmem:[%s2047_s0 + $0x40] sm:$0xff]   ;;  %v947_v54 = vld [vmem:[%s2047_s0 + $0x88] sm:$0xff]   ;;  %v948_v59 = vld [vmem:[%s2047_s0 + $0x90] sm:$0xff]  }
   0x5   :  { %v995_v11 = vmul.f32 %v805_v4, %v983_v1  ;;  %v1001_v13 = vmul.f32 %v806_v6, %v983_v1  ;;  %v1024_v24 = vmul.f32 %v818_v17, %v983_v1  ;;  %v1027_v25 = vmul.f32 %v817_v18, %v983_v1  ;;  %v946_v52 = vld [vmem:[%s2047_s0 + $0x80] sm:$0xff]   ;;  %v949_v60 = vld [vmem:[%s2047_s0 + $0x98] sm:$0xff]   ;;  %v939_v2 = vld [vmem:[%s2047_s0 + $0x48] sm:$0xff]  }
   0x6   :  { %v224_v15 = vsel %vm217_vm0, %v992_v10, 0.0  ;;  %v227_v19 = vsel %vm217_vm0, %v998_v12, 0.0  ;;  %v233_v26 = vsel %vm217_vm0, %v1015_v21, 0.0  ;;  %v230_v27 = vsel %vm217_vm0, %v1018_v22, 0.0  ;;  %v1080_v53 = vld [vmem:[%s2048_s1 + $0x1] ss:$0 sm:$0xff] }
   0x7   :  { %v218_v16 = vsel %vm217_vm0, %v995_v11, 0.0  ;;  %225 = vadd.xlane.f32.xlu1 %v224_v15  ;;  %v221_v20 = vsel %vm217_vm0, %v1001_v13, 0.0  ;;  %v822_v28 = vunpack.c.h.bf16 %v934_v23  ;;  %v821_v29 = vunpack.c.l.bf16 %v934_v23  ;;  %v940_v8 = vld [vmem:[%s2047_s0 + $0x50] sm:$0xff]   ;;  %v1122_v18 = vld [vmem:[%s2047_s0 + $0x58] sm:$0xff]  }
   0x8   :  { %219 = vadd.xlane.f32.xlu0 %v218_v16  ;;  %v239_v33 = vsel %vm217_vm0, %v1024_v24, 0.0  ;;  %v236_v34 = vsel %vm217_vm0, %v1027_v25, 0.0  ;;  %v826_v35 = vunpack.c.h.bf16 %v935_v30  ;;  %v825_v38 = vunpack.c.l.bf16 %v935_v30  ;;  %v950_v16 = vld [vmem:[%s2047_s0 + $0xa0] sm:$0xff]   ;;  %v951_v30 = vld [vmem:[%s2047_s0 + $0xa8] sm:$0xff]  }
   0x9   :  { %v1047_v36 = vmul.f32 %v822_v28, %v983_v1  ;;  %v1050_v37 = vmul.f32 %v821_v29, %v983_v1  ;;  %v830_v39 = vunpack.c.h.bf16 %v936_v31  ;;  %v829_v40 = vunpack.c.l.bf16 %v936_v31 }
   0xa   :  { %v834_v41 = vunpack.c.h.bf16 %v937_v32  ;;  %v1056_v43 = vmul.f32 %v826_v35, %v983_v1  ;;  %v1063_v46 = vmul.f32 %v825_v38, %v983_v1  ;;  %v833_v50 = vunpack.c.l.bf16 %v937_v32  ;;  %v952_v35 = vld [vmem:[%s2047_s0 + $0xb0] sm:$0xff]   ;;  %v953_v38 = vld [vmem:[%s2047_s0 + $0xb8] sm:$0xff]  }
   0xb   :  { %228 = vadd.xlane.f32.xlu1 %v227_v19  ;;  %v245_v44 = vsel %vm217_vm0, %v1047_v36, 0.0  ;;  %v242_v45 = vsel %vm217_vm0, %v1050_v37, 0.0  ;;  %v1066_v47 = vmul.f32 %v830_v39, %v983_v1  ;;  %v1069_v48 = vmul.f32 %v829_v40, %v983_v1 }
   0xc   :  { %222 = vadd.xlane.f32.xlu0 %v221_v20  ;;  %v1072_v49 = vmul.f32 %v834_v41, %v983_v1  ;;  %v838_v51 = vunpack.c.h.bf16 %v938_v42  ;;  %v251_v55 = vsel %vm217_vm0, %v1056_v43, 0.0  ;;  %v248_v56 = vsel %vm217_vm0, %v1063_v46, 0.0 }
   0xd   :  { %v257_v57 = vsel %vm217_vm0, %v1066_v47, 0.0  ;;  %v870_v58 = vunpack.c.h.bf16 %v946_v52  ;;  %v254_v61 = vsel %vm217_vm0, %v1069_v48, 0.0  ;;  %v1102_v63 = vmul.f32 %v833_v50, %v983_v1 }
   0xe   :  { %v263_v62 = vsel %vm217_vm0, %v1072_v49, 0.0  ;;  %v1105_v0 = vmul.f32 %v838_v51, %v983_v1  ;;  %v869_v4 = vunpack.c.l.bf16 %v946_v52  ;;  %v874_v5 = vunpack.c.h.bf16 %v947_v54 }
   0xf   :  { %234 = vadd.xlane.f32.xlu1 %v233_v26  ;;  %2059 = vst [vmem:[#allocation2_spill] sm:$0xff] %v1102_v63  ;;  %v1111_v3 = vmul.f32 %v870_v58, %v1080_v53  ;;  %v873_v6 = vunpack.c.l.bf16 %v947_v54  ;;  %v837_v7 = vunpack.c.l.bf16 %v938_v42  ;;  %v878_v9 = vunpack.c.h.bf16 %v948_v59 }
  0x10   :  { %231 = vadd.xlane.f32.xlu0 %v230_v27  ;;  %2060 = vst [vmem:[#allocation3_spill] sm:$0xff] %v1105_v0  ;;  %v877_v14 = vunpack.c.l.bf16 %v948_v59  ;;  %v882_v15 = vunpack.c.h.bf16 %v949_v60  ;;  %v842_v17 = vunpack.c.h.bf16 %v939_v2  ;;  %v1125_v19 = vmul.f32 %v869_v4, %v1080_v53 }
  0x11   :  { %v1128_v20 = vmul.f32 %v874_v5, %v1080_v53  ;;  %v1131_v23 = vmul.f32 %v873_v6, %v1080_v53  ;;  %v1134_v26 = vmul.f32 %v878_v9, %v1080_v53  ;;  %v881_v29 = vunpack.c.l.bf16 %v949_v60 }
  0x12   :  { %v1137_v27 = vmul.f32 %v877_v14, %v1080_v53  ;;  %v1140_v28 = vmul.f32 %v882_v15, %v1080_v53  ;;  %v260_v31 = vsel %vm217_vm0, %v1102_v63, 0.0  ;;  %v841_v32 = vunpack.c.l.bf16 %v939_v2  ;;  %v956_v15 = vld [vmem:[%s2047_s0 + $0xd0] sm:$0xff]  }
  0x13   :  { %240 = vadd.xlane.f32.xlu1 %v239_v33  ;;  %v846_v33 = vunpack.c.h.bf16 %v940_v8  ;;  %v1154_v39 = vmul.f32 %v837_v7, %v983_v1  ;;  %v845_v40 = vunpack.c.l.bf16 %v940_v8  ;;  %v850_v41 = vunpack.c.h.bf16 %v1122_v18  ;;  %v955_v7 = vld [vmem:[%s2047_s0 + $0xc8] sm:$0xff]  }
  0x14   :  { %237 = vadd.xlane.f32.xlu0 %v236_v34  ;;  %v886_v34 = vunpack.c.h.bf16 %v950_v16  ;;  %v1158_v42 = vmul.f32 %v881_v29, %v1080_v53  ;;  %v890_v50 = vunpack.c.h.bf16 %v951_v30  ;;  %v889_v51 = vunpack.c.l.bf16 %v951_v30 }
  0x15   :  { %2061 = vst [vmem:[#allocation4_spill] sm:$0xff] %v1154_v39  ;;  %v269_v52 = vsel %vm217_vm0, %v1105_v0, 0.0  ;;  %v894_v54 = vunpack.c.h.bf16 %v952_v35  ;;  %v1169_v58 = vmul.f32 %v842_v17, %v983_v1  ;;  %v897_v6 = vunpack.c.l.bf16 %v953_v38 }
  0x16   :  { %v1175_v60 = vmul.f32 %v890_v50, %v1080_v53  ;;  %v266_v8 = vsel %vm217_vm0, %v1154_v39, 0.0  ;;  %v1198_v9 = vmul.f32 %v846_v33, %v983_v1  ;;  %v1207_v17 = vmul.f32 %v845_v40, %v983_v1  ;;  %v942_v40 = vld [vmem:[%s2047_s0 + $0x60] sm:$0xff]  }
  0x17   :  { %246 = vadd.xlane.f32.xlu1 %v245_v44  ;;  %v1161_v44 = vmul.f32 %v886_v34, %v1080_v53  ;;  %2062 = vst [vmem:[#allocation5_spill] sm:$0xff] %v1169_v58  ;;  %v1181_v2 = vmul.f32 %v894_v54, %v1080_v53  ;;  %v1210_v29 = vmul.f32 %v850_v41, %v983_v1  ;;  %v849_v30 = vunpack.c.l.bf16 %v1122_v18  ;;  %v958_v50 = vld [vmem:[%s2047_s0 + $0xe0] sm:$0xff]  }
  0x18   :  { %243 = vadd.xlane.f32.xlu0 %v242_v45  ;;  %v885_v45 = vunpack.c.l.bf16 %v950_v16  ;;  %2064 = vst [vmem:[#allocation7_spill] sm:$0xff] %v1198_v9  ;;  %v957_v16 = vld [vmem:[%s2047_s0 + $0xd8] sm:$0xff]   ;;  %2065 = vst [vmem:[#allocation8_spill] sm:$0xff] %v1207_v17  ;;  %v906_v34 = vunpack.c.h.bf16 %v955_v7  ;;  %v910_v41 = vunpack.c.h.bf16 %v956_v15  ;;  %v909_v18 = vunpack.c.l.bf16 %v956_v15 }
  0x19   :  { %2066 = vst [vmem:[#allocation9_spill] sm:$0xff] %v1210_v29  ;;  %v854_v15 = vunpack.c.h.bf16 %v942_v40 }
  0x1a   :  { %v1172_v59 = vmul.f32 %v885_v45, %v1080_v53  ;;  %v914_v45 = vunpack.c.h.bf16 %v957_v16  ;;  %v1233_v54 = vmul.f32 %v906_v34, %v1080_v53  ;;  %v960_v34 = vld [vmem:[%s2047_s0 + $0xf0] sm:$0xff]  }
  0x1b   :  { %252 = vadd.xlane.f32.xlu1 %v251_v55  ;;  %v893_v55 = vunpack.c.l.bf16 %v952_v35  ;;  %v905_v35 = vunpack.c.l.bf16 %v955_v7  ;;  %v913_v7 = vunpack.c.l.bf16 %v957_v16  ;;  %v278_v16 = vsel %vm217_vm0, %v1207_v17, 0.0 }
  0x1c   :  { %249 = vadd.xlane.f32.xlu0 %v248_v56  ;;  %v898_v56 = vunpack.c.h.bf16 %v953_v38  ;;  %v275_v38 = vsel %vm217_vm0, %v1169_v58, 0.0  ;;  %v926_v17 = vunpack.c.h.bf16 %v960_v34 }
  0x1d   :  { %v1184_v4 = vmul.f32 %v893_v55, %v1080_v53  ;;  %v1236_v55 = vmul.f32 %v905_v35, %v1080_v53  ;;  %v961_v35 = vld [vmem:[%s2047_s0 + $0xf8] sm:$0xff]  }
  0x1e   :  { %v1187_v5 = vmul.f32 %v898_v56, %v1080_v53  ;;  %v1239_v56 = vmul.f32 %v910_v41, %v1080_v53  ;;  %v1261_v41 = vmul.f32 %v849_v30, %v983_v1  ;;  %v925_v30 = vunpack.c.l.bf16 %v960_v34 }
  0x1f   :  { %258 = vadd.xlane.f32.xlu1 %v257_v57  ;;  %v954_v57 = vld [vmem:[%s2047_s0 + $0xc0] sm:$0xff]   ;;  %v930_v0 = vunpack.c.h.bf16 %v961_v35 }
  0x20   :  { %255 = vadd.xlane.f32.xlu0 %v254_v61  ;;  %v1178_v61 = vmul.f32 %v889_v51, %v1080_v53  ;;  %v902_v14 = vunpack.c.h.bf16 %v954_v57  ;;  %v901_v33 = vunpack.c.l.bf16 %v954_v57  ;;  %v1242_v57 = vmul.f32 %v909_v18, %v1080_v53 }
  0x21   :  { %v853_v18 = vunpack.c.l.bf16 %v942_v40  ;;  %v1275_v40 = vmul.f32 %v854_v15, %v983_v1  ;;  %v1290_v34 = vmul.f32 %v925_v30, %v1080_v53  ;;  %v1293_v15 = vmul.f32 %v930_v0, %v1080_v53 }
  0x23   :  { %264 = vadd.xlane.f32.xlu1 %v263_v62  ;;  %v1195_v62 = vmul.f32 %v841_v32, %v983_v1  ;;  %v1217_v32 = vmul.f32 %v902_v14, %v1080_v53  ;;  %v281_v14 = vsel %vm217_vm0, %v1198_v9, 0.0 }
  0x24   :  { %261 = vadd.xlane.f32.xlu0 %v260_v31  ;;  %v1214_v31 = vmul.f32 %v897_v6, %v1080_v53  ;;  %v1245_v6 = vmul.f32 %v914_v45, %v1080_v53  ;;  %v1264_v45 = vmul.f32 %v913_v7, %v1080_v53 }
  0x25   :  { %2063 = vst [vmem:[#allocation6_spill] sm:$0xff] %v1195_v62  ;;  %v272_v51 = vsel %vm217_vm0, %v1195_v62, 0.0  ;;  %v917_v62 = vunpack.c.l.bf16 %v958_v50 }
  0x27   :  { %270 = vadd.xlane.f32.xlu1 %v269_v52  ;;  %v1230_v52 = vmul.f32 %v901_v33, %v1080_v53  ;;  %v918_v33 = vunpack.c.h.bf16 %v958_v50  ;;  %v1278_v7 = vmul.f32 %v917_v62, %v1080_v53  ;;  %v284_v62 = vsel %vm217_vm0, %v1261_v41, 0.0 }
  0x28   :  { %267 = vadd.xlane.f32.xlu0 %v266_v8  ;;  %v959_v8 = vld [vmem:[%s2047_s0 + $0xe8] sm:$0xff]  }
  0x29   :  { %v1267_v9 = vmul.f32 %v918_v33, %v1080_v53  ;;  %v922_v58 = vunpack.c.h.bf16 %v959_v8  ;;  %v921_v39 = vunpack.c.l.bf16 %v959_v8  ;;  %v1287_v33 = vmul.f32 %v926_v17, %v1080_v53  ;;  %v944_v17 = vld [vmem:[%s2047_s0 + $0x70] sm:$0xff]  }
  0x2a   :  { %v862_v0 = vunpack.c.h.bf16 %v944_v17 }
  0x2b   :  { %276 = vadd.xlane.f32.xlu1 %v275_v38  ;;  %v287_v38 = vsel %vm217_vm0, %v1210_v29, 0.0  ;;  %v1281_v50 = vmul.f32 %v922_v58, %v1080_v53  ;;  %v1284_v8 = vmul.f32 %v921_v39, %v1080_v53  ;;  %v929_v29 = vunpack.c.l.bf16 %v961_v35 }
  0x2c   :  { %273 = vadd.xlane.f32.xlu0 %v272_v51  ;;  %v943_v51 = vld [vmem:[%s2047_s0 + $0x68] sm:$0xff]   ;;  %v1298_v58 = vmul.f32 %v853_v18, %v983_v1  ;;  %v293_v35 = vsel %vm217_vm0, %v1275_v40, 0.0 }
  0x2d   :  { %v858_v39 = vunpack.c.h.bf16 %v943_v51  ;;  %v857_v63 = vunpack.c.l.bf16 %v943_v51 }
  0x2e   :  { %v290_v18 = vsel %vm217_vm0, %v1298_v58, 0.0 }
  0x2f   :  { %282 = vadd.xlane.f32.xlu1 %v281_v14  ;;  %v1304_v14 = vmul.f32 %v929_v29, %v1080_v53  ;;  %v1311_v30 = vmul.f32 %v858_v39, %v983_v1  ;;  %v1314_v51 = vmul.f32 %v857_v63, %v983_v1  ;;  %v945_v53 = vld [vmem:[%s2047_s0 + $0x78] sm:$0xff]   ;;  %v1320_v29 = vmul.f32 %v862_v0, %v983_v1 }
  0x30   :  { %279 = vadd.xlane.f32.xlu0 %v278_v16  ;;  %v861_v16 = vunpack.c.l.bf16 %v944_v17  ;;  %v865_v63 = vunpack.c.l.bf16 %v945_v53 }
  0x31   :  { %2067 = vst [vmem:[#allocation10_spill] sm:$0xff] %v1311_v30  ;;  %v296_v39 = vsel %vm217_vm0, %v1314_v51, 0.0 }
  0x32   :  { %v1327_v17 = vmul.f32 %v861_v16, %v983_v1 }
  0x33   :  { %288 = vadd.xlane.f32.xlu1 %v287_v38  ;;  %v866_v38 = vunpack.c.h.bf16 %v945_v53 }
  0x34   :  { %285 = vadd.xlane.f32.xlu0 %v284_v62  ;;  %v299_v62 = vsel %vm217_vm0, %v1311_v30, 0.0  ;;  %v302_v0 = vsel %vm217_vm0, %v1327_v17, 0.0  ;;  %v1337_v30 = vmul.f32 %v865_v63, %v983_v1  ;;  %v329_v63 = vsel %vm217_vm0, %v1134_v26, 0.0 }
  0x36   :  { %v308_v53 = vsel %vm217_vm0, %v1337_v30, 0.0 }
  0x37   :  { %294 = vadd.xlane.f32.xlu1 %v293_v35  ;;  %v305_v35 = vsel %vm217_vm0, %v1320_v29, 0.0 }
  0x38   :  { %291 = vadd.xlane.f32.xlu0 %v290_v18  ;;  %v1334_v18 = vmul.f32 %v866_v38, %v983_v1  ;;  %v314_v38 = vsel %vm217_vm0, %v1125_v19, 0.0  ;;  %v323_v1 = vsel %vm217_vm0, %v1128_v20, 0.0 }
  0x3a   :  { %v311_v16 = vsel %vm217_vm0, %v1334_v18, 0.0 }
  0x3b   :  { %300 = vadd.xlane.f32.xlu1 %v299_v62  ;;  %v317_v62 = vsel %vm217_vm0, %v1111_v3, 0.0 }
  0x3c   :  { %297 = vadd.xlane.f32.xlu0 %v296_v39  ;;  %v320_v39 = vsel %vm217_vm0, %v1131_v23, 0.0 }
  0x3f   :  { %306 = vadd.xlane.f32.xlu1 %v305_v35  ;;  %v326_v35 = vsel %vm217_vm0, %v1137_v27, 0.0 }
  0x40   :  { %303 = vadd.xlane.f32.xlu0 %v302_v0  ;;  %v335_v0 = vsel %vm217_vm0, %v1140_v28, 0.0 }
  0x43   :  { %312 = vadd.xlane.f32.xlu1 %v311_v16  ;;  %v332_v16 = vsel %vm217_vm0, %v1158_v42, 0.0 }
  0x44   :  { %309 = vadd.xlane.f32.xlu0 %v308_v53  ;;  %v341_v53 = vsel %vm217_vm0, %v1161_v44, 0.0 }
  0x47   :  { %318 = vadd.xlane.f32.xlu1 %v317_v62  ;;  %v338_v62 = vsel %vm217_vm0, %v1172_v59, 0.0 }
  0x48   :  { %315 = vadd.xlane.f32.xlu0 %v314_v38  ;;  %v347_v38 = vsel %vm217_vm0, %v1175_v60, 0.0 }
  0x4b   :  { %324 = vadd.xlane.f32.xlu1 %v323_v1  ;;  %v344_v1 = vsel %vm217_vm0, %v1178_v61, 0.0 }
  0x4c   :  { %321 = vadd.xlane.f32.xlu0 %v320_v39  ;;  %v353_v39 = vsel %vm217_vm0, %v1181_v2, 0.0 }
  0x4f   :  { %330 = vadd.xlane.f32.xlu1 %v329_v63  ;;  %v350_v63 = vsel %vm217_vm0, %v1184_v4, 0.0 }
  0x50   :  { %327 = vadd.xlane.f32.xlu0 %v326_v35  ;;  %v359_v35 = vsel %vm217_vm0, %v1187_v5, 0.0 }
  0x53   :  { %336 = vadd.xlane.f32.xlu1 %v335_v0  ;;  %v356_v0 = vsel %vm217_vm0, %v1214_v31, 0.0 }
  0x54   :  { %333 = vadd.xlane.f32.xlu0 %v332_v16  ;;  %v365_v16 = vsel %vm217_vm0, %v1217_v32, 0.0 }
  0x57   :  { %342 = vadd.xlane.f32.xlu1 %v341_v53  ;;  %v362_v53 = vsel %vm217_vm0, %v1230_v52, 0.0 }
  0x58   :  { %339 = vadd.xlane.f32.xlu0 %v338_v62  ;;  %v371_v62 = vsel %vm217_vm0, %v1233_v54, 0.0 }
  0x5b   :  { %348 = vadd.xlane.f32.xlu1 %v347_v38  ;;  %v368_v38 = vsel %vm217_vm0, %v1236_v55, 0.0 }
  0x5c   :  { %345 = vadd.xlane.f32.xlu0 %v344_v1  ;;  %v377_v1 = vsel %vm217_vm0, %v1239_v56, 0.0 }
  0x5f   :  { %354 = vadd.xlane.f32.xlu1 %v353_v39  ;;  %v374_v39 = vsel %vm217_vm0, %v1242_v57, 0.0 }
  0x60   :  { %351 = vadd.xlane.f32.xlu0 %v350_v63  ;;  %v383_v63 = vsel %vm217_vm0, %v1245_v6, 0.0 }
  0x63   :  { %360 = vadd.xlane.f32.xlu1 %v359_v35  ;;  %v380_v35 = vsel %vm217_vm0, %v1264_v45, 0.0 }
  0x64   :  { %357 = vadd.xlane.f32.xlu0 %v356_v0  ;;  %v389_v0 = vsel %vm217_vm0, %v1267_v9, 0.0 }
  0x67   :  { %366 = vadd.xlane.f32.xlu1 %v365_v16  ;;  %v386_v16 = vsel %vm217_vm0, %v1278_v7, 0.0 }
  0x68   :  { %363 = vadd.xlane.f32.xlu0 %v362_v53  ;;  %v395_v53 = vsel %vm217_vm0, %v1281_v50, 0.0 }
  0x6b   :  { %372 = vadd.xlane.f32.xlu1 %v371_v62  ;;  %v392_v62 = vsel %vm217_vm0, %v1284_v8, 0.0 }
  0x6c   :  { %369 = vadd.xlane.f32.xlu0 %v368_v38  ;;  %v401_v38 = vsel %vm217_vm0, %v1287_v33, 0.0 }
  0x6f   :  { %378 = vadd.xlane.f32.xlu1 %v377_v1  ;;  %v398_v1 = vsel %vm217_vm0, %v1290_v34, 0.0 }
  0x70   :  { %375 = vadd.xlane.f32.xlu0 %v374_v39  ;;  %v407_v39 = vsel %vm217_vm0, %v1293_v15, 0.0 }
  0x73   :  { %384 = vadd.xlane.f32.xlu1 %v383_v63  ;;  %v404_v63 = vsel %vm217_vm0, %v1304_v14, 0.0 }
  0x74   :  { %381 = vadd.xlane.f32.xlu0 %v380_v35  ;;  %v543_v35 = vsel %vm217_vm0, %v1001_v13, -inf  ;;  %v558_v13 = vsel %vm217_vm0, %v1027_v25, -inf }
  0x77   :  { %390 = vadd.xlane.f32.xlu1 %v389_v0  ;;  %v540_v0 = vsel %vm217_vm0, %v995_v11, -inf  ;;  %v561_v11 = vsel %vm217_vm0, %v1024_v24, -inf }
  0x78   :  { %387 = vadd.xlane.f32.xlu0 %v386_v16  ;;  %v549_v16 = vsel %vm217_vm0, %v998_v12, -inf }
  0x7b   :  { %396 = vadd.xlane.f32.xlu1 %v395_v53  ;;  %v546_v53 = vsel %vm217_vm0, %v992_v10, -inf }
  0x7c   :  { %393 = vadd.xlane.f32.xlu0 %v392_v62  ;;  %v555_v62 = vsel %vm217_vm0, %v1015_v21, -inf  ;;  %v564_v21 = vsel %vm217_vm0, %v1050_v37, -inf  ;;  %v570_v37 = vsel %vm217_vm0, %v1063_v46, -inf  ;;  %v576_v46 = vsel %vm217_vm0, %v1069_v48, -inf  ;;  %v2068_v48 = vld [vmem:[#allocation2_spill] sm:$0xff] }
  0x7f   :  { %402 = vadd.xlane.f32.xlu1 %v401_v38  ;;  %v552_v38 = vsel %vm217_vm0, %v1018_v22, -inf }
  0x80   :  { %399 = vadd.xlane.f32.xlu0 %v398_v1  ;;  %v567_v1 = vsel %vm217_vm0, %v1047_v36, -inf  ;;  %v573_v36 = vsel %vm217_vm0, %v1056_v43, -inf  ;;  %v579_v43 = vsel %vm217_vm0, %v1066_v47, -inf  ;;  %v585_v47 = vsel %vm217_vm0, %v1072_v49, -inf  ;;  %v2069_v49 = vld [vmem:[#allocation3_spill] sm:$0xff] }
  0x83   :  { %408 = vadd.xlane.f32.xlu1 %v407_v39 }
  0x84   :  { %405 = vadd.xlane.f32.xlu0 %v404_v63 }
  0x87   :  { %544 = vmax.xlane.f32.xlu1 %v543_v35 }
  0x88   :  { %541 = vmax.xlane.f32.xlu0 %v540_v0 }
  0x8b   :  { %550 = vmax.xlane.f32.xlu1 %v549_v16 }
  0x8c   :  { %547 = vmax.xlane.f32.xlu0 %v546_v53 }
  0x8f   :  { %556 = vmax.xlane.f32.xlu1 %v555_v62 }
  0x90   :  { %553 = vmax.xlane.f32.xlu0 %v552_v38 }
  0x93   :  { %562 = vmax.xlane.f32.xlu1 %v561_v11 }
  0x94   :  { %559 = vmax.xlane.f32.xlu0 %v558_v13  ;;  %v226_v10 = vpop.xlane.xlu1 %225  ;;  %v582_v13 = vsel %vm217_vm0, %v2068_v48, -inf  ;;  %v2074_v48 = vld [vmem:[#allocation8_spill] sm:$0xff] }
  0x95   :  { %v220_v12 = vpop.xlane.xlu0 %219  ;;  %v413_v22 = vmul.f32 0.03125, %v226_v10 }
  0x96   :  { %v411_v39 = vmul.f32 0.03125, %v220_v12 }
  0x97   :  { %478 = vst.msk [vmem:[%s2049_s2 + $0x10] sm:$0xff] %vm475_vm1, %v413_v22  ;;  %568 = vmax.xlane.f32.xlu1 %v567_v1  ;;  %v591_v22 = vsel %vm217_vm0, %v2069_v49, -inf  ;;  %v2075_v49 = vld [vmem:[#allocation9_spill] sm:$0xff] }
  0x98   :  { %476 = vst.msk [vmem:[%s2049_s2] sm:$0xff] %vm475_vm1, %v411_v39  ;;  %565 = vmax.xlane.f32.xlu0 %v564_v21  ;;  %v229_v24 = vpop.xlane.xlu1 %228  ;;  %v2070_v39 = vld [vmem:[#allocation4_spill] sm:$0xff] }
  0x99   :  { %v223_v25 = vpop.xlane.xlu0 %222  ;;  %v414_v63 = vmul.f32 0.03125, %v229_v24  ;;  %v588_v24 = vsel %vm217_vm0, %v2070_v39, -inf  ;;  %v606_v39 = vsel %vm217_vm0, %v1261_v41, -inf  ;;  %v612_v41 = vsel %vm217_vm0, %v1298_v58, -inf }
  0x9a   :  { %v412_v35 = vmul.f32 0.03125, %v223_v25  ;;  %v618_v58 = vsel %vm217_vm0, %v1314_v51, -inf  ;;  %v624_v51 = vsel %vm217_vm0, %v1327_v17, -inf  ;;  %v630_v17 = vsel %vm217_vm0, %v1337_v30, -inf }
  0x9b   :  { %479 = vst.msk [vmem:[%s2049_s2 + $0x18] sm:$0xff] %vm475_vm1, %v414_v63  ;;  %574 = vmax.xlane.f32.xlu1 %v573_v36  ;;  %v636_v30 = vsel %vm217_vm0, %v1125_v19, -inf  ;;  %v642_v19 = vsel %vm217_vm0, %v1131_v23, -inf  ;;  %v648_v23 = vsel %vm217_vm0, %v1137_v27, -inf  ;;  %v654_v27 = vsel %vm217_vm0, %v1158_v42, -inf }
  0x9c   :  { %477 = vst.msk [vmem:[%s2049_s2 + $0x8] sm:$0xff] %vm475_vm1, %v412_v35  ;;  %571 = vmax.xlane.f32.xlu0 %v570_v37  ;;  %v235_v0 = vpop.xlane.xlu1 %234  ;;  %v2071_v35 = vld [vmem:[#allocation5_spill] sm:$0xff]  ;;  %v660_v42 = vsel %vm217_vm0, %v1172_v59, -inf  ;;  %v666_v59 = vsel %vm217_vm0, %v1178_v61, -inf  ;;  %v672_v61 = vsel %vm217_vm0, %v1184_v4, -inf  ;;  %v678_v4 = vsel %vm217_vm0, %v1214_v31, -inf }
  0x9d   :  { %v232_v16 = vpop.xlane.xlu0 %231  ;;  %v416_v53 = vmul.f32 0.03125, %v235_v0  ;;  %v597_v0 = vsel %vm217_vm0, %v2071_v35, -inf  ;;  %v684_v31 = vsel %vm217_vm0, %v1230_v52, -inf  ;;  %v690_v52 = vsel %vm217_vm0, %v1236_v55, -inf }
  0x9e   :  { %v415_v62 = vmul.f32 0.03125, %v232_v16  ;;  %v2072_v16 = vld [vmem:[#allocation6_spill] sm:$0xff]  ;;  %v696_v55 = vsel %vm217_vm0, %v1242_v57, -inf  ;;  %v702_v57 = vsel %vm217_vm0, %v1264_v45, -inf  ;;  %v708_v45 = vsel %vm217_vm0, %v1278_v7, -inf }
  0x9f   :  { %481 = vst.msk [vmem:[%s2049_s2 + $0x28] sm:$0xff] %vm475_vm1, %v416_v53  ;;  %580 = vmax.xlane.f32.xlu1 %v579_v43  ;;  %v594_v43 = vsel %vm217_vm0, %v2072_v16, -inf  ;;  %v714_v7 = vsel %vm217_vm0, %v1284_v8, -inf  ;;  %v720_v8 = vsel %vm217_vm0, %v1290_v34, -inf  ;;  %v726_v34 = vsel %vm217_vm0, %v1304_v14, -inf }
  0xa0   :  { %480 = vst.msk [vmem:[%s2049_s2 + $0x20] sm:$0xff] %vm475_vm1, %v415_v62  ;;  %577 = vmax.xlane.f32.xlu0 %v576_v46  ;;  %v241_v38 = vpop.xlane.xlu1 %240 }
  0xa1   :  { %v238_v11 = vpop.xlane.xlu0 %237  ;;  %v418_v10 = vmul.f32 0.03125, %v241_v38 }
  0xa2   :  { %v417_v12 = vmul.f32 0.03125, %v238_v11  ;;  %v2073_v11 = vld [vmem:[#allocation7_spill] sm:$0xff] }
  0xa3   :  { %483 = vst.msk [vmem:[%s2049_s2 + $0x38] sm:$0xff] %vm475_vm1, %v418_v10  ;;  %586 = vmax.xlane.f32.xlu1 %v585_v47  ;;  %v603_v47 = vsel %vm217_vm0, %v2073_v11, -inf }
  0xa4   :  { %482 = vst.msk [vmem:[%s2049_s2 + $0x30] sm:$0xff] %vm475_vm1, %v417_v12  ;;  %583 = vmax.xlane.f32.xlu0 %v582_v13  ;;  %v247_v1 = vpop.xlane.xlu1 %246  ;;  %v600_v13 = vsel %vm217_vm0, %v2074_v48, -inf }
  0xa5   :  { %v244_v21 = vpop.xlane.xlu0 %243  ;;  %v420_v25 = vmul.f32 0.03125, %v247_v1 }
  0xa6   :  { %v419_v36 = vmul.f32 0.03125, %v244_v21 }
  0xa7   :  { %485 = vst.msk [vmem:[%s2049_s2 + $0x48] sm:$0xff] %vm475_vm1, %v420_v25  ;;  %592 = vmax.xlane.f32.xlu1 %v591_v22  ;;  %v609_v22 = vsel %vm217_vm0, %v2075_v49, -inf }
  0xa8   :  { %484 = vst.msk [vmem:[%s2049_s2 + $0x40] sm:$0xff] %vm475_vm1, %v419_v36  ;;  %589 = vmax.xlane.f32.xlu0 %v588_v24  ;;  %v253_v37 = vpop.xlane.xlu1 %252 }
  0xa9   :  { %v250_v63 = vpop.xlane.xlu0 %249  ;;  %v422_v46 = vmul.f32 0.03125, %v253_v37 }
  0xaa   :  { %v421_v53 = vmul.f32 0.03125, %v250_v63  ;;  %v615_v63 = vsel %vm217_vm0, %v1275_v40, -inf  ;;  %v2076_v40 = vld [vmem:[#allocation10_spill] sm:$0xff] }
  0xab   :  { %487 = vst.msk [vmem:[%s2049_s2 + $0x58] sm:$0xff] %vm475_vm1, %v422_v46  ;;  %598 = vmax.xlane.f32.xlu1 %v597_v0  ;;  %v621_v46 = vsel %vm217_vm0, %v2076_v40, -inf }
  0xac   :  { %486 = vst.msk [vmem:[%s2049_s2 + $0x50] sm:$0xff] %vm475_vm1, %v421_v53  ;;  %595 = vmax.xlane.f32.xlu0 %v594_v43  ;;  %v259_v62 = vpop.xlane.xlu1 %258 }
  0xad   :  { %v256_v38 = vpop.xlane.xlu0 %255  ;;  %v424_v10 = vmul.f32 0.03125, %v259_v62 }
  0xae   :  { %v423_v12 = vmul.f32 0.03125, %v256_v38 }
  0xaf   :  { %489 = vst.msk [vmem:[%s2049_s2 + $0x68] sm:$0xff] %vm475_vm1, %v424_v10  ;;  %604 = vmax.xlane.f32.xlu1 %v603_v47  ;;  %v627_v47 = vsel %vm217_vm0, %v1320_v29, -inf  ;;  %v633_v29 = vsel %vm217_vm0, %v1334_v18, -inf  ;;  %v639_v18 = vsel %vm217_vm0, %v1111_v3, -inf  ;;  %v645_v3 = vsel %vm217_vm0, %v1128_v20, -inf }
  0xb0   :  { %488 = vst.msk [vmem:[%s2049_s2 + $0x60] sm:$0xff] %vm475_vm1, %v423_v12  ;;  %601 = vmax.xlane.f32.xlu0 %v600_v13  ;;  %v265_v1 = vpop.xlane.xlu1 %264  ;;  %v651_v20 = vsel %vm217_vm0, %v1134_v26, -inf  ;;  %v657_v26 = vsel %vm217_vm0, %v1140_v28, -inf  ;;  %v663_v28 = vsel %vm217_vm0, %v1161_v44, -inf  ;;  %v669_v44 = vsel %vm217_vm0, %v1175_v60, -inf }
  0xb1   :  { %v262_v21 = vpop.xlane.xlu0 %261  ;;  %v426_v24 = vmul.f32 0.03125, %v265_v1  ;;  %v675_v60 = vsel %vm217_vm0, %v1181_v2, -inf  ;;  %v681_v2 = vsel %vm217_vm0, %v1187_v5, -inf  ;;  %v687_v5 = vsel %vm217_vm0, %v1217_v32, -inf }
  0xb2   :  { %v425_v25 = vmul.f32 0.03125, %v262_v21  ;;  %v693_v32 = vsel %vm217_vm0, %v1233_v54, -inf  ;;  %v699_v54 = vsel %vm217_vm0, %v1239_v56, -inf  ;;  %v705_v56 = vsel %vm217_vm0, %v1245_v6, -inf }
  0xb3   :  { %491 = vst.msk [vmem:[%s2049_s2 + $0x78] sm:$0xff] %vm475_vm1, %v426_v24  ;;  %610 = vmax.xlane.f32.xlu1 %v609_v22  ;;  %v711_v6 = vsel %vm217_vm0, %v1267_v9, -inf  ;;  %v717_v9 = vsel %vm217_vm0, %v1281_v50, -inf  ;;  %v723_v50 = vsel %vm217_vm0, %v1287_v33, -inf  ;;  %v729_v33 = vsel %vm217_vm0, %v1293_v15, -inf }
  0xb4   :  { %490 = vst.msk [vmem:[%s2049_s2 + $0x70] sm:$0xff] %vm475_vm1, %v425_v25  ;;  %607 = vmax.xlane.f32.xlu0 %v606_v39  ;;  %v271_v36 = vpop.xlane.xlu1 %270 }
  0xb5   :  { %v268_v37 = vpop.xlane.xlu0 %267  ;;  %v428_v35 = vmul.f32 0.03125, %v271_v36 }
  0xb6   :  { %v427_v0 = vmul.f32 0.03125, %v268_v37 }
  0xb7   :  { %493 = vst.msk [vmem:[%s2049_s2 + $0x88] sm:$0xff] %vm475_vm1, %v428_v35  ;;  %616 = vmax.xlane.f32.xlu1 %v615_v63 }
  0xb8   :  { %492 = vst.msk [vmem:[%s2049_s2 + $0x80] sm:$0xff] %vm475_vm1, %v427_v0  ;;  %613 = vmax.xlane.f32.xlu0 %v612_v41  ;;  %v277_v16 = vpop.xlane.xlu1 %276 }
  0xb9   :  { %v274_v43 = vpop.xlane.xlu0 %273  ;;  %v430_v53 = vmul.f32 0.03125, %v277_v16 }
  0xba   :  { %v429_v62 = vmul.f32 0.03125, %v274_v43 }
  0xbb   :  { %495 = vst.msk [vmem:[%s2049_s2 + $0x98] sm:$0xff] %vm475_vm1, %v430_v53  ;;  %622 = vmax.xlane.f32.xlu1 %v621_v46 }
  0xbc   :  { %494 = vst.msk [vmem:[%s2049_s2 + $0x90] sm:$0xff] %vm475_vm1, %v429_v62  ;;  %619 = vmax.xlane.f32.xlu0 %v618_v58  ;;  %v283_v38 = vpop.xlane.xlu1 %282 }
  0xbd   :  { %v280_v11 = vpop.xlane.xlu0 %279  ;;  %v432_v48 = vmul.f32 0.03125, %v283_v38 }
  0xbe   :  { %v431_v13 = vmul.f32 0.03125, %v280_v11 }
  0xbf   :  { %497 = vst.msk [vmem:[%s2049_s2 + $0xa8] sm:$0xff] %vm475_vm1, %v432_v48  ;;  %628 = vmax.xlane.f32.xlu1 %v627_v47 }
  0xc0   :  { %496 = vst.msk [vmem:[%s2049_s2 + $0xa0] sm:$0xff] %vm475_vm1, %v431_v13  ;;  %625 = vmax.xlane.f32.xlu0 %v624_v51  ;;  %v289_v10 = vpop.xlane.xlu1 %288 }
  0xc1   :  { %v286_v12 = vpop.xlane.xlu0 %285  ;;  %v434_v1 = vmul.f32 0.03125, %v289_v10 }
  0xc2   :  { %v433_v21 = vmul.f32 0.03125, %v286_v12 }
  0xc3   :  { %499 = vst.msk [vmem:[%s2049_s2 + $0xb8] sm:$0xff] %vm475_vm1, %v434_v1  ;;  %634 = vmax.xlane.f32.xlu1 %v633_v29 }
  0xc4   :  { %498 = vst.msk [vmem:[%s2049_s2 + $0xb0] sm:$0xff] %vm475_vm1, %v433_v21  ;;  %631 = vmax.xlane.f32.xlu0 %v630_v17  ;;  %v295_v49 = vpop.xlane.xlu1 %294 }
  0xc5   :  { %v292_v22 = vpop.xlane.xlu0 %291  ;;  %v436_v39 = vmul.f32 0.03125, %v295_v49 }
  0xc6   :  { %v435_v24 = vmul.f32 0.03125, %v292_v22 }
  0xc7   :  { %501 = vst.msk [vmem:[%s2049_s2 + $0xc8] sm:$0xff] %vm475_vm1, %v436_v39  ;;  %640 = vmax.xlane.f32.xlu1 %v639_v18 }
  0xc8   :  { %500 = vst.msk [vmem:[%s2049_s2 + $0xc0] sm:$0xff] %vm475_vm1, %v435_v24  ;;  %637 = vmax.xlane.f32.xlu0 %v636_v30  ;;  %v301_v25 = vpop.xlane.xlu1 %300 }
  0xc9   :  { %v298_v36 = vpop.xlane.xlu0 %297  ;;  %v438_v37 = vmul.f32 0.03125, %v301_v25 }
  0xca   :  { %v437_v63 = vmul.f32 0.03125, %v298_v36 }
  0xcb   :  { %503 = vst.msk [vmem:[%s2049_s2 + $0xd8] sm:$0xff] %vm475_vm1, %v438_v37  ;;  %646 = vmax.xlane.f32.xlu1 %v645_v3 }
  0xcc   :  { %502 = vst.msk [vmem:[%s2049_s2 + $0xd0] sm:$0xff] %vm475_vm1, %v437_v63  ;;  %643 = vmax.xlane.f32.xlu0 %v642_v19  ;;  %v307_v41 = vpop.xlane.xlu1 %306 }
  0xcd   :  { %v304_v35 = vpop.xlane.xlu0 %303  ;;  %v440_v0 = vmul.f32 0.03125, %v307_v41 }
  0xce   :  { %v439_v16 = vmul.f32 0.03125, %v304_v35 }
  0xcf   :  { %505 = vst.msk [vmem:[%s2049_s2 + $0xe8] sm:$0xff] %vm475_vm1, %v440_v0  ;;  %652 = vmax.xlane.f32.xlu1 %v651_v20 }
  0xd0   :  { %504 = vst.msk [vmem:[%s2049_s2 + $0xe0] sm:$0xff] %vm475_vm1, %v439_v16  ;;  %649 = vmax.xlane.f32.xlu0 %v648_v23  ;;  %v313_v43 = vpop.xlane.xlu1 %312 }
  0xd1   :  { %v310_v40 = vpop.xlane.xlu0 %309  ;;  %v442_v46 = vmul.f32 0.03125, %v313_v43 }
  0xd2   :  { %v441_v58 = vmul.f32 0.03125, %v310_v40 }
  0xd3   :  { %507 = vst.msk [vmem:[%s2049_s2 + $0xf8] sm:$0xff] %vm475_vm1, %v442_v46  ;;  %658 = vmax.xlane.f32.xlu1 %v657_v26 }
  0xd4   :  { %506 = vst.msk [vmem:[%s2049_s2 + $0xf0] sm:$0xff] %vm475_vm1, %v441_v58  ;;  %655 = vmax.xlane.f32.xlu0 %v654_v27  ;;  %v319_v53 = vpop.xlane.xlu1 %318 }
  0xd5   :  { %v316_v62 = vpop.xlane.xlu0 %315  ;;  %v444_v38 = vmul.f32 0.03125, %v319_v53 }
  0xd6   :  { %v443_v11 = vmul.f32 0.03125, %v316_v62 }
  0xd7   :  { %509 = vst.msk [vmem:[%s2049_s2 + $0x108] sm:$0xff] %vm475_vm1, %v444_v38  ;;  %664 = vmax.xlane.f32.xlu1 %v663_v28 }
  0xd8   :  { %508 = vst.msk [vmem:[%s2049_s2 + $0x100] sm:$0xff] %vm475_vm1, %v443_v11  ;;  %661 = vmax.xlane.f32.xlu0 %v660_v42  ;;  %v325_v47 = vpop.xlane.xlu1 %324 }
  0xd9   :  { %v322_v51 = vpop.xlane.xlu0 %321  ;;  %v446_v48 = vmul.f32 0.03125, %v325_v47 }
  0xda   :  { %v445_v13 = vmul.f32 0.03125, %v322_v51 }
  0xdb   :  { %511 = vst.msk [vmem:[%s2049_s2 + $0x118] sm:$0xff] %vm475_vm1, %v446_v48  ;;  %670 = vmax.xlane.f32.xlu1 %v669_v44 }
  0xdc   :  { %510 = vst.msk [vmem:[%s2049_s2 + $0x110] sm:$0xff] %vm475_vm1, %v445_v13  ;;  %667 = vmax.xlane.f32.xlu0 %v666_v59  ;;  %v331_v10 = vpop.xlane.xlu1 %330 }
  0xdd   :  { %v328_v12 = vpop.xlane.xlu0 %327  ;;  %v448_v29 = vmul.f32 0.03125, %v331_v10 }
  0xde   :  { %v447_v17 = vmul.f32 0.03125, %v328_v12 }
  0xdf   :  { %513 = vst.msk [vmem:[%s2049_s2 + $0x128] sm:$0xff] %vm475_vm1, %v448_v29  ;;  %676 = vmax.xlane.f32.xlu1 %v675_v60 }
  0xe0   :  { %512 = vst.msk [vmem:[%s2049_s2 + $0x120] sm:$0xff] %vm475_vm1, %v447_v17  ;;  %673 = vmax.xlane.f32.xlu0 %v672_v61  ;;  %v337_v1 = vpop.xlane.xlu1 %336 }
  0xe1   :  { %v334_v21 = vpop.xlane.xlu0 %333  ;;  %v450_v49 = vmul.f32 0.03125, %v337_v1 }
  0xe2   :  { %v449_v22 = vmul.f32 0.03125, %v334_v21 }
  0xe3   :  { %515 = vst.msk [vmem:[%s2049_s2 + $0x138] sm:$0xff] %vm475_vm1, %v450_v49  ;;  %682 = vmax.xlane.f32.xlu1 %v681_v2 }
  0xe4   :  { %514 = vst.msk [vmem:[%s2049_s2 + $0x130] sm:$0xff] %vm475_vm1, %v449_v22  ;;  %679 = vmax.xlane.f32.xlu0 %v678_v4  ;;  %v343_v18 = vpop.xlane.xlu1 %342 }
  0xe5   :  { %v340_v30 = vpop.xlane.xlu0 %339  ;;  %v452_v39 = vmul.f32 0.03125, %v343_v18 }
  0xe6   :  { %v451_v24 = vmul.f32 0.03125, %v340_v30 }
  0xe7   :  { %517 = vst.msk [vmem:[%s2049_s2 + $0x148] sm:$0xff] %vm475_vm1, %v452_v39  ;;  %688 = vmax.xlane.f32.xlu1 %v687_v5 }
  0xe8   :  { %516 = vst.msk [vmem:[%s2049_s2 + $0x140] sm:$0xff] %vm475_vm1, %v451_v24  ;;  %685 = vmax.xlane.f32.xlu0 %v684_v31  ;;  %v349_v25 = vpop.xlane.xlu1 %348 }
  0xe9   :  { %v346_v36 = vpop.xlane.xlu0 %345  ;;  %v454_v3 = vmul.f32 0.03125, %v349_v25 }
  0xea   :  { %v453_v19 = vmul.f32 0.03125, %v346_v36 }
  0xeb   :  { %519 = vst.msk [vmem:[%s2049_s2 + $0x158] sm:$0xff] %vm475_vm1, %v454_v3  ;;  %694 = vmax.xlane.f32.xlu1 %v693_v32 }
  0xec   :  { %518 = vst.msk [vmem:[%s2049_s2 + $0x150] sm:$0xff] %vm475_vm1, %v453_v19  ;;  %691 = vmax.xlane.f32.xlu0 %v690_v52  ;;  %v355_v37 = vpop.xlane.xlu1 %354 }
  0xed   :  { %v352_v63 = vpop.xlane.xlu0 %351  ;;  %v456_v41 = vmul.f32 0.03125, %v355_v37 }
  0xee   :  { %v455_v35 = vmul.f32 0.03125, %v352_v63 }
  0xef   :  { %521 = vst.msk [vmem:[%s2049_s2 + $0x168] sm:$0xff] %vm475_vm1, %v456_v41  ;;  %700 = vmax.xlane.f32.xlu1 %v699_v54 }
  0xf0   :  { %520 = vst.msk [vmem:[%s2049_s2 + $0x160] sm:$0xff] %vm475_vm1, %v455_v35  ;;  %697 = vmax.xlane.f32.xlu0 %v696_v55  ;;  %v361_v20 = vpop.xlane.xlu1 %360 }
  0xf1   :  { %v358_v23 = vpop.xlane.xlu0 %357  ;;  %v458_v0 = vmul.f32 0.03125, %v361_v20 }
  0xf2   :  { %v457_v16 = vmul.f32 0.03125, %v358_v23 }
  0xf3   :  { %523 = vst.msk [vmem:[%s2049_s2 + $0x178] sm:$0xff] %vm475_vm1, %v458_v0  ;;  %706 = vmax.xlane.f32.xlu1 %v705_v56 }
  0xf4   :  { %522 = vst.msk [vmem:[%s2049_s2 + $0x170] sm:$0xff] %vm475_vm1, %v457_v16  ;;  %703 = vmax.xlane.f32.xlu0 %v702_v57  ;;  %v367_v43 = vpop.xlane.xlu1 %366 }
  0xf5   :  { %v364_v40 = vpop.xlane.xlu0 %363  ;;  %v460_v26 = vmul.f32 0.03125, %v367_v43 }
  0xf6   :  { %v459_v27 = vmul.f32 0.03125, %v364_v40 }
  0xf7   :  { %525 = vst.msk [vmem:[%s2049_s2 + $0x188] sm:$0xff] %vm475_vm1, %v460_v26  ;;  %712 = vmax.xlane.f32.xlu1 %v711_v6 }
  0xf8   :  { %524 = vst.msk [vmem:[%s2049_s2 + $0x180] sm:$0xff] %vm475_vm1, %v459_v27  ;;  %709 = vmax.xlane.f32.xlu0 %v708_v45  ;;  %v373_v46 = vpop.xlane.xlu1 %372 }
  0xf9   :  { %v370_v58 = vpop.xlane.xlu0 %369  ;;  %v462_v53 = vmul.f32 0.03125, %v373_v46 }
  0xfa   :  { %v461_v62 = vmul.f32 0.03125, %v370_v58 }
  0xfb   :  { %527 = vst.msk [vmem:[%s2049_s2 + $0x198] sm:$0xff] %vm475_vm1, %v462_v53  ;;  %718 = vmax.xlane.f32.xlu1 %v717_v9 }
  0xfc   :  { %526 = vst.msk [vmem:[%s2049_s2 + $0x190] sm:$0xff] %vm475_vm1, %v461_v62  ;;  %715 = vmax.xlane.f32.xlu0 %v714_v7  ;;  %v379_v28 = vpop.xlane.xlu1 %378 }
  0xfd   :  { %v376_v42 = vpop.xlane.xlu0 %375  ;;  %v464_v38 = vmul.f32 0.03125, %v379_v28 }
  0xfe   :  { %v463_v11 = vmul.f32 0.03125, %v376_v42 }
  0xff   :  { %529 = vst.msk [vmem:[%s2049_s2 + $0x1a8] sm:$0xff] %vm475_vm1, %v464_v38  ;;  %724 = vmax.xlane.f32.xlu1 %v723_v50 }
 0x100   :  { %528 = vst.msk [vmem:[%s2049_s2 + $0x1a0] sm:$0xff] %vm475_vm1, %v463_v11  ;;  %721 = vmax.xlane.f32.xlu0 %v720_v8  ;;  %v385_v47 = vpop.xlane.xlu1 %384 }
 0x101   :  { %v382_v51 = vpop.xlane.xlu0 %381  ;;  %v466_v44 = vmul.f32 0.03125, %v385_v47 }
 0x102   :  { %v465_v59 = vmul.f32 0.03125, %v382_v51 }
 0x103   :  { %531 = vst.msk [vmem:[%s2049_s2 + $0x1b8] sm:$0xff] %vm475_vm1, %v466_v44  ;;  %730 = vmax.xlane.f32.xlu1 %v729_v33 }
 0x104   :  { %530 = vst.msk [vmem:[%s2049_s2 + $0x1b0] sm:$0xff] %vm475_vm1, %v465_v59  ;;  %727 = vmax.xlane.f32.xlu0 %v726_v34  ;;  %v391_v48 = vpop.xlane.xlu1 %390 }
 0x105   :  { %v388_v13 = vpop.xlane.xlu0 %387  ;;  %v468_v15 = vmul.f32 0.03125, %v391_v48 }
 0x106   :  { %v467_v10 = vmul.f32 0.03125, %v388_v13 }
 0x107   :  { %533 = vst.msk [vmem:[%s2049_s2 + $0x1c8] sm:$0xff] %vm475_vm1, %v468_v15 }
 0x108   :  { %532 = vst.msk [vmem:[%s2049_s2 + $0x1c0] sm:$0xff] %vm475_vm1, %v467_v10  ;;  %v397_v14 = vpop.xlane.xlu1 %396 }
 0x109   :  { %v394_v12 = vpop.xlane.xlu0 %393  ;;  %v470_v60 = vmul.f32 0.03125, %v397_v14 }
 0x10a   :  { %v469_v61 = vmul.f32 0.03125, %v394_v12 }
 0x10b   :  { %535 = vst.msk [vmem:[%s2049_s2 + $0x1d8] sm:$0xff] %vm475_vm1, %v470_v60 }
 0x10c   :  { %534 = vst.msk [vmem:[%s2049_s2 + $0x1d0] sm:$0xff] %vm475_vm1, %v469_v61  ;;  %v403_v29 = vpop.xlane.xlu1 %402 }
 0x10d   :  { %v400_v17 = vpop.xlane.xlu0 %399  ;;  %v472_v1 = vmul.f32 0.03125, %v403_v29 }
 0x10e   :  { %v471_v21 = vmul.f32 0.03125, %v400_v17 }
 0x10f   :  { %537 = vst.msk [vmem:[%s2049_s2 + $0x1e8] sm:$0xff] %vm475_vm1, %v472_v1 }
 0x110   :  { %536 = vst.msk [vmem:[%s2049_s2 + $0x1e0] sm:$0xff] %vm475_vm1, %v471_v21  ;;  %v409_v2 = vpop.xlane.xlu1 %408 }
 0x111   :  { %v406_v4 = vpop.xlane.xlu0 %405  ;;  %v474_v49 = vmul.f32 0.03125, %v409_v2 }
 0x112   :  { %v473_v22 = vmul.f32 0.03125, %v406_v4 }
 0x113   :  { %539 = vst.msk [vmem:[%s2049_s2 + $0x1f8] sm:$0xff] %vm475_vm1, %v474_v49 }
 0x114   :  { %538 = vst.msk [vmem:[%s2049_s2 + $0x1f0] sm:$0xff] %vm475_vm1, %v473_v22  ;;  %v545_v18 = vpop.xlane.xlu1 %544 }
 0x115   :  { %v542_v30 = vpop.xlane.xlu0 %541  ;;  %734 = vst.msk [vmem:[%s2049_s2 + $0x8] sm:$0xff] %vm732_vm2, %v545_v18 }
 0x116   :  { %733 = vst.msk [vmem:[%s2049_s2] sm:$0xff] %vm732_vm2, %v542_v30 }
 0x118   :  { %v551_v5 = vpop.xlane.xlu1 %550 }
 0x119   :  { %v548_v31 = vpop.xlane.xlu0 %547  ;;  %736 = vst.msk [vmem:[%s2049_s2 + $0x18] sm:$0xff] %vm732_vm2, %v551_v5 }
 0x11a   :  { %735 = vst.msk [vmem:[%s2049_s2 + $0x10] sm:$0xff] %vm732_vm2, %v548_v31 }
 0x11c   :  { %v557_v39 = vpop.xlane.xlu1 %556 }
 0x11d   :  { %v554_v24 = vpop.xlane.xlu0 %553  ;;  %738 = vst.msk [vmem:[%s2049_s2 + $0x28] sm:$0xff] %vm732_vm2, %v557_v39 }
 0x11e   :  { %737 = vst.msk [vmem:[%s2049_s2 + $0x20] sm:$0xff] %vm732_vm2, %v554_v24 }
 0x120   :  { %v563_v25 = vpop.xlane.xlu1 %562 }
 0x121   :  { %v560_v36 = vpop.xlane.xlu0 %559  ;;  %740 = vst.msk [vmem:[%s2049_s2 + $0x38] sm:$0xff] %vm732_vm2, %v563_v25 }
 0x122   :  { %739 = vst.msk [vmem:[%s2049_s2 + $0x30] sm:$0xff] %vm732_vm2, %v560_v36 }
 0x124   :  { %v569_v32 = vpop.xlane.xlu1 %568 }
 0x125   :  { %v566_v52 = vpop.xlane.xlu0 %565  ;;  %742 = vst.msk [vmem:[%s2049_s2 + $0x48] sm:$0xff] %vm732_vm2, %v569_v32 }
 0x126   :  { %741 = vst.msk [vmem:[%s2049_s2 + $0x40] sm:$0xff] %vm732_vm2, %v566_v52 }
 0x128   :  { %v575_v3 = vpop.xlane.xlu1 %574 }
 0x129   :  { %v572_v19 = vpop.xlane.xlu0 %571  ;;  %744 = vst.msk [vmem:[%s2049_s2 + $0x58] sm:$0xff] %vm732_vm2, %v575_v3 }
 0x12a   :  { %743 = vst.msk [vmem:[%s2049_s2 + $0x50] sm:$0xff] %vm732_vm2, %v572_v19 }
 0x12c   :  { %v581_v37 = vpop.xlane.xlu1 %580 }
 0x12d   :  { %v578_v63 = vpop.xlane.xlu0 %577  ;;  %746 = vst.msk [vmem:[%s2049_s2 + $0x68] sm:$0xff] %vm732_vm2, %v581_v37 }
 0x12e   :  { %745 = vst.msk [vmem:[%s2049_s2 + $0x60] sm:$0xff] %vm732_vm2, %v578_v63 }
 0x130   :  { %v587_v54 = vpop.xlane.xlu1 %586 }
 0x131   :  { %v584_v55 = vpop.xlane.xlu0 %583  ;;  %748 = vst.msk [vmem:[%s2049_s2 + $0x78] sm:$0xff] %vm732_vm2, %v587_v54 }
 0x132   :  { %747 = vst.msk [vmem:[%s2049_s2 + $0x70] sm:$0xff] %vm732_vm2, %v584_v55 }
 0x134   :  { %v593_v41 = vpop.xlane.xlu1 %592 }
 0x135   :  { %v590_v35 = vpop.xlane.xlu0 %589  ;;  %750 = vst.msk [vmem:[%s2049_s2 + $0x88] sm:$0xff] %vm732_vm2, %v593_v41 }
 0x136   :  { %749 = vst.msk [vmem:[%s2049_s2 + $0x80] sm:$0xff] %vm732_vm2, %v590_v35 }
 0x138   :  { %v599_v20 = vpop.xlane.xlu1 %598 }
 0x139   :  { %v596_v23 = vpop.xlane.xlu0 %595  ;;  %752 = vst.msk [vmem:[%s2049_s2 + $0x98] sm:$0xff] %vm732_vm2, %v599_v20 }
 0x13a   :  { %751 = vst.msk [vmem:[%s2049_s2 + $0x90] sm:$0xff] %vm732_vm2, %v596_v23 }
 0x13c   :  { %v605_v56 = vpop.xlane.xlu1 %604 }
 0x13d   :  { %v602_v57 = vpop.xlane.xlu0 %601  ;;  %754 = vst.msk [vmem:[%s2049_s2 + $0xa8] sm:$0xff] %vm732_vm2, %v605_v56 }
 0x13e   :  { %753 = vst.msk [vmem:[%s2049_s2 + $0xa0] sm:$0xff] %vm732_vm2, %v602_v57 }
 0x140   :  { %v611_v0 = vpop.xlane.xlu1 %610 }
 0x141   :  { %v608_v16 = vpop.xlane.xlu0 %607  ;;  %756 = vst.msk [vmem:[%s2049_s2 + $0xb8] sm:$0xff] %vm732_vm2, %v611_v0 }
 0x142   :  { %755 = vst.msk [vmem:[%s2049_s2 + $0xb0] sm:$0xff] %vm732_vm2, %v608_v16 }
 0x144   :  { %v617_v43 = vpop.xlane.xlu1 %616 }
 0x145   :  { %v614_v40 = vpop.xlane.xlu0 %613  ;;  %758 = vst.msk [vmem:[%s2049_s2 + $0xc8] sm:$0xff] %vm732_vm2, %v617_v43 }
 0x146   :  { %757 = vst.msk [vmem:[%s2049_s2 + $0xc0] sm:$0xff] %vm732_vm2, %v614_v40 }
 0x148   :  { %v623_v6 = vpop.xlane.xlu1 %622 }
 0x149   :  { %v620_v45 = vpop.xlane.xlu0 %619  ;;  %760 = vst.msk [vmem:[%s2049_s2 + $0xd8] sm:$0xff] %vm732_vm2, %v623_v6 }
 0x14a   :  { %759 = vst.msk [vmem:[%s2049_s2 + $0xd0] sm:$0xff] %vm732_vm2, %v620_v45 }
 0x14c   :  { %v629_v26 = vpop.xlane.xlu1 %628 }
 0x14d   :  { %v626_v27 = vpop.xlane.xlu0 %625  ;;  %762 = vst.msk [vmem:[%s2049_s2 + $0xe8] sm:$0xff] %vm732_vm2, %v629_v26 }
 0x14e   :  { %761 = vst.msk [vmem:[%s2049_s2 + $0xe0] sm:$0xff] %vm732_vm2, %v626_v27 }
 0x150   :  { %v635_v46 = vpop.xlane.xlu1 %634 }
 0x151   :  { %v632_v58 = vpop.xlane.xlu0 %631  ;;  %764 = vst.msk [vmem:[%s2049_s2 + $0xf8] sm:$0xff] %vm732_vm2, %v635_v46 }
 0x152   :  { %763 = vst.msk [vmem:[%s2049_s2 + $0xf0] sm:$0xff] %vm732_vm2, %v632_v58 }
 0x154   :  { %v641_v9 = vpop.xlane.xlu1 %640 }
 0x155   :  { %v638_v7 = vpop.xlane.xlu0 %637  ;;  %766 = vst.msk [vmem:[%s2049_s2 + $0x108] sm:$0xff] %vm732_vm2, %v641_v9 }
 0x156   :  { %765 = vst.msk [vmem:[%s2049_s2 + $0x100] sm:$0xff] %vm732_vm2, %v638_v7 }
 0x158   :  { %v647_v53 = vpop.xlane.xlu1 %646 }
 0x159   :  { %v644_v62 = vpop.xlane.xlu0 %643  ;;  %768 = vst.msk [vmem:[%s2049_s2 + $0x118] sm:$0xff] %vm732_vm2, %v647_v53 }
 0x15a   :  { %767 = vst.msk [vmem:[%s2049_s2 + $0x110] sm:$0xff] %vm732_vm2, %v644_v62 }
 0x15c   :  { %v653_v28 = vpop.xlane.xlu1 %652 }
 0x15d   :  { %v650_v42 = vpop.xlane.xlu0 %649  ;;  %770 = vst.msk [vmem:[%s2049_s2 + $0x128] sm:$0xff] %vm732_vm2, %v653_v28 }
 0x15e   :  { %769 = vst.msk [vmem:[%s2049_s2 + $0x120] sm:$0xff] %vm732_vm2, %v650_v42 }
 0x160   :  { %v659_v50 = vpop.xlane.xlu1 %658 }
 0x161   :  { %v656_v8 = vpop.xlane.xlu0 %655  ;;  %772 = vst.msk [vmem:[%s2049_s2 + $0x138] sm:$0xff] %vm732_vm2, %v659_v50 }
 0x162   :  { %771 = vst.msk [vmem:[%s2049_s2 + $0x130] sm:$0xff] %vm732_vm2, %v656_v8 }
 0x164   :  { %v665_v38 = vpop.xlane.xlu1 %664 }
 0x165   :  { %v662_v11 = vpop.xlane.xlu0 %661  ;;  %774 = vst.msk [vmem:[%s2049_s2 + $0x148] sm:$0xff] %vm732_vm2, %v665_v38 }
 0x166   :  { %773 = vst.msk [vmem:[%s2049_s2 + $0x140] sm:$0xff] %vm732_vm2, %v662_v11 }
 0x168   :  { %v671_v47 = vpop.xlane.xlu1 %670 }
 0x169   :  { %v668_v51 = vpop.xlane.xlu0 %667  ;;  %776 = vst.msk [vmem:[%s2049_s2 + $0x158] sm:$0xff] %vm732_vm2, %v671_v47 }
 0x16a   :  { %775 = vst.msk [vmem:[%s2049_s2 + $0x150] sm:$0xff] %vm732_vm2, %v668_v51 }
 0x16c   :  { %v677_v33 = vpop.xlane.xlu1 %676 }
 0x16d   :  { %v674_v34 = vpop.xlane.xlu0 %673  ;;  %778 = vst.msk [vmem:[%s2049_s2 + $0x168] sm:$0xff] %vm732_vm2, %v677_v33 }
 0x16e   :  { %777 = vst.msk [vmem:[%s2049_s2 + $0x160] sm:$0xff] %vm732_vm2, %v674_v34 }
 0x170   :  { %v683_v44 = vpop.xlane.xlu1 %682 }
 0x171   :  { %v680_v59 = vpop.xlane.xlu0 %679  ;;  %780 = vst.msk [vmem:[%s2049_s2 + $0x178] sm:$0xff] %vm732_vm2, %v683_v44 }
 0x172   :  { %779 = vst.msk [vmem:[%s2049_s2 + $0x170] sm:$0xff] %vm732_vm2, %v680_v59 }
 0x174   :  { %v689_v48 = vpop.xlane.xlu1 %688 }
 0x175   :  { %v686_v13 = vpop.xlane.xlu0 %685  ;;  %782 = vst.msk [vmem:[%s2049_s2 + $0x188] sm:$0xff] %vm732_vm2, %v689_v48 }
 0x176   :  { %781 = vst.msk [vmem:[%s2049_s2 + $0x180] sm:$0xff] %vm732_vm2, %v686_v13 }
 0x178   :  { %v695_v15 = vpop.xlane.xlu1 %694 }
 0x179   :  { %v692_v10 = vpop.xlane.xlu0 %691  ;;  %784 = vst.msk [vmem:[%s2049_s2 + $0x198] sm:$0xff] %vm732_vm2, %v695_v15 }
 0x17a   :  { %783 = vst.msk [vmem:[%s2049_s2 + $0x190] sm:$0xff] %vm732_vm2, %v692_v10 }
 0x17c   :  { %v701_v14 = vpop.xlane.xlu1 %700 }
 0x17d   :  { %v698_v12 = vpop.xlane.xlu0 %697  ;;  %786 = vst.msk [vmem:[%s2049_s2 + $0x1a8] sm:$0xff] %vm732_vm2, %v701_v14 }
 0x17e   :  { %785 = vst.msk [vmem:[%s2049_s2 + $0x1a0] sm:$0xff] %vm732_vm2, %v698_v12 }
 0x180   :  { %v707_v60 = vpop.xlane.xlu1 %706 }
 0x181   :  { %v704_v61 = vpop.xlane.xlu0 %703  ;;  %788 = vst.msk [vmem:[%s2049_s2 + $0x1b8] sm:$0xff] %vm732_vm2, %v707_v60 }
 0x182   :  { %787 = vst.msk [vmem:[%s2049_s2 + $0x1b0] sm:$0xff] %vm732_vm2, %v704_v61 }
 0x184   :  { %v713_v29 = vpop.xlane.xlu1 %712 }
 0x185   :  { %v710_v17 = vpop.xlane.xlu0 %709  ;;  %790 = vst.msk [vmem:[%s2049_s2 + $0x1c8] sm:$0xff] %vm732_vm2, %v713_v29 }
 0x186   :  { %789 = vst.msk [vmem:[%s2049_s2 + $0x1c0] sm:$0xff] %vm732_vm2, %v710_v17 }
 0x188   :  { %v719_v1 = vpop.xlane.xlu1 %718 }
 0x189   :  { %v716_v21 = vpop.xlane.xlu0 %715  ;;  %792 = vst.msk [vmem:[%s2049_s2 + $0x1d8] sm:$0xff] %vm732_vm2, %v719_v1 }
 0x18a   :  { %791 = vst.msk [vmem:[%s2049_s2 + $0x1d0] sm:$0xff] %vm732_vm2, %v716_v21 }
 0x18c   :  { %v725_v2 = vpop.xlane.xlu1 %724 }
 0x18d   :  { %v722_v4 = vpop.xlane.xlu0 %721  ;;  %794 = vst.msk [vmem:[%s2049_s2 + $0x1e8] sm:$0xff] %vm732_vm2, %v725_v2 }
 0x18e   :  { %793 = vst.msk [vmem:[%s2049_s2 + $0x1e0] sm:$0xff] %vm732_vm2, %v722_v4 }
 0x190   :  { %v731_v49 = vpop.xlane.xlu1 %730 }
 0x191   :  { %v728_v22 = vpop.xlane.xlu0 %727  ;;  %796 = vst.msk [vmem:[%s2049_s2 + $0x1f8] sm:$0xff] %vm732_vm2, %v731_v49 }
 0x192   :  { %795 = vst.msk [vmem:[%s2049_s2 + $0x1f0] sm:$0xff] %vm732_vm2, %v728_v22 }

// kernel: maniqa_forward.24
= control target key start
LH: loop header
LB: loop body
LE: loop exit
PB: predicated region body
PF: predicated region fallthrough
CT: control target
= control target key end

     0   :  { %v357_v0 = vmov 0   ;;  %vm204_vm0 = vcmask 1041408   ;;  %vm319_vm1 = vcmask 1041409   ;;  %vm321_vm2 = vcmask 1043459   ;;  %s576_s1 = inlined_call_operand.vmem [shape: f32[1,98,1], index: 1, kind: input, shape index: {}]   ;;  %s577_s0 = inlined_call_operand.vmem [shape: f32[2,98,256], index: 0, kind: input, shape index: {}]   ;;  %s578_s2 = inlined_call_operand.vmem [shape: f32[2,256], index: 2, kind: output, shape index: {}]  }
   0x1   :  { %340 = vset.pattern.permute.xlu1 %v357_v0  ;;  %339 = vset.pattern.permute.xlu0 %v357_v0  ;;  %v65_v1 = vld [vmem:[%s576_s1 + $0x10] sm:$0xff]  ;;  %v63_v2 = vld [vmem:[%s576_s1] sm:$0xff]  ;;  %v66_v3 = vld [vmem:[%s576_s1 + $0x18] sm:$0xff]  ;;  %vm323_vm3 = vcmask 1045509   ;;  %vm325_vm4 = vcmask 1047559  }
   0x2   :  { %88 = vperm.xlu1 %340, %v65_v1   ;;  %78 = vperm.xlu0 %339, %v63_v2   ;;  %v64_v4 = vld [vmem:[%s576_s1 + $0x8] sm:$0xff]  ;;  %v67_v6 = vld [vmem:[%s576_s1 + $0x20] sm:$0xff]  ;;  %v70_v7 = vld [vmem:[%s576_s1 + $0x38] sm:$0xff] }
   0x3   :  { %v68_v5 = vld [vmem:[%s576_s1 + $0x28] sm:$0xff]  ;;  %v69_v8 = vld [vmem:[%s576_s1 + $0x30] sm:$0xff]  ;;  %v71_v10 = vld [vmem:[%s576_s1 + $0x40] sm:$0xff] }
   0x4   :  { %v72_v9 = vld [vmem:[%s576_s1 + $0x48] sm:$0xff]  ;;  %v74_v11 = vld [vmem:[%s576_s1 + $0x58] sm:$0xff]  ;;  %v73_v12 = vld [vmem:[%s576_s1 + $0x50] sm:$0xff] }
   0x5   :  { %v75_v13 = vld [vmem:[%s576_s1 + $0x60] sm:$0x3]  ;;  %v16_v16 = vld [vmem:[%s577_s0 + $0x28] sm:$0xff]  ;;  %v41_v17 = vld [vmem:[%s577_s0 + $0xf0] sm:$0xff] }
   0x6   :  { %93 = vperm.xlu1 %340, %v66_v3   ;;  %83 = vperm.xlu0 %339, %v64_v4   ;;  %v15_v14 = vld [vmem:[%s577_s0 + $0x20] sm:$0xff]  ;;  %v42_v18 = vld [vmem:[%s577_s0 + $0xf8] sm:$0xff]  ;;  %v12_v21 = vld [vmem:[%s577_s0 + $0x8] sm:$0xff] }
   0x7   :  { %v11_v20 = vld [vmem:[%s577_s0] sm:$0xff]  ;;  %v37_v22 = vld [vmem:[%s577_s0 + $0xd0] sm:$0xff]  ;;  %v38_v23 = vld [vmem:[%s577_s0 + $0xd8] sm:$0xff] }
   0x8   :  { %v17_v24 = vld [vmem:[%s577_s0 + $0x30] sm:$0xff]  ;;  %v14_v26 = vld [vmem:[%s577_s0 + $0x18] sm:$0xff]  ;;  %v39_v27 = vld [vmem:[%s577_s0 + $0xe0] sm:$0xff] }
   0x9   :  { %v13_v25 = vld [vmem:[%s577_s0 + $0x10] sm:$0xff]  ;;  %v40_v28 = vld [vmem:[%s577_s0 + $0xe8] sm:$0xff]  ;;  %v18_v34 = vld [vmem:[%s577_s0 + $0x38] sm:$0xff] }
   0xa   :  { %103 = vperm.xlu1 %340, %v68_v5   ;;  %98 = vperm.xlu0 %339, %v67_v6   ;;  %v43_v35 = vld [vmem:[%s577_s0 + $0x100] sm:$0xff]  ;;  %v44_v36 = vld [vmem:[%s577_s0 + $0x108] sm:$0xff]  ;;  %v21_v42 = vld [vmem:[%s577_s0 + $0x50] sm:$0xff] }
   0xb   :  { %v22_v47 = vld [vmem:[%s577_s0 + $0x58] sm:$0xff]  ;;  %v47_v48 = vld [vmem:[%s577_s0 + $0x120] sm:$0xff]  ;;  %v48_v49 = vld [vmem:[%s577_s0 + $0x128] sm:$0xff] }
   0xc   :  { %v19_v54 = vld [vmem:[%s577_s0 + $0x40] sm:$0xff]  ;;  %v20_v61 = vld [vmem:[%s577_s0 + $0x48] sm:$0xff]  ;;  %v45_v62 = vld [vmem:[%s577_s0 + $0x110] sm:$0xff] }
   0xd   :  { %v46_v63 = vld [vmem:[%s577_s0 + $0x118] sm:$0xff]  ;;  %v25_v4 = vld [vmem:[%s577_s0 + $0x70] sm:$0xff] }
   0xe   :  { %113 = vperm.xlu1 %340, %v70_v7   ;;  %108 = vperm.xlu0 %339, %v69_v8  }
  0x12   :  { %123 = vperm.xlu1 %340, %v72_v9   ;;  %118 = vperm.xlu0 %339, %v71_v10   ;;  %v26_v9 = vld [vmem:[%s577_s0 + $0x78] sm:$0xff]  ;;  %v51_v10 = vld [vmem:[%s577_s0 + $0x140] sm:$0xff] }
  0x16   :  { %133 = vperm.xlu1 %340, %v74_v11   ;;  %128 = vperm.xlu0 %339, %v73_v12   ;;  %v52_v11 = vld [vmem:[%s577_s0 + $0x148] sm:$0xff] }
  0x1a   :  { %138 = vperm.xlu0 %339, %v75_v13  }
  0x81   :  { %v89_v15 = vpop.permute.xlu1 %88  ;;  %v79_v19 = vpop.permute.xlu0 %78 }
  0x82   :  { %v145_v29 = vmul.f32 %v89_v15, %v15_v14  ;;  %v146_v30 = vmul.f32 %v89_v15, %v16_v16  ;;  %v171_v31 = vmul.f32 %v89_v15, %v41_v17  ;;  %v172_v32 = vmul.f32 %v89_v15, %v42_v18  ;;  %v23_v16 = vld [vmem:[%s577_s0 + $0x60] sm:$0xff] }
  0x83   :  { %v141_v38 = vmul.f32 %v79_v19, %v11_v20  ;;  %v142_v39 = vmul.f32 %v79_v19, %v12_v21  ;;  %v167_v40 = vmul.f32 %v79_v19, %v37_v22  ;;  %v168_v41 = vmul.f32 %v79_v19, %v38_v23  ;;  %v24_v23 = vld [vmem:[%s577_s0 + $0x68] sm:$0xff] }
  0x85   :  { %v94_v33 = vpop.permute.xlu1 %93  ;;  %v84_v37 = vpop.permute.xlu0 %83 }
  0x86   :  { %v143_v43 = vmul.f32 %v84_v37, %v13_v25  ;;  %v144_v44 = vmul.f32 %v84_v37, %v14_v26  ;;  %v169_v45 = vmul.f32 %v84_v37, %v39_v27  ;;  %v170_v46 = vmul.f32 %v84_v37, %v40_v28  ;;  %v50_v25 = vld [vmem:[%s577_s0 + $0x138] sm:$0xff]  ;;  %v56_v37 = vld [vmem:[%s577_s0 + $0x168] sm:$0xff] }
  0x87   :  { %v147_v50 = vmul.f32 %v94_v33, %v17_v24  ;;  %v148_v51 = vmul.f32 %v94_v33, %v18_v34  ;;  %v173_v52 = vmul.f32 %v94_v33, %v43_v35  ;;  %v174_v53 = vmul.f32 %v94_v33, %v44_v36  ;;  %v49_v24 = vld [vmem:[%s577_s0 + $0x130] sm:$0xff]  ;;  %v30_v35 = vld [vmem:[%s577_s0 + $0x98] sm:$0xff]  ;;  %v55_v36 = vld [vmem:[%s577_s0 + $0x160] sm:$0xff] }
  0x88   :  { %v193_v55 = vadd.f32 %v143_v43, %v141_v38  ;;  %v213_v56 = vadd.f32 %v144_v44, %v142_v39  ;;  %v232_v57 = vadd.f32 %v169_v45, %v167_v40  ;;  %v251_v58 = vadd.f32 %v170_v46, %v168_v41 }
  0x89   :  { %v104_v59 = vpop.permute.xlu1 %103  ;;  %v99_v60 = vpop.permute.xlu0 %98 }
  0x8a   :  { %v151_v0 = vmul.f32 %v104_v59, %v21_v42  ;;  %v152_v1 = vmul.f32 %v104_v59, %v22_v47  ;;  %v177_v2 = vmul.f32 %v104_v59, %v47_v48  ;;  %v178_v3 = vmul.f32 %v104_v59, %v48_v49  ;;  %v27_v42 = vld [vmem:[%s577_s0 + $0x80] sm:$0xff]  ;;  %v28_v49 = vld [vmem:[%s577_s0 + $0x88] sm:$0xff] }
  0x8b   :  { %v194_v5 = vadd.f32 %v193_v55, %v145_v29  ;;  %v214_v6 = vadd.f32 %v213_v56, %v146_v30  ;;  %v233_v7 = vadd.f32 %v232_v57, %v171_v31  ;;  %v252_v8 = vadd.f32 %v251_v58, %v172_v32  ;;  %v29_v30 = vld [vmem:[%s577_s0 + $0x90] sm:$0xff] }
  0x8c   :  { %v149_v12 = vmul.f32 %v99_v60, %v19_v54  ;;  %v150_v13 = vmul.f32 %v99_v60, %v20_v61  ;;  %v175_v14 = vmul.f32 %v99_v60, %v45_v62  ;;  %v176_v15 = vmul.f32 %v99_v60, %v46_v63  ;;  %v33_v56 = vld [vmem:[%s577_s0 + $0xb0] sm:$0xff]  ;;  %v34_v61 = vld [vmem:[%s577_s0 + $0xb8] sm:$0xff]  ;;  %v59_v62 = vld [vmem:[%s577_s0 + $0x180] sm:$0xff] }
  0x8d   :  { %v195_v17 = vadd.f32 %v194_v5, %v147_v50  ;;  %v215_v18 = vadd.f32 %v214_v6, %v148_v51  ;;  %v234_v19 = vadd.f32 %v233_v7, %v173_v52  ;;  %v253_v20 = vadd.f32 %v252_v8, %v174_v53  ;;  %v114_v21 = vpop.permute.xlu1 %113  ;;  %v109_v22 = vpop.permute.xlu0 %108  ;;  %v53_v50 = vld [vmem:[%s577_s0 + $0x150] sm:$0xff]  ;;  %v54_v51 = vld [vmem:[%s577_s0 + $0x158] sm:$0xff]  ;;  %v60_v63 = vld [vmem:[%s577_s0 + $0x188] sm:$0xff] }
  0x8e   :  { %v155_v26 = vmul.f32 %v114_v21, %v25_v4  ;;  %v156_v27 = vmul.f32 %v114_v21, %v26_v9  ;;  %v181_v28 = vmul.f32 %v114_v21, %v51_v10  ;;  %v182_v29 = vmul.f32 %v114_v21, %v52_v11  ;;  %v31_v4 = vld [vmem:[%s577_s0 + $0xa0] sm:$0xff]  ;;  %v32_v11 = vld [vmem:[%s577_s0 + $0xa8] sm:$0xff] }
  0x8f   :  { %v196_v31 = vadd.f32 %v195_v17, %v149_v12  ;;  %v216_v32 = vadd.f32 %v215_v18, %v150_v13  ;;  %v235_v33 = vadd.f32 %v234_v19, %v175_v14  ;;  %v254_v34 = vadd.f32 %v253_v20, %v176_v15  ;;  %v57_v12 = vld [vmem:[%s577_s0 + $0x170] sm:$0xff]  ;;  %v58_v13 = vld [vmem:[%s577_s0 + $0x178] sm:$0xff]  ;;  %v35_v18 = vld [vmem:[%s577_s0 + $0xc0] sm:$0x3] }
  0x90   :  { %v153_v38 = vmul.f32 %v109_v22, %v23_v16  ;;  %v154_v39 = vmul.f32 %v109_v22, %v24_v23  ;;  %v179_v40 = vmul.f32 %v109_v22, %v49_v24  ;;  %v180_v41 = vmul.f32 %v109_v22, %v50_v25  ;;  %v36_v23 = vld [vmem:[%s577_s0 + $0xc8] sm:$0x3]  ;;  %v61_v24 = vld [vmem:[%s577_s0 + $0x190] sm:$0x3]  ;;  %v62_v25 = vld [vmem:[%s577_s0 + $0x198] sm:$0x3] }
  0x91   :  { %v197_v43 = vadd.f32 %v196_v31, %v151_v0  ;;  %v217_v44 = vadd.f32 %v216_v32, %v152_v1  ;;  %v236_v45 = vadd.f32 %v235_v33, %v177_v2  ;;  %v255_v46 = vadd.f32 %v254_v34, %v178_v3  ;;  %v124_v47 = vpop.permute.xlu1 %123  ;;  %v119_v48 = vpop.permute.xlu0 %118 }
  0x92   :  { %v159_v52 = vmul.f32 %v124_v47, %v29_v30  ;;  %v160_v53 = vmul.f32 %v124_v47, %v30_v35  ;;  %v185_v54 = vmul.f32 %v124_v47, %v55_v36  ;;  %v186_v55 = vmul.f32 %v124_v47, %v56_v37 }
  0x93   :  { %v198_v57 = vadd.f32 %v197_v43, %v153_v38  ;;  %v218_v58 = vadd.f32 %v217_v44, %v154_v39  ;;  %v237_v59 = vadd.f32 %v236_v45, %v179_v40  ;;  %v256_v60 = vadd.f32 %v255_v46, %v180_v41 }
  0x94   :  { %v157_v0 = vmul.f32 %v119_v48, %v27_v42  ;;  %v158_v1 = vmul.f32 %v119_v48, %v28_v49  ;;  %v183_v2 = vmul.f32 %v119_v48, %v53_v50  ;;  %v184_v3 = vmul.f32 %v119_v48, %v54_v51 }
  0x95   :  { %v199_v5 = vadd.f32 %v198_v57, %v155_v26  ;;  %v219_v6 = vadd.f32 %v218_v58, %v156_v27  ;;  %v238_v7 = vadd.f32 %v237_v59, %v181_v28  ;;  %v257_v8 = vadd.f32 %v256_v60, %v182_v29  ;;  %v134_v9 = vpop.permute.xlu1 %133  ;;  %v129_v10 = vpop.permute.xlu0 %128 }
  0x96   :  { %v163_v14 = vmul.f32 %v134_v9, %v33_v56  ;;  %v164_v15 = vmul.f32 %v134_v9, %v34_v61  ;;  %v189_v16 = vmul.f32 %v134_v9, %v59_v62  ;;  %v190_v17 = vmul.f32 %v134_v9, %v60_v63 }
  0x97   :  { %v200_v19 = vadd.f32 %v199_v5, %v157_v0  ;;  %v220_v20 = vadd.f32 %v219_v6, %v158_v1  ;;  %v239_v21 = vadd.f32 %v238_v7, %v183_v2  ;;  %v258_v22 = vadd.f32 %v257_v8, %v184_v3 }
  0x98   :  { %v161_v26 = vmul.f32 %v129_v10, %v31_v4  ;;  %v162_v27 = vmul.f32 %v129_v10, %v32_v11  ;;  %v187_v28 = vmul.f32 %v129_v10, %v57_v12  ;;  %v188_v29 = vmul.f32 %v129_v10, %v58_v13 }
  0x99   :  { %v201_v30 = vadd.f32 %v200_v19, %v159_v52  ;;  %v221_v31 = vadd.f32 %v220_v20, %v160_v53  ;;  %v240_v32 = vadd.f32 %v239_v21, %v185_v54  ;;  %v259_v33 = vadd.f32 %v258_v22, %v186_v55  ;;  %v139_v34 = vpop.permute.xlu0 %138 }
  0x9a   :  { %v165_v35 = vmul.f32 %v139_v34, %v35_v18  ;;  %v166_v36 = vmul.f32 %v139_v34, %v36_v23  ;;  %v191_v37 = vmul.f32 %v139_v34, %v61_v24  ;;  %v192_v38 = vmul.f32 %v139_v34, %v62_v25 }
  0x9b   :  { %v202_v39 = vadd.f32 %v201_v30, %v161_v26  ;;  %v222_v40 = vadd.f32 %v221_v31, %v162_v27  ;;  %v241_v41 = vadd.f32 %v240_v32, %v187_v28  ;;  %v260_v42 = vadd.f32 %v259_v33, %v188_v29 }
  0x9c   :  { %v205_v43 = vsel %vm204_vm0, %v165_v35, 0.0  ;;  %v224_v44 = vsel %vm204_vm0, %v166_v36, 0.0  ;;  %v243_v45 = vsel %vm204_vm0, %v191_v37, 0.0  ;;  %v262_v46 = vsel %vm204_vm0, %v192_v38, 0.0 }
  0x9d   :  { %v203_v47 = vadd.f32 %v202_v39, %v163_v14  ;;  %v223_v48 = vadd.f32 %v222_v40, %v164_v15  ;;  %v242_v49 = vadd.f32 %v241_v41, %v189_v16  ;;  %v261_v50 = vadd.f32 %v260_v42, %v190_v17 }
  0x9e   :  { %v358_v27 = vmov 1983009808   ;;  %v302_v29 = vlaneseq }
  0x9f   :  { %v206_v51 = vadd.f32 %v205_v43, %v203_v47  ;;  %v225_v52 = vadd.f32 %v224_v44, %v223_v48  ;;  %v244_v53 = vadd.f32 %v243_v45, %v242_v49  ;;  %v263_v54 = vadd.f32 %v262_v46, %v261_v50 }
  0xa0   :  { %v300_v28 = vunpack.c.l.s4 %v358_v27  ;;  %v303_v31 = vshrl.u32 %v302_v29, 7 }
  0xa1   :  { %v207_v55 = vrot.slane %v206_v51, 4  ;;  %v226_v56 = vrot.slane %v225_v52, 4  ;;  %v245_v57 = vrot.slane %v244_v53, 4  ;;  %v264_v58 = vrot.slane %v263_v54, 4 }
  0xa2   :  { %v301_v30 = vunpack.c.0.s8 %v300_v28 }
  0xa3   :  { %v208_v59 = vadd.f32 %v207_v55, %v206_v51  ;;  %v227_v60 = vadd.f32 %v226_v56, %v225_v52  ;;  %v246_v61 = vadd.f32 %v245_v57, %v244_v53  ;;  %v265_v62 = vadd.f32 %v264_v58, %v263_v54 }
  0xa4   :  { %v304_v35 = vsub.s32 %v301_v30, %v303_v31 }
  0xa5   :  { %v209_v63 = vrot.slane %v208_v59, 2  ;;  %v228_v0 = vrot.slane %v227_v60, 2  ;;  %v247_v1 = vrot.slane %v246_v61, 2  ;;  %v266_v2 = vrot.slane %v265_v62, 2 }
  0xa7   :  { %v210_v3 = vadd.f32 %v209_v63, %v208_v59  ;;  %v229_v4 = vadd.f32 %v228_v0, %v227_v60  ;;  %v248_v5 = vadd.f32 %v247_v1, %v246_v61  ;;  %v267_v6 = vadd.f32 %v266_v2, %v265_v62 }
  0xa9   :  { %v211_v7 = vrot.slane %v210_v3, 1  ;;  %v230_v8 = vrot.slane %v229_v4, 1  ;;  %v249_v9 = vrot.slane %v248_v5, 1  ;;  %v268_v10 = vrot.slane %v267_v6, 1 }
  0xab   :  { %v212_v11 = vadd.f32 %v211_v7, %v210_v3  ;;  %v231_v12 = vadd.f32 %v230_v8, %v229_v4  ;;  %v250_v13 = vadd.f32 %v249_v9, %v248_v5  ;;  %v269_v14 = vadd.f32 %v268_v10, %v267_v6 }
  0xad   :  { %v333_v15 = vmul.f32 -1.442695, %v212_v11  ;;  %v334_v16 = vmul.f32 -1.442695, %v231_v12  ;;  %v335_v17 = vmul.f32 -1.442695, %v250_v13 }
  0xae   :  { %v336_v18 = vmul.f32 -1.442695, %v269_v14 }
  0xaf   :  { %341 = vpow2.f32 %v333_v15 }
  0xb0   :  { %343 = vpow2.f32 %v334_v16 }
  0xb1   :  { %345 = vpow2.f32 %v335_v17 }
  0xb2   :  { %347 = vpow2.f32 %v336_v18 }
  0xb9   :  { %v342_v19 = vpop.eup %341 }
  0xba   :  { %v344_v20 = vpop.eup %343  ;;  %v282_v21 = vadd.f32 1.0, %v342_v19 }
  0xbb   :  { %v346_v22 = vpop.eup %345  ;;  %v283_v23 = vadd.f32 1.0, %v344_v20 }
  0xbc   :  { %v348_v24 = vpop.eup %347  ;;  %v284_v25 = vadd.f32 1.0, %v346_v22  ;;  %349 = vrcp.f32 %v282_v21 }
  0xbd   :  { %v285_v26 = vadd.f32 1.0, %v348_v24  ;;  %351 = vrcp.f32 %v283_v23 }
  0xbe   :  { %353 = vrcp.f32 %v284_v25 }
  0xbf   :  { %355 = vrcp.f32 %v285_v26 }
  0xc6   :  { %v350_v32 = vpop.eup %349 }
  0xc7   :  { %v352_v33 = vpop.eup %351 }
  0xc8   :  { %v354_v34 = vpop.eup %353  ;;  %v298_v37 = vcombine.low %v350_v32, %v352_v33 }
  0xc9   :  { %v356_v36 = vpop.eup %355 }
  0xca   :  { %v306_v38 = vcombine.low %v354_v34, %v356_v36  ;;  %v305_v40 = vrot.slane %v298_v37, %v304_v35 }
  0xcc   :  { %v313_v39 = vrot.slane %v306_v38, %v304_v35 }
  0xce   :  { %v318_v41 = vrot.slane %v313_v39, 7 }
  0xd0   :  { %v320_v42 = vsel %vm319_vm1, %v318_v41, %v305_v40 }
  0xd1   :  { %v322_v43 = vsel %vm321_vm2, %v318_v41, %v320_v42 }
  0xd2   :  { %v324_v44 = vsel %vm323_vm3, %v318_v41, %v322_v43 }
  0xd3   :  { %v326_v45 = vsel %vm325_vm4, %v318_v41, %v324_v44 }
  0xd4   :  { %328 = vst [vmem:[%s578_s2] sm:$0xf] %v326_v45 }

// kernel: maniqa_forward.25
= control target key start
LH: loop header
LB: loop body
LE: loop exit
PB: predicated region body
PF: predicated region fallthrough
CT: control target
= control target key end

     0   :  { %s1439_s24 = smov 0   ;;  %s1441_s25 = smov 0   ;;  %s1772_s0 = inlined_call_operand.vmem [shape: bf16[2,256,32], index: 0, kind: input, shape index: {}]   ;;  %s1773_s1 = inlined_call_operand.vmem [shape: f32[2,1,32], index: 1, kind: input, shape index: {}]   ;;  %s1774_s2 = inlined_call_operand.vmem [shape: f32[2,256,1], index: 2, kind: input, shape index: {}]   ;;  %s1775_s3 = inlined_call_operand.vmem [shape: f32[1,32], index: 3, kind: input, shape index: {}]   ;;  %s1776_s4 = inlined_call_operand.vmem [shape: f32[1,32], index: 4, kind: input, shape index: {}]   ;;  %s1777_s5 = inlined_call_operand.vmem [shape: bf16[32,64], index: 5, kind: input, shape index: {}]   ;;  %s1778_s6 = inlined_call_operand.vmem [shape: f32[1,64], index: 6, kind: input, shape index: {}]   ;;  %s1779_s7 = inlined_call_operand.vmem [shape: f32[2,256,64], index: 7, kind: output, shape index: {}]  }
   0x1   :  { %s1443_s26 = smov 0  }
   0x2 LB: > { %s29_s27 = sadd.s32 1, %s1392_s25  ;;  %p1174_p0 = scmp.ge.s32.totalorder %s1396_s26, 1  ;;  %s1396_s26 = sphi %s1443_s26, %s17_s26   ;;  %s1392_s25 = sphi %s1441_s25, %s1781_s25   ;;  %s1388_s24 = sphi %s1439_s24, %s1780_s24  }
   0x3   : > { %p31_p1 = scmp.ge.s32.totalorder %s29_s27, 2  ;;  %p283_p2 = scmp.lt.s32.totalorder %s1396_s26, 3 }
   0x5   : > { %s1783_s27 = smov (%p31_p1, %s29_s27), 0  ;;  %p284_p3 = pnand %p1174_p0, %p283_p2 }
   0x6   : > { %p336_p4 = scmp.lt.s32.totalorder (!%p284_p3), %s1388_s24, 1  ;;  %v1398_v0 = vmov (!%p284_p3), 0   ;;  %v1372_v9 = vld [vmem:[%s1777_s5] sm:$0xff] (!%p284_p3)   ;;  %v1373_v10 = vld [vmem:[%s1777_s5 + $0x8] sm:$0xff] (!%p284_p3)   ;;  %vm813_vm0 = vcmask (!%p284_p3), 261120   ;;  %vm1023_vm1 = vcmask (!%p284_p3), 523264  }
   0x7   : > { %287 = sbr.rel (%p284_p3) target bundleno = 433 (0x1b1), region = 48  ;;  %1371 = vset.pattern.permute.xlu1 (!%p284_p3), %v1398_v0  ;;  %1370 = vset.pattern.permute.xlu0 (!%p284_p3), %v1398_v0  ;;  %v1526_v49 = vld [vmem:[%s1775_s3] ss:$0 sm:$0xff] (!%p284_p3) }
   0x8   : > { %1305 = vmatprep.subr.bf16.mxu0 (!%p284_p3), %v1372_v9  ;;  %1341 = vmatprep.subr.bf16.mxu1 (!%p284_p3), %v1372_v9  ;;  %v1536_v0 = vld [vmem:[%s1776_s4] ss:$0 sm:$0xff] (!%p284_p3) }
   0x9   : > { %1306 = vmatpush3.bf16.msra.mxu0 (!%p284_p3), %v1372_v9  ;;  %1343 = vmatpush3.bf16.msra.mxu1 (!%p284_p3), %v1372_v9 }
   0xa   : > { %1307 = vmatprep.subr.bf16.mxu0 (!%p284_p3), %v1373_v10  ;;  %1342 = vmatprep.subr.bf16.mxu1 (!%p284_p3), %v1373_v10 }
   0xd   : > { %1308 = vmatpush3.bf16.msra.mxu0 (!%p284_p3), %v1373_v10  ;;  %1344 = vmatpush3.bf16.msra.mxu1 (!%p284_p3), %v1373_v10 }
   0xe   : > { %s1785_s24 = smov (!%p336_p4, %s1388_s24), 1 }
   0xf   : > { %s1206_s28 = sshll.u32 %s1785_s24, 8  ;;  %s1205_s13 = sshll.u32 %s1785_s24, 7 }
  0x10   : > { %s1465_s8 = scalar_lea.vmem %s1774_s2, %s1206_s28  ;;  %s1509_s16 = scalar_lea.vmem %s1772_s0, %s1205_s13 }
  0x11   : > { %v488_v1 = vld [vmem:[%s1465_s8 + $0x80] sm:$0xff]  ;;  %v489_v3 = vld [vmem:[%s1465_s8 + $0x88] sm:$0xff]  ;;  %v475_v5 = vld [vmem:[%s1465_s8 + $0x18] sm:$0xff]  ;;  %s347_s19 = scalar_lea.vmem %s1773_s1, %s1785_s24  ;;  %s1665_s10 = scalar_lea.vmem %s1779_s7, %s1206_s28 }
  0x12   : > { %v472_v2 = vld [vmem:[%s1465_s8] sm:$0xff]  ;;  %586 = vperm.xlu1 %1371, %v488_v1   ;;  %v473_v4 = vld [vmem:[%s1465_s8 + $0x8] sm:$0xff]  ;;  %v474_v6 = vld [vmem:[%s1465_s8 + $0x10] sm:$0xff] }
  0x13   : > { %506 = vperm.xlu0 %1370, %v472_v2   ;;  %v491_v7 = vld [vmem:[%s1465_s8 + $0x98] sm:$0xff]  ;;  %v490_v8 = vld [vmem:[%s1465_s8 + $0x90] sm:$0xff]  ;;  %v477_v11 = vld [vmem:[%s1465_s8 + $0x28] sm:$0xff] }
  0x14   : > { %v476_v12 = vld [vmem:[%s1465_s8 + $0x20] sm:$0xff]  ;;  %v493_v13 = vld [vmem:[%s1465_s8 + $0xa8] sm:$0xff]  ;;  %v479_v15 = vld [vmem:[%s1465_s8 + $0x38] sm:$0xff] }
  0x15   : > { %v492_v14 = vld [vmem:[%s1465_s8 + $0xa0] sm:$0xff]  ;;  %v478_v16 = vld [vmem:[%s1465_s8 + $0x30] sm:$0xff]  ;;  %v495_v17 = vld [vmem:[%s1465_s8 + $0xb8] sm:$0xff] }
  0x16   : > { %591 = vperm.xlu1 %1371, %v489_v3   ;;  %v494_v18 = vld [vmem:[%s1465_s8 + $0xb0] sm:$0xff]  ;;  %v481_v19 = vld [vmem:[%s1465_s8 + $0x48] sm:$0xff]  ;;  %v480_v20 = vld [vmem:[%s1465_s8 + $0x40] sm:$0xff] }
  0x17   : > { %511 = vperm.xlu0 %1370, %v473_v4   ;;  %v497_v21 = vld [vmem:[%s1465_s8 + $0xc8] sm:$0xff]  ;;  %v496_v22 = vld [vmem:[%s1465_s8 + $0xc0] sm:$0xff]  ;;  %v483_v23 = vld [vmem:[%s1465_s8 + $0x58] sm:$0xff] }
  0x18   : > { %v482_v24 = vld [vmem:[%s1465_s8 + $0x50] sm:$0xff]  ;;  %v499_v25 = vld [vmem:[%s1465_s8 + $0xd8] sm:$0xff]  ;;  %v485_v27 = vld [vmem:[%s1465_s8 + $0x68] sm:$0xff] }
  0x19   : > { %v498_v26 = vld [vmem:[%s1465_s8 + $0xd0] sm:$0xff]  ;;  %v484_v28 = vld [vmem:[%s1465_s8 + $0x60] sm:$0xff]  ;;  %v501_v29 = vld [vmem:[%s1465_s8 + $0xe8] sm:$0xff] }
  0x1a   : > { %521 = vperm.xlu1 %1371, %v475_v5   ;;  %v500_v30 = vld [vmem:[%s1465_s8 + $0xe0] sm:$0xff]  ;;  %v487_v31 = vld [vmem:[%s1465_s8 + $0x78] sm:$0xff]  ;;  %v486_v32 = vld [vmem:[%s1465_s8 + $0x70] sm:$0xff] }
  0x1b   : > { %516 = vperm.xlu0 %1370, %v474_v6   ;;  %v503_v33 = vld [vmem:[%s1465_s8 + $0xf8] sm:$0xff]  ;;  %v502_v34 = vld [vmem:[%s1465_s8 + $0xf0] sm:$0xff]  ;;  %v1279_v35 = vld [vmem:[%s1509_s16 + $0x40] sm:$0xff]  }
  0x1c   : > { %v1209_v36 = vld [vmem:[%s1509_s16] sm:$0xff]   ;;  %v1242_v37 = vunpack.c.l.bf16 %v1279_v35  ;;  %v1243_v40 = vunpack.c.h.bf16 %v1279_v35  ;;  %v1272_v44 = vld [vmem:[%s1509_s16 + $0x8] sm:$0xff]   ;;  %v1273_v61 = vld [vmem:[%s1509_s16 + $0x10] sm:$0xff]  }
  0x1d   : > { %v1210_v38 = vunpack.c.l.bf16 %v1209_v36  ;;  %v1517_v39 = vld [vmem:[%s347_s19] ss:$0 sm:$0xff]  ;;  %v1211_v43 = vunpack.c.h.bf16 %v1209_v36  ;;  %v1215_v48 = vunpack.c.h.bf16 %v1272_v44  ;;  %v1214_v53 = vunpack.c.l.bf16 %v1272_v44  ;;  %v1280_v54 = vld [vmem:[%s1509_s16 + $0x48] sm:$0xff]  }
  0x1e   : > { %601 = vperm.xlu1 %1371, %v491_v7   ;;  %v456_v41 = vmul.f32 %v1242_v37, %v1517_v39  ;;  %v457_v47 = vmul.f32 %v1243_v40, %v1517_v39  ;;  %v1247_v59 = vunpack.c.h.bf16 %v1280_v54  ;;  %v1246_v60 = vunpack.c.l.bf16 %v1280_v54 }
  0x1f   : > { %596 = vperm.xlu0 %1370, %v490_v8   ;;  %v440_v42 = vmul.f32 %v1210_v38, %v1517_v39  ;;  %v441_v52 = vmul.f32 %v1211_v43, %v1517_v39  ;;  %v443_v1 = vmul.f32 %v1215_v48, %v1517_v39  ;;  %v442_v2 = vmul.f32 %v1214_v53, %v1517_v39 }
  0x20   : > { %v1219_v5 = vunpack.c.h.bf16 %v1273_v61  ;;  %v1218_v6 = vunpack.c.l.bf16 %v1273_v61  ;;  %v459_v9 = vmul.f32 %v1247_v59, %v1517_v39  ;;  %v458_v10 = vmul.f32 %v1246_v60, %v1517_v39 }
  0x22   : > { %531 = vperm.xlu1 %1371, %v477_v11  }
  0x23   : > { %526 = vperm.xlu0 %1370, %v476_v12  }
  0x26   : > { %611 = vperm.xlu1 %1371, %v493_v13  }
  0x27   : > { %606 = vperm.xlu0 %1370, %v492_v14  }
  0x2a   : > { %541 = vperm.xlu1 %1371, %v479_v15  }
  0x2b   : > { %536 = vperm.xlu0 %1370, %v478_v16  }
  0x2e   : > { %621 = vperm.xlu1 %1371, %v495_v17   ;;  %v1281_v17 = vld [vmem:[%s1509_s16 + $0x50] sm:$0xff]  }
  0x2f   : > { %616 = vperm.xlu0 %1370, %v494_v18  }
  0x32   : > { %551 = vperm.xlu1 %1371, %v481_v19  }
  0x33   : > { %546 = vperm.xlu0 %1370, %v480_v20  }
  0x36   : > { %631 = vperm.xlu1 %1371, %v497_v21  }
  0x37   : > { %626 = vperm.xlu0 %1370, %v496_v22  }
  0x3a   : > { %561 = vperm.xlu1 %1371, %v483_v23  }
  0x3b   : > { %556 = vperm.xlu0 %1370, %v482_v24   ;;  %v445_v24 = vmul.f32 %v1219_v5, %v1517_v39 }
  0x3e   : > { %641 = vperm.xlu1 %1371, %v499_v25   ;;  %v444_v25 = vmul.f32 %v1218_v6, %v1517_v39 }
  0x3f   : > { %636 = vperm.xlu0 %1370, %v498_v26   ;;  %v1251_v26 = vunpack.c.h.bf16 %v1281_v17 }
  0x41   : > { %v461_v38 = vmul.f32 %v1251_v26, %v1517_v39 }
  0x42   : > { %571 = vperm.xlu1 %1371, %v485_v27   ;;  %v1250_v27 = vunpack.c.l.bf16 %v1281_v17 }
  0x43   : > { %566 = vperm.xlu0 %1370, %v484_v28  }
  0x44   : > { %v460_v40 = vmul.f32 %v1250_v27, %v1517_v39  ;;  %v1276_v27 = vld [vmem:[%s1509_s16 + $0x28] sm:$0xff]  }
  0x46   : > { %651 = vperm.xlu1 %1371, %v501_v29  }
  0x47   : > { %646 = vperm.xlu0 %1370, %v500_v30  }
  0x4a   : > { %581 = vperm.xlu1 %1371, %v487_v31  }
  0x4b   : > { %576 = vperm.xlu0 %1370, %v486_v32   ;;  %v1274_v32 = vld [vmem:[%s1509_s16 + $0x18] sm:$0xff]  }
  0x4e   : > { %661 = vperm.xlu1 %1371, %v503_v33  }
  0x4f   : > { %656 = vperm.xlu0 %1370, %v502_v34  }
  0x91   : > { %v587_v45 = vpop.permute.xlu1 %586 }
  0x92   : > { %v507_v46 = vpop.permute.xlu0 %506  ;;  %v680_v50 = vmul.f32 %v587_v45, %v456_v41  ;;  %v1223_v41 = vunpack.c.h.bf16 %v1274_v32 }
  0x93   : > { %v664_v51 = vmul.f32 %v507_v46, %v440_v42  ;;  %v1222_v42 = vunpack.c.l.bf16 %v1274_v32 }
  0x94   : > { %v719_v55 = vmul.f32 %v1526_v49, %v680_v50  ;;  %v447_v54 = vmul.f32 %v1223_v41, %v1517_v39 }
  0x95   : > { %v703_v56 = vmul.f32 %v1526_v49, %v664_v51  ;;  %v592_v57 = vpop.permute.xlu1 %591 }
  0x96   : > { %v512_v58 = vpop.permute.xlu0 %511  ;;  %v681_v62 = vmul.f32 %v592_v57, %v457_v47  ;;  %v758_v12 = vadd.f32 %v1536_v0, %v719_v55  ;;  %v1282_v47 = vld [vmem:[%s1509_s16 + $0x58] sm:$0xff]   ;;  %v446_v55 = vmul.f32 %v1222_v42, %v1517_v39  ;;  %v1284_v42 = vld [vmem:[%s1509_s16 + $0x68] sm:$0xff]  }
  0x97   : > { %v665_v63 = vmul.f32 %v512_v58, %v441_v52  ;;  %v742_v11 = vadd.f32 %v1536_v0, %v703_v56  ;;  %v1255_v56 = vunpack.c.h.bf16 %v1282_v47  ;;  %v1254_v57 = vunpack.c.l.bf16 %v1282_v47 }
  0x98   : > { %v720_v3 = vmul.f32 %v1526_v49, %v681_v62  ;;  %v1275_v62 = vld [vmem:[%s1509_s16 + $0x20] sm:$0xff]  }
  0x99   : > { %v704_v4 = vmul.f32 %v1526_v49, %v665_v63  ;;  %v522_v7 = vpop.permute.xlu1 %521  ;;  %v463_v5 = vmul.f32 %v1255_v56, %v1517_v39  ;;  %v462_v6 = vmul.f32 %v1254_v57, %v1517_v39  ;;  %v1277_v57 = vld [vmem:[%s1509_s16 + $0x30] sm:$0xff]  }
  0x9a   : > { %v517_v8 = vpop.permute.xlu0 %516  ;;  %v667_v13 = vmul.f32 %v522_v7, %v443_v1  ;;  %v759_v16 = vadd.f32 %v1536_v0, %v720_v3  ;;  %v1227_v7 = vunpack.c.h.bf16 %v1275_v62 }
  0x9b   : > { %v666_v14 = vmul.f32 %v517_v8, %v442_v2  ;;  %v743_v15 = vadd.f32 %v1536_v0, %v704_v4  ;;  %v1226_v8 = vunpack.c.l.bf16 %v1275_v62 }
  0x9c   : > { %v706_v18 = vmul.f32 %v1526_v49, %v667_v13  ;;  %v782_v21 = vpack.c.bf16 %v759_v16, %v758_v12  ;;  %v1283_v13 = vld [vmem:[%s1509_s16 + $0x60] sm:$0xff]  }
  0x9d   : > { %v705_v19 = vmul.f32 %v1526_v49, %v666_v14  ;;  %v774_v20 = vpack.c.bf16 %v743_v15, %v742_v11  ;;  %v602_v22 = vpop.permute.xlu1 %601 }
  0x9e   : > { %v597_v23 = vpop.permute.xlu0 %596  ;;  %v745_v28 = vadd.f32 %v1536_v0, %v706_v18  ;;  %v683_v30 = vmul.f32 %v602_v22, %v459_v9  ;;  %1325 = vmatprep.mubr.msk.bf16.mxu1 %vm813_vm0, %v782_v21  ;;  %v1259_v21 = vunpack.c.h.bf16 %v1283_v13  ;;  %v1258_v22 = vunpack.c.l.bf16 %v1283_v13 }
  0x9f   : > { %v744_v29 = vadd.f32 %v1536_v0, %v705_v19  ;;  %v682_v31 = vmul.f32 %v597_v23, %v458_v10  ;;  %1309 = vmatprep.mubr.msk.bf16.mxu0 %vm813_vm0, %v774_v20  ;;  %v449_v19 = vmul.f32 %v1227_v7, %v1517_v39  ;;  %v448_v20 = vmul.f32 %v1226_v8, %v1517_v39  ;;  %v1285_v8 = vld [vmem:[%s1509_s16 + $0x70] sm:$0xff]  }
  0xa0   : > { %v722_v34 = vmul.f32 %v1526_v49, %v683_v30 }
  0xa1   : > { %v775_v33 = vpack.c.bf16 %v745_v28, %v744_v29  ;;  %v721_v35 = vmul.f32 %v1526_v49, %v682_v31  ;;  %v532_v36 = vpop.permute.xlu1 %531 }
  0xa2   : > { %v527_v37 = vpop.permute.xlu0 %526  ;;  %v761_v43 = vadd.f32 %v1536_v0, %v722_v34  ;;  %v669_v45 = vmul.f32 %v532_v36, %v445_v24  ;;  %v464_v34 = vmul.f32 %v1258_v22, %v1517_v39  ;;  %v1230_v36 = vunpack.c.l.bf16 %v1276_v27  ;;  %v1278_v22 = vld [vmem:[%s1509_s16 + $0x38] sm:$0xff]  }
  0xa3   : > { %v760_v44 = vadd.f32 %v1536_v0, %v721_v35  ;;  %v668_v46 = vmul.f32 %v527_v37, %v444_v25  ;;  %1310 = vmatmul.mubr.msk.bf16.vlgmr.msra.gmra.mrb[0].mxu0 %vm813_vm0, %v775_v33  ;;  %v465_v33 = vmul.f32 %v1259_v21, %v1517_v39  ;;  %v1231_v35 = vunpack.c.h.bf16 %v1276_v27 }
  0xa4   : > { %v708_v50 = vmul.f32 %v1526_v49, %v669_v45 }
  0xa5   : > { %v783_v48 = vpack.c.bf16 %v761_v43, %v760_v44  ;;  %v707_v51 = vmul.f32 %v1526_v49, %v668_v46  ;;  %v612_v52 = vpop.permute.xlu1 %611 }
  0xa6   : > { %v607_v53 = vpop.permute.xlu0 %606  ;;  %v747_v58 = vadd.f32 %v1536_v0, %v708_v50  ;;  %v685_v60 = vmul.f32 %v612_v52, %v461_v38  ;;  %v450_v50 = vmul.f32 %v1230_v36, %v1517_v39  ;;  %v1262_v52 = vunpack.c.l.bf16 %v1284_v42  ;;  %v1286_v36 = vld [vmem:[%s1509_s16 + $0x78] sm:$0xff]  }
  0xa7   : > { %v746_v59 = vadd.f32 %v1536_v0, %v707_v51  ;;  %v684_v61 = vmul.f32 %v607_v53, %v460_v40  ;;  %1326 = vmatmul.mubr.msk.bf16.vlgmr.msra.gmra.mrb[0].mxu1 %vm813_vm0, %v783_v48  ;;  %v451_v48 = vmul.f32 %v1231_v35, %v1517_v39  ;;  %v1263_v51 = vunpack.c.h.bf16 %v1284_v42 }
  0xa8   : > { %v724_v1 = vmul.f32 %v1526_v49, %v685_v60 }
  0xa9   : > { %v776_v63 = vpack.c.bf16 %v747_v58, %v746_v59  ;;  %v723_v2 = vmul.f32 %v1526_v49, %v684_v61  ;;  %v542_v3 = vpop.permute.xlu1 %541 }
  0xaa   : > { %v537_v4 = vpop.permute.xlu0 %536  ;;  %v763_v9 = vadd.f32 %v1536_v0, %v724_v1  ;;  %v671_v11 = vmul.f32 %v542_v3, %v447_v54  ;;  %v466_v1 = vmul.f32 %v1262_v52, %v1517_v39  ;;  %v1234_v3 = vunpack.c.l.bf16 %v1277_v57 }
  0xab   : > { %v762_v10 = vadd.f32 %v1536_v0, %v723_v2  ;;  %v670_v12 = vmul.f32 %v537_v4, %v446_v55  ;;  %1313 = vmatprep.mubr.msk.bf16.mxu0 %vm813_vm0, %v776_v63  ;;  %v467_v63 = vmul.f32 %v1263_v51, %v1517_v39  ;;  %v1235_v2 = vunpack.c.h.bf16 %v1277_v57 }
  0xac   : > { %v710_v15 = vmul.f32 %v1526_v49, %v671_v11 }
  0xad   : > { %v784_v14 = vpack.c.bf16 %v763_v9, %v762_v10  ;;  %v709_v16 = vmul.f32 %v1526_v49, %v670_v12  ;;  %v622_v17 = vpop.permute.xlu1 %621 }
  0xae   : > { %v617_v18 = vpop.permute.xlu0 %616  ;;  %v749_v23 = vadd.f32 %v1536_v0, %v710_v15  ;;  %v687_v25 = vmul.f32 %v622_v17, %v463_v5  ;;  %v452_v15 = vmul.f32 %v1234_v3, %v1517_v39  ;;  %v1266_v17 = vunpack.c.l.bf16 %v1285_v8 }
  0xaf   : > { %v748_v24 = vadd.f32 %v1536_v0, %v709_v16  ;;  %v686_v26 = vmul.f32 %v617_v18, %v462_v6  ;;  %1329 = vmatprep.mubr.msk.bf16.mxu1 %vm813_vm0, %v784_v14  ;;  %v453_v14 = vmul.f32 %v1235_v2, %v1517_v39  ;;  %v1267_v16 = vunpack.c.h.bf16 %v1285_v8 }
  0xb0   : > { %v726_v29 = vmul.f32 %v1526_v49, %v687_v25 }
  0xb1   : > { %v777_v28 = vpack.c.bf16 %v749_v23, %v748_v24  ;;  %v725_v30 = vmul.f32 %v1526_v49, %v686_v26  ;;  %v552_v31 = vpop.permute.xlu1 %551 }
  0xb2   : > { %v547_v32 = vpop.permute.xlu0 %546  ;;  %v765_v37 = vadd.f32 %v1536_v0, %v726_v29  ;;  %v673_v40 = vmul.f32 %v552_v31, %v449_v19  ;;  %v468_v29 = vmul.f32 %v1266_v17, %v1517_v39  ;;  %v1238_v31 = vunpack.c.l.bf16 %v1278_v22 }
  0xb3   : > { %v764_v38 = vadd.f32 %v1536_v0, %v725_v30  ;;  %v672_v41 = vmul.f32 %v547_v32, %v448_v20  ;;  %1314 = vmatmul.mubr.msk.bf16.gmra.mrb[4].mxu0 %vm813_vm0, %v777_v28  ;;  %v469_v28 = vmul.f32 %v1267_v16, %v1517_v39  ;;  %v1239_v30 = vunpack.c.h.bf16 %v1278_v22 }
  0xb4   : > { %v712_v44 = vmul.f32 %v1526_v49, %v673_v40 }
  0xb5   : > { %v785_v43 = vpack.c.bf16 %v765_v37, %v764_v38  ;;  %v711_v45 = vmul.f32 %v1526_v49, %v672_v41  ;;  %v632_v46 = vpop.permute.xlu1 %631 }
  0xb6   : > { %v627_v47 = vpop.permute.xlu0 %626  ;;  %v751_v53 = vadd.f32 %v1536_v0, %v712_v44  ;;  %v689_v55 = vmul.f32 %v632_v46, %v465_v33  ;;  %v454_v44 = vmul.f32 %v1238_v31, %v1517_v39  ;;  %v1270_v46 = vunpack.c.l.bf16 %v1286_v36 }
  0xb7   : > { %v750_v54 = vadd.f32 %v1536_v0, %v711_v45  ;;  %v688_v56 = vmul.f32 %v627_v47, %v464_v34  ;;  %1330 = vmatmul.mubr.msk.bf16.gmra.mrb[4].mxu1 %vm813_vm0, %v785_v43  ;;  %v455_v43 = vmul.f32 %v1239_v30, %v1517_v39  ;;  %v1271_v45 = vunpack.c.h.bf16 %v1286_v36 }
  0xb8   : > { %v728_v59 = vmul.f32 %v1526_v49, %v689_v55 }
  0xb9   : > { %v778_v58 = vpack.c.bf16 %v751_v53, %v750_v54  ;;  %v727_v60 = vmul.f32 %v1526_v49, %v688_v56  ;;  %v562_v61 = vpop.permute.xlu1 %561  ;;  %v471_v57 = vmul.f32 %v1271_v45, %v1517_v39 }
  0xba   : > { %v557_v62 = vpop.permute.xlu0 %556  ;;  %v767_v4 = vadd.f32 %v1536_v0, %v728_v59  ;;  %v675_v6 = vmul.f32 %v562_v61, %v451_v48 }
  0xbb   : > { %v766_v5 = vadd.f32 %v1536_v0, %v727_v60  ;;  %v674_v7 = vmul.f32 %v557_v62, %v450_v50  ;;  %1317 = vmatprep.mubr.msk.bf16.mxu0 %vm813_vm0, %v778_v58  ;;  %v470_v58 = vmul.f32 %v1270_v46, %v1517_v39 }
  0xbc   : > { %v714_v10 = vmul.f32 %v1526_v49, %v675_v6 }
  0xbd   : > { %v786_v9 = vpack.c.bf16 %v767_v4, %v766_v5  ;;  %v713_v11 = vmul.f32 %v1526_v49, %v674_v7  ;;  %v642_v12 = vpop.permute.xlu1 %641 }
  0xbe   : > { %v637_v13 = vpop.permute.xlu0 %636  ;;  %v753_v18 = vadd.f32 %v1536_v0, %v714_v10  ;;  %v691_v20 = vmul.f32 %v642_v12, %v467_v63 }
  0xbf   : > { %v752_v19 = vadd.f32 %v1536_v0, %v713_v11  ;;  %v690_v21 = vmul.f32 %v637_v13, %v466_v1  ;;  %1333 = vmatprep.mubr.msk.bf16.mxu1 %vm813_vm0, %v786_v9 }
  0xc0   : > { %v730_v24 = vmul.f32 %v1526_v49, %v691_v20 }
  0xc1   : > { %v779_v23 = vpack.c.bf16 %v753_v18, %v752_v19  ;;  %v729_v25 = vmul.f32 %v1526_v49, %v690_v21  ;;  %v572_v26 = vpop.permute.xlu1 %571 }
  0xc2   : > { %v567_v27 = vpop.permute.xlu0 %566  ;;  %v769_v32 = vadd.f32 %v1536_v0, %v730_v24  ;;  %v677_v34 = vmul.f32 %v572_v26, %v453_v14  ;;  %v1658_v14 = vld [vmem:[%s1778_s6] ss:$0 sm:$0xff] }
  0xc3   : > { %v768_v33 = vadd.f32 %v1536_v0, %v729_v25  ;;  %v676_v35 = vmul.f32 %v567_v27, %v452_v15  ;;  %1318 = vmatmul.mubr.msk.bf16.gmra.mrb[8].mxu0 %vm813_vm0, %v779_v23 }
  0xc4   : > { %v716_v38 = vmul.f32 %v1526_v49, %v677_v34 }
  0xc5   : > { %v787_v37 = vpack.c.bf16 %v769_v32, %v768_v33  ;;  %v715_v40 = vmul.f32 %v1526_v49, %v676_v35  ;;  %v652_v41 = vpop.permute.xlu1 %651 }
  0xc6   : > { %v647_v42 = vpop.permute.xlu0 %646  ;;  %v755_v47 = vadd.f32 %v1536_v0, %v716_v38  ;;  %v693_v50 = vmul.f32 %v652_v41, %v469_v28 }
  0xc7   : > { %v754_v48 = vadd.f32 %v1536_v0, %v715_v40  ;;  %v692_v51 = vmul.f32 %v647_v42, %v468_v29  ;;  %1334 = vmatmul.mubr.msk.bf16.gmra.mrb[8].mxu1 %vm813_vm0, %v787_v37 }
  0xc8   : > { %v732_v53 = vmul.f32 %v1526_v49, %v693_v50 }
  0xc9   : > { %v780_v52 = vpack.c.bf16 %v755_v47, %v754_v48  ;;  %v731_v54 = vmul.f32 %v1526_v49, %v692_v51  ;;  %v582_v55 = vpop.permute.xlu1 %581 }
  0xca   : > { %v577_v56 = vpop.permute.xlu0 %576  ;;  %v771_v59 = vadd.f32 %v1536_v0, %v732_v53  ;;  %v679_v61 = vmul.f32 %v582_v55, %v455_v43 }
  0xcb   : > { %v770_v60 = vadd.f32 %v1536_v0, %v731_v54  ;;  %v678_v62 = vmul.f32 %v577_v56, %v454_v44  ;;  %1321 = vmatprep.mubr.msk.bf16.mxu0 %vm813_vm0, %v780_v52 }
  0xcc   : > { %v718_v1 = vmul.f32 %v1526_v49, %v679_v61 }
  0xcd   : > { %v788_v63 = vpack.c.bf16 %v771_v59, %v770_v60  ;;  %v717_v2 = vmul.f32 %v1526_v49, %v678_v62  ;;  %v662_v3 = vpop.permute.xlu1 %661 }
  0xce   : > { %v657_v4 = vpop.permute.xlu0 %656  ;;  %v757_v5 = vadd.f32 %v1536_v0, %v718_v1  ;;  %v695_v6 = vmul.f32 %v662_v3, %v471_v57 }
  0xcf   : > { %v756_v39 = vadd.f32 %v1536_v0, %v717_v2  ;;  %v694_v7 = vmul.f32 %v657_v4, %v470_v58  ;;  %1337 = vmatprep.mubr.msk.bf16.mxu1 %vm813_vm0, %v788_v63 }
  0xd0   : > { %v734_v9 = vmul.f32 %v1526_v49, %v695_v6 }
  0xd1   : > { %v781_v8 = vpack.c.bf16 %v757_v5, %v756_v39  ;;  %v733_v10 = vmul.f32 %v1526_v49, %v694_v7 }
  0xd2   : > { %v773_v11 = vadd.f32 %v1536_v0, %v734_v9 }
  0xd3   : > { %v772_v12 = vadd.f32 %v1536_v0, %v733_v10  ;;  %1322 = vmatmul.mubr.msk.bf16.gmra.mrb[12].mxu0 %vm813_vm0, %v781_v8 }
  0xd5   : > { %v789_v13 = vpack.c.bf16 %v773_v11, %v772_v12 }
  0xd7   : > { %1338 = vmatmul.mubr.msk.bf16.gmra.mrb[12].mxu1 %vm813_vm0, %v789_v13 }
 0x176   : > { %v1311_v49 = vpop.f32.mrb[0].mxu0 }
 0x177   : > { %v905_v0 = vadd.f32 %v1311_v49, %v1658_v14  ;;  %v896_v15 = vpop.f32.mrb[1].mxu0 }
 0x178   : > { %v897_v16 = vadd.f32 %v1658_v14, %v896_v15  ;;  %v1312_v17 = vpop.f32.mrb[2].mxu0 }
 0x179   : > { %1026 = vst.msk [vmem:[%s1665_s10 + $0x10] sm:$0xff] %vm1023_vm1, %v905_v0  ;;  %v908_v18 = vadd.f32 %v1312_v17, %v1658_v14  ;;  %v899_v19 = vpop.f32.mrb[3].mxu0 }
 0x17a   : > { %1024 = vst.msk [vmem:[%s1665_s10] sm:$0xff] %vm1023_vm1, %v897_v16  ;;  %v900_v20 = vadd.f32 %v1658_v14, %v899_v19  ;;  %v1327_v21 = vpop.f32.mrb[0].mxu1 }
 0x17b   : > { %1027 = vst.msk [vmem:[%s1665_s10 + $0x18] sm:$0xff] %vm1023_vm1, %v908_v18  ;;  %v969_v22 = vadd.f32 %v1327_v21, %v1658_v14  ;;  %v960_v23 = vpop.f32.mrb[1].mxu1 }
 0x17c   : > { %1025 = vst.msk [vmem:[%s1665_s10 + $0x8] sm:$0xff] %vm1023_vm1, %v900_v20  ;;  %v961_v24 = vadd.f32 %v1658_v14, %v960_v23  ;;  %v1328_v25 = vpop.f32.mrb[2].mxu1 }
 0x17d   : > { %1042 = vst.msk [vmem:[%s1665_s10 + $0x90] sm:$0xff] %vm1023_vm1, %v969_v22  ;;  %v972_v26 = vadd.f32 %v1328_v25, %v1658_v14  ;;  %v963_v27 = vpop.f32.mrb[3].mxu1 }
 0x17e   : > { %1040 = vst.msk [vmem:[%s1665_s10 + $0x80] sm:$0xff] %vm1023_vm1, %v961_v24  ;;  %v964_v28 = vadd.f32 %v1658_v14, %v963_v27 }
 0x17f   : > { %1043 = vst.msk [vmem:[%s1665_s10 + $0x98] sm:$0xff] %vm1023_vm1, %v972_v26 }
 0x180   : > { %1041 = vst.msk [vmem:[%s1665_s10 + $0x88] sm:$0xff] %vm1023_vm1, %v964_v28 }
 0x186   : > { %v1315_v29 = vpop.f32.mrb[4].mxu0 }
 0x187   : > { %v921_v30 = vadd.f32 %v1315_v29, %v1658_v14  ;;  %v912_v31 = vpop.f32.mrb[5].mxu0 }
 0x188   : > { %v913_v32 = vadd.f32 %v1658_v14, %v912_v31  ;;  %v1316_v33 = vpop.f32.mrb[6].mxu0 }
 0x189   : > { %1030 = vst.msk [vmem:[%s1665_s10 + $0x30] sm:$0xff] %vm1023_vm1, %v921_v30  ;;  %v924_v34 = vadd.f32 %v1316_v33, %v1658_v14  ;;  %v915_v35 = vpop.f32.mrb[7].mxu0 }
 0x18a   : > { %1028 = vst.msk [vmem:[%s1665_s10 + $0x20] sm:$0xff] %vm1023_vm1, %v913_v32  ;;  %v916_v36 = vadd.f32 %v1658_v14, %v915_v35  ;;  %v1331_v37 = vpop.f32.mrb[4].mxu1 }
 0x18b   : > { %1031 = vst.msk [vmem:[%s1665_s10 + $0x38] sm:$0xff] %vm1023_vm1, %v924_v34  ;;  %v985_v38 = vadd.f32 %v1331_v37, %v1658_v14  ;;  %v976_v40 = vpop.f32.mrb[5].mxu1 }
 0x18c   : > { %1029 = vst.msk [vmem:[%s1665_s10 + $0x28] sm:$0xff] %vm1023_vm1, %v916_v36  ;;  %v977_v41 = vadd.f32 %v1658_v14, %v976_v40  ;;  %v1332_v42 = vpop.f32.mrb[6].mxu1 }
 0x18d   : > { %1046 = vst.msk [vmem:[%s1665_s10 + $0xb0] sm:$0xff] %vm1023_vm1, %v985_v38  ;;  %v988_v43 = vadd.f32 %v1332_v42, %v1658_v14  ;;  %v979_v44 = vpop.f32.mrb[7].mxu1 }
 0x18e   : > { %1044 = vst.msk [vmem:[%s1665_s10 + $0xa0] sm:$0xff] %vm1023_vm1, %v977_v41  ;;  %v980_v45 = vadd.f32 %v1658_v14, %v979_v44 }
 0x18f   : > { %1047 = vst.msk [vmem:[%s1665_s10 + $0xb8] sm:$0xff] %vm1023_vm1, %v988_v43 }
 0x190   : > { %1045 = vst.msk [vmem:[%s1665_s10 + $0xa8] sm:$0xff] %vm1023_vm1, %v980_v45 }
 0x196   : > { %v1319_v46 = vpop.f32.mrb[8].mxu0 }
 0x197   : > { %v937_v47 = vadd.f32 %v1319_v46, %v1658_v14  ;;  %v928_v48 = vpop.f32.mrb[9].mxu0 }
 0x198   : > { %v929_v50 = vadd.f32 %v1658_v14, %v928_v48  ;;  %v1320_v51 = vpop.f32.mrb[10].mxu0 }
 0x199   : > { %1034 = vst.msk [vmem:[%s1665_s10 + $0x50] sm:$0xff] %vm1023_vm1, %v937_v47  ;;  %v940_v52 = vadd.f32 %v1320_v51, %v1658_v14  ;;  %v931_v53 = vpop.f32.mrb[11].mxu0 }
 0x19a   : > { %1032 = vst.msk [vmem:[%s1665_s10 + $0x40] sm:$0xff] %vm1023_vm1, %v929_v50  ;;  %v932_v54 = vadd.f32 %v1658_v14, %v931_v53  ;;  %v1335_v55 = vpop.f32.mrb[8].mxu1 }
 0x19b   : > { %1035 = vst.msk [vmem:[%s1665_s10 + $0x58] sm:$0xff] %vm1023_vm1, %v940_v52  ;;  %v1001_v56 = vadd.f32 %v1335_v55, %v1658_v14  ;;  %v992_v57 = vpop.f32.mrb[9].mxu1 }
 0x19c   : > { %1033 = vst.msk [vmem:[%s1665_s10 + $0x48] sm:$0xff] %vm1023_vm1, %v932_v54  ;;  %v993_v58 = vadd.f32 %v1658_v14, %v992_v57  ;;  %v1336_v59 = vpop.f32.mrb[10].mxu1 }
 0x19d   : > { %1050 = vst.msk [vmem:[%s1665_s10 + $0xd0] sm:$0xff] %vm1023_vm1, %v1001_v56  ;;  %v1004_v60 = vadd.f32 %v1336_v59, %v1658_v14  ;;  %v995_v61 = vpop.f32.mrb[11].mxu1 }
 0x19e   : > { %1048 = vst.msk [vmem:[%s1665_s10 + $0xc0] sm:$0xff] %vm1023_vm1, %v993_v58  ;;  %v996_v62 = vadd.f32 %v1658_v14, %v995_v61 }
 0x19f   : > { %1051 = vst.msk [vmem:[%s1665_s10 + $0xd8] sm:$0xff] %vm1023_vm1, %v1004_v60 }
 0x1a0   : > { %1049 = vst.msk [vmem:[%s1665_s10 + $0xc8] sm:$0xff] %vm1023_vm1, %v996_v62 }
 0x1a6   : > { %v1323_v63 = vpop.f32.mrb[12].mxu0 }
 0x1a7   : > { %v953_v1 = vadd.f32 %v1323_v63, %v1658_v14  ;;  %v944_v2 = vpop.f32.mrb[13].mxu0 }
 0x1a8   : > { %v945_v3 = vadd.f32 %v1658_v14, %v944_v2  ;;  %v1324_v4 = vpop.f32.mrb[14].mxu0 }
 0x1a9   : > { %1038 = vst.msk [vmem:[%s1665_s10 + $0x70] sm:$0xff] %vm1023_vm1, %v953_v1  ;;  %v956_v5 = vadd.f32 %v1324_v4, %v1658_v14  ;;  %v947_v39 = vpop.f32.mrb[15].mxu0 }
 0x1aa   : > { %1036 = vst.msk [vmem:[%s1665_s10 + $0x60] sm:$0xff] %vm1023_vm1, %v945_v3  ;;  %v948_v6 = vadd.f32 %v1658_v14, %v947_v39  ;;  %v1339_v7 = vpop.f32.mrb[12].mxu1 }
 0x1ab   : > { %1039 = vst.msk [vmem:[%s1665_s10 + $0x78] sm:$0xff] %vm1023_vm1, %v956_v5  ;;  %v1017_v8 = vadd.f32 %v1339_v7, %v1658_v14  ;;  %v1008_v9 = vpop.f32.mrb[13].mxu1 }
 0x1ac   : > { %1037 = vst.msk [vmem:[%s1665_s10 + $0x68] sm:$0xff] %vm1023_vm1, %v948_v6  ;;  %v1009_v10 = vadd.f32 %v1658_v14, %v1008_v9  ;;  %v1340_v11 = vpop.f32.mrb[14].mxu1 }
 0x1ad   : > { %1054 = vst.msk [vmem:[%s1665_s10 + $0xf0] sm:$0xff] %vm1023_vm1, %v1017_v8  ;;  %v1020_v12 = vadd.f32 %v1340_v11, %v1658_v14  ;;  %v1011_v13 = vpop.f32.mrb[15].mxu1 }
 0x1ae   : > { %1052 = vst.msk [vmem:[%s1665_s10 + $0xe0] sm:$0xff] %vm1023_vm1, %v1009_v10  ;;  %v1012_v49 = vadd.f32 %v1658_v14, %v1011_v13 }
 0x1af   : > { %1055 = vst.msk [vmem:[%s1665_s10 + $0xf8] sm:$0xff] %vm1023_vm1, %v1020_v12 }
 0x1b0   : > { %1053 = vst.msk [vmem:[%s1665_s10 + $0xe8] sm:$0xff] %vm1023_vm1, %v1012_v49 }
 0x1b1 PF: > { %s17_s26 = sadd.s32 1, %s1396_s26   ;;  %s1780_s24 = smov %s1392_s25 }
 0x1b2   : > { %p14_p5 = scmp.ge.s32.totalorder %s17_s26, 4   ;;  %s1781_s25 = smov %s1783_s27 }
 0x1b4   :  { %16 = sbr.rel (!%p14_p5) target bundleno = 2 (0x2), region = 84 }

// kernel: maniqa_forward.26
= control target key start
LH: loop header
LB: loop body
LE: loop exit
PB: predicated region body
PF: predicated region fallthrough
CT: control target
= control target key end

     0   :  { %s924_s21 = smov 0   ;;  %s926_s22 = smov 0   ;;  %s1022_s0 = inlined_call_operand.vmem [shape: bf16[2,64,3], index: 0, kind: input, shape index: {}]   ;;  %s1023_s1 = inlined_call_operand.vmem [shape: bf16[3,128], index: 1, kind: input, shape index: {}]   ;;  %s1024_s2 = inlined_call_operand.vmem [shape: f32[1,128], index: 2, kind: input, shape index: {}]   ;;  %s1025_s3 = inlined_call_operand.vmem [shape: bf16[128,64], index: 3, kind: input, shape index: {}]   ;;  %s1026_s4 = inlined_call_operand.vmem [shape: f32[1,64], index: 4, kind: input, shape index: {}]   ;;  %s1027_s5 = inlined_call_operand.vmem [shape: f32[1,64], index: 5, kind: input, shape index: {}]   ;;  %s1028_s6 = inlined_call_operand.vmem [shape: bf16[2,64,64], index: 6, kind: output, shape index: {}]  }
   0x1   :  { %s928_s23 = smov 0  }
   0x2 LB: > { %s28_s24 = sadd.s32 1, %s882_s22  ;;  %p716_p0 = scmp.ge.s32.totalorder %s886_s23, 1  ;;  %s886_s23 = sphi %s928_s23, %s16_s23   ;;  %s882_s22 = sphi %s926_s22, %s1030_s22   ;;  %s878_s21 = sphi %s924_s21, %s1029_s21  }
   0x3   : > { %p30_p1 = scmp.ge.s32.totalorder %s28_s24, 2  ;;  %p233_p2 = scmp.lt.s32.totalorder %s886_s23, 3 }
   0x5   : > { %s1032_s24 = smov (%p30_p1, %s28_s24), 0  ;;  %p234_p3 = pnand %p716_p0, %p233_p2 }
   0x6   : > { %v300_v0 = vld [vmem:[%s1023_s1] sm:$0x3] (!%p234_p3)  ;;  %vm341_vm0 = vcmask (!%p234_p3), 1040384   ;;  %vm342_vm1 = vcmask (!%p234_p3), 1041408   ;;  %p272_p4 = scmp.lt.s32.totalorder (!%p234_p3), %s878_s21, 1  ;;  %v888_v1 = vmov (!%p234_p3), 65535  }
   0x7   : > { %237 = sbr.rel (%p234_p3) target bundleno = 471 (0x1d7), region = 44  ;;  %v343_v2 = vsel (!%p234_p3), %vm341_vm0, 4294967295, %v888_v1  ;;  %v856_v4 = vld [vmem:[%s1025_s3] sm:$0xff] (!%p234_p3)   ;;  %v857_v6 = vld [vmem:[%s1025_s3 + $0x8] sm:$0xff] (!%p234_p3)   ;;  %vm328_vm2 = vcmask (!%p234_p3), 23552   ;;  %v858_v10 = vld [vmem:[%s1025_s3 + $0x10] sm:$0xff] (!%p234_p3)  }
   0x8   : > { %v344_v3 = vsel (!%p234_p3), %vm342_vm1, %v343_v2, 0  ;;  %811 = vmatprep.subr.bf16.mxu1 (!%p234_p3), %v856_v4  ;;  %v859_v11 = vld [vmem:[%s1025_s3 + $0x18] sm:$0xff] (!%p234_p3)   ;;  %v860_v13 = vld [vmem:[%s1025_s3 + $0x20] sm:$0xff] (!%p234_p3)   ;;  %v861_v14 = vld [vmem:[%s1025_s3 + $0x28] sm:$0xff] (!%p234_p3)   ;;  %vm616_vm3 = vcmask (!%p234_p3), 519168  }
   0x9   : > { %v346_v5 = vand.u32 (!%p234_p3), %v344_v3, %v300_v0  ;;  %819 = vmatpush3.bf16.msra.mxu1 (!%p234_p3), %v856_v4  ;;  %v862_v15 = vld [vmem:[%s1025_s3 + $0x30] sm:$0xff] (!%p234_p3)   ;;  %v863_v16 = vld [vmem:[%s1025_s3 + $0x38] sm:$0xff] (!%p234_p3)   ;;  %v721_v18 = vld [vmem:[%s1024_s2] ss:$0 sm:$0xff] (!%p234_p3) }
   0xa   : > { %812 = vmatprep.subr.bf16.mxu1 (!%p234_p3), %v857_v6  ;;  %v738_v38 = vld [vmem:[%s1026_s4] ss:$0 sm:$0xff] (!%p234_p3) }
   0xb   : > { %777 = vmatprep.subr.bf16.mxu0 (!%p234_p3), %v346_v5  ;;  %v739_v40 = vld [vmem:[%s1027_s5] ss:$0 sm:$0xff] (!%p234_p3) }
   0xc   : > { %778 = vmatpush3.bf16.msra.mxu0 (!%p234_p3), %v346_v5 }
   0xd   : > { %787 = vmatprep.subr.bf16.mxu0 (!%p234_p3), %v856_v4  ;;  %820 = vmatpush3.bf16.msra.mxu1 (!%p234_p3), %v857_v6 }
   0xe   : > { %s1034_s21 = smov (!%p272_p4, %s878_s21), 1  ;;  %813 = vmatprep.subr.bf16.mxu1 %v858_v10 }
   0xf   : > { %s750_s29 = sshll.u32 %s1034_s21, 5 }
  0x10   : > { %s279_s10 = scalar_lea.vmem %s1022_s0, %s750_s29  ;;  %s995_s12 = scalar_lea.vmem %s1028_s6, %s750_s29 }
  0x11   : > { %v852_v7 = vld [vmem:[%s279_s10] sm:$0xff]   ;;  %v853_v8 = vld [vmem:[%s279_s10 + $0x8] sm:$0xff]   ;;  %v854_v9 = vld [vmem:[%s279_s10 + $0x10] sm:$0xff]   ;;  %821 = vmatpush3.bf16.msra.mxu1 %v858_v10 }
  0x12   : > { %779 = vmatprep.mubr.msk.bf16.mxu0 %vm328_vm2, %v852_v7  ;;  %v855_v12 = vld [vmem:[%s279_s10 + $0x18] sm:$0xff]   ;;  %814 = vmatprep.subr.bf16.mxu1 %v859_v11 }
  0x13   : > { %780 = vmatmul.mubr.msk.bf16.vlgmr.msra.gmra.mrb[0].mxu0 %vm328_vm2, %v853_v8 }
  0x14   : > { %783 = vmatprep.mubr.msk.bf16.mxu0 %vm328_vm2, %v854_v9  ;;  %788 = vmatpush3.bf16.msra.mxu0 %v856_v4 }
  0x15   : > { %789 = vmatprep.subr.bf16.mxu0 %v857_v6  ;;  %822 = vmatpush3.bf16.msra.mxu1 %v859_v11 }
  0x16   : > { %815 = vmatprep.subr.bf16.mxu1 %v860_v13 }
  0x18   : > { %790 = vmatpush3.bf16.msra.mxu0 %v857_v6 }
  0x19   : > { %791 = vmatprep.subr.bf16.mxu0 %v858_v10  ;;  %823 = vmatpush3.bf16.msra.mxu1 %v860_v13 }
  0x1a   : > { %816 = vmatprep.subr.bf16.mxu1 %v861_v14 }
  0x1b   : > { %784 = vmatmul.mubr.msk.bf16.gmra.mrb[4].mxu0 %vm328_vm2, %v855_v12 }
  0x1c   : > { %792 = vmatpush3.bf16.msra.mxu0 %v858_v10 }
  0x1d   : > { %793 = vmatprep.subr.bf16.mxu0 %v859_v11  ;;  %824 = vmatpush3.bf16.msra.mxu1 %v861_v14 }
  0x1e   : > { %817 = vmatprep.subr.bf16.mxu1 %v862_v15 }
  0x20   : > { %794 = vmatpush3.bf16.msra.mxu0 %v859_v11 }
  0x21   : > { %795 = vmatprep.subr.bf16.mxu0 %v860_v13  ;;  %825 = vmatpush3.bf16.msra.mxu1 %v862_v15 }
  0x22   : > { %818 = vmatprep.subr.bf16.mxu1 %v863_v16 }
  0x24   : > { %796 = vmatpush3.bf16.msra.mxu0 %v860_v13 }
  0x25   : > { %797 = vmatprep.subr.bf16.mxu0 %v861_v14  ;;  %826 = vmatpush3.bf16.msra.mxu1 %v863_v16 }
  0x28   : > { %798 = vmatpush3.bf16.msra.mxu0 %v861_v14 }
  0x29   : > { %799 = vmatprep.subr.bf16.mxu0 %v862_v15 }
  0x2c   : > { %800 = vmatpush3.bf16.msra.mxu0 %v862_v15 }
  0x2d   : > { %801 = vmatprep.subr.bf16.mxu0 %v863_v16 }
  0x30   : > { %802 = vmatpush3.bf16.msra.mxu0 %v863_v16 }
  0xe6   : > { %v781_v17 = vpop.f32.mrb[0].mxu0 }
  0xe7   : > { %v382_v19 = vpop.f32.mrb[1].mxu0  ;;  %v391_v21 = vadd.f32 %v781_v17, %v721_v18 }
  0xe8   : > { %v782_v20 = vpop.f32.mrb[2].mxu0  ;;  %v383_v24 = vadd.f32 %v721_v18, %v382_v19 }
  0xe9   : > { %v394_v22 = vadd.f32 %v782_v20, %v721_v18  ;;  %v385_v23 = vpop.f32.mrb[3].mxu0 }
  0xea   : > { %v386_v25 = vadd.f32 %v721_v18, %v385_v23 }
  0xeb   : > { %v414_v26 = vpack.c.bf16 %v394_v22, %v391_v21 }
  0xec   : > { %v413_v27 = vpack.c.bf16 %v386_v25, %v383_v24 }
  0xee   : > { %v785_v28 = vpop.f32.mrb[4].mxu0  ;;  %803 = vmatprep.mubr.bf16.mxu0 %v413_v27 }
  0xef   : > { %v398_v29 = vpop.f32.mrb[5].mxu0  ;;  %804 = vmatmul.mubr.bf16.vlgmr.msra.gmra.mrb[8].mxu0 %v414_v26  ;;  %v407_v31 = vadd.f32 %v785_v28, %v721_v18 }
  0xf0   : > { %v786_v30 = vpop.f32.mrb[6].mxu0  ;;  %v399_v34 = vadd.f32 %v721_v18, %v398_v29 }
  0xf1   : > { %v410_v32 = vadd.f32 %v786_v30, %v721_v18  ;;  %v401_v33 = vpop.f32.mrb[7].mxu0 }
  0xf2   : > { %v402_v35 = vadd.f32 %v721_v18, %v401_v33 }
  0xf3   : > { %v416_v36 = vpack.c.bf16 %v410_v32, %v407_v31 }
  0xf4   : > { %v415_v37 = vpack.c.bf16 %v402_v35, %v399_v34 }
  0xf6   : > { %807 = vmatprep.mubr.bf16.mxu1 %v415_v37 }
  0xf7   : > { %808 = vmatmul.mubr.bf16.vlgmr.msra.gmra.mrb[0].mxu1 %v416_v36 }
 0x1c2   : > { %v805_v39 = vpop.f32.mrb[8].mxu0 }
 0x1c3   : > { %v555_v41 = vmul.f32 %v805_v39, %v738_v38  ;;  %v515_v42 = vpop.f32.mrb[9].mxu0 }
 0x1c4   : > { %v553_v43 = vmul.f32 %v738_v38, %v515_v42  ;;  %v806_v44 = vpop.f32.mrb[10].mxu0 }
 0x1c5   : > { %v570_v45 = vadd.f32 %v739_v40, %v555_v41  ;;  %v556_v46 = vmul.f32 %v806_v44, %v738_v38  ;;  %v518_v47 = vpop.f32.mrb[11].mxu0 }
 0x1c6   : > { %v568_v48 = vadd.f32 %v739_v40, %v553_v43  ;;  %v554_v49 = vmul.f32 %v738_v38, %v518_v47 }
 0x1c7   : > { %v578_v50 = vmax.f32 %v570_v45, 0.0  ;;  %v571_v51 = vadd.f32 %v739_v40, %v556_v46 }
 0x1c8   : > { %v576_v52 = vmax.f32 %v568_v48, 0.0  ;;  %v569_v53 = vadd.f32 %v739_v40, %v554_v49 }
 0x1c9   : > { %v754_v54 = vpack.c.bf16 %v578_v50, %v578_v50  ;;  %v579_v55 = vmax.f32 %v571_v51, 0.0 }
 0x1ca   : > { %v752_v56 = vpack.c.bf16 %v576_v52, %v576_v52  ;;  %v577_v57 = vmax.f32 %v569_v53, 0.0  ;;  %v809_v58 = vpop.f32.mrb[0].mxu1 }
 0x1cb   : > { %619 = vst.msk [vmem:[%s995_s12 + $0x8] sm:$0xf] %vm616_vm3, %v754_v54  ;;  %v755_v59 = vpack.c.bf16 %v579_v55, %v579_v55  ;;  %v559_v60 = vmul.f32 %v809_v58, %v738_v38  ;;  %v531_v61 = vpop.f32.mrb[1].mxu1 }
 0x1cc   : > { %617 = vst.msk [vmem:[%s995_s12] sm:$0xf] %vm616_vm3, %v752_v56  ;;  %v753_v62 = vpack.c.bf16 %v577_v57, %v577_v57  ;;  %v557_v63 = vmul.f32 %v738_v38, %v531_v61  ;;  %v810_v0 = vpop.f32.mrb[2].mxu1 }
 0x1cd   : > { %620 = vst.msk [vmem:[%s995_s12 + $0xc] sm:$0xf] %vm616_vm3, %v755_v59  ;;  %v574_v1 = vadd.f32 %v739_v40, %v559_v60  ;;  %v560_v2 = vmul.f32 %v810_v0, %v738_v38  ;;  %v534_v3 = vpop.f32.mrb[3].mxu1 }
 0x1ce   : > { %618 = vst.msk [vmem:[%s995_s12 + $0x4] sm:$0xf] %vm616_vm3, %v753_v62  ;;  %v572_v4 = vadd.f32 %v739_v40, %v557_v63  ;;  %v558_v5 = vmul.f32 %v738_v38, %v534_v3 }
 0x1cf   : > { %v582_v6 = vmax.f32 %v574_v1, 0.0  ;;  %v575_v7 = vadd.f32 %v739_v40, %v560_v2 }
 0x1d0   : > { %v580_v8 = vmax.f32 %v572_v4, 0.0  ;;  %v573_v9 = vadd.f32 %v739_v40, %v558_v5 }
 0x1d1   : > { %v758_v10 = vpack.c.bf16 %v582_v6, %v582_v6  ;;  %v583_v11 = vmax.f32 %v575_v7, 0.0 }
 0x1d2   : > { %v756_v12 = vpack.c.bf16 %v580_v8, %v580_v8  ;;  %v581_v13 = vmax.f32 %v573_v9, 0.0 }
 0x1d3   : > { %623 = vst.msk [vmem:[%s995_s12 + $0x18] sm:$0xf] %vm616_vm3, %v758_v10  ;;  %v759_v14 = vpack.c.bf16 %v583_v11, %v583_v11 }
 0x1d4   : > { %621 = vst.msk [vmem:[%s995_s12 + $0x10] sm:$0xf] %vm616_vm3, %v756_v12  ;;  %v757_v15 = vpack.c.bf16 %v581_v13, %v581_v13 }
 0x1d5   : > { %624 = vst.msk [vmem:[%s995_s12 + $0x1c] sm:$0xf] %vm616_vm3, %v759_v14 }
 0x1d6   : > { %622 = vst.msk [vmem:[%s995_s12 + $0x14] sm:$0xf] %vm616_vm3, %v757_v15 }
 0x1d7 PF: > { %s16_s23 = sadd.s32 1, %s886_s23   ;;  %s1029_s21 = smov %s882_s22 }
 0x1d8   : > { %p13_p5 = scmp.ge.s32.totalorder %s16_s23, 4   ;;  %s1030_s22 = smov %s1032_s24 }
 0x1da   :  { %15 = sbr.rel (!%p13_p5) target bundleno = 2 (0x2), region = 74 }

// kernel: maniqa_forward.27
= control target key start
LH: loop header
LB: loop body
LE: loop exit
PB: predicated region body
PF: predicated region fallthrough
CT: control target
= control target key end

     0   :  { %vm19_vm0 = vcmask 517120   ;;  %v498_v0 = vmov 0.0   ;;  %v499_v2 = vmov -inf   ;;  %vm500_vm1 = vmmov 0   ;;  %s675_s1 = inlined_call_operand.vmem [shape: bf16[64,4], index: 1, kind: input, shape index: {}]   ;;  %s676_s0 = inlined_call_operand.vmem [shape: bf16[2,64,64], index: 0, kind: input, shape index: {}]   ;;  %s677_s2 = inlined_call_operand.vmem [shape: bf16[4,64], index: 2, kind: input, shape index: {}]   ;;  %s678_s3 = inlined_call_operand.vmem [shape: f32[2,64], index: 3, kind: output, shape index: {}]  }
   0x1   :  { %462 = vmatprep.subr.bf16.mxu1 %v498_v0  ;;  %v490_v1 = vld [vmem:[%s675_s1] sm:$0xff]   ;;  %450 = vmatprep.subr.bf16.mxu0 %v498_v0  ;;  %21 = vst.msk [vmem:[#allocation3] sm:$0x3] %vm19_vm0, %v499_v2  ;;  %20 = vst.msk [vmem:[#allocation2] sm:$0x3] %vm19_vm0, %v498_v0  ;;  %v491_v3 = vld [vmem:[%s675_s1 + $0x8] sm:$0xff]  }
   0x2   :  { %470 = vmatprep.mubr.msk.bf16.mxu1 %vm500_vm1, %v498_v0  ;;  %458 = vmatprep.mubr.msk.bf16.mxu0 %vm500_vm1, %v498_v0  ;;  %v398_v4 = vld [vmem:[%s676_s0] sm:$0xff]   ;;  %v544_v5 = vld [vmem:[%s676_s0 + $0x8] sm:$0xff]   ;;  %v549_v6 = vld [vmem:[%s676_s0 + $0x10] sm:$0xff]   ;;  %vm55_vm2 = vcmask 523264   ;;  %vm100_vm3 = vcmask 1041409   ;;  %vm290_vm4 = vcmask 1041408  }
   0x3   :  { %463 = vmatpush3.bf16.msra.mxu1 %v490_v1  ;;  %451 = vmatpush3.bf16.msra.mxu0 %v490_v1  ;;  %v399_v7 = vunpack.c.l.bf16 %v398_v4  ;;  %v400_v8 = vunpack.c.h.bf16 %v398_v4  ;;  %v403_v9 = vunpack.c.l.bf16 %v544_v5  ;;  %v404_v10 = vunpack.c.h.bf16 %v544_v5  ;;  %v556_v11 = vld [vmem:[%s676_s0 + $0x18] sm:$0xff]   ;;  %v432_v12 = vld [vmem:[%s676_s0 + $0x20] sm:$0xff]   ;;  %v564_v13 = vld [vmem:[%s676_s0 + $0x28] sm:$0xff]  }
   0x4   :  { %464 = vmatprep.subr.bf16.mxu1 %v498_v0  ;;  %452 = vmatprep.subr.bf16.mxu0 %v498_v0  ;;  %v492_v14 = vld [vmem:[%s675_s1 + $0x10] sm:$0xff]   ;;  %v407_v15 = vunpack.c.l.bf16 %v549_v6  ;;  %v408_v16 = vunpack.c.h.bf16 %v549_v6  ;;  %v411_v17 = vunpack.c.l.bf16 %v556_v11  ;;  %v412_v18 = vunpack.c.h.bf16 %v556_v11  ;;  %v581_v20 = vld [vmem:[%s676_s0 + $0x38] sm:$0xff]  }
   0x5   :  { %v576_v19 = vld [vmem:[%s676_s0 + $0x30] sm:$0xff]   ;;  %v415_v21 = vunpack.c.l.bf16 %v432_v12  ;;  %v416_v22 = vunpack.c.h.bf16 %v432_v12  ;;  %v419_v23 = vunpack.c.l.bf16 %v564_v13  ;;  %v420_v24 = vunpack.c.h.bf16 %v564_v13  ;;  %v493_v33 = vld [vmem:[%s675_s1 + $0x18] sm:$0xff]  }
   0x6   :  { %v423_v25 = vunpack.c.l.bf16 %v576_v19  ;;  %v424_v26 = vunpack.c.h.bf16 %v576_v19  ;;  %v427_v27 = vunpack.c.l.bf16 %v581_v20  ;;  %v428_v28 = vunpack.c.h.bf16 %v581_v20 }
   0x7   :  { %465 = vmatpush3.bf16.msra.mxu1 %v491_v3  ;;  %453 = vmatpush3.bf16.msra.mxu0 %v491_v3  ;;  %v56_v29 = vsel %vm55_vm2, %v399_v7, 0.0  ;;  %v57_v30 = vsel %vm55_vm2, %v400_v8, 0.0  ;;  %v59_v31 = vsel %vm55_vm2, %v403_v9, 0.0  ;;  %v77_v32 = vsel %vm55_vm2, %v415_v21, 0.0 }
   0x8   :  { %466 = vmatprep.subr.bf16.mxu1 %v498_v0  ;;  %454 = vmatprep.subr.bf16.mxu0 %v498_v0  ;;  %v58_v34 = vadd.f32 %v57_v30, %v56_v29  ;;  %v78_v35 = vsel %vm55_vm2, %v416_v22, 0.0  ;;  %v80_v36 = vsel %vm55_vm2, %v419_v23, 0.0  ;;  %v107_v37 = vsel %vm55_vm2, %v399_v7, -inf }
   0x9   :  { %v79_v38 = vadd.f32 %v78_v35, %v77_v32  ;;  %v108_v39 = vsel %vm55_vm2, %v400_v8, -inf  ;;  %v109_v40 = vsel %vm55_vm2, %v403_v9, -inf  ;;  %v111_v41 = vsel %vm55_vm2, %v404_v10, -inf }
   0xa   :  { %v110_v42 = vmax.f32 %v107_v37, %v109_v40  ;;  %v112_v43 = vmax.f32 %v108_v39, %v111_v41  ;;  %v113_v44 = vsel %vm55_vm2, %v407_v15, -inf  ;;  %v115_v45 = vsel %vm55_vm2, %v408_v16, -inf }
   0xb   :  { %467 = vmatpush3.bf16.msra.mxu1 %v492_v14  ;;  %455 = vmatpush3.bf16.msra.mxu0 %v492_v14  ;;  %v117_v46 = vsel %vm55_vm2, %v411_v17, -inf  ;;  %v119_v47 = vsel %vm55_vm2, %v412_v18, -inf  ;;  %v128_v48 = vsel %vm55_vm2, %v415_v21, -inf  ;;  %v129_v49 = vsel %vm55_vm2, %v416_v22, -inf }
   0xc   :  { %468 = vmatprep.subr.bf16.mxu1 %v498_v0  ;;  %456 = vmatprep.subr.bf16.mxu0 %v498_v0  ;;  %v114_v50 = vmax.f32 %v110_v42, %v113_v44  ;;  %v116_v51 = vmax.f32 %v112_v43, %v115_v45  ;;  %v130_v52 = vsel %vm55_vm2, %v419_v23, -inf  ;;  %v132_v53 = vsel %vm55_vm2, %v420_v24, -inf  ;;  %v106_v44 = vld [vmem:[#allocation3] sm:$0x3] }
   0xd   :  { %v131_v54 = vmax.f32 %v128_v48, %v130_v52  ;;  %v133_v55 = vmax.f32 %v129_v49, %v132_v53  ;;  %v134_v56 = vsel %vm55_vm2, %v423_v25, -inf  ;;  %v136_v57 = vsel %vm55_vm2, %v424_v26, -inf  ;;  %v54_v53 = vld [vmem:[#allocation2] sm:$0x3] }
   0xe   :  { %v118_v58 = vmax.f32 %v114_v50, %v117_v46  ;;  %v120_v59 = vmax.f32 %v116_v51, %v119_v47  ;;  %v138_v60 = vsel %vm55_vm2, %v427_v27, -inf  ;;  %v140_v61 = vsel %vm55_vm2, %v428_v28, -inf }
   0xf   :  { %469 = vmatpush3.bf16.msra.mxu1 %v493_v33  ;;  %457 = vmatpush3.bf16.msra.mxu0 %v493_v33  ;;  %v135_v62 = vmax.f32 %v131_v54, %v134_v56  ;;  %v137_v63 = vmax.f32 %v133_v55, %v136_v57  ;;  %v60_v1 = vadd.f32 %v59_v31, %v58_v34  ;;  %v61_v2 = vsel %vm55_vm2, %v404_v10, 0.0 }
  0x10   :  { %474 = vmatprep.subr.bf16.mxu1 %v498_v0  ;;  %480 = vmatprep.subr.bf16.mxu0 %v498_v0  ;;  %v121_v3 = vmax.f32 %v118_v58, %v120_v59  ;;  %v63_v4 = vsel %vm55_vm2, %v407_v15, 0.0  ;;  %v65_v13 = vsel %vm55_vm2, %v408_v16, 0.0  ;;  %v81_v14 = vadd.f32 %v80_v36, %v79_v38 }
  0x11   :  { %v139_v7 = vmax.f32 %v135_v62, %v138_v60  ;;  %v141_v8 = vmax.f32 %v137_v63, %v140_v61  ;;  %v62_v9 = vadd.f32 %v61_v2, %v60_v1  ;;  %v82_v21 = vsel %vm55_vm2, %v420_v24, 0.0  ;;  %v284_v62 = vld [vmem:[%s677_s2] sm:$0x3] }
  0x12   :  { %v122_v12 = vrot.slane %v121_v3, 4  ;;  %v84_v5 = vsel %vm55_vm2, %v423_v25, 0.0  ;;  %v67_v10 = vsel %vm55_vm2, %v411_v17, 0.0  ;;  %v83_v15 = vadd.f32 %v82_v21, %v81_v14 }
  0x13   :  { %v142_v22 = vmax.f32 %v139_v7, %v141_v8  ;;  %v64_v23 = vadd.f32 %v63_v4, %v62_v9  ;;  %v86_v6 = vsel %vm55_vm2, %v424_v26, 0.0  ;;  %v69_v24 = vsel %vm55_vm2, %v412_v18, 0.0 }
  0x14   :  { %v123_v29 = vmax.f32 %v121_v3, %v122_v12  ;;  %v85_v32 = vadd.f32 %v84_v5, %v83_v15  ;;  %v88_v34 = vsel %vm55_vm2, %v427_v27, 0.0  ;;  %v90_v19 = vsel %vm55_vm2, %v428_v28, 0.0 }
  0x15   :  { %v143_v30 = vrot.slane %v142_v22, 4  ;;  %v66_v31 = vadd.f32 %v65_v13, %v64_v23  ;;  %v292_v63 = vsel %vm290_vm4, %v284_v62, 0  ;;  %vm286_vm5 = vcmask 31744  }
  0x16   :  { %v124_v16 = vrot.slane %v123_v29, 2  ;;  %v87_v35 = vadd.f32 %v86_v6, %v85_v32 }
  0x17   :  { %v144_v33 = vmax.f32 %v142_v22, %v143_v30  ;;  %v68_v25 = vadd.f32 %v67_v10, %v66_v31 }
  0x18   :  { %v125_v17 = vmax.f32 %v123_v29, %v124_v16  ;;  %v89_v38 = vadd.f32 %v88_v34, %v87_v35 }
  0x19   :  { %v145_v36 = vrot.slane %v144_v33, 2  ;;  %v70_v37 = vadd.f32 %v69_v24, %v68_v25 }
  0x1a   :  { %v126_v26 = vrot.slane %v125_v17, 1  ;;  %v91_v18 = vadd.f32 %v90_v19, %v89_v38 }
  0x1b   :  { %v146_v11 = vmax.f32 %v144_v33, %v145_v36  ;;  %v71_v39 = vrot.slane %v70_v37, 4 }
  0x1c   :  { %v127_v40 = vmax.f32 %v125_v17, %v126_v26  ;;  %v92_v43 = vrot.slane %v91_v18, 4 }
  0x1d   :  { %v147_v41 = vrot.slane %v146_v11, 1  ;;  %v72_v42 = vadd.f32 %v71_v39, %v70_v37 }
  0x1e   :  { %v93_v46 = vadd.f32 %v92_v43, %v91_v18 }
  0x1f   :  { %v148_v27 = vmax.f32 %v146_v11, %v147_v41  ;;  %v73_v45 = vrot.slane %v72_v42, 2 }
  0x20   :  { %v94_v49 = vrot.slane %v93_v46, 2 }
  0x21   :  { %v151_v47 = vsel %vm100_vm3, %v148_v27, %v127_v40  ;;  %v74_v48 = vadd.f32 %v73_v45, %v72_v42 }
  0x22   :  { %v153_v20 = vmax.f32 %v106_v44, %v151_v47  ;;  %v95_v50 = vadd.f32 %v94_v49, %v93_v46 }
  0x23   :  { %v75_v28 = vrot.slane %v74_v48, 1 }
  0x24   :  { %154 = vst.msk [vmem:[#allocation3] sm:$0x3] %vm19_vm0, %v153_v20  ;;  %v96_v52 = vrot.slane %v95_v50, 1 }
  0x25   :  { %v76_v51 = vadd.f32 %v75_v28, %v74_v48 }
  0x26   :  { %v97_v54 = vadd.f32 %v96_v52, %v95_v50 }
  0x28   :  { %v101_v55 = vsel %vm100_vm3, %v97_v54, %v76_v51 }
  0x29   :  { %v103_v57 = vadd.f32 %v101_v55, %v54_v53 }
  0x2b   :  { %v161_v56 = vld [vmem:[#allocation3] sm:$0x3]  ;;  %105 = vst.msk [vmem:[#allocation2] sm:$0x3] %vm19_vm0, %v103_v57 }
  0x2c   :  { %v162_v58 = vpack.c.bf16 %v161_v56, %v161_v56 }
  0x2e   :  { %471 = vmatmul.mubr.msk.bf16.vlgmr.msra.gmra.mrb[0].mxu1 %vm55_vm2, %v162_v58 }
  0x2f   :  { %476 = vmatprep.mubr.msk.bf16.mxu1 %vm500_vm1, %v498_v0  ;;  %475 = vmatpush3.bf16.msra.mxu1 %v292_v63 }
  0x32   :  { %v158_v59 = vld [vmem:[#allocation2] sm:$0x3] }
  0x33   :  { %v159_v60 = vmul.f32 0.015625, %v158_v59 }
  0x35   :  { %v160_v61 = vpack.c.bf16 %v159_v60, %v159_v60 }
  0x37   :  { %459 = vmatmul.mubr.msk.bf16.vlgmr.msra.gmra.mrb[0].mxu0 %vm55_vm2, %v160_v61 }
  0x38   :  { %482 = vmatprep.mubr.msk.bf16.mxu0 %vm500_vm1, %v498_v0  ;;  %481 = vmatpush3.bf16.msra.mxu0 %v292_v63 }
 0x101   :  { %v276_v1 = vpop.f32.mrb[0].mxu1 }
 0x102   :  { %v282_v2 = vmax.f32 %v276_v1, 0.0  ;;  %v472_v3 = vpop.f32.mrb[1].mxu1 }
 0x103   :  { %v279_v4 = vpop.f32.mrb[2].mxu1 }
 0x104   :  { %v285_v7 = vpack.c.bf16 %v282_v2, %v282_v2  ;;  %v473_v8 = vpop.f32.mrb[3].mxu1 }
 0x106   :  { %477 = vmatmul.mubr.msk.bf16.vlgmr.msra.gmra.mrb[4].mxu1 %vm286_vm5, %v285_v7 }
 0x10a   :  { %v232_v9 = vpop.f32.mrb[0].mxu0 }
 0x10b   :  { %v238_v12 = vmax.f32 %v232_v9, 0.0  ;;  %v460_v13 = vpop.f32.mrb[1].mxu0 }
 0x10c   :  { %v235_v0 = vpop.f32.mrb[2].mxu0 }
 0x10d   :  { %v283_v14 = vpack.c.bf16 %v238_v12, %v238_v12  ;;  %v461_v21 = vpop.f32.mrb[3].mxu0 }
 0x10f   :  { %483 = vmatmul.mubr.msk.bf16.vlgmr.msra.gmra.mrb[4].mxu0 %vm286_vm5, %v283_v14 }
 0x1d9   :  { %v328_v22 = vpop.f32.mrb[4].mxu1 }
 0x1da   :  { %v478_v23 = vpop.f32.mrb[5].mxu1 }
 0x1db   :  { %v331_v5 = vpop.f32.mrb[6].mxu1 }
 0x1dc   :  { %v479_v29 = vpop.f32.mrb[7].mxu1 }
 0x1e2   :  { %v371_v10 = vpop.f32.mrb[4].mxu0 }
 0x1e3   :  { %v372_v15 = vadd.f32 %v371_v10, %v328_v22  ;;  %v484_v30 = vpop.f32.mrb[5].mxu0 }
 0x1e4   :  { %v374_v31 = vpop.f32.mrb[6].mxu0 }
 0x1e5   :  { %v396_v6 = vmul.f32 -1.442695, %v372_v15  ;;  %v485_v16 = vpop.f32.mrb[7].mxu0 }
 0x1e7   :  { %494 = vpow2.f32 %v396_v6 }
 0x1f1   :  { %v495_v24 = vpop.eup %494 }
 0x1f2   :  { %v380_v32 = vadd.f32 1.0, %v495_v24 }
 0x1f4   :  { %496 = vrcp.f32 %v380_v32 }
 0x1fe   :  { %v497_v33 = vpop.eup %496 }
 0x1ff   :  { %383 = vst.msk [vmem:[%s678_s3] sm:$0x3] %vm19_vm0, %v497_v33 }

// kernel: maniqa_forward.28
= control target key start
LH: loop header
LB: loop body
LE: loop exit
PB: predicated region body
PF: predicated region fallthrough
CT: control target
= control target key end

     0   :  { %vm73_vm0 = vcmask 523264   ;;  %vm139_vm1 = vcmask 7168   ;;  %vm204_vm2 = vcmask 15368   ;;  %s483_s0 = inlined_call_operand.vmem [shape: bf16[2,64,64], index: 0, kind: input, shape index: {}]   ;;  %s484_s1 = inlined_call_operand.vmem [shape: f32[2,1,64], index: 1, kind: input, shape index: {}]   ;;  %s485_s2 = inlined_call_operand.vmem [shape: f32[2,64,2], index: 2, kind: output, shape index: {}]  }
   0x1   :  { %v259_v0 = vld [vmem:[%s483_s0 + $0x8] sm:$0xff]   ;;  %v225_v1 = vld [vmem:[%s484_s1] ss:$0 sm:$0xff]  ;;  %v260_v7 = vld [vmem:[%s483_s0 + $0x10] sm:$0xff]  }
   0x2   :  { %v228_v2 = vld [vmem:[%s483_s0] sm:$0xff]   ;;  %v233_v3 = vunpack.c.l.bf16 %v259_v0  ;;  %v234_v5 = vunpack.c.h.bf16 %v259_v0  ;;  %v238_v8 = vunpack.c.h.bf16 %v260_v7  ;;  %v237_v9 = vunpack.c.l.bf16 %v260_v7  ;;  %v261_v14 = vld [vmem:[%s483_s0 + $0x18] sm:$0xff]   ;;  %v263_v31 = vld [vmem:[%s483_s0 + $0x28] sm:$0xff]  }
   0x3   :  { %v229_v4 = vunpack.c.l.bf16 %v228_v2  ;;  %v230_v6 = vunpack.c.h.bf16 %v228_v2  ;;  %v242_v17 = vunpack.c.h.bf16 %v261_v14  ;;  %v241_v18 = vunpack.c.l.bf16 %v261_v14  ;;  %v262_v23 = vld [vmem:[%s483_s0 + $0x20] sm:$0xff]   ;;  %v264_v38 = vld [vmem:[%s483_s0 + $0x30] sm:$0xff]   ;;  %v265_v45 = vld [vmem:[%s483_s0 + $0x38] sm:$0xff]  }
   0x4   :  { %v293_v10 = vmul.f32 %v233_v3, %v225_v1  ;;  %v297_v12 = vmul.f32 %v234_v5, %v225_v1  ;;  %v62_v21 = vmul.f32 %v238_v8, %v225_v1  ;;  %v61_v22 = vmul.f32 %v237_v9, %v225_v1  ;;  %v226_v30 = vld [vmem:[%s484_s1 + $0x1] ss:$0 sm:$0xff] }
   0x5   :  { %v295_v11 = vmul.f32 %v229_v4, %v225_v1  ;;  %v58_v13 = vmul.f32 %v230_v6, %v225_v1  ;;  %v64_v24 = vmul.f32 %v242_v17, %v225_v1  ;;  %v63_v25 = vmul.f32 %v241_v18, %v225_v1 }
   0x6   :  { %v80_v15 = vsel %vm73_vm0, %v293_v10, 0.0  ;;  %v83_v19 = vsel %vm73_vm0, %v297_v12, 0.0  ;;  %v89_v26 = vsel %vm73_vm0, %v62_v21, 0.0  ;;  %v86_v27 = vsel %vm73_vm0, %v61_v22, 0.0 }
   0x7   :  { %v74_v16 = vsel %vm73_vm0, %v295_v11, 0.0  ;;  %81 = vadd.xlane.f32.xlu1 %v80_v15  ;;  %v77_v20 = vsel %vm73_vm0, %v58_v13, 0.0  ;;  %v246_v28 = vunpack.c.h.bf16 %v262_v23  ;;  %v245_v29 = vunpack.c.l.bf16 %v262_v23 }
   0x8   :  { %75 = vadd.xlane.f32.xlu0 %v74_v16  ;;  %v95_v32 = vsel %vm73_vm0, %v64_v24, 0.0  ;;  %v92_v33 = vsel %vm73_vm0, %v63_v25, 0.0  ;;  %v250_v36 = vunpack.c.h.bf16 %v263_v31  ;;  %v249_v37 = vunpack.c.l.bf16 %v263_v31 }
   0x9   :  { %v66_v34 = vmul.f32 %v246_v28, %v226_v30  ;;  %v65_v35 = vmul.f32 %v245_v29, %v226_v30  ;;  %v254_v39 = vunpack.c.h.bf16 %v264_v38  ;;  %v253_v40 = vunpack.c.l.bf16 %v264_v38 }
   0xa   :  { %v68_v43 = vmul.f32 %v250_v36, %v226_v30  ;;  %v67_v44 = vmul.f32 %v249_v37, %v226_v30  ;;  %v258_v46 = vunpack.c.h.bf16 %v265_v45  ;;  %v257_v47 = vunpack.c.l.bf16 %v265_v45 }
   0xb   :  { %84 = vadd.xlane.f32.xlu1 %v83_v19  ;;  %v101_v41 = vsel %vm73_vm0, %v66_v34, 0.0  ;;  %v98_v42 = vsel %vm73_vm0, %v65_v35, 0.0  ;;  %v70_v50 = vmul.f32 %v254_v39, %v226_v30  ;;  %v69_v51 = vmul.f32 %v253_v40, %v226_v30 }
   0xc   :  { %78 = vadd.xlane.f32.xlu0 %v77_v20  ;;  %v107_v48 = vsel %vm73_vm0, %v68_v43, 0.0  ;;  %v104_v49 = vsel %vm73_vm0, %v67_v44, 0.0  ;;  %v72_v54 = vmul.f32 %v258_v46, %v226_v30  ;;  %v71_v55 = vmul.f32 %v257_v47, %v226_v30 }
   0xd   :  { %v113_v52 = vsel %vm73_vm0, %v70_v50, 0.0  ;;  %v110_v53 = vsel %vm73_vm0, %v69_v51, 0.0  ;;  %v159_v58 = vsel %vm73_vm0, %v58_v13, -inf  ;;  %v156_v59 = vsel %vm73_vm0, %v295_v11, -inf }
   0xe   :  { %v119_v56 = vsel %vm73_vm0, %v72_v54, 0.0  ;;  %v116_v57 = vsel %vm73_vm0, %v71_v55, 0.0  ;;  %v165_v60 = vsel %vm73_vm0, %v297_v12, -inf  ;;  %v162_v61 = vsel %vm73_vm0, %v293_v10, -inf }
   0xf   :  { %90 = vadd.xlane.f32.xlu1 %v89_v26  ;;  %v171_v62 = vsel %vm73_vm0, %v62_v21, -inf  ;;  %v168_v63 = vsel %vm73_vm0, %v61_v22, -inf  ;;  %v177_v0 = vsel %vm73_vm0, %v64_v24, -inf  ;;  %v174_v1 = vsel %vm73_vm0, %v63_v25, -inf }
  0x10   :  { %87 = vadd.xlane.f32.xlu0 %v86_v27  ;;  %v183_v2 = vsel %vm73_vm0, %v66_v34, -inf  ;;  %v180_v3 = vsel %vm73_vm0, %v65_v35, -inf  ;;  %v189_v4 = vsel %vm73_vm0, %v68_v43, -inf  ;;  %v186_v5 = vsel %vm73_vm0, %v67_v44, -inf }
  0x11   :  { %v195_v6 = vsel %vm73_vm0, %v70_v50, -inf  ;;  %v192_v7 = vsel %vm73_vm0, %v69_v51, -inf  ;;  %v201_v8 = vsel %vm73_vm0, %v72_v54, -inf  ;;  %v198_v9 = vsel %vm73_vm0, %v71_v55, -inf }
  0x13   :  { %96 = vadd.xlane.f32.xlu1 %v95_v32 }
  0x14   :  { %93 = vadd.xlane.f32.xlu0 %v92_v33 }
  0x17   :  { %102 = vadd.xlane.f32.xlu1 %v101_v41 }
  0x18   :  { %99 = vadd.xlane.f32.xlu0 %v98_v42 }
  0x1b   :  { %108 = vadd.xlane.f32.xlu1 %v107_v48 }
  0x1c   :  { %105 = vadd.xlane.f32.xlu0 %v104_v49 }
  0x1f   :  { %114 = vadd.xlane.f32.xlu1 %v113_v52 }
  0x20   :  { %111 = vadd.xlane.f32.xlu0 %v110_v53 }
  0x23   :  { %120 = vadd.xlane.f32.xlu1 %v119_v56 }
  0x24   :  { %117 = vadd.xlane.f32.xlu0 %v116_v57 }
  0x27   :  { %160 = vmax.xlane.f32.xlu1 %v159_v58 }
  0x28   :  { %157 = vmax.xlane.f32.xlu0 %v156_v59 }
  0x2b   :  { %166 = vmax.xlane.f32.xlu1 %v165_v60 }
  0x2c   :  { %163 = vmax.xlane.f32.xlu0 %v162_v61 }
  0x2f   :  { %172 = vmax.xlane.f32.xlu1 %v171_v62 }
  0x30   :  { %169 = vmax.xlane.f32.xlu0 %v168_v63 }
  0x33   :  { %178 = vmax.xlane.f32.xlu1 %v177_v0 }
  0x34   :  { %175 = vmax.xlane.f32.xlu0 %v174_v1 }
  0x37   :  { %184 = vmax.xlane.f32.xlu1 %v183_v2 }
  0x38   :  { %181 = vmax.xlane.f32.xlu0 %v180_v3 }
  0x3b   :  { %190 = vmax.xlane.f32.xlu1 %v189_v4 }
  0x3c   :  { %187 = vmax.xlane.f32.xlu0 %v186_v5 }
  0x3f   :  { %196 = vmax.xlane.f32.xlu1 %v195_v6 }
  0x40   :  { %193 = vmax.xlane.f32.xlu0 %v192_v7 }
  0x43   :  { %202 = vmax.xlane.f32.xlu1 %v201_v8 }
  0x44   :  { %199 = vmax.xlane.f32.xlu0 %v198_v9 }
  0x94   :  { %v82_v10 = vpop.xlane.xlu1 %81 }
  0x95   :  { %v76_v11 = vpop.xlane.xlu0 %75  ;;  %v125_v12 = vmul.f32 0.015625, %v82_v10 }
  0x96   :  { %v123_v13 = vmul.f32 0.015625, %v76_v11 }
  0x97   :  { %142 = vst.msk [vmem:[%s485_s2 + $0x10] sm:$0xff] %vm139_vm1, %v125_v12 }
  0x98   :  { %140 = vst.msk [vmem:[%s485_s2] sm:$0xff] %vm139_vm1, %v123_v13  ;;  %v85_v14 = vpop.xlane.xlu1 %84 }
  0x99   :  { %v79_v15 = vpop.xlane.xlu0 %78  ;;  %v126_v16 = vmul.f32 0.015625, %v85_v14 }
  0x9a   :  { %v124_v17 = vmul.f32 0.015625, %v79_v15 }
  0x9b   :  { %143 = vst.msk [vmem:[%s485_s2 + $0x18] sm:$0xff] %vm139_vm1, %v126_v16 }
  0x9c   :  { %141 = vst.msk [vmem:[%s485_s2 + $0x8] sm:$0xff] %vm139_vm1, %v124_v17  ;;  %v91_v18 = vpop.xlane.xlu1 %90 }
  0x9d   :  { %v88_v19 = vpop.xlane.xlu0 %87  ;;  %v128_v20 = vmul.f32 0.015625, %v91_v18 }
  0x9e   :  { %v127_v21 = vmul.f32 0.015625, %v88_v19 }
  0x9f   :  { %145 = vst.msk [vmem:[%s485_s2 + $0x28] sm:$0xff] %vm139_vm1, %v128_v20 }
  0xa0   :  { %144 = vst.msk [vmem:[%s485_s2 + $0x20] sm:$0xff] %vm139_vm1, %v127_v21  ;;  %v97_v22 = vpop.xlane.xlu1 %96 }
  0xa1   :  { %v94_v23 = vpop.xlane.xlu0 %93  ;;  %v130_v24 = vmul.f32 0.015625, %v97_v22 }
  0xa2   :  { %v129_v25 = vmul.f32 0.015625, %v94_v23 }
  0xa3   :  { %147 = vst.msk [vmem:[%s485_s2 + $0x38] sm:$0xff] %vm139_vm1, %v130_v24 }
  0xa4   :  { %146 = vst.msk [vmem:[%s485_s2 + $0x30] sm:$0xff] %vm139_vm1, %v129_v25  ;;  %v103_v26 = vpop.xlane.xlu1 %102 }
  0xa5   :  { %v100_v27 = vpop.xlane.xlu0 %99  ;;  %v132_v28 = vmul.f32 0.015625, %v103_v26 }
  0xa6   :  { %v131_v29 = vmul.f32 0.015625, %v100_v27 }
  0xa7   :  { %149 = vst.msk [vmem:[%s485_s2 + $0x48] sm:$0xff] %vm139_vm1, %v132_v28 }
  0xa8   :  { %148 = vst.msk [vmem:[%s485_s2 + $0x40] sm:$0xff] %vm139_vm1, %v131_v29  ;;  %v109_v30 = vpop.xlane.xlu1 %108 }
  0xa9   :  { %v106_v31 = vpop.xlane.xlu0 %105  ;;  %v134_v32 = vmul.f32 0.015625, %v109_v30 }
  0xaa   :  { %v133_v33 = vmul.f32 0.015625, %v106_v31 }
  0xab   :  { %151 = vst.msk [vmem:[%s485_s2 + $0x58] sm:$0xff] %vm139_vm1, %v134_v32 }
  0xac   :  { %150 = vst.msk [vmem:[%s485_s2 + $0x50] sm:$0xff] %vm139_vm1, %v133_v33  ;;  %v115_v34 = vpop.xlane.xlu1 %114 }
  0xad   :  { %v112_v35 = vpop.xlane.xlu0 %111  ;;  %v136_v36 = vmul.f32 0.015625, %v115_v34 }
  0xae   :  { %v135_v37 = vmul.f32 0.015625, %v112_v35 }
  0xaf   :  { %153 = vst.msk [vmem:[%s485_s2 + $0x68] sm:$0xff] %vm139_vm1, %v136_v36 }
  0xb0   :  { %152 = vst.msk [vmem:[%s485_s2 + $0x60] sm:$0xff] %vm139_vm1, %v135_v37  ;;  %v121_v38 = vpop.xlane.xlu1 %120 }
  0xb1   :  { %v118_v39 = vpop.xlane.xlu0 %117  ;;  %v138_v40 = vmul.f32 0.015625, %v121_v38 }
  0xb2   :  { %v137_v41 = vmul.f32 0.015625, %v118_v39 }
  0xb3   :  { %155 = vst.msk [vmem:[%s485_s2 + $0x78] sm:$0xff] %vm139_vm1, %v138_v40 }
  0xb4   :  { %154 = vst.msk [vmem:[%s485_s2 + $0x70] sm:$0xff] %vm139_vm1, %v137_v41  ;;  %v161_v42 = vpop.xlane.xlu1 %160 }
  0xb5   :  { %v158_v43 = vpop.xlane.xlu0 %157  ;;  %206 = vst.msk [vmem:[%s485_s2 + $0x8] sm:$0xff] %vm204_vm2, %v161_v42 }
  0xb6   :  { %205 = vst.msk [vmem:[%s485_s2] sm:$0xff] %vm204_vm2, %v158_v43 }
  0xb8   :  { %v167_v44 = vpop.xlane.xlu1 %166 }
  0xb9   :  { %v164_v45 = vpop.xlane.xlu0 %163  ;;  %208 = vst.msk [vmem:[%s485_s2 + $0x18] sm:$0xff] %vm204_vm2, %v167_v44 }
  0xba   :  { %207 = vst.msk [vmem:[%s485_s2 + $0x10] sm:$0xff] %vm204_vm2, %v164_v45 }
  0xbc   :  { %v173_v46 = vpop.xlane.xlu1 %172 }
  0xbd   :  { %v170_v47 = vpop.xlane.xlu0 %169  ;;  %210 = vst.msk [vmem:[%s485_s2 + $0x28] sm:$0xff] %vm204_vm2, %v173_v46 }
  0xbe   :  { %209 = vst.msk [vmem:[%s485_s2 + $0x20] sm:$0xff] %vm204_vm2, %v170_v47 }
  0xc0   :  { %v179_v48 = vpop.xlane.xlu1 %178 }
  0xc1   :  { %v176_v49 = vpop.xlane.xlu0 %175  ;;  %212 = vst.msk [vmem:[%s485_s2 + $0x38] sm:$0xff] %vm204_vm2, %v179_v48 }
  0xc2   :  { %211 = vst.msk [vmem:[%s485_s2 + $0x30] sm:$0xff] %vm204_vm2, %v176_v49 }
  0xc4   :  { %v185_v50 = vpop.xlane.xlu1 %184 }
  0xc5   :  { %v182_v51 = vpop.xlane.xlu0 %181  ;;  %214 = vst.msk [vmem:[%s485_s2 + $0x48] sm:$0xff] %vm204_vm2, %v185_v50 }
  0xc6   :  { %213 = vst.msk [vmem:[%s485_s2 + $0x40] sm:$0xff] %vm204_vm2, %v182_v51 }
  0xc8   :  { %v191_v52 = vpop.xlane.xlu1 %190 }
  0xc9   :  { %v188_v53 = vpop.xlane.xlu0 %187  ;;  %216 = vst.msk [vmem:[%s485_s2 + $0x58] sm:$0xff] %vm204_vm2, %v191_v52 }
  0xca   :  { %215 = vst.msk [vmem:[%s485_s2 + $0x50] sm:$0xff] %vm204_vm2, %v188_v53 }
  0xcc   :  { %v197_v54 = vpop.xlane.xlu1 %196 }
  0xcd   :  { %v194_v55 = vpop.xlane.xlu0 %193  ;;  %218 = vst.msk [vmem:[%s485_s2 + $0x68] sm:$0xff] %vm204_vm2, %v197_v54 }
  0xce   :  { %217 = vst.msk [vmem:[%s485_s2 + $0x60] sm:$0xff] %vm204_vm2, %v194_v55 }
  0xd0   :  { %v203_v56 = vpop.xlane.xlu1 %202 }
  0xd1   :  { %v200_v57 = vpop.xlane.xlu0 %199  ;;  %220 = vst.msk [vmem:[%s485_s2 + $0x78] sm:$0xff] %vm204_vm2, %v203_v56 }
  0xd2   :  { %219 = vst.msk [vmem:[%s485_s2 + $0x70] sm:$0xff] %vm204_vm2, %v200_v57 }

// kernel: maniqa_forward.29
= control target key start
LH: loop header
LB: loop body
LE: loop exit
PB: predicated region body
PF: predicated region fallthrough
CT: control target
= control target key end

     0   :  { %v240_v0 = vmov 0   ;;  %vm141_vm0 = vcmask 523264   ;;  %vm165_vm1 = vcmask 517120   ;;  %vm219_vm2 = vcmask 1041409   ;;  %s403_s1 = inlined_call_operand.vmem [shape: f32[1,98,1], index: 1, kind: input, shape index: {}]   ;;  %s404_s0 = inlined_call_operand.vmem [shape: f32[2,98,64], index: 0, kind: input, shape index: {}]   ;;  %s405_s2 = inlined_call_operand.vmem [shape: f32[2,64], index: 2, kind: output, shape index: {}]  }
   0x1   :  { %231 = vset.pattern.permute.xlu1 %v240_v0  ;;  %230 = vset.pattern.permute.xlu0 %v240_v0  ;;  %v39_v1 = vld [vmem:[%s403_s1 + $0x10] sm:$0xff]  ;;  %v37_v2 = vld [vmem:[%s403_s1] sm:$0xff]  ;;  %v40_v3 = vld [vmem:[%s403_s1 + $0x18] sm:$0xff] }
   0x2   :  { %62 = vperm.xlu1 %231, %v39_v1   ;;  %52 = vperm.xlu0 %230, %v37_v2   ;;  %v38_v4 = vld [vmem:[%s403_s1 + $0x8] sm:$0xff]  ;;  %v41_v6 = vld [vmem:[%s403_s1 + $0x20] sm:$0xff]  ;;  %v44_v7 = vld [vmem:[%s403_s1 + $0x38] sm:$0xff] }
   0x3   :  { %v42_v5 = vld [vmem:[%s403_s1 + $0x28] sm:$0xff]  ;;  %v43_v8 = vld [vmem:[%s403_s1 + $0x30] sm:$0xff]  ;;  %v45_v10 = vld [vmem:[%s403_s1 + $0x40] sm:$0xff] }
   0x4   :  { %v46_v9 = vld [vmem:[%s403_s1 + $0x48] sm:$0xff]  ;;  %v48_v11 = vld [vmem:[%s403_s1 + $0x58] sm:$0xff]  ;;  %v47_v12 = vld [vmem:[%s403_s1 + $0x50] sm:$0xff] }
   0x5   :  { %v49_v13 = vld [vmem:[%s403_s1 + $0x60] sm:$0x3]  ;;  %v24_v15 = vld [vmem:[%s404_s0 + $0x68] sm:$0xff]  ;;  %v13_v18 = vld [vmem:[%s404_s0 + $0x10] sm:$0xff] }
   0x6   :  { %67 = vperm.xlu1 %231, %v40_v3   ;;  %57 = vperm.xlu0 %230, %v38_v4   ;;  %v11_v14 = vld [vmem:[%s404_s0] sm:$0xff]  ;;  %v26_v19 = vld [vmem:[%s404_s0 + $0x78] sm:$0xff]  ;;  %v12_v22 = vld [vmem:[%s404_s0 + $0x8] sm:$0xff] }
   0x7   :  { %v25_v23 = vld [vmem:[%s404_s0 + $0x70] sm:$0xff]  ;;  %v14_v25 = vld [vmem:[%s404_s0 + $0x18] sm:$0xff]  ;;  %v27_v26 = vld [vmem:[%s404_s0 + $0x80] sm:$0xff] }
   0x8   :  { %v15_v34 = vld [vmem:[%s404_s0 + $0x20] sm:$0xff]  ;;  %v28_v35 = vld [vmem:[%s404_s0 + $0x88] sm:$0xff]  ;;  %v29_v44 = vld [vmem:[%s404_s0 + $0x90] sm:$0xff] }
   0x9   :  { %v16_v43 = vld [vmem:[%s404_s0 + $0x28] sm:$0xff]  ;;  %v17_v52 = vld [vmem:[%s404_s0 + $0x30] sm:$0xff]  ;;  %v30_v53 = vld [vmem:[%s404_s0 + $0x98] sm:$0xff] }
   0xa   :  { %77 = vperm.xlu1 %231, %v42_v5   ;;  %72 = vperm.xlu0 %230, %v41_v6   ;;  %v18_v61 = vld [vmem:[%s404_s0 + $0x38] sm:$0xff]  ;;  %v31_v62 = vld [vmem:[%s404_s0 + $0xa0] sm:$0xff] }
   0xb   :  { %v19_v6 = vld [vmem:[%s404_s0 + $0x40] sm:$0xff] }
   0xe   :  { %87 = vperm.xlu1 %231, %v44_v7   ;;  %82 = vperm.xlu0 %230, %v43_v8   ;;  %v32_v7 = vld [vmem:[%s404_s0 + $0xa8] sm:$0xff] }
  0x12   :  { %97 = vperm.xlu1 %231, %v46_v9   ;;  %92 = vperm.xlu0 %230, %v45_v10  }
  0x16   :  { %107 = vperm.xlu1 %231, %v48_v11   ;;  %102 = vperm.xlu0 %230, %v47_v12  }
  0x1a   :  { %112 = vperm.xlu0 %230, %v49_v13  }
  0x81   :  { %v63_v16 = vpop.permute.xlu1 %62  ;;  %v53_v17 = vpop.permute.xlu0 %52 }
  0x82   :  { %v115_v20 = vmul.f32 %v53_v17, %v11_v14  ;;  %v128_v21 = vmul.f32 %v53_v17, %v24_v15  ;;  %v117_v28 = vmul.f32 %v63_v16, %v13_v18  ;;  %v130_v29 = vmul.f32 %v63_v16, %v26_v19  ;;  %v20_v15 = vld [vmem:[%s404_s0 + $0x48] sm:$0xff]  ;;  %v33_v16 = vld [vmem:[%s404_s0 + $0xb0] sm:$0xff] }
  0x84   :  { %v142_v32 = vsel %vm141_vm0, %v115_v20, 0.0  ;;  %v174_v33 = vsel %vm141_vm0, %v128_v21, 0.0  ;;  %v145_v46 = vsel %vm141_vm0, %v117_v28, 0.0  ;;  %v177_v47 = vsel %vm141_vm0, %v130_v29, 0.0 }
  0x85   :  { %v68_v24 = vpop.permute.xlu1 %67  ;;  %v58_v27 = vpop.permute.xlu0 %57 }
  0x86   :  { %v116_v30 = vmul.f32 %v58_v27, %v12_v22  ;;  %v129_v31 = vmul.f32 %v58_v27, %v25_v23  ;;  %v118_v36 = vmul.f32 %v68_v24, %v14_v25  ;;  %v131_v37 = vmul.f32 %v68_v24, %v27_v26  ;;  %v21_v24 = vld [vmem:[%s404_s0 + $0x50] sm:$0xff]  ;;  %v34_v25 = vld [vmem:[%s404_s0 + $0xb8] sm:$0xff] }
  0x88   :  { %v143_v38 = vsel %vm141_vm0, %v116_v30, 0.0  ;;  %v175_v39 = vsel %vm141_vm0, %v129_v31, 0.0  ;;  %v147_v54 = vsel %vm141_vm0, %v118_v36, 0.0  ;;  %v179_v55 = vsel %vm141_vm0, %v131_v37, 0.0 }
  0x89   :  { %v144_v40 = vadd.f32 %v143_v38, %v142_v32  ;;  %v176_v41 = vadd.f32 %v175_v39, %v174_v33  ;;  %v78_v42 = vpop.permute.xlu1 %77  ;;  %v73_v45 = vpop.permute.xlu0 %72  ;;  %v22_v33 = vld [vmem:[%s404_s0 + $0x58] sm:$0xff] }
  0x8a   :  { %v119_v48 = vmul.f32 %v73_v45, %v15_v34  ;;  %v132_v49 = vmul.f32 %v73_v45, %v28_v35  ;;  %v120_v56 = vmul.f32 %v78_v42, %v16_v43  ;;  %v133_v57 = vmul.f32 %v78_v42, %v29_v44  ;;  %v35_v34 = vld [vmem:[%s404_s0 + $0xc0] sm:$0xff]  ;;  %v36_v43 = vld [vmem:[%s404_s0 + $0xc8] sm:$0x3] }
  0x8b   :  { %v146_v50 = vadd.f32 %v145_v46, %v144_v40  ;;  %v178_v51 = vadd.f32 %v177_v47, %v176_v41  ;;  %v23_v42 = vld [vmem:[%s404_s0 + $0x60] sm:$0x3] }
  0x8c   :  { %v149_v0 = vsel %vm141_vm0, %v119_v48, 0.0  ;;  %v181_v1 = vsel %vm141_vm0, %v132_v49, 0.0  ;;  %v151_v8 = vsel %vm141_vm0, %v120_v56, 0.0  ;;  %v183_v9 = vsel %vm141_vm0, %v133_v57, 0.0 }
  0x8d   :  { %v148_v58 = vadd.f32 %v147_v54, %v146_v50  ;;  %v180_v59 = vadd.f32 %v179_v55, %v178_v51  ;;  %v88_v60 = vpop.permute.xlu1 %87  ;;  %v83_v63 = vpop.permute.xlu0 %82 }
  0x8e   :  { %v121_v2 = vmul.f32 %v83_v63, %v17_v52  ;;  %v134_v3 = vmul.f32 %v83_v63, %v30_v53  ;;  %v122_v10 = vmul.f32 %v88_v60, %v18_v61  ;;  %v135_v11 = vmul.f32 %v88_v60, %v31_v62 }
  0x8f   :  { %v150_v4 = vadd.f32 %v149_v0, %v148_v58  ;;  %v182_v5 = vadd.f32 %v181_v1, %v180_v59 }
  0x90   :  { %v153_v18 = vsel %vm141_vm0, %v121_v2, 0.0  ;;  %v185_v19 = vsel %vm141_vm0, %v134_v3, 0.0  ;;  %v155_v26 = vsel %vm141_vm0, %v122_v10, 0.0  ;;  %v187_v27 = vsel %vm141_vm0, %v135_v11, 0.0 }
  0x91   :  { %v152_v12 = vadd.f32 %v151_v8, %v150_v4  ;;  %v184_v13 = vadd.f32 %v183_v9, %v182_v5  ;;  %v98_v14 = vpop.permute.xlu1 %97  ;;  %v93_v17 = vpop.permute.xlu0 %92 }
  0x92   :  { %v123_v20 = vmul.f32 %v93_v17, %v19_v6  ;;  %v136_v21 = vmul.f32 %v93_v17, %v32_v7  ;;  %v124_v28 = vmul.f32 %v98_v14, %v20_v15  ;;  %v137_v29 = vmul.f32 %v98_v14, %v33_v16 }
  0x93   :  { %v154_v22 = vadd.f32 %v153_v18, %v152_v12  ;;  %v186_v23 = vadd.f32 %v185_v19, %v184_v13 }
  0x94   :  { %v157_v36 = vsel %vm141_vm0, %v123_v20, 0.0  ;;  %v189_v37 = vsel %vm141_vm0, %v136_v21, 0.0  ;;  %v159_v44 = vsel %vm141_vm0, %v124_v28, 0.0  ;;  %v191_v45 = vsel %vm141_vm0, %v137_v29, 0.0 }
  0x95   :  { %v156_v30 = vadd.f32 %v155_v26, %v154_v22  ;;  %v188_v31 = vadd.f32 %v187_v27, %v186_v23  ;;  %v108_v32 = vpop.permute.xlu1 %107  ;;  %v103_v35 = vpop.permute.xlu0 %102 }
  0x96   :  { %v125_v38 = vmul.f32 %v103_v35, %v21_v24  ;;  %v138_v39 = vmul.f32 %v103_v35, %v34_v25  ;;  %v126_v46 = vmul.f32 %v108_v32, %v22_v33  ;;  %v139_v47 = vmul.f32 %v108_v32, %v35_v34 }
  0x97   :  { %v158_v40 = vadd.f32 %v157_v36, %v156_v30  ;;  %v190_v41 = vadd.f32 %v189_v37, %v188_v31 }
  0x98   :  { %v161_v51 = vsel %vm141_vm0, %v125_v38, 0.0  ;;  %v193_v52 = vsel %vm141_vm0, %v138_v39, 0.0  ;;  %v163_v57 = vsel %vm141_vm0, %v126_v46, 0.0  ;;  %v195_v58 = vsel %vm141_vm0, %v139_v47, 0.0 }
  0x99   :  { %v160_v48 = vadd.f32 %v159_v44, %v158_v40  ;;  %v192_v49 = vadd.f32 %v191_v45, %v190_v41  ;;  %v113_v50 = vpop.permute.xlu0 %112 }
  0x9a   :  { %v127_v53 = vmul.f32 %v113_v50, %v23_v42  ;;  %v140_v54 = vmul.f32 %v113_v50, %v36_v43 }
  0x9b   :  { %v162_v55 = vadd.f32 %v161_v51, %v160_v48  ;;  %v194_v56 = vadd.f32 %v193_v52, %v192_v49 }
  0x9c   :  { %v166_v61 = vsel %vm165_vm1, %v127_v53, 0.0  ;;  %v197_v62 = vsel %vm165_vm1, %v140_v54, 0.0 }
  0x9d   :  { %v164_v59 = vadd.f32 %v163_v57, %v162_v55  ;;  %v196_v60 = vadd.f32 %v195_v58, %v194_v56 }
  0x9f   :  { %v167_v63 = vadd.f32 %v166_v61, %v164_v59  ;;  %v198_v0 = vadd.f32 %v197_v62, %v196_v60 }
  0xa1   :  { %v168_v1 = vrot.slane %v167_v63, 4  ;;  %v199_v2 = vrot.slane %v198_v0, 4 }
  0xa3   :  { %v169_v3 = vadd.f32 %v168_v1, %v167_v63  ;;  %v200_v4 = vadd.f32 %v199_v2, %v198_v0 }
  0xa5   :  { %v170_v5 = vrot.slane %v169_v3, 2  ;;  %v201_v6 = vrot.slane %v200_v4, 2 }
  0xa7   :  { %v171_v7 = vadd.f32 %v170_v5, %v169_v3  ;;  %v202_v8 = vadd.f32 %v201_v6, %v200_v4 }
  0xa9   :  { %v172_v9 = vrot.slane %v171_v7, 1  ;;  %v203_v10 = vrot.slane %v202_v8, 1 }
  0xab   :  { %v173_v11 = vadd.f32 %v172_v9, %v171_v7  ;;  %v204_v12 = vadd.f32 %v203_v10, %v202_v8 }
  0xad   :  { %v227_v13 = vmul.f32 -1.442695, %v173_v11  ;;  %v228_v14 = vmul.f32 -1.442695, %v204_v12 }
  0xaf   :  { %232 = vpow2.f32 %v227_v13 }
  0xb0   :  { %234 = vpow2.f32 %v228_v14 }
  0xb9   :  { %v233_v15 = vpop.eup %232 }
  0xba   :  { %v235_v16 = vpop.eup %234  ;;  %v211_v17 = vadd.f32 1.0, %v233_v15 }
  0xbb   :  { %v212_v18 = vadd.f32 1.0, %v235_v16 }
  0xbc   :  { %236 = vrcp.f32 %v211_v17 }
  0xbd   :  { %238 = vrcp.f32 %v212_v18 }
  0xc6   :  { %v237_v19 = vpop.eup %236 }
  0xc7   :  { %v239_v20 = vpop.eup %238 }
  0xc8   :  { %v220_v21 = vsel %vm219_vm2, %v239_v20, %v237_v19 }
  0xc9   :  { %222 = vst.msk [vmem:[%s405_s2] sm:$0x3] %vm165_vm1, %v220_v21 }

// kernel: maniqa_forward.30
= control target key start
LH: loop header
LB: loop body
LE: loop exit
PB: predicated region body
PF: predicated region fallthrough
CT: control target
= control target key end

     0   :  { %s904_s24 = smov 0   ;;  %s906_s25 = smov 0   ;;  %s985_s0 = inlined_call_operand.vmem [shape: bf16[2,64,64], index: 0, kind: input, shape index: {}]   ;;  %s986_s1 = inlined_call_operand.vmem [shape: f32[2,1,64], index: 1, kind: input, shape index: {}]   ;;  %s987_s2 = inlined_call_operand.vmem [shape: f32[2,64,1], index: 2, kind: input, shape index: {}]   ;;  %s988_s3 = inlined_call_operand.vmem [shape: f32[1,64], index: 3, kind: input, shape index: {}]   ;;  %s989_s4 = inlined_call_operand.vmem [shape: f32[1,64], index: 4, kind: input, shape index: {}]   ;;  %s990_s5 = inlined_call_operand.vmem [shape: bf16[64,64], index: 5, kind: input, shape index: {}]   ;;  %s991_s6 = inlined_call_operand.vmem [shape: f32[1,64], index: 6, kind: input, shape index: {}]   ;;  %s992_s7 = inlined_call_operand.vmem [shape: f32[2,64,64], index: 7, kind: output, shape index: {}]  }
   0x1   :  { %s908_s26 = smov 0  }
   0x2 LB: > { %s29_s27 = sadd.s32 1, %s857_s25  ;;  %p733_p0 = scmp.ge.s32.totalorder %s861_s26, 1  ;;  %s861_s26 = sphi %s908_s26, %s17_s26   ;;  %s857_s25 = sphi %s906_s25, %s994_s25   ;;  %s853_s24 = sphi %s904_s24, %s993_s24  }
   0x3   : > { %p31_p1 = scmp.ge.s32.totalorder %s29_s27, 2  ;;  %p283_p2 = scmp.lt.s32.totalorder %s861_s26, 3 }
   0x5   : > { %s996_s27 = smov (%p31_p1, %s29_s27), 0  ;;  %p284_p3 = pnand %p733_p0, %p283_p2 }
   0x6   : > { %p336_p4 = scmp.lt.s32.totalorder (!%p284_p3), %s853_s24, 1  ;;  %v863_v0 = vmov (!%p284_p3), 0   ;;  %v835_v1 = vld [vmem:[%s990_s5] sm:$0xff] (!%p284_p3)   ;;  %v836_v6 = vld [vmem:[%s990_s5 + $0x8] sm:$0xff] (!%p284_p3)   ;;  %v837_v9 = vld [vmem:[%s990_s5 + $0x10] sm:$0xff] (!%p284_p3)   ;;  %vm529_vm0 = vcmask (!%p284_p3), 523264  }
   0x7   : > { %287 = sbr.rel (%p284_p3) target bundleno = 385 (0x181), region = 48  ;;  %834 = vset.pattern.permute.xlu1 (!%p284_p3), %v863_v0  ;;  %833 = vset.pattern.permute.xlu0 (!%p284_p3), %v863_v0  ;;  %v838_v12 = vld [vmem:[%s990_s5 + $0x18] sm:$0xff] (!%p284_p3)   ;;  %v741_v27 = vld [vmem:[%s988_s3] ss:$0 sm:$0xff] (!%p284_p3) }
   0x8   : > { %784 = vmatprep.subr.bf16.mxu0 (!%p284_p3), %v835_v1  ;;  %800 = vmatprep.subr.bf16.mxu1 (!%p284_p3), %v835_v1  ;;  %v742_v41 = vld [vmem:[%s989_s4] ss:$0 sm:$0xff] (!%p284_p3) }
   0x9   : > { %785 = vmatpush3.bf16.msra.mxu0 (!%p284_p3), %v835_v1  ;;  %804 = vmatpush3.bf16.msra.mxu1 (!%p284_p3), %v835_v1 }
   0xa   : > { %786 = vmatprep.subr.bf16.mxu0 (!%p284_p3), %v836_v6  ;;  %801 = vmatprep.subr.bf16.mxu1 (!%p284_p3), %v836_v6 }
   0xd   : > { %787 = vmatpush3.bf16.msra.mxu0 (!%p284_p3), %v836_v6  ;;  %805 = vmatpush3.bf16.msra.mxu1 (!%p284_p3), %v836_v6 }
   0xe   : > { %s998_s24 = smov (!%p336_p4, %s853_s24), 1  ;;  %788 = vmatprep.subr.bf16.mxu0 %v837_v9  ;;  %802 = vmatprep.subr.bf16.mxu1 %v837_v9 }
   0xf   : > { %s755_s28 = sshll.u32 %s998_s24, 6  ;;  %s754_s17 = sshll.u32 %s998_s24, 5 }
  0x10   : > { %s356_s8 = scalar_lea.vmem %s987_s2, %s755_s28  ;;  %s343_s20 = scalar_lea.vmem %s985_s0, %s754_s17 }
  0x11   : > { %v404_v2 = vld [vmem:[%s356_s8 + $0x20] sm:$0xff]  ;;  %v405_v4 = vld [vmem:[%s356_s8 + $0x28] sm:$0xff]  ;;  %v403_v7 = vld [vmem:[%s356_s8 + $0x18] sm:$0xff]  ;;  %789 = vmatpush3.bf16.msra.mxu0 %v837_v9  ;;  %806 = vmatpush3.bf16.msra.mxu1 %v837_v9  ;;  %s347_s23 = scalar_lea.vmem %s986_s1, %s998_s24  ;;  %s366_s14 = scalar_lea.vmem %s992_s7, %s755_s28 }
  0x12   : > { %v400_v3 = vld [vmem:[%s356_s8] sm:$0xff]  ;;  %430 = vperm.xlu1 %834, %v404_v2   ;;  %v401_v5 = vld [vmem:[%s356_s8 + $0x8] sm:$0xff]  ;;  %v402_v8 = vld [vmem:[%s356_s8 + $0x10] sm:$0xff]  ;;  %790 = vmatprep.subr.bf16.mxu0 %v838_v12 }
  0x13   : > { %410 = vperm.xlu0 %833, %v400_v3   ;;  %v407_v10 = vld [vmem:[%s356_s8 + $0x38] sm:$0xff]  ;;  %v406_v11 = vld [vmem:[%s356_s8 + $0x30] sm:$0xff]  ;;  %803 = vmatprep.subr.bf16.mxu1 %v838_v12  ;;  %v758_v14 = vld [vmem:[%s343_s20] sm:$0xff]  }
  0x14   : > { %v774_v13 = vld [vmem:[%s343_s20 + $0x10] sm:$0xff]   ;;  %v759_v16 = vunpack.c.l.bf16 %v758_v14  ;;  %v740_v17 = vld [vmem:[%s347_s23] ss:$0 sm:$0xff]  ;;  %v760_v21 = vunpack.c.h.bf16 %v758_v14  ;;  %v773_v22 = vld [vmem:[%s343_s20 + $0x8] sm:$0xff]  }
  0x15   : > { %791 = vmatpush3.bf16.msra.mxu0 %v838_v12  ;;  %807 = vmatpush3.bf16.msra.mxu1 %v838_v12  ;;  %v767_v15 = vunpack.c.l.bf16 %v774_v13  ;;  %v768_v18 = vunpack.c.h.bf16 %v774_v13  ;;  %v764_v26 = vunpack.c.h.bf16 %v773_v22  ;;  %v763_v31 = vunpack.c.l.bf16 %v773_v22  ;;  %v775_v32 = vld [vmem:[%s343_s20 + $0x18] sm:$0xff]  }
  0x16   : > { %435 = vperm.xlu1 %834, %v405_v4   ;;  %v392_v20 = vmul.f32 %v759_v16, %v740_v17  ;;  %v393_v30 = vmul.f32 %v760_v21, %v740_v17  ;;  %v772_v37 = vunpack.c.h.bf16 %v775_v32  ;;  %v771_v38 = vunpack.c.l.bf16 %v775_v32 }
  0x17   : > { %415 = vperm.xlu0 %833, %v401_v5   ;;  %v396_v19 = vmul.f32 %v767_v15, %v740_v17  ;;  %v397_v25 = vmul.f32 %v768_v18, %v740_v17  ;;  %v395_v42 = vmul.f32 %v764_v26, %v740_v17  ;;  %v394_v43 = vmul.f32 %v763_v31, %v740_v17 }
  0x18   : > { %v399_v48 = vmul.f32 %v772_v37, %v740_v17  ;;  %v398_v49 = vmul.f32 %v771_v38, %v740_v17 }
  0x1a   : > { %425 = vperm.xlu1 %834, %v403_v7  }
  0x1b   : > { %420 = vperm.xlu0 %833, %v402_v8   ;;  %v743_v8 = vld [vmem:[%s991_s6] ss:$0 sm:$0xff] }
  0x1e   : > { %445 = vperm.xlu1 %834, %v407_v10  }
  0x1f   : > { %440 = vperm.xlu0 %833, %v406_v11  }
  0x91   : > { %v431_v23 = vpop.permute.xlu1 %430 }
  0x92   : > { %v411_v24 = vpop.permute.xlu0 %410  ;;  %v452_v28 = vmul.f32 %v431_v23, %v396_v19 }
  0x93   : > { %v448_v29 = vmul.f32 %v411_v24, %v392_v20 }
  0x94   : > { %v467_v33 = vmul.f32 %v741_v27, %v452_v28 }
  0x95   : > { %v463_v34 = vmul.f32 %v741_v27, %v448_v29  ;;  %v436_v35 = vpop.permute.xlu1 %435 }
  0x96   : > { %v416_v36 = vpop.permute.xlu0 %415  ;;  %v453_v39 = vmul.f32 %v436_v35, %v397_v25  ;;  %v482_v51 = vadd.f32 %v742_v41, %v467_v33 }
  0x97   : > { %v449_v40 = vmul.f32 %v416_v36, %v393_v30  ;;  %v478_v50 = vadd.f32 %v742_v41, %v463_v34 }
  0x98   : > { %v468_v44 = vmul.f32 %v741_v27, %v453_v39 }
  0x99   : > { %v464_v45 = vmul.f32 %v741_v27, %v449_v40  ;;  %v426_v46 = vpop.permute.xlu1 %425 }
  0x9a   : > { %v421_v47 = vpop.permute.xlu0 %420  ;;  %v451_v52 = vmul.f32 %v426_v46, %v395_v42  ;;  %v483_v55 = vadd.f32 %v742_v41, %v468_v44 }
  0x9b   : > { %v450_v53 = vmul.f32 %v421_v47, %v394_v43  ;;  %v479_v54 = vadd.f32 %v742_v41, %v464_v45 }
  0x9c   : > { %v466_v56 = vmul.f32 %v741_v27, %v451_v52  ;;  %v488_v59 = vpack.c.bf16 %v483_v55, %v482_v51 }
  0x9d   : > { %v465_v57 = vmul.f32 %v741_v27, %v450_v53  ;;  %v486_v58 = vpack.c.bf16 %v479_v54, %v478_v50  ;;  %v446_v60 = vpop.permute.xlu1 %445 }
  0x9e   : > { %v441_v61 = vpop.permute.xlu0 %440  ;;  %v481_v62 = vadd.f32 %v742_v41, %v466_v56  ;;  %v455_v0 = vmul.f32 %v446_v60, %v399_v48  ;;  %796 = vmatprep.mubr.msk.bf16.mxu1 %vm529_vm0, %v488_v59 }
  0x9f   : > { %v480_v63 = vadd.f32 %v742_v41, %v465_v57  ;;  %v454_v1 = vmul.f32 %v441_v61, %v398_v49  ;;  %792 = vmatprep.mubr.msk.bf16.mxu0 %vm529_vm0, %v486_v58 }
  0xa0   : > { %v470_v3 = vmul.f32 %v741_v27, %v455_v0 }
  0xa1   : > { %v487_v2 = vpack.c.bf16 %v481_v62, %v480_v63  ;;  %v469_v4 = vmul.f32 %v741_v27, %v454_v1 }
  0xa2   : > { %v485_v5 = vadd.f32 %v742_v41, %v470_v3 }
  0xa3   : > { %v484_v6 = vadd.f32 %v742_v41, %v469_v4  ;;  %793 = vmatmul.mubr.msk.bf16.vlgmr.msra.gmra.mrb[0].mxu0 %vm529_vm0, %v487_v2 }
  0xa5   : > { %v489_v7 = vpack.c.bf16 %v485_v5, %v484_v6 }
  0xa7   : > { %797 = vmatmul.mubr.msk.bf16.vlgmr.msra.gmra.mrb[0].mxu1 %vm529_vm0, %v489_v7 }
 0x176   : > { %v794_v9 = vpop.f32.mrb[0].mxu0 }
 0x177   : > { %v585_v10 = vadd.f32 %v794_v9, %v743_v8  ;;  %v576_v11 = vpop.f32.mrb[1].mxu0 }
 0x178   : > { %v577_v12 = vadd.f32 %v743_v8, %v576_v11  ;;  %v795_v13 = vpop.f32.mrb[2].mxu0 }
 0x179   : > { %609 = vst.msk [vmem:[%s366_s14 + $0x10] sm:$0xff] %vm529_vm0, %v585_v10  ;;  %v588_v14 = vadd.f32 %v795_v13, %v743_v8  ;;  %v579_v15 = vpop.f32.mrb[3].mxu0 }
 0x17a   : > { %607 = vst.msk [vmem:[%s366_s14] sm:$0xff] %vm529_vm0, %v577_v12  ;;  %v580_v16 = vadd.f32 %v743_v8, %v579_v15  ;;  %v798_v17 = vpop.f32.mrb[0].mxu1 }
 0x17b   : > { %610 = vst.msk [vmem:[%s366_s14 + $0x18] sm:$0xff] %vm529_vm0, %v588_v14  ;;  %v601_v18 = vadd.f32 %v798_v17, %v743_v8  ;;  %v592_v19 = vpop.f32.mrb[1].mxu1 }
 0x17c   : > { %608 = vst.msk [vmem:[%s366_s14 + $0x8] sm:$0xff] %vm529_vm0, %v580_v16  ;;  %v593_v20 = vadd.f32 %v743_v8, %v592_v19  ;;  %v799_v21 = vpop.f32.mrb[2].mxu1 }
 0x17d   : > { %613 = vst.msk [vmem:[%s366_s14 + $0x30] sm:$0xff] %vm529_vm0, %v601_v18  ;;  %v604_v22 = vadd.f32 %v799_v21, %v743_v8  ;;  %v595_v23 = vpop.f32.mrb[3].mxu1 }
 0x17e   : > { %611 = vst.msk [vmem:[%s366_s14 + $0x20] sm:$0xff] %vm529_vm0, %v593_v20  ;;  %v596_v24 = vadd.f32 %v743_v8, %v595_v23 }
 0x17f   : > { %614 = vst.msk [vmem:[%s366_s14 + $0x38] sm:$0xff] %vm529_vm0, %v604_v22 }
 0x180   : > { %612 = vst.msk [vmem:[%s366_s14 + $0x28] sm:$0xff] %vm529_vm0, %v596_v24 }
 0x181 PF: > { %s17_s26 = sadd.s32 1, %s861_s26   ;;  %s993_s24 = smov %s857_s25 }
 0x182   : > { %p14_p5 = scmp.ge.s32.totalorder %s17_s26, 4   ;;  %s994_s25 = smov %s996_s27 }
 0x184   :  { %16 = sbr.rel (!%p14_p5) target bundleno = 2 (0x2), region = 84 }

// kernel: maniqa_forward.31
= control target key start
LH: loop header
LB: loop body
LE: loop exit
PB: predicated region body
PF: predicated region fallthrough
CT: control target
= control target key end

     0   :  { %s774_s21 = smov 0   ;;  %s776_s22 = smov 0   ;;  %s862_s0 = inlined_call_operand.vmem [shape: bf16[2,16,3], index: 0, kind: input, shape index: {}]   ;;  %s863_s1 = inlined_call_operand.vmem [shape: bf16[3,192], index: 1, kind: input, shape index: {}]   ;;  %s864_s2 = inlined_call_operand.vmem [shape: f32[1,192], index: 2, kind: input, shape index: {}]   ;;  %s865_s3 = inlined_call_operand.vmem [shape: bf16[192,96], index: 3, kind: input, shape index: {}]   ;;  %s866_s4 = inlined_call_operand.vmem [shape: f32[1,96], index: 4, kind: input, shape index: {}]   ;;  %s867_s5 = inlined_call_operand.vmem [shape: f32[1,96], index: 5, kind: input, shape index: {}]   ;;  %s868_s6 = inlined_call_operand.vmem [shape: bf16[2,16,96], index: 6, kind: output, shape index: {}]  }
   0x1   :  { %s778_s23 = smov 0  }
   0x2 LB: > { %s28_s24 = sadd.s32 1, %s731_s22  ;;  %p643_p0 = scmp.ge.s32.totalorder %s735_s23, 1  ;;  %s735_s23 = sphi %s778_s23, %s16_s23   ;;  %s731_s22 = sphi %s776_s22, %s870_s22   ;;  %s727_s21 = sphi %s774_s21, %s869_s21  }
   0x3   : > { %p30_p1 = scmp.ge.s32.totalorder %s28_s24, 2  ;;  %p233_p2 = scmp.lt.s32.totalorder %s735_s23, 3 }
   0x5   : > { %s872_s24 = smov (%p30_p1, %s28_s24), 0  ;;  %p234_p3 = pnand %p643_p0, %p233_p2 }
   0x6   : > { %v649_v0 = vld.sshfl [vmem:[%s863_s1] sm:$0x33 pattern:$0x76325410] (!%p234_p3)  ;;  %vm325_vm0 = vcmask (!%p234_p3), 1040384   ;;  %vm326_vm1 = vcmask (!%p234_p3), 1041408   ;;  %v297_v21 = vlaneseq (!%p234_p3) }
   0x7   : > { %237 = sbr.rel (%p234_p3) target bundleno = 461 (0x1cd), region = 44  ;;  %v320_v1 = vcombine.high (!%p234_p3), %v649_v0, %v649_v0  ;;  %p272_p4 = scmp.lt.s32.totalorder (!%p234_p3), %s727_s21, 1  ;;  %v737_v2 = vmov (!%p234_p3), 65535   ;;  %v738_v4 = vmov (!%p234_p3), 0   ;;  %v701_v5 = vld [vmem:[%s865_s3] sm:$0xff] (!%p234_p3)   ;;  %v702_v7 = vld [vmem:[%s865_s3 + $0x8] sm:$0xff] (!%p234_p3)  }
   0x8   : > { %v327_v3 = vsel (!%p234_p3), %vm325_vm0, 4294967295, %v737_v2  ;;  %367 = vmatprep.mubr.bf16.mxu0 (!%p234_p3), %v738_v4  ;;  %480 = vmatprep.subr.bf16.mxu1 (!%p234_p3), %v738_v4  ;;  %vm321_vm2 = vcmask (!%p234_p3), 23552   ;;  %v703_v11 = vld [vmem:[%s865_s3 + $0x10] sm:$0xff] (!%p234_p3)   ;;  %v704_v12 = vld [vmem:[%s865_s3 + $0x18] sm:$0xff] (!%p234_p3)   ;;  %v705_v13 = vld [vmem:[%s865_s3 + $0x20] sm:$0xff] (!%p234_p3)   ;;  %v298_v22 = vshrl.u32 (!%p234_p3), %v297_v21, 7 }
   0x9   : > { %v328_v6 = vsel (!%p234_p3), %vm326_vm1, %v327_v3, 0  ;;  %481 = vmatpush1.bf16.msra.mxu1 (!%p234_p3), %v701_v5  ;;  %v706_v14 = vld [vmem:[%s865_s3 + $0x28] sm:$0xff] (!%p234_p3)   ;;  %v707_v15 = vld [vmem:[%s865_s3 + $0x30] sm:$0xff] (!%p234_p3)   ;;  %v708_v16 = vld [vmem:[%s865_s3 + $0x38] sm:$0xff] (!%p234_p3)   ;;  %vm476_vm3 = vcmask (!%p234_p3), 523264   ;;  %vm549_vm4 = vcmask (!%p234_p3), 781312  }
   0xa   : > { %v333_v8 = vand.u32 (!%p234_p3), %v328_v6, %v320_v1  ;;  %v330_v9 = vand.u32 (!%p234_p3), %v649_v0, %v328_v6  ;;  %482 = vmatprep.subr.bf16.mxu1 (!%p234_p3), %v738_v4  ;;  %v709_v17 = vld [vmem:[%s865_s3 + $0x40] sm:$0xff] (!%p234_p3)   ;;  %v710_v18 = vld [vmem:[%s865_s3 + $0x48] sm:$0xff] (!%p234_p3)   ;;  %v711_v19 = vld [vmem:[%s865_s3 + $0x50] sm:$0xff] (!%p234_p3)   ;;  %v299_v23 = vsub.s32 (!%p234_p3), 0, %v298_v22  ;;  %v303_v25 = vsub.s32 (!%p234_p3), 1, %v298_v22 }
   0xb   : > { %v712_v20 = vld [vmem:[%s865_s3 + $0x58] sm:$0xff] (!%p234_p3)   ;;  %v295_v24 = vld [vmem:[%s864_s2] sm:$0x3] (!%p234_p3) }
   0xc   : > { %335 = vmatprep.subr.bf16.mxu0 (!%p234_p3), %v333_v8  ;;  %v300_v26 = vrot.slane (!%p234_p3), %v295_v24, %v299_v23  ;;  %v304_v28 = vrot.slane (!%p234_p3), %v295_v24, %v303_v25  ;;  %v664_v38 = vld [vmem:[%s866_s4] ss:$0 sm:$0xff] (!%p234_p3) }
   0xd   : > { %336 = vmatpush1.bf16.msra.mxu0 (!%p234_p3), %v330_v9  ;;  %483 = vmatpush1.bf16.msra.mxu1 (!%p234_p3), %v702_v7  ;;  %v665_v40 = vld [vmem:[%s867_s5] ss:$0 sm:$0xff] (!%p234_p3) }
   0xe   : > { %s874_s21 = smov (!%p272_p4, %s727_s21), 1  ;;  %484 = vmatprep.subr.bf16.mxu1 %v738_v4 }
   0xf   : > { %s670_s7 = sshll.u32 %s874_s21, 3 }
  0x10   : > { %s279_s10 = scalar_lea.vmem %s862_s0, %s670_s7  ;;  %s289_s20 = scalar_lea.vmem %s868_s6, %s670_s7 }
  0x11   : > { %v700_v10 = vld [vmem:[%s279_s10] sm:$0xff]   ;;  %485 = vmatpush1.bf16.msra.mxu1 %v703_v11 }
  0x12   : > { %650 = vmatmul.mubr.msk.bf16.vlgmr.msra.gmra.mrb[0].mxu0 %vm321_vm2, %v700_v10  ;;  %486 = vmatprep.subr.bf16.mxu1 %v738_v4 }
  0x15   : > { %487 = vmatpush1.bf16.msra.mxu1 %v704_v12 }
  0x16   : > { %488 = vmatprep.subr.bf16.mxu1 %v738_v4 }
  0x19   : > { %489 = vmatpush1.bf16.msra.mxu1 %v705_v13 }
  0x1a   : > { %490 = vmatprep.subr.bf16.mxu1 %v738_v4 }
  0x1d   : > { %491 = vmatpush1.bf16.msra.mxu1 %v706_v14 }
  0x1e   : > { %492 = vmatprep.subr.bf16.mxu1 %v738_v4 }
  0x21   : > { %493 = vmatpush1.bf16.msra.mxu1 %v707_v15 }
  0x22   : > { %494 = vmatprep.subr.bf16.mxu1 %v738_v4 }
  0x25   : > { %495 = vmatpush1.bf16.msra.mxu1 %v708_v16 }
  0x26   : > { %496 = vmatprep.subr.bf16.mxu1 %v738_v4 }
  0x29   : > { %497 = vmatpush1.bf16.msra.mxu1 %v709_v17 }
  0x2a   : > { %498 = vmatprep.subr.bf16.mxu1 %v738_v4 }
  0x2d   : > { %499 = vmatpush1.bf16.msra.mxu1 %v710_v18 }
  0x2e   : > { %500 = vmatprep.subr.bf16.mxu1 %v738_v4 }
  0x31   : > { %501 = vmatpush1.bf16.msra.mxu1 %v711_v19 }
  0x32   : > { %502 = vmatprep.subr.bf16.mxu1 %v738_v4 }
  0x35   : > { %503 = vmatpush1.bf16.msra.mxu1 %v712_v20 }
  0xe5   : > { %v369_v27 = vpop.f32.mrb[0].mxu0 }
  0xe6   : > { %v371_v29 = vpop.f32.mrb[1].mxu0  ;;  %v370_v31 = vadd.f32 %v369_v27, %v300_v26 }
  0xe7   : > { %v373_v30 = vpop.f32.mrb[2].mxu0  ;;  %v372_v34 = vadd.f32 %v371_v29, %v304_v28 }
  0xe8   : > { %v374_v32 = vadd.f32 %v373_v30, %v300_v26  ;;  %v375_v33 = vpop.f32.mrb[3].mxu0 }
  0xe9   : > { %v376_v35 = vadd.f32 %v375_v33, %v304_v28 }
  0xea   : > { %v378_v36 = vpack.c.bf16 %v374_v32, %v370_v31 }
  0xeb   : > { %v379_v37 = vpack.c.bf16 %v376_v35, %v372_v34 }
  0xed   : > { %663 = vmatprep.mubr.msk.bf16.mxu1 %vm476_vm3, %v379_v37 }
  0xee   : > { %513 = vmatmul.mubr.bf16.vlgmr.msra.gmra.mrb[0].mxu1 %v378_v36 }
 0x1c1   : > { %v514_v39 = vpop.f32.mrb[0].mxu1 }
 0x1c2   : > { %v528_v41 = vmul.f32 %v664_v38, %v514_v39  ;;  %v516_v42 = vpop.f32.mrb[1].mxu1 }
 0x1c3   : > { %v517_v43 = vpop.f32.mrb[2].mxu1 }
 0x1c4   : > { %v537_v44 = vadd.f32 %v665_v40, %v528_v41  ;;  %v529_v45 = vmul.f32 %v664_v38, %v517_v43  ;;  %v519_v46 = vpop.f32.mrb[3].mxu1 }
 0x1c6   : > { %v539_v47 = vmax.f32 %v537_v44, 0.0  ;;  %v538_v48 = vadd.f32 %v665_v40, %v529_v45 }
 0x1c8   : > { %v672_v49 = vpack.c.bf16 %v539_v47, %v539_v47  ;;  %v540_v50 = vmax.f32 %v538_v48, 0.0 }
 0x1ca   : > { %550 = vst.msk [vmem:[%s289_s20] sm:$0xf] %vm549_vm4, %v672_v49  ;;  %v673_v51 = vpack.c.bf16 %v540_v50, %v540_v50 }
 0x1cc   : > { %551 = vst.msk [vmem:[%s289_s20 + $0x4] sm:$0xf] %vm549_vm4, %v673_v51 }
 0x1cd PF: > { %s16_s23 = sadd.s32 1, %s735_s23   ;;  %s869_s21 = smov %s731_s22 }
 0x1ce   : > { %p13_p5 = scmp.ge.s32.totalorder %s16_s23, 4   ;;  %s870_s22 = smov %s872_s24 }
 0x1d0   :  { %15 = sbr.rel (!%p13_p5) target bundleno = 2 (0x2), region = 74 }

// kernel: maniqa_forward.33
= control target key start
LH: loop header
LB: loop body
LE: loop exit
PB: predicated region body
PF: predicated region fallthrough
CT: control target
= control target key end

     0   :  { %vm37_vm0 = vcmask 785408   ;;  %vm55_vm1 = vcmask 7168   ;;  %vm72_vm2 = vcmask 15368   ;;  %s151_s0 = inlined_call_operand.vmem [shape: bf16[2,16,96], index: 0, kind: input, shape index: {}]   ;;  %s152_s1 = inlined_call_operand.vmem [shape: f32[2,1,96], index: 1, kind: input, shape index: {}]   ;;  %s153_s2 = inlined_call_operand.vmem [shape: f32[2,16,2], index: 2, kind: output, shape index: {}]  }
   0x1   :  { %v91_v0 = vld [vmem:[%s151_s0 + $0x8] sm:$0xff]   ;;  %v82_v1 = vld [vmem:[%s152_s1 + $0x1] ss:$0 sm:$0xff]  ;;  %v81_v5 = vld [vmem:[%s152_s1] ss:$0 sm:$0xff] }
   0x2   :  { %v84_v2 = vld [vmem:[%s151_s0] sm:$0xff]   ;;  %v89_v3 = vunpack.c.l.bf16 %v91_v0  ;;  %v90_v6 = vunpack.c.h.bf16 %v91_v0 }
   0x3   :  { %v85_v4 = vunpack.c.l.bf16 %v84_v2  ;;  %v86_v7 = vunpack.c.h.bf16 %v84_v2 }
   0x4   :  { %v35_v8 = vmul.f32 %v89_v3, %v82_v1  ;;  %v36_v10 = vmul.f32 %v90_v6, %v82_v1 }
   0x5   :  { %v33_v9 = vmul.f32 %v85_v4, %v81_v5  ;;  %v34_v11 = vmul.f32 %v86_v7, %v81_v5 }
   0x6   :  { %v44_v12 = vsel %vm37_vm0, %v35_v8, 0.0  ;;  %v47_v14 = vsel %vm37_vm0, %v36_v10, 0.0  ;;  %v69_v18 = vsel %vm37_vm0, %v36_v10, -inf  ;;  %v66_v19 = vsel %vm37_vm0, %v35_v8, -inf }
   0x7   :  { %v38_v13 = vsel %vm37_vm0, %v33_v9, 0.0  ;;  %45 = vadd.xlane.f32.xlu1 %v44_v12  ;;  %v41_v15 = vsel %vm37_vm0, %v34_v11, 0.0  ;;  %v63_v16 = vsel %vm37_vm0, %v34_v11, -inf  ;;  %v60_v17 = vsel %vm37_vm0, %v33_v9, -inf }
   0x8   :  { %39 = vadd.xlane.f32.xlu0 %v38_v13 }
   0xb   :  { %48 = vadd.xlane.f32.xlu1 %v47_v14 }
   0xc   :  { %42 = vadd.xlane.f32.xlu0 %v41_v15 }
   0xf   :  { %64 = vmax.xlane.f32.xlu1 %v63_v16 }
  0x10   :  { %61 = vmax.xlane.f32.xlu0 %v60_v17 }
  0x13   :  { %70 = vmax.xlane.f32.xlu1 %v69_v18 }
  0x14   :  { %67 = vmax.xlane.f32.xlu0 %v66_v19 }
  0x94   :  { %v46_v20 = vpop.xlane.xlu1 %45 }
  0x95   :  { %v40_v21 = vpop.xlane.xlu0 %39  ;;  %v53_v22 = vmul.f32 0.010416667, %v46_v20 }
  0x96   :  { %v51_v23 = vmul.f32 0.010416667, %v40_v21 }
  0x97   :  { %58 = vst.msk [vmem:[%s153_s2 + $0x10] sm:$0xff] %vm55_vm1, %v53_v22 }
  0x98   :  { %56 = vst.msk [vmem:[%s153_s2] sm:$0xff] %vm55_vm1, %v51_v23  ;;  %v49_v24 = vpop.xlane.xlu1 %48 }
  0x99   :  { %v43_v25 = vpop.xlane.xlu0 %42  ;;  %v54_v26 = vmul.f32 0.010416667, %v49_v24 }
  0x9a   :  { %v52_v27 = vmul.f32 0.010416667, %v43_v25 }
  0x9b   :  { %59 = vst.msk [vmem:[%s153_s2 + $0x18] sm:$0xff] %vm55_vm1, %v54_v26 }
  0x9c   :  { %57 = vst.msk [vmem:[%s153_s2 + $0x8] sm:$0xff] %vm55_vm1, %v52_v27  ;;  %v65_v28 = vpop.xlane.xlu1 %64 }
  0x9d   :  { %v62_v29 = vpop.xlane.xlu0 %61  ;;  %74 = vst.msk [vmem:[%s153_s2 + $0x8] sm:$0xff] %vm72_vm2, %v65_v28 }
  0x9e   :  { %73 = vst.msk [vmem:[%s153_s2] sm:$0xff] %vm72_vm2, %v62_v29 }
  0xa0   :  { %v71_v30 = vpop.xlane.xlu1 %70 }
  0xa1   :  { %v68_v31 = vpop.xlane.xlu0 %67  ;;  %76 = vst.msk [vmem:[%s153_s2 + $0x18] sm:$0xff] %vm72_vm2, %v71_v30 }
  0xa2   :  { %75 = vst.msk [vmem:[%s153_s2 + $0x10] sm:$0xff] %vm72_vm2, %v68_v31 }

// kernel: maniqa_forward.32
= control target key start
LH: loop header
LB: loop body
LE: loop exit
PB: predicated region body
PF: predicated region fallthrough
CT: control target
= control target key end

     0   :  { %vm19_vm0 = vcmask 779264   ;;  %v428_v0 = vmov 0.0   ;;  %v429_v2 = vmov -inf   ;;  %vm430_vm1 = vmmov 0   ;;  %s519_s1 = inlined_call_operand.vmem [shape: bf16[96,6], index: 1, kind: input, shape index: {}]   ;;  %s520_s0 = inlined_call_operand.vmem [shape: bf16[2,16,96], index: 0, kind: input, shape index: {}]   ;;  %s521_s2 = inlined_call_operand.vmem [shape: bf16[6,96], index: 2, kind: input, shape index: {}]   ;;  %s522_s3 = inlined_call_operand.vmem [shape: f32[2,96], index: 3, kind: output, shape index: {}]  }
   0x1   :  { %386 = vmatprep.subr.bf16.mxu1 %v428_v0  ;;  %v418_v1 = vld [vmem:[%s519_s1] sm:$0xff]   ;;  %370 = vmatprep.subr.bf16.mxu0 %v428_v0  ;;  %21 = vst.msk [vmem:[#allocation3] sm:$0x3] %vm19_vm0, %v429_v2  ;;  %20 = vst.msk [vmem:[#allocation2] sm:$0x3] %vm19_vm0, %v428_v0  ;;  %v419_v3 = vld [vmem:[%s519_s1 + $0x8] sm:$0xff]  }
   0x2   :  { %398 = vmatprep.mubr.msk.bf16.mxu1 %vm430_vm1, %v428_v0  ;;  %382 = vmatprep.mubr.msk.bf16.mxu0 %vm430_vm1, %v428_v0  ;;  %v420_v4 = vld [vmem:[%s519_s1 + $0x10] sm:$0xff]   ;;  %v344_v5 = vld [vmem:[%s520_s0] sm:$0xff]   ;;  %v351_v6 = vld [vmem:[%s520_s0 + $0x8] sm:$0xff]   ;;  %vm31_vm2 = vcmask 785408   ;;  %vm52_vm3 = vcmask 1041409   ;;  %vm234_vm4 = vcmask 1042432  }
   0x3   :  { %387 = vmatpush3.bf16.msra.mxu1 %v418_v1  ;;  %371 = vmatpush3.bf16.msra.mxu0 %v418_v1  ;;  %v345_v7 = vunpack.c.l.bf16 %v344_v5  ;;  %v346_v8 = vunpack.c.h.bf16 %v344_v5  ;;  %v349_v9 = vunpack.c.l.bf16 %v351_v6  ;;  %v350_v10 = vunpack.c.h.bf16 %v351_v6  ;;  %v421_v15 = vld [vmem:[%s519_s1 + $0x18] sm:$0xff]   ;;  %v422_v27 = vld [vmem:[%s519_s1 + $0x20] sm:$0xff]   ;;  %v423_v36 = vld [vmem:[%s519_s1 + $0x28] sm:$0xff]  }
   0x4   :  { %388 = vmatprep.subr.bf16.mxu1 %v428_v0  ;;  %372 = vmatprep.subr.bf16.mxu0 %v428_v0  ;;  %v228_v57 = vld [vmem:[%s521_s2] sm:$0x7]  ;;  %vm230_vm5 = vcmask 48128  }
   0x5   :  { %v32_v11 = vsel %vm31_vm2, %v345_v7, 0.0  ;;  %v33_v12 = vsel %vm31_vm2, %v346_v8, 0.0  ;;  %v41_v13 = vsel %vm31_vm2, %v349_v9, 0.0  ;;  %v42_v14 = vsel %vm31_vm2, %v350_v10, 0.0 }
   0x6   :  { %v34_v16 = vadd.f32 %v33_v12, %v32_v11  ;;  %v43_v17 = vadd.f32 %v42_v14, %v41_v13  ;;  %v59_v18 = vsel %vm31_vm2, %v345_v7, -inf  ;;  %v60_v19 = vsel %vm31_vm2, %v346_v8, -inf }
   0x7   :  { %389 = vmatpush3.bf16.msra.mxu1 %v419_v3  ;;  %373 = vmatpush3.bf16.msra.mxu0 %v419_v3  ;;  %v61_v20 = vmax.f32 %v59_v18, %v60_v19  ;;  %v68_v21 = vsel %vm31_vm2, %v349_v9, -inf  ;;  %v69_v22 = vsel %vm31_vm2, %v350_v10, -inf  ;;  %v236_v62 = vsel %vm234_vm4, %v228_v57, 0 }
   0x8   :  { %390 = vmatprep.subr.bf16.mxu1 %v428_v0  ;;  %374 = vmatprep.subr.bf16.mxu0 %v428_v0  ;;  %v35_v23 = vrot.slane %v34_v16, 4  ;;  %v44_v24 = vrot.slane %v43_v17, 4  ;;  %v70_v25 = vmax.f32 %v68_v21, %v69_v22  ;;  %v30_v46 = vld [vmem:[#allocation2] sm:$0x3]  ;;  %v58_v50 = vld [vmem:[#allocation3] sm:$0x3] }
   0x9   :  { %v62_v26 = vrot.slane %v61_v20, 4 }
   0xa   :  { %v36_v28 = vadd.f32 %v35_v23, %v34_v16  ;;  %v45_v29 = vadd.f32 %v44_v24, %v43_v17  ;;  %v71_v30 = vrot.slane %v70_v25, 4 }
   0xb   :  { %391 = vmatpush3.bf16.msra.mxu1 %v420_v4  ;;  %375 = vmatpush3.bf16.msra.mxu0 %v420_v4  ;;  %v63_v31 = vmax.f32 %v61_v20, %v62_v26 }
   0xc   :  { %392 = vmatprep.subr.bf16.mxu1 %v428_v0  ;;  %376 = vmatprep.subr.bf16.mxu0 %v428_v0  ;;  %v37_v32 = vrot.slane %v36_v28, 2  ;;  %v46_v33 = vrot.slane %v45_v29, 2  ;;  %v72_v34 = vmax.f32 %v70_v25, %v71_v30 }
   0xd   :  { %v64_v35 = vrot.slane %v63_v31, 2 }
   0xe   :  { %v73_v37 = vrot.slane %v72_v34, 2  ;;  %v38_v38 = vadd.f32 %v37_v32, %v36_v28  ;;  %v47_v39 = vadd.f32 %v46_v33, %v45_v29 }
   0xf   :  { %393 = vmatpush3.bf16.msra.mxu1 %v421_v15  ;;  %377 = vmatpush3.bf16.msra.mxu0 %v421_v15  ;;  %v65_v40 = vmax.f32 %v63_v31, %v64_v35 }
  0x10   :  { %394 = vmatprep.subr.bf16.mxu1 %v428_v0  ;;  %378 = vmatprep.subr.bf16.mxu0 %v428_v0  ;;  %v74_v41 = vmax.f32 %v72_v34, %v73_v37  ;;  %v39_v42 = vrot.slane %v38_v38, 1  ;;  %v48_v43 = vrot.slane %v47_v39, 1 }
  0x11   :  { %v66_v44 = vrot.slane %v65_v40, 1 }
  0x12   :  { %v75_v45 = vrot.slane %v74_v41, 1  ;;  %v40_v47 = vadd.f32 %v39_v42, %v38_v38  ;;  %v49_v48 = vadd.f32 %v48_v43, %v47_v39 }
  0x13   :  { %395 = vmatpush3.bf16.msra.mxu1 %v422_v27  ;;  %379 = vmatpush3.bf16.msra.mxu0 %v422_v27  ;;  %v67_v49 = vmax.f32 %v65_v40, %v66_v44 }
  0x14   :  { %396 = vmatprep.subr.bf16.mxu1 %v428_v0  ;;  %380 = vmatprep.subr.bf16.mxu0 %v428_v0  ;;  %v76_v51 = vmax.f32 %v74_v41, %v75_v45  ;;  %v53_v52 = vsel %vm52_vm3, %v49_v48, %v40_v47 }
  0x15   :  { %v55_v53 = vadd.f32 %v53_v52, %v30_v46 }
  0x16   :  { %v79_v54 = vsel %vm52_vm3, %v76_v51, %v67_v49 }
  0x17   :  { %397 = vmatpush3.bf16.msra.mxu1 %v423_v36  ;;  %381 = vmatpush3.bf16.msra.mxu0 %v423_v36  ;;  %v81_v55 = vmax.f32 %v58_v50, %v79_v54  ;;  %57 = vst.msk [vmem:[#allocation2] sm:$0x3] %vm19_vm0, %v55_v53 }
  0x18   :  { %402 = vmatprep.subr.bf16.mxu1 %v428_v0  ;;  %408 = vmatprep.subr.bf16.mxu0 %v428_v0 }
  0x19   :  { %82 = vst.msk [vmem:[#allocation3] sm:$0x3] %vm19_vm0, %v81_v55 }
  0x1e   :  { %v86_v56 = vld [vmem:[#allocation2] sm:$0x3] }
  0x1f   :  { %v87_v58 = vmul.f32 0.0625, %v86_v56 }
  0x20   :  { %v89_v59 = vld [vmem:[#allocation3] sm:$0x3] }
  0x21   :  { %v90_v60 = vpack.c.bf16 %v89_v59, %v89_v59  ;;  %v88_v61 = vpack.c.bf16 %v87_v58, %v87_v58 }
  0x23   :  { %399 = vmatmul.mubr.msk.bf16.vlgmr.msra.gmra.mrb[0].mxu1 %vm31_vm2, %v90_v60  ;;  %383 = vmatmul.mubr.msk.bf16.vlgmr.msra.gmra.mrb[0].mxu0 %vm31_vm2, %v88_v61 }
  0x24   :  { %403 = vmatpush3.bf16.msra.mxu1 %v236_v62  ;;  %409 = vmatpush3.bf16.msra.mxu0 %v236_v62 }
  0x25   :  { %404 = vmatprep.mubr.msk.bf16.mxu1 %vm430_vm1, %v428_v0  ;;  %410 = vmatprep.mubr.msk.bf16.mxu0 %vm430_vm1, %v428_v0 }
  0xf6   :  { %v220_v63 = vpop.f32.mrb[0].mxu1  ;;  %v176_v1 = vpop.f32.mrb[0].mxu0 }
  0xf7   :  { %v226_v2 = vmax.f32 %v220_v63, 0.0  ;;  %v400_v3 = vpop.f32.mrb[1].mxu1  ;;  %v182_v4 = vmax.f32 %v176_v1, 0.0  ;;  %v384_v5 = vpop.f32.mrb[1].mxu0 }
  0xf8   :  { %v223_v6 = vpop.f32.mrb[2].mxu1  ;;  %v179_v7 = vpop.f32.mrb[2].mxu0 }
  0xf9   :  { %v229_v8 = vpack.c.bf16 %v226_v2, %v226_v2  ;;  %v227_v9 = vpack.c.bf16 %v182_v4, %v182_v4  ;;  %v401_v10 = vpop.f32.mrb[3].mxu1  ;;  %v385_v11 = vpop.f32.mrb[3].mxu0 }
  0xfb   :  { %405 = vmatmul.mubr.msk.bf16.vlgmr.msra.gmra.mrb[4].mxu1 %vm230_vm5, %v229_v8  ;;  %411 = vmatmul.mubr.msk.bf16.vlgmr.msra.gmra.mrb[4].mxu0 %vm230_vm5, %v227_v9 }
 0x1ce   :  { %v272_v12 = vpop.f32.mrb[4].mxu1  ;;  %v315_v13 = vpop.f32.mrb[4].mxu0 }
 0x1cf   :  { %v406_v14 = vpop.f32.mrb[5].mxu1  ;;  %v316_v15 = vadd.f32 %v315_v13, %v272_v12  ;;  %v412_v0 = vpop.f32.mrb[5].mxu0 }
 0x1d0   :  { %v275_v16 = vpop.f32.mrb[6].mxu1  ;;  %v318_v17 = vpop.f32.mrb[6].mxu0 }
 0x1d1   :  { %v342_v18 = vmul.f32 -1.442695, %v316_v15  ;;  %v407_v19 = vpop.f32.mrb[7].mxu1  ;;  %v413_v20 = vpop.f32.mrb[7].mxu0 }
 0x1d3   :  { %424 = vpow2.f32 %v342_v18 }
 0x1dd   :  { %v425_v21 = vpop.eup %424 }
 0x1de   :  { %v324_v22 = vadd.f32 1.0, %v425_v21 }
 0x1e0   :  { %426 = vrcp.f32 %v324_v22 }
 0x1ea   :  { %v427_v23 = vpop.eup %426 }
 0x1eb   :  { %327 = vst.msk [vmem:[%s522_s3] sm:$0x3] %vm19_vm0, %v427_v23 }

// kernel: maniqa_forward.34
= control target key start
LH: loop header
LB: loop body
LE: loop exit
PB: predicated region body
PF: predicated region fallthrough
CT: control target
= control target key end

     0   :  { %v240_v0 = vmov 0   ;;  %vm141_vm0 = vcmask 130048   ;;  %vm165_vm1 = vcmask 123904   ;;  %vm219_vm2 = vcmask 1041409   ;;  %s403_s1 = inlined_call_operand.vmem [shape: f32[1,98,1], index: 1, kind: input, shape index: {}]   ;;  %s404_s0 = inlined_call_operand.vmem [shape: f32[2,98,16], index: 0, kind: input, shape index: {}]   ;;  %s405_s2 = inlined_call_operand.vmem [shape: f32[2,16], index: 2, kind: output, shape index: {}]  }
   0x1   :  { %231 = vset.pattern.permute.xlu1 %v240_v0  ;;  %230 = vset.pattern.permute.xlu0 %v240_v0  ;;  %v39_v1 = vld [vmem:[%s403_s1 + $0x10] sm:$0xff]  ;;  %v37_v2 = vld [vmem:[%s403_s1] sm:$0xff]  ;;  %v40_v3 = vld [vmem:[%s403_s1 + $0x18] sm:$0xff] }
   0x2   :  { %62 = vperm.xlu1 %231, %v39_v1   ;;  %52 = vperm.xlu0 %230, %v37_v2   ;;  %v38_v4 = vld [vmem:[%s403_s1 + $0x8] sm:$0xff]  ;;  %v41_v6 = vld [vmem:[%s403_s1 + $0x20] sm:$0xff]  ;;  %v44_v7 = vld [vmem:[%s403_s1 + $0x38] sm:$0xff] }
   0x3   :  { %v42_v5 = vld [vmem:[%s403_s1 + $0x28] sm:$0xff]  ;;  %v43_v8 = vld [vmem:[%s403_s1 + $0x30] sm:$0xff]  ;;  %v45_v10 = vld [vmem:[%s403_s1 + $0x40] sm:$0xff] }
   0x4   :  { %v46_v9 = vld [vmem:[%s403_s1 + $0x48] sm:$0xff]  ;;  %v48_v11 = vld [vmem:[%s403_s1 + $0x58] sm:$0xff]  ;;  %v47_v12 = vld [vmem:[%s403_s1 + $0x50] sm:$0xff] }
   0x5   :  { %v49_v13 = vld [vmem:[%s403_s1 + $0x60] sm:$0x3]  ;;  %v24_v15 = vld [vmem:[%s404_s0 + $0x68] sm:$0xff]  ;;  %v13_v18 = vld [vmem:[%s404_s0 + $0x10] sm:$0xff] }
   0x6   :  { %67 = vperm.xlu1 %231, %v40_v3   ;;  %57 = vperm.xlu0 %230, %v38_v4   ;;  %v11_v14 = vld [vmem:[%s404_s0] sm:$0xff]  ;;  %v26_v19 = vld [vmem:[%s404_s0 + $0x78] sm:$0xff]  ;;  %v12_v22 = vld [vmem:[%s404_s0 + $0x8] sm:$0xff] }
   0x7   :  { %v25_v23 = vld [vmem:[%s404_s0 + $0x70] sm:$0xff]  ;;  %v14_v25 = vld [vmem:[%s404_s0 + $0x18] sm:$0xff]  ;;  %v27_v26 = vld [vmem:[%s404_s0 + $0x80] sm:$0xff] }
   0x8   :  { %v15_v34 = vld [vmem:[%s404_s0 + $0x20] sm:$0xff]  ;;  %v28_v35 = vld [vmem:[%s404_s0 + $0x88] sm:$0xff]  ;;  %v29_v44 = vld [vmem:[%s404_s0 + $0x90] sm:$0xff] }
   0x9   :  { %v16_v43 = vld [vmem:[%s404_s0 + $0x28] sm:$0xff]  ;;  %v17_v52 = vld [vmem:[%s404_s0 + $0x30] sm:$0xff]  ;;  %v30_v53 = vld [vmem:[%s404_s0 + $0x98] sm:$0xff] }
   0xa   :  { %77 = vperm.xlu1 %231, %v42_v5   ;;  %72 = vperm.xlu0 %230, %v41_v6   ;;  %v18_v61 = vld [vmem:[%s404_s0 + $0x38] sm:$0xff]  ;;  %v31_v62 = vld [vmem:[%s404_s0 + $0xa0] sm:$0xff] }
   0xb   :  { %v19_v6 = vld [vmem:[%s404_s0 + $0x40] sm:$0xff] }
   0xe   :  { %87 = vperm.xlu1 %231, %v44_v7   ;;  %82 = vperm.xlu0 %230, %v43_v8   ;;  %v32_v7 = vld [vmem:[%s404_s0 + $0xa8] sm:$0xff] }
  0x12   :  { %97 = vperm.xlu1 %231, %v46_v9   ;;  %92 = vperm.xlu0 %230, %v45_v10  }
  0x16   :  { %107 = vperm.xlu1 %231, %v48_v11   ;;  %102 = vperm.xlu0 %230, %v47_v12  }
  0x1a   :  { %112 = vperm.xlu0 %230, %v49_v13  }
  0x81   :  { %v63_v16 = vpop.permute.xlu1 %62  ;;  %v53_v17 = vpop.permute.xlu0 %52 }
  0x82   :  { %v115_v20 = vmul.f32 %v53_v17, %v11_v14  ;;  %v128_v21 = vmul.f32 %v53_v17, %v24_v15  ;;  %v117_v28 = vmul.f32 %v63_v16, %v13_v18  ;;  %v130_v29 = vmul.f32 %v63_v16, %v26_v19  ;;  %v20_v15 = vld [vmem:[%s404_s0 + $0x48] sm:$0xff]  ;;  %v33_v16 = vld [vmem:[%s404_s0 + $0xb0] sm:$0xff] }
  0x84   :  { %v142_v32 = vsel %vm141_vm0, %v115_v20, 0.0  ;;  %v174_v33 = vsel %vm141_vm0, %v128_v21, 0.0  ;;  %v145_v46 = vsel %vm141_vm0, %v117_v28, 0.0  ;;  %v177_v47 = vsel %vm141_vm0, %v130_v29, 0.0 }
  0x85   :  { %v68_v24 = vpop.permute.xlu1 %67  ;;  %v58_v27 = vpop.permute.xlu0 %57 }
  0x86   :  { %v116_v30 = vmul.f32 %v58_v27, %v12_v22  ;;  %v129_v31 = vmul.f32 %v58_v27, %v25_v23  ;;  %v118_v36 = vmul.f32 %v68_v24, %v14_v25  ;;  %v131_v37 = vmul.f32 %v68_v24, %v27_v26  ;;  %v21_v24 = vld [vmem:[%s404_s0 + $0x50] sm:$0xff]  ;;  %v34_v25 = vld [vmem:[%s404_s0 + $0xb8] sm:$0xff] }
  0x88   :  { %v143_v38 = vsel %vm141_vm0, %v116_v30, 0.0  ;;  %v175_v39 = vsel %vm141_vm0, %v129_v31, 0.0  ;;  %v147_v54 = vsel %vm141_vm0, %v118_v36, 0.0  ;;  %v179_v55 = vsel %vm141_vm0, %v131_v37, 0.0 }
  0x89   :  { %v144_v40 = vadd.f32 %v143_v38, %v142_v32  ;;  %v176_v41 = vadd.f32 %v175_v39, %v174_v33  ;;  %v78_v42 = vpop.permute.xlu1 %77  ;;  %v73_v45 = vpop.permute.xlu0 %72  ;;  %v22_v33 = vld [vmem:[%s404_s0 + $0x58] sm:$0xff] }
  0x8a   :  { %v119_v48 = vmul.f32 %v73_v45, %v15_v34  ;;  %v132_v49 = vmul.f32 %v73_v45, %v28_v35  ;;  %v120_v56 = vmul.f32 %v78_v42, %v16_v43  ;;  %v133_v57 = vmul.f32 %v78_v42, %v29_v44  ;;  %v35_v34 = vld [vmem:[%s404_s0 + $0xc0] sm:$0xff]  ;;  %v36_v43 = vld [vmem:[%s404_s0 + $0xc8] sm:$0x3] }
  0x8b   :  { %v146_v50 = vadd.f32 %v145_v46, %v144_v40  ;;  %v178_v51 = vadd.f32 %v177_v47, %v176_v41  ;;  %v23_v42 = vld [vmem:[%s404_s0 + $0x60] sm:$0x3] }
  0x8c   :  { %v149_v0 = vsel %vm141_vm0, %v119_v48, 0.0  ;;  %v181_v1 = vsel %vm141_vm0, %v132_v49, 0.0  ;;  %v151_v8 = vsel %vm141_vm0, %v120_v56, 0.0  ;;  %v183_v9 = vsel %vm141_vm0, %v133_v57, 0.0 }
  0x8d   :  { %v148_v58 = vadd.f32 %v147_v54, %v146_v50  ;;  %v180_v59 = vadd.f32 %v179_v55, %v178_v51  ;;  %v88_v60 = vpop.permute.xlu1 %87  ;;  %v83_v63 = vpop.permute.xlu0 %82 }
  0x8e   :  { %v121_v2 = vmul.f32 %v83_v63, %v17_v52  ;;  %v134_v3 = vmul.f32 %v83_v63, %v30_v53  ;;  %v122_v10 = vmul.f32 %v88_v60, %v18_v61  ;;  %v135_v11 = vmul.f32 %v88_v60, %v31_v62 }
  0x8f   :  { %v150_v4 = vadd.f32 %v149_v0, %v148_v58  ;;  %v182_v5 = vadd.f32 %v181_v1, %v180_v59 }
  0x90   :  { %v153_v18 = vsel %vm141_vm0, %v121_v2, 0.0  ;;  %v185_v19 = vsel %vm141_vm0, %v134_v3, 0.0  ;;  %v155_v26 = vsel %vm141_vm0, %v122_v10, 0.0  ;;  %v187_v27 = vsel %vm141_vm0, %v135_v11, 0.0 }
  0x91   :  { %v152_v12 = vadd.f32 %v151_v8, %v150_v4  ;;  %v184_v13 = vadd.f32 %v183_v9, %v182_v5  ;;  %v98_v14 = vpop.permute.xlu1 %97  ;;  %v93_v17 = vpop.permute.xlu0 %92 }
  0x92   :  { %v123_v20 = vmul.f32 %v93_v17, %v19_v6  ;;  %v136_v21 = vmul.f32 %v93_v17, %v32_v7  ;;  %v124_v28 = vmul.f32 %v98_v14, %v20_v15  ;;  %v137_v29 = vmul.f32 %v98_v14, %v33_v16 }
  0x93   :  { %v154_v22 = vadd.f32 %v153_v18, %v152_v12  ;;  %v186_v23 = vadd.f32 %v185_v19, %v184_v13 }
  0x94   :  { %v157_v36 = vsel %vm141_vm0, %v123_v20, 0.0  ;;  %v189_v37 = vsel %vm141_vm0, %v136_v21, 0.0  ;;  %v159_v44 = vsel %vm141_vm0, %v124_v28, 0.0  ;;  %v191_v45 = vsel %vm141_vm0, %v137_v29, 0.0 }
  0x95   :  { %v156_v30 = vadd.f32 %v155_v26, %v154_v22  ;;  %v188_v31 = vadd.f32 %v187_v27, %v186_v23  ;;  %v108_v32 = vpop.permute.xlu1 %107  ;;  %v103_v35 = vpop.permute.xlu0 %102 }
  0x96   :  { %v125_v38 = vmul.f32 %v103_v35, %v21_v24  ;;  %v138_v39 = vmul.f32 %v103_v35, %v34_v25  ;;  %v126_v46 = vmul.f32 %v108_v32, %v22_v33  ;;  %v139_v47 = vmul.f32 %v108_v32, %v35_v34 }
  0x97   :  { %v158_v40 = vadd.f32 %v157_v36, %v156_v30  ;;  %v190_v41 = vadd.f32 %v189_v37, %v188_v31 }
  0x98   :  { %v161_v51 = vsel %vm141_vm0, %v125_v38, 0.0  ;;  %v193_v52 = vsel %vm141_vm0, %v138_v39, 0.0  ;;  %v163_v57 = vsel %vm141_vm0, %v126_v46, 0.0  ;;  %v195_v58 = vsel %vm141_vm0, %v139_v47, 0.0 }
  0x99   :  { %v160_v48 = vadd.f32 %v159_v44, %v158_v40  ;;  %v192_v49 = vadd.f32 %v191_v45, %v190_v41  ;;  %v113_v50 = vpop.permute.xlu0 %112 }
  0x9a   :  { %v127_v53 = vmul.f32 %v113_v50, %v23_v42  ;;  %v140_v54 = vmul.f32 %v113_v50, %v36_v43 }
  0x9b   :  { %v162_v55 = vadd.f32 %v161_v51, %v160_v48  ;;  %v194_v56 = vadd.f32 %v193_v52, %v192_v49 }
  0x9c   :  { %v166_v61 = vsel %vm165_vm1, %v127_v53, 0.0  ;;  %v197_v62 = vsel %vm165_vm1, %v140_v54, 0.0 }
  0x9d   :  { %v164_v59 = vadd.f32 %v163_v57, %v162_v55  ;;  %v196_v60 = vadd.f32 %v195_v58, %v194_v56 }
  0x9f   :  { %v167_v63 = vadd.f32 %v166_v61, %v164_v59  ;;  %v198_v0 = vadd.f32 %v197_v62, %v196_v60 }
  0xa1   :  { %v168_v1 = vrot.slane %v167_v63, 4  ;;  %v199_v2 = vrot.slane %v198_v0, 4 }
  0xa3   :  { %v169_v3 = vadd.f32 %v168_v1, %v167_v63  ;;  %v200_v4 = vadd.f32 %v199_v2, %v198_v0 }
  0xa5   :  { %v170_v5 = vrot.slane %v169_v3, 2  ;;  %v201_v6 = vrot.slane %v200_v4, 2 }
  0xa7   :  { %v171_v7 = vadd.f32 %v170_v5, %v169_v3  ;;  %v202_v8 = vadd.f32 %v201_v6, %v200_v4 }
  0xa9   :  { %v172_v9 = vrot.slane %v171_v7, 1  ;;  %v203_v10 = vrot.slane %v202_v8, 1 }
  0xab   :  { %v173_v11 = vadd.f32 %v172_v9, %v171_v7  ;;  %v204_v12 = vadd.f32 %v203_v10, %v202_v8 }
  0xad   :  { %v227_v13 = vmul.f32 -1.442695, %v173_v11  ;;  %v228_v14 = vmul.f32 -1.442695, %v204_v12 }
  0xaf   :  { %232 = vpow2.f32 %v227_v13 }
  0xb0   :  { %234 = vpow2.f32 %v228_v14 }
  0xb9   :  { %v233_v15 = vpop.eup %232 }
  0xba   :  { %v235_v16 = vpop.eup %234  ;;  %v211_v17 = vadd.f32 1.0, %v233_v15 }
  0xbb   :  { %v212_v18 = vadd.f32 1.0, %v235_v16 }
  0xbc   :  { %236 = vrcp.f32 %v211_v17 }
  0xbd   :  { %238 = vrcp.f32 %v212_v18 }
  0xc6   :  { %v237_v19 = vpop.eup %236 }
  0xc7   :  { %v239_v20 = vpop.eup %238 }
  0xc8   :  { %v220_v21 = vsel %vm219_vm2, %v239_v20, %v237_v19 }
  0xc9   :  { %222 = vst.msk [vmem:[%s405_s2] sm:$0x3] %vm165_vm1, %v220_v21 }

// kernel: maniqa_forward.35
= control target key start
LH: loop header
LB: loop body
LE: loop exit
PB: predicated region body
PF: predicated region fallthrough
CT: control target
= control target key end

     0   :  { %s787_s24 = smov 0   ;;  %s789_s25 = smov 0   ;;  %s862_s0 = inlined_call_operand.vmem [shape: bf16[2,16,96], index: 0, kind: input, shape index: {}]   ;;  %s863_s1 = inlined_call_operand.vmem [shape: f32[2,1,96], index: 1, kind: input, shape index: {}]   ;;  %s864_s2 = inlined_call_operand.vmem [shape: f32[2,16,1], index: 2, kind: input, shape index: {}]   ;;  %s865_s3 = inlined_call_operand.vmem [shape: f32[1,96], index: 3, kind: input, shape index: {}]   ;;  %s866_s4 = inlined_call_operand.vmem [shape: f32[1,96], index: 4, kind: input, shape index: {}]   ;;  %s867_s5 = inlined_call_operand.vmem [shape: bf16[96,64], index: 5, kind: input, shape index: {}]   ;;  %s868_s6 = inlined_call_operand.vmem [shape: f32[1,64], index: 6, kind: input, shape index: {}]   ;;  %s869_s7 = inlined_call_operand.vmem [shape: f32[2,16,64], index: 7, kind: output, shape index: {}]  }
   0x1   :  { %s791_s26 = smov 0  }
   0x2 LB: > { %s29_s27 = sadd.s32 1, %s738_s25  ;;  %p636_p0 = scmp.ge.s32.totalorder %s742_s26, 1  ;;  %s742_s26 = sphi %s791_s26, %s17_s26   ;;  %s738_s25 = sphi %s789_s25, %s871_s25   ;;  %s734_s24 = sphi %s787_s24, %s870_s24  }
   0x3   : > { %p31_p1 = scmp.ge.s32.totalorder %s29_s27, 2  ;;  %p283_p2 = scmp.lt.s32.totalorder %s742_s26, 3 }
   0x5   : > { %s873_s27 = smov (%p31_p1, %s29_s27), 0  ;;  %p284_p3 = pnand %p636_p0, %p283_p2 }
   0x6   : > { %p336_p4 = scmp.lt.s32.totalorder (!%p284_p3), %s734_s24, 1  ;;  %v714_v0 = vld [vmem:[%s867_s5] sm:$0xff] (!%p284_p3)   ;;  %v744_v1 = vmov (!%p284_p3), 0   ;;  %v745_v2 = vmov (!%p284_p3), 0.0   ;;  %v715_v3 = vld [vmem:[%s867_s5 + $0x8] sm:$0xff] (!%p284_p3)   ;;  %v716_v5 = vld [vmem:[%s867_s5 + $0x10] sm:$0xff] (!%p284_p3)  }
   0x7   : > { %287 = sbr.rel (%p284_p3) target bundleno = 375 (0x177), region = 48  ;;  %713 = vset.pattern.permute.xlu0 (!%p284_p3), %v744_v1  ;;  %670 = vmatprep.subr.bf16.mxu0 (!%p284_p3), %v745_v2  ;;  %v717_v7 = vld [vmem:[%s867_s5 + $0x18] sm:$0xff] (!%p284_p3)   ;;  %v718_v8 = vld [vmem:[%s867_s5 + $0x20] sm:$0xff] (!%p284_p3)   ;;  %v719_v9 = vld [vmem:[%s867_s5 + $0x28] sm:$0xff] (!%p284_p3)   ;;  %vm746_vm0 = vmmov (!%p284_p3), 0   ;;  %vm470_vm1 = vcmask (!%p284_p3), 785408  }
   0x8   : > { %671 = vmatpush3.bf16.msra.mxu0 (!%p284_p3), %v714_v0  ;;  %682 = vmatprep.mubr.msk.bf16.mxu0 (!%p284_p3), %vm746_vm0, %v745_v2  ;;  %v644_v18 = vld [vmem:[%s865_s3] ss:$0 sm:$0xff] (!%p284_p3)  ;;  %vm515_vm2 = vcmask (!%p284_p3), 523264  }
   0x9   : > { %672 = vmatprep.subr.bf16.mxu0 (!%p284_p3), %v745_v2  ;;  %v645_v22 = vld [vmem:[%s866_s4] ss:$0 sm:$0xff] (!%p284_p3) }
   0xa   : > { %v646_v27 = vld [vmem:[%s868_s6] ss:$0 sm:$0xff] (!%p284_p3) }
   0xc   : > { %673 = vmatpush3.bf16.msra.mxu0 (!%p284_p3), %v715_v3 }
   0xd   : > { %674 = vmatprep.subr.bf16.mxu0 (!%p284_p3), %v745_v2 }
   0xe   : > { %s875_s24 = smov (!%p336_p4, %s734_s24), 1 }
   0xf   : > { %s657_s9 = sshll.u32 %s875_s24, 4  ;;  %s656_s21 = sshll.u32 %s875_s24, 3 }
  0x10   : > { %s356_s12 = scalar_lea.vmem %s864_s2, %s657_s9  ;;  %675 = vmatpush3.bf16.msra.mxu0 %v716_v5  ;;  %s343_s28 = scalar_lea.vmem %s862_s0, %s656_s21 }
  0x11   : > { %v382_v4 = vld [vmem:[%s356_s12] sm:$0xff]  ;;  %v383_v6 = vld [vmem:[%s356_s12 + $0x8] sm:$0xff]  ;;  %676 = vmatprep.subr.bf16.mxu0 %v745_v2  ;;  %s347_s8 = scalar_lea.vmem %s863_s1, %s875_s24  ;;  %s366_s18 = scalar_lea.vmem %s869_s7, %s657_s9 }
  0x12   : > { %386 = vperm.xlu0 %713, %v382_v4   ;;  %v660_v10 = vld [vmem:[%s343_s28] sm:$0xff]  }
  0x13   : > { %v661_v11 = vunpack.c.l.bf16 %v660_v10  ;;  %v643_v12 = vld [vmem:[%s347_s8] ss:$0 sm:$0xff]  ;;  %v662_v14 = vunpack.c.h.bf16 %v660_v10 }
  0x14   : > { %677 = vmatpush3.bf16.msra.mxu0 %v717_v7 }
  0x15   : > { %678 = vmatprep.subr.bf16.mxu0 %v745_v2  ;;  %v380_v13 = vmul.f32 %v661_v11, %v643_v12  ;;  %v381_v17 = vmul.f32 %v662_v14, %v643_v12 }
  0x16   : > { %391 = vperm.xlu0 %713, %v383_v6  }
  0x18   : > { %679 = vmatpush3.bf16.msra.mxu0 %v718_v8 }
  0x19   : > { %680 = vmatprep.subr.bf16.mxu0 %v745_v2 }
  0x1c   : > { %681 = vmatpush3.bf16.msra.mxu0 %v719_v9 }
  0x91   : > { %v387_v15 = vpop.permute.xlu0 %386 }
  0x92   : > { %v394_v16 = vmul.f32 %v387_v15, %v380_v13 }
  0x94   : > { %v403_v20 = vmul.f32 %v644_v18, %v394_v16 }
  0x95   : > { %v392_v19 = vpop.permute.xlu0 %391 }
  0x96   : > { %v395_v21 = vmul.f32 %v392_v19, %v381_v17  ;;  %v412_v24 = vadd.f32 %v645_v22, %v403_v20 }
  0x98   : > { %v404_v23 = vmul.f32 %v644_v18, %v395_v21 }
  0x9a   : > { %v413_v25 = vadd.f32 %v645_v22, %v404_v23 }
  0x9c   : > { %v414_v26 = vpack.c.bf16 %v413_v25, %v412_v24 }
  0x9e   : > { %683 = vmatmul.mubr.msk.bf16.vlgmr.msra.gmra.mrb[0].mxu0 %vm470_vm1, %v414_v26 }
 0x171   : > { %v508_v28 = vpop.f32.mrb[0].mxu0 }
 0x172   : > { %v509_v29 = vadd.f32 %v646_v27, %v508_v28  ;;  %v684_v30 = vpop.f32.mrb[1].mxu0 }
 0x173   : > { %v511_v31 = vpop.f32.mrb[2].mxu0 }
 0x174   : > { %516 = vst.msk [vmem:[%s366_s18] sm:$0xff] %vm515_vm2, %v509_v29  ;;  %v512_v32 = vadd.f32 %v646_v27, %v511_v31  ;;  %v685_v33 = vpop.f32.mrb[3].mxu0 }
 0x176   : > { %517 = vst.msk [vmem:[%s366_s18 + $0x8] sm:$0xff] %vm515_vm2, %v512_v32 }
 0x177 PF: > { %s17_s26 = sadd.s32 1, %s742_s26   ;;  %s870_s24 = smov %s738_s25 }
 0x178   : > { %p14_p5 = scmp.ge.s32.totalorder %s17_s26, 4   ;;  %s871_s25 = smov %s873_s27 }
 0x17a   :  { %16 = sbr.rel (!%p14_p5) target bundleno = 2 (0x2), region = 84 }

// kernel: maniqa_forward.36
= control target key start
LH: loop header
LB: loop body
LE: loop exit
PB: predicated region body
PF: predicated region fallthrough
CT: control target
= control target key end

     0   :  { %s774_s21 = smov 0   ;;  %s776_s22 = smov 0   ;;  %s874_s0 = inlined_call_operand.vmem [shape: bf16[2,4,3], index: 0, kind: input, shape index: {}]   ;;  %s875_s1 = inlined_call_operand.vmem [shape: bf16[3,256], index: 1, kind: input, shape index: {}]   ;;  %s876_s2 = inlined_call_operand.vmem [shape: f32[1,256], index: 2, kind: input, shape index: {}]   ;;  %s877_s3 = inlined_call_operand.vmem [shape: bf16[256,128], index: 3, kind: input, shape index: {}]   ;;  %s878_s4 = inlined_call_operand.vmem [shape: f32[1,128], index: 4, kind: input, shape index: {}]   ;;  %s879_s5 = inlined_call_operand.vmem [shape: f32[1,128], index: 5, kind: input, shape index: {}]   ;;  %s880_s6 = inlined_call_operand.vmem [shape: bf16[2,4,128], index: 6, kind: output, shape index: {}]  }
   0x1   :  { %s778_s23 = smov 0  }
   0x2 LB: > { %s28_s24 = sadd.s32 1, %s731_s22  ;;  %p624_p0 = scmp.ge.s32.totalorder %s735_s23, 1  ;;  %s735_s23 = sphi %s778_s23, %s16_s23   ;;  %s731_s22 = sphi %s776_s22, %s882_s22   ;;  %s727_s21 = sphi %s774_s21, %s881_s21  }
   0x3   : > { %p30_p1 = scmp.ge.s32.totalorder %s28_s24, 2  ;;  %p230_p2 = scmp.lt.s32.totalorder %s735_s23, 3 }
   0x5   : > { %s884_s24 = smov (%p30_p1, %s28_s24), 0  ;;  %p231_p3 = pnand %p624_p0, %p230_p2 }
   0x6   : > { %v627_v0 = vld.sshfl [vmem:[%s875_s1] sm:$0x33 pattern:$0x76325410] (!%p231_p3)  ;;  %vm306_vm0 = vcmask (!%p231_p3), 1040384   ;;  %vm307_vm1 = vcmask (!%p231_p3), 1041408   ;;  %v283_v25 = vlaneseq (!%p231_p3) }
   0x7   : > { %234 = sbr.rel (%p231_p3) target bundleno = 460 (0x1cc), region = 44  ;;  %v301_v1 = vcombine.high (!%p231_p3), %v627_v0, %v627_v0  ;;  %p264_p4 = scmp.lt.s32.totalorder (!%p231_p3), %s727_s21, 1  ;;  %v737_v2 = vmov (!%p231_p3), 65535   ;;  %v738_v4 = vmov (!%p231_p3), 0   ;;  %v697_v5 = vld [vmem:[%s877_s3 + $0x40] sm:$0xff] (!%p231_p3)   ;;  %v699_v8 = vld [vmem:[%s877_s3 + $0x48] sm:$0xff] (!%p231_p3)  }
   0x8   : > { %v308_v3 = vsel (!%p231_p3), %vm306_vm0, 4294967295, %v737_v2  ;;  %348 = vmatprep.mubr.bf16.mxu0 (!%p231_p3), %v738_v4  ;;  %v698_v7 = vld [vmem:[%s877_s3] sm:$0xff] (!%p231_p3)   ;;  %649 = vmatprep.subr.bf16.mxu1 (!%p231_p3), %v697_v5  ;;  %v700_v11 = vld [vmem:[%s877_s3 + $0x8] sm:$0xff] (!%p231_p3)   ;;  %v701_v12 = vld [vmem:[%s877_s3 + $0x50] sm:$0xff] (!%p231_p3)   ;;  %vm302_vm2 = vcmask (!%p231_p3), 23552   ;;  %v284_v26 = vshrl.u32 (!%p231_p3), %v283_v25, 7 }
   0x9   : > { %v309_v6 = vsel (!%p231_p3), %vm307_vm1, %v308_v3, 0  ;;  %650 = vmatpush3.bf16.msra.mxu1 (!%p231_p3), %v698_v7  ;;  %v702_v14 = vld [vmem:[%s877_s3 + $0x10] sm:$0xff] (!%p231_p3)   ;;  %v703_v15 = vld [vmem:[%s877_s3 + $0x58] sm:$0xff] (!%p231_p3)   ;;  %v705_v17 = vld [vmem:[%s877_s3 + $0x60] sm:$0xff] (!%p231_p3)  }
   0xa   : > { %v314_v9 = vand.u32 (!%p231_p3), %v309_v6, %v301_v1  ;;  %v311_v10 = vand.u32 (!%p231_p3), %v627_v0, %v309_v6  ;;  %651 = vmatprep.subr.bf16.mxu1 (!%p231_p3), %v699_v8  ;;  %v704_v16 = vld [vmem:[%s877_s3 + $0x18] sm:$0xff] (!%p231_p3)   ;;  %v706_v18 = vld [vmem:[%s877_s3 + $0x20] sm:$0xff] (!%p231_p3)   ;;  %v707_v19 = vld [vmem:[%s877_s3 + $0x68] sm:$0xff] (!%p231_p3)   ;;  %v285_v27 = vsub.s32 (!%p231_p3), 0, %v284_v26  ;;  %v289_v29 = vsub.s32 (!%p231_p3), 1, %v284_v26 }
   0xb   : > { %v708_v20 = vld [vmem:[%s877_s3 + $0x28] sm:$0xff] (!%p231_p3)   ;;  %v709_v21 = vld [vmem:[%s877_s3 + $0x70] sm:$0xff] (!%p231_p3)   ;;  %v711_v23 = vld [vmem:[%s877_s3 + $0x78] sm:$0xff] (!%p231_p3)  }
   0xc   : > { %316 = vmatprep.subr.bf16.mxu0 (!%p231_p3), %v314_v9  ;;  %v710_v22 = vld [vmem:[%s877_s3 + $0x30] sm:$0xff] (!%p231_p3)   ;;  %v712_v24 = vld [vmem:[%s877_s3 + $0x38] sm:$0xff] (!%p231_p3)   ;;  %v281_v28 = vld [vmem:[%s876_s2] sm:$0x3] (!%p231_p3) }
   0xd   : > { %317 = vmatpush1.bf16.msra.mxu0 (!%p231_p3), %v311_v10  ;;  %652 = vmatpush3.bf16.msra.mxu1 (!%p231_p3), %v700_v11  ;;  %v286_v30 = vrot.slane (!%p231_p3), %v281_v28, %v285_v27  ;;  %v290_v31 = vrot.slane (!%p231_p3), %v281_v28, %v289_v29  ;;  %v645_v42 = vld [vmem:[%s878_s4] ss:$0 sm:$0xff] (!%p231_p3) }
   0xe   : > { %s886_s21 = smov (!%p264_p4, %s727_s21), 1  ;;  %653 = vmatprep.subr.bf16.mxu1 %v701_v12  ;;  %v646_v45 = vld [vmem:[%s879_s5] ss:$0 sm:$0xff] }
   0xf   : > { %s625_s9 = sshll.u32 %s886_s21, 1 }
  0x10   : > { %s270_s14 = scalar_lea.vmem %s874_s0, %s625_s9  ;;  %s277_s8 = scalar_lea.vmem %s880_s6, %s625_s9 }
  0x11   : > { %v279_v13 = vld [vmem:[%s270_s14] sm:$0x3]  ;;  %654 = vmatpush3.bf16.msra.mxu1 %v702_v14 }
  0x12   : > { %628 = vmatmul.mubr.msk.bf16.vlgmr.msra.gmra.mrb[0].mxu0 %vm302_vm2, %v279_v13  ;;  %655 = vmatprep.subr.bf16.mxu1 %v703_v15 }
  0x15   : > { %656 = vmatpush3.bf16.msra.mxu1 %v704_v16 }
  0x16   : > { %657 = vmatprep.subr.bf16.mxu1 %v705_v17 }
  0x19   : > { %658 = vmatpush3.bf16.msra.mxu1 %v706_v18 }
  0x1a   : > { %659 = vmatprep.subr.bf16.mxu1 %v707_v19 }
  0x1d   : > { %660 = vmatpush3.bf16.msra.mxu1 %v708_v20 }
  0x1e   : > { %661 = vmatprep.subr.bf16.mxu1 %v709_v21 }
  0x21   : > { %662 = vmatpush3.bf16.msra.mxu1 %v710_v22 }
  0x22   : > { %663 = vmatprep.subr.bf16.mxu1 %v711_v23 }
  0x25   : > { %664 = vmatpush3.bf16.msra.mxu1 %v712_v24 }
  0xe5   : > { %v350_v32 = vpop.f32.mrb[0].mxu0 }
  0xe6   : > { %v351_v33 = vadd.f32 %v350_v32, %v286_v30  ;;  %v352_v34 = vpop.f32.mrb[1].mxu0 }
  0xe7   : > { %v354_v35 = vpop.f32.mrb[2].mxu0  ;;  %v353_v36 = vadd.f32 %v352_v34, %v290_v31 }
  0xe8   : > { %v355_v37 = vpop.f32.mrb[3].mxu0  ;;  %v357_v39 = vpack.c.bf16 %v351_v33, %v351_v33 }
  0xe9   : > { %v358_v38 = vpack.c.bf16 %v353_v36, %v353_v36 }
  0xeb   : > { %519 = vmatprep.mubr.bf16.mxu1 %v358_v38 }
  0xec   : > { %520 = vmatmul.mubr.bf16.vlgmr.msra.gmra.mrb[0].mxu1 %v357_v39 }
 0x1bf   : > { %v665_v40 = vpop.f32.mrb[0].mxu1 }
 0x1c0   : > { %v666_v41 = vpop.f32.mrb[1].mxu1 }
 0x1c1   : > { %v667_v43 = vadd.f32 %v666_v41, %v665_v40  ;;  %v668_v44 = vpop.f32.mrb[2].mxu1 }
 0x1c2   : > { %v669_v46 = vpop.f32.mrb[3].mxu1 }
 0x1c3   : > { %v534_v47 = vmul.f32 %v667_v43, %v645_v42 }
 0x1c5   : > { %v542_v48 = vadd.f32 %v646_v45, %v534_v47 }
 0x1c7   : > { %v543_v49 = vmax.f32 %v542_v48, 0.0 }
 0x1c9   : > { %v544_v50 = vpack.c.bf16 %v543_v49, %v543_v49 }
 0x1cb   : > { %545 = vst [vmem:[%s277_s8] sm:$0x3] %v544_v50 }
 0x1cc PF: > { %s16_s23 = sadd.s32 1, %s735_s23   ;;  %s881_s21 = smov %s731_s22 }
 0x1cd   : > { %p13_p5 = scmp.ge.s32.totalorder %s16_s23, 4   ;;  %s882_s22 = smov %s884_s24 }
 0x1cf   :  { %15 = sbr.rel (!%p13_p5) target bundleno = 2 (0x2), region = 74 }

// kernel: maniqa_forward.38
= control target key start
LH: loop header
LB: loop body
LE: loop exit
PB: predicated region body
PF: predicated region fallthrough
CT: control target
= control target key end

     0   :  { %vm31_vm0 = vcmask 1043456   ;;  %vm41_vm1 = vcmask 3072   ;;  %vm50_vm2 = vcmask 11272   ;;  %s98_s0 = inlined_call_operand.vmem [shape: bf16[2,4,128], index: 0, kind: input, shape index: {}]   ;;  %s99_s1 = inlined_call_operand.vmem [shape: f32[2,1,128], index: 1, kind: input, shape index: {}]   ;;  %s100_s2 = inlined_call_operand.vmem [shape: f32[2,4,2], index: 2, kind: output, shape index: {}]  }
   0x1   :  { %v11_v0 = vld [vmem:[%s98_s0] sm:$0x3]  ;;  %v12_v2 = vld [vmem:[%s98_s0 + $0x2] sm:$0x3] }
   0x2   :  { %v57_v1 = vld [vmem:[%s99_s1] ss:$0 sm:$0xff]  ;;  %v13_v3 = vunpack.c.l.bf16 %v11_v0  ;;  %v14_v4 = vunpack.c.l.bf16 %v12_v2  ;;  %v58_v5 = vld [vmem:[%s99_s1 + $0x1] ss:$0 sm:$0xff] }
   0x4   :  { %v29_v6 = vmul.f32 %v57_v1, %v13_v3  ;;  %v30_v7 = vmul.f32 %v58_v5, %v14_v4 }
   0x6   :  { %v32_v8 = vsel %vm31_vm0, %v29_v6, 0.0  ;;  %v44_v9 = vsel %vm31_vm0, %v29_v6, -inf  ;;  %v35_v10 = vsel %vm31_vm0, %v30_v7, 0.0  ;;  %v47_v11 = vsel %vm31_vm0, %v30_v7, -inf }
   0x7   :  { %33 = vadd.xlane.f32.xlu0 %v32_v8  ;;  %45 = vmax.xlane.f32.xlu1 %v44_v9 }
   0xb   :  { %36 = vadd.xlane.f32.xlu0 %v35_v10  ;;  %48 = vmax.xlane.f32.xlu1 %v47_v11 }
  0x94   :  { %v34_v12 = vpop.xlane.xlu0 %33  ;;  %v46_v13 = vpop.xlane.xlu1 %45 }
  0x95   :  { %v39_v14 = vmul.f32 0.0078125, %v34_v12 }
  0x97   :  { %42 = vst.msk [vmem:[%s100_s2] sm:$0xf] %vm41_vm1, %v39_v14 }
  0x98   :  { %51 = vst.msk [vmem:[%s100_s2] sm:$0xf] %vm50_vm2, %v46_v13  ;;  %v37_v15 = vpop.xlane.xlu0 %36  ;;  %v49_v17 = vpop.xlane.xlu1 %48 }
  0x99   :  { %v40_v16 = vmul.f32 0.0078125, %v37_v15 }
  0x9b   :  { %43 = vst.msk [vmem:[%s100_s2 + $0x4] sm:$0xf] %vm41_vm1, %v40_v16 }
  0x9c   :  { %52 = vst.msk [vmem:[%s100_s2 + $0x4] sm:$0xf] %vm50_vm2, %v49_v17 }

// kernel: maniqa_forward.37
= control target key start
LH: loop header
LB: loop body
LE: loop exit
PB: predicated region body
PF: predicated region fallthrough
CT: control target
= control target key end

     0   :  { %v428_v0 = vmov 0.0   ;;  %vm429_vm0 = vmmov 0   ;;  %v430_v2 = vmov -inf   ;;  %vm26_vm1 = vcmask 1043456   ;;  %s519_s1 = inlined_call_operand.vmem [shape: bf16[128,8], index: 1, kind: input, shape index: {}]   ;;  %s520_s0 = inlined_call_operand.vmem [shape: bf16[2,4,128], index: 0, kind: input, shape index: {}]   ;;  %s521_s2 = inlined_call_operand.vmem [shape: bf16[8,128], index: 2, kind: input, shape index: {}]   ;;  %s522_s3 = inlined_call_operand.vmem [shape: f32[2,128], index: 3, kind: output, shape index: {}]  }
   0x1   :  { %360 = vmatprep.subr.bf16.mxu0 %v428_v0  ;;  %19 = vst [vmem:[#allocation2] sm:$0x3] %v428_v0  ;;  %380 = vmatprep.subr.bf16.mxu1 %v428_v0  ;;  %v416_v1 = vld [vmem:[%s519_s1] sm:$0xff]   ;;  %20 = vst [vmem:[#allocation3] sm:$0x3] %v430_v2  ;;  %v417_v3 = vld [vmem:[%s519_s1 + $0x8] sm:$0xff]  }
   0x2   :  { %376 = vmatprep.mubr.msk.bf16.mxu0 %vm429_vm0, %v428_v0  ;;  %396 = vmatprep.mubr.msk.bf16.mxu1 %vm429_vm0, %v428_v0  ;;  %v418_v4 = vld [vmem:[%s519_s1 + $0x10] sm:$0xff]   ;;  %v21_v5 = vld [vmem:[%s520_s0] sm:$0x3]  ;;  %v22_v6 = vld [vmem:[%s520_s0 + $0x2] sm:$0x3]  ;;  %vm43_vm2 = vcmask 1041409  }
   0x3   :  { %361 = vmatpush3.bf16.msra.mxu0 %v416_v1  ;;  %381 = vmatpush3.bf16.msra.mxu1 %v416_v1  ;;  %v23_v7 = vunpack.c.l.bf16 %v21_v5  ;;  %v24_v8 = vunpack.c.l.bf16 %v22_v6  ;;  %v419_v9 = vld [vmem:[%s519_s1 + $0x18] sm:$0xff]   ;;  %v420_v18 = vld [vmem:[%s519_s1 + $0x20] sm:$0xff]   ;;  %v421_v27 = vld [vmem:[%s519_s1 + $0x28] sm:$0xff]   ;;  %vm226_vm3 = vcmask 64512  }
   0x4   :  { %362 = vmatprep.subr.bf16.mxu0 %v428_v0  ;;  %382 = vmatprep.subr.bf16.mxu1 %v428_v0  ;;  %v422_v36 = vld [vmem:[%s519_s1 + $0x30] sm:$0xff]   ;;  %v423_v46 = vld [vmem:[%s519_s1 + $0x38] sm:$0xff]   ;;  %v224_v48 = vld [vmem:[%s521_s2] sm:$0xf] }
   0x5   :  { %v27_v10 = vsel %vm26_vm1, %v23_v7, 0.0  ;;  %v34_v11 = vsel %vm26_vm1, %v24_v8, 0.0  ;;  %v49_v12 = vsel %vm26_vm1, %v23_v7, -inf  ;;  %v56_v13 = vsel %vm26_vm1, %v24_v8, -inf }
   0x6   :  { %v28_v14 = vrot.slane %v27_v10, 4  ;;  %v35_v15 = vrot.slane %v34_v11, 4  ;;  %v50_v16 = vrot.slane %v49_v12, 4  ;;  %v57_v17 = vrot.slane %v56_v13, 4 }
   0x7   :  { %363 = vmatpush3.bf16.msra.mxu0 %v417_v3  ;;  %383 = vmatpush3.bf16.msra.mxu1 %v417_v3  ;;  %v231_v53 = vsel %vm26_vm1, %v224_v48, 0 }
   0x8   :  { %364 = vmatprep.subr.bf16.mxu0 %v428_v0  ;;  %384 = vmatprep.subr.bf16.mxu1 %v428_v0  ;;  %v29_v19 = vadd.f32 %v28_v14, %v27_v10  ;;  %v36_v20 = vadd.f32 %v35_v15, %v34_v11  ;;  %v51_v21 = vmax.f32 %v49_v12, %v50_v16  ;;  %v25_v37 = vld [vmem:[#allocation2] sm:$0x3]  ;;  %v48_v41 = vld [vmem:[#allocation3] sm:$0x3] }
   0x9   :  { %v58_v22 = vmax.f32 %v56_v13, %v57_v17 }
   0xa   :  { %v30_v23 = vrot.slane %v29_v19, 2  ;;  %v37_v24 = vrot.slane %v36_v20, 2  ;;  %v52_v25 = vrot.slane %v51_v21, 2 }
   0xb   :  { %365 = vmatpush3.bf16.msra.mxu0 %v418_v4  ;;  %385 = vmatpush3.bf16.msra.mxu1 %v418_v4  ;;  %v59_v26 = vrot.slane %v58_v22, 2 }
   0xc   :  { %366 = vmatprep.subr.bf16.mxu0 %v428_v0  ;;  %386 = vmatprep.subr.bf16.mxu1 %v428_v0  ;;  %v31_v28 = vadd.f32 %v30_v23, %v29_v19  ;;  %v38_v29 = vadd.f32 %v37_v24, %v36_v20  ;;  %v53_v30 = vmax.f32 %v51_v21, %v52_v25 }
   0xd   :  { %v60_v31 = vmax.f32 %v58_v22, %v59_v26 }
   0xe   :  { %v32_v32 = vrot.slane %v31_v28, 1  ;;  %v39_v33 = vrot.slane %v38_v29, 1  ;;  %v54_v34 = vrot.slane %v53_v30, 1 }
   0xf   :  { %367 = vmatpush3.bf16.msra.mxu0 %v419_v9  ;;  %387 = vmatpush3.bf16.msra.mxu1 %v419_v9  ;;  %v61_v35 = vrot.slane %v60_v31, 1 }
  0x10   :  { %368 = vmatprep.subr.bf16.mxu0 %v428_v0  ;;  %388 = vmatprep.subr.bf16.mxu1 %v428_v0  ;;  %v33_v38 = vadd.f32 %v32_v32, %v31_v28  ;;  %v40_v39 = vadd.f32 %v39_v33, %v38_v29  ;;  %v55_v40 = vmax.f32 %v53_v30, %v54_v34 }
  0x11   :  { %v62_v42 = vmax.f32 %v60_v31, %v61_v35 }
  0x12   :  { %v44_v43 = vsel %vm43_vm2, %v40_v39, %v33_v38 }
  0x13   :  { %369 = vmatpush3.bf16.msra.mxu0 %v420_v18  ;;  %389 = vmatpush3.bf16.msra.mxu1 %v420_v18  ;;  %v46_v44 = vadd.f32 %v44_v43, %v25_v37  ;;  %v65_v45 = vsel %vm43_vm2, %v62_v42, %v55_v40 }
  0x14   :  { %370 = vmatprep.subr.bf16.mxu0 %v428_v0  ;;  %390 = vmatprep.subr.bf16.mxu1 %v428_v0  ;;  %v67_v47 = vmax.f32 %v48_v41, %v65_v45 }
  0x15   :  { %47 = vst [vmem:[#allocation2] sm:$0x3] %v46_v44 }
  0x16   :  { %68 = vst [vmem:[#allocation3] sm:$0x3] %v67_v47 }
  0x17   :  { %371 = vmatpush3.bf16.msra.mxu0 %v421_v27  ;;  %391 = vmatpush3.bf16.msra.mxu1 %v421_v27 }
  0x18   :  { %372 = vmatprep.subr.bf16.mxu0 %v428_v0  ;;  %392 = vmatprep.subr.bf16.mxu1 %v428_v0 }
  0x1b   :  { %373 = vmatpush3.bf16.msra.mxu0 %v422_v36  ;;  %393 = vmatpush3.bf16.msra.mxu1 %v422_v36 }
  0x1c   :  { %374 = vmatprep.subr.bf16.mxu0 %v428_v0  ;;  %394 = vmatprep.subr.bf16.mxu1 %v428_v0  ;;  %v72_v49 = vld [vmem:[#allocation2] sm:$0x3] }
  0x1d   :  { %v73_v50 = vmul.f32 0.25, %v72_v49  ;;  %v75_v51 = vld [vmem:[#allocation3] sm:$0x3] }
  0x1e   :  { %v76_v52 = vpack.c.bf16 %v75_v51, %v75_v51 }
  0x1f   :  { %375 = vmatpush3.bf16.msra.mxu0 %v423_v46  ;;  %395 = vmatpush3.bf16.msra.mxu1 %v423_v46  ;;  %v74_v54 = vpack.c.bf16 %v73_v50, %v73_v50 }
  0x20   :  { %400 = vmatprep.subr.bf16.mxu1 %v428_v0  ;;  %406 = vmatprep.subr.bf16.mxu0 %v428_v0 }
  0x22   :  { %397 = vmatmul.mubr.bf16.vlgmr.msra.gmra.mrb[0].mxu1 %v76_v52  ;;  %377 = vmatmul.mubr.bf16.vlgmr.msra.gmra.mrb[0].mxu0 %v74_v54 }
  0x23   :  { %401 = vmatpush3.bf16.msra.mxu1 %v231_v53  ;;  %407 = vmatpush3.bf16.msra.mxu0 %v231_v53 }
  0x24   :  { %402 = vmatprep.mubr.msk.bf16.mxu1 %vm429_vm0, %v428_v0  ;;  %408 = vmatprep.mubr.msk.bf16.mxu0 %vm429_vm0, %v428_v0 }
  0xf5   :  { %v216_v55 = vpop.f32.mrb[0].mxu1  ;;  %v175_v56 = vpop.f32.mrb[0].mxu0 }
  0xf6   :  { %v222_v57 = vmax.f32 %v216_v55, 0.0  ;;  %v398_v58 = vpop.f32.mrb[1].mxu1  ;;  %v181_v59 = vmax.f32 %v175_v56, 0.0  ;;  %v378_v60 = vpop.f32.mrb[1].mxu0 }
  0xf7   :  { %v219_v61 = vpop.f32.mrb[2].mxu1  ;;  %v178_v63 = vpop.f32.mrb[2].mxu0 }
  0xf8   :  { %v225_v62 = vpack.c.bf16 %v222_v57, %v222_v57  ;;  %v399_v1 = vpop.f32.mrb[3].mxu1  ;;  %v223_v2 = vpack.c.bf16 %v181_v59, %v181_v59  ;;  %v379_v3 = vpop.f32.mrb[3].mxu0 }
  0xfa   :  { %403 = vmatmul.mubr.msk.bf16.vlgmr.msra.gmra.mrb[4].mxu1 %vm226_vm3, %v225_v62  ;;  %409 = vmatmul.mubr.msk.bf16.vlgmr.msra.gmra.mrb[4].mxu0 %vm226_vm3, %v223_v2 }
 0x1cd   :  { %v267_v4 = vpop.f32.mrb[4].mxu1  ;;  %v310_v5 = vpop.f32.mrb[4].mxu0 }
 0x1ce   :  { %v404_v6 = vpop.f32.mrb[5].mxu1  ;;  %v311_v7 = vadd.f32 %v310_v5, %v267_v4  ;;  %v410_v0 = vpop.f32.mrb[5].mxu0 }
 0x1cf   :  { %v270_v8 = vpop.f32.mrb[6].mxu1  ;;  %v313_v9 = vpop.f32.mrb[6].mxu0 }
 0x1d0   :  { %v405_v10 = vpop.f32.mrb[7].mxu1  ;;  %v337_v11 = vmul.f32 -1.442695, %v311_v7  ;;  %v411_v12 = vpop.f32.mrb[7].mxu0 }
 0x1d2   :  { %424 = vpow2.f32 %v337_v11 }
 0x1dc   :  { %v425_v13 = vpop.eup %424 }
 0x1dd   :  { %v319_v14 = vadd.f32 1.0, %v425_v13 }
 0x1df   :  { %426 = vrcp.f32 %v319_v14 }
 0x1e9   :  { %v427_v15 = vpop.eup %426 }
 0x1ea   :  { %322 = vst [vmem:[%s522_s3] sm:$0x3] %v427_v15 }

// kernel: maniqa_forward.39
= control target key start
LH: loop header
LB: loop body
LE: loop exit
PB: predicated region body
PF: predicated region fallthrough
CT: control target
= control target key end

     0   :  { %v240_v0 = vmov 0   ;;  %vm141_vm0 = vcmask 31744   ;;  %vm165_vm1 = vcmask 25600   ;;  %vm219_vm2 = vcmask 1041409   ;;  %s403_s1 = inlined_call_operand.vmem [shape: f32[1,98,1], index: 1, kind: input, shape index: {}]   ;;  %s404_s0 = inlined_call_operand.vmem [shape: f32[2,98,4], index: 0, kind: input, shape index: {}]   ;;  %s405_s2 = inlined_call_operand.vmem [shape: f32[2,4], index: 2, kind: output, shape index: {}]  }
   0x1   :  { %231 = vset.pattern.permute.xlu1 %v240_v0  ;;  %230 = vset.pattern.permute.xlu0 %v240_v0  ;;  %v39_v1 = vld [vmem:[%s403_s1 + $0x10] sm:$0xff]  ;;  %v37_v2 = vld [vmem:[%s403_s1] sm:$0xff]  ;;  %v40_v3 = vld [vmem:[%s403_s1 + $0x18] sm:$0xff] }
   0x2   :  { %62 = vperm.xlu1 %231, %v39_v1   ;;  %52 = vperm.xlu0 %230, %v37_v2   ;;  %v38_v4 = vld [vmem:[%s403_s1 + $0x8] sm:$0xff]  ;;  %v41_v6 = vld [vmem:[%s403_s1 + $0x20] sm:$0xff]  ;;  %v44_v7 = vld [vmem:[%s403_s1 + $0x38] sm:$0xff] }
   0x3   :  { %v42_v5 = vld [vmem:[%s403_s1 + $0x28] sm:$0xff]  ;;  %v43_v8 = vld [vmem:[%s403_s1 + $0x30] sm:$0xff]  ;;  %v45_v10 = vld [vmem:[%s403_s1 + $0x40] sm:$0xff] }
   0x4   :  { %v46_v9 = vld [vmem:[%s403_s1 + $0x48] sm:$0xff]  ;;  %v48_v11 = vld [vmem:[%s403_s1 + $0x58] sm:$0xff]  ;;  %v47_v12 = vld [vmem:[%s403_s1 + $0x50] sm:$0xff] }
   0x5   :  { %v49_v13 = vld [vmem:[%s403_s1 + $0x60] sm:$0x3]  ;;  %v24_v15 = vld [vmem:[%s404_s0 + $0x68] sm:$0xff]  ;;  %v13_v18 = vld [vmem:[%s404_s0 + $0x10] sm:$0xff] }
   0x6   :  { %67 = vperm.xlu1 %231, %v40_v3   ;;  %57 = vperm.xlu0 %230, %v38_v4   ;;  %v11_v14 = vld [vmem:[%s404_s0] sm:$0xff]  ;;  %v26_v19 = vld [vmem:[%s404_s0 + $0x78] sm:$0xff]  ;;  %v12_v22 = vld [vmem:[%s404_s0 + $0x8] sm:$0xff] }
   0x7   :  { %v25_v23 = vld [vmem:[%s404_s0 + $0x70] sm:$0xff]  ;;  %v14_v25 = vld [vmem:[%s404_s0 + $0x18] sm:$0xff]  ;;  %v27_v26 = vld [vmem:[%s404_s0 + $0x80] sm:$0xff] }
   0x8   :  { %v15_v34 = vld [vmem:[%s404_s0 + $0x20] sm:$0xff]  ;;  %v28_v35 = vld [vmem:[%s404_s0 + $0x88] sm:$0xff]  ;;  %v29_v44 = vld [vmem:[%s404_s0 + $0x90] sm:$0xff] }
   0x9   :  { %v16_v43 = vld [vmem:[%s404_s0 + $0x28] sm:$0xff]  ;;  %v17_v52 = vld [vmem:[%s404_s0 + $0x30] sm:$0xff]  ;;  %v30_v53 = vld [vmem:[%s404_s0 + $0x98] sm:$0xff] }
   0xa   :  { %77 = vperm.xlu1 %231, %v42_v5   ;;  %72 = vperm.xlu0 %230, %v41_v6   ;;  %v18_v61 = vld [vmem:[%s404_s0 + $0x38] sm:$0xff]  ;;  %v31_v62 = vld [vmem:[%s404_s0 + $0xa0] sm:$0xff] }
   0xb   :  { %v19_v6 = vld [vmem:[%s404_s0 + $0x40] sm:$0xff] }
   0xe   :  { %87 = vperm.xlu1 %231, %v44_v7   ;;  %82 = vperm.xlu0 %230, %v43_v8   ;;  %v32_v7 = vld [vmem:[%s404_s0 + $0xa8] sm:$0xff] }
  0x12   :  { %97 = vperm.xlu1 %231, %v46_v9   ;;  %92 = vperm.xlu0 %230, %v45_v10  }
  0x16   :  { %107 = vperm.xlu1 %231, %v48_v11   ;;  %102 = vperm.xlu0 %230, %v47_v12  }
  0x1a   :  { %112 = vperm.xlu0 %230, %v49_v13  }
  0x81   :  { %v63_v16 = vpop.permute.xlu1 %62  ;;  %v53_v17 = vpop.permute.xlu0 %52 }
  0x82   :  { %v115_v20 = vmul.f32 %v53_v17, %v11_v14  ;;  %v128_v21 = vmul.f32 %v53_v17, %v24_v15  ;;  %v117_v28 = vmul.f32 %v63_v16, %v13_v18  ;;  %v130_v29 = vmul.f32 %v63_v16, %v26_v19  ;;  %v20_v15 = vld [vmem:[%s404_s0 + $0x48] sm:$0xff]  ;;  %v33_v16 = vld [vmem:[%s404_s0 + $0xb0] sm:$0xff] }
  0x84   :  { %v142_v32 = vsel %vm141_vm0, %v115_v20, 0.0  ;;  %v174_v33 = vsel %vm141_vm0, %v128_v21, 0.0  ;;  %v145_v46 = vsel %vm141_vm0, %v117_v28, 0.0  ;;  %v177_v47 = vsel %vm141_vm0, %v130_v29, 0.0 }
  0x85   :  { %v68_v24 = vpop.permute.xlu1 %67  ;;  %v58_v27 = vpop.permute.xlu0 %57 }
  0x86   :  { %v116_v30 = vmul.f32 %v58_v27, %v12_v22  ;;  %v129_v31 = vmul.f32 %v58_v27, %v25_v23  ;;  %v118_v36 = vmul.f32 %v68_v24, %v14_v25  ;;  %v131_v37 = vmul.f32 %v68_v24, %v27_v26  ;;  %v21_v24 = vld [vmem:[%s404_s0 + $0x50] sm:$0xff]  ;;  %v34_v25 = vld [vmem:[%s404_s0 + $0xb8] sm:$0xff] }
  0x88   :  { %v143_v38 = vsel %vm141_vm0, %v116_v30, 0.0  ;;  %v175_v39 = vsel %vm141_vm0, %v129_v31, 0.0  ;;  %v147_v54 = vsel %vm141_vm0, %v118_v36, 0.0  ;;  %v179_v55 = vsel %vm141_vm0, %v131_v37, 0.0 }
  0x89   :  { %v144_v40 = vadd.f32 %v143_v38, %v142_v32  ;;  %v176_v41 = vadd.f32 %v175_v39, %v174_v33  ;;  %v78_v42 = vpop.permute.xlu1 %77  ;;  %v73_v45 = vpop.permute.xlu0 %72  ;;  %v22_v33 = vld [vmem:[%s404_s0 + $0x58] sm:$0xff] }
  0x8a   :  { %v119_v48 = vmul.f32 %v73_v45, %v15_v34  ;;  %v132_v49 = vmul.f32 %v73_v45, %v28_v35  ;;  %v120_v56 = vmul.f32 %v78_v42, %v16_v43  ;;  %v133_v57 = vmul.f32 %v78_v42, %v29_v44  ;;  %v35_v34 = vld [vmem:[%s404_s0 + $0xc0] sm:$0xff]  ;;  %v36_v43 = vld [vmem:[%s404_s0 + $0xc8] sm:$0x3] }
  0x8b   :  { %v146_v50 = vadd.f32 %v145_v46, %v144_v40  ;;  %v178_v51 = vadd.f32 %v177_v47, %v176_v41  ;;  %v23_v42 = vld [vmem:[%s404_s0 + $0x60] sm:$0x3] }
  0x8c   :  { %v149_v0 = vsel %vm141_vm0, %v119_v48, 0.0  ;;  %v181_v1 = vsel %vm141_vm0, %v132_v49, 0.0  ;;  %v151_v8 = vsel %vm141_vm0, %v120_v56, 0.0  ;;  %v183_v9 = vsel %vm141_vm0, %v133_v57, 0.0 }
  0x8d   :  { %v148_v58 = vadd.f32 %v147_v54, %v146_v50  ;;  %v180_v59 = vadd.f32 %v179_v55, %v178_v51  ;;  %v88_v60 = vpop.permute.xlu1 %87  ;;  %v83_v63 = vpop.permute.xlu0 %82 }
  0x8e   :  { %v121_v2 = vmul.f32 %v83_v63, %v17_v52  ;;  %v134_v3 = vmul.f32 %v83_v63, %v30_v53  ;;  %v122_v10 = vmul.f32 %v88_v60, %v18_v61  ;;  %v135_v11 = vmul.f32 %v88_v60, %v31_v62 }
  0x8f   :  { %v150_v4 = vadd.f32 %v149_v0, %v148_v58  ;;  %v182_v5 = vadd.f32 %v181_v1, %v180_v59 }
  0x90   :  { %v153_v18 = vsel %vm141_vm0, %v121_v2, 0.0  ;;  %v185_v19 = vsel %vm141_vm0, %v134_v3, 0.0  ;;  %v155_v26 = vsel %vm141_vm0, %v122_v10, 0.0  ;;  %v187_v27 = vsel %vm141_vm0, %v135_v11, 0.0 }
  0x91   :  { %v152_v12 = vadd.f32 %v151_v8, %v150_v4  ;;  %v184_v13 = vadd.f32 %v183_v9, %v182_v5  ;;  %v98_v14 = vpop.permute.xlu1 %97  ;;  %v93_v17 = vpop.permute.xlu0 %92 }
  0x92   :  { %v123_v20 = vmul.f32 %v93_v17, %v19_v6  ;;  %v136_v21 = vmul.f32 %v93_v17, %v32_v7  ;;  %v124_v28 = vmul.f32 %v98_v14, %v20_v15  ;;  %v137_v29 = vmul.f32 %v98_v14, %v33_v16 }
  0x93   :  { %v154_v22 = vadd.f32 %v153_v18, %v152_v12  ;;  %v186_v23 = vadd.f32 %v185_v19, %v184_v13 }
  0x94   :  { %v157_v36 = vsel %vm141_vm0, %v123_v20, 0.0  ;;  %v189_v37 = vsel %vm141_vm0, %v136_v21, 0.0  ;;  %v159_v44 = vsel %vm141_vm0, %v124_v28, 0.0  ;;  %v191_v45 = vsel %vm141_vm0, %v137_v29, 0.0 }
  0x95   :  { %v156_v30 = vadd.f32 %v155_v26, %v154_v22  ;;  %v188_v31 = vadd.f32 %v187_v27, %v186_v23  ;;  %v108_v32 = vpop.permute.xlu1 %107  ;;  %v103_v35 = vpop.permute.xlu0 %102 }
  0x96   :  { %v125_v38 = vmul.f32 %v103_v35, %v21_v24  ;;  %v138_v39 = vmul.f32 %v103_v35, %v34_v25  ;;  %v126_v46 = vmul.f32 %v108_v32, %v22_v33  ;;  %v139_v47 = vmul.f32 %v108_v32, %v35_v34 }
  0x97   :  { %v158_v40 = vadd.f32 %v157_v36, %v156_v30  ;;  %v190_v41 = vadd.f32 %v189_v37, %v188_v31 }
  0x98   :  { %v161_v51 = vsel %vm141_vm0, %v125_v38, 0.0  ;;  %v193_v52 = vsel %vm141_vm0, %v138_v39, 0.0  ;;  %v163_v57 = vsel %vm141_vm0, %v126_v46, 0.0  ;;  %v195_v58 = vsel %vm141_vm0, %v139_v47, 0.0 }
  0x99   :  { %v160_v48 = vadd.f32 %v159_v44, %v158_v40  ;;  %v192_v49 = vadd.f32 %v191_v45, %v190_v41  ;;  %v113_v50 = vpop.permute.xlu0 %112 }
  0x9a   :  { %v127_v53 = vmul.f32 %v113_v50, %v23_v42  ;;  %v140_v54 = vmul.f32 %v113_v50, %v36_v43 }
  0x9b   :  { %v162_v55 = vadd.f32 %v161_v51, %v160_v48  ;;  %v194_v56 = vadd.f32 %v193_v52, %v192_v49 }
  0x9c   :  { %v166_v61 = vsel %vm165_vm1, %v127_v53, 0.0  ;;  %v197_v62 = vsel %vm165_vm1, %v140_v54, 0.0 }
  0x9d   :  { %v164_v59 = vadd.f32 %v163_v57, %v162_v55  ;;  %v196_v60 = vadd.f32 %v195_v58, %v194_v56 }
  0x9f   :  { %v167_v63 = vadd.f32 %v166_v61, %v164_v59  ;;  %v198_v0 = vadd.f32 %v197_v62, %v196_v60 }
  0xa1   :  { %v168_v1 = vrot.slane %v167_v63, 4  ;;  %v199_v2 = vrot.slane %v198_v0, 4 }
  0xa3   :  { %v169_v3 = vadd.f32 %v168_v1, %v167_v63  ;;  %v200_v4 = vadd.f32 %v199_v2, %v198_v0 }
  0xa5   :  { %v170_v5 = vrot.slane %v169_v3, 2  ;;  %v201_v6 = vrot.slane %v200_v4, 2 }
  0xa7   :  { %v171_v7 = vadd.f32 %v170_v5, %v169_v3  ;;  %v202_v8 = vadd.f32 %v201_v6, %v200_v4 }
  0xa9   :  { %v172_v9 = vrot.slane %v171_v7, 1  ;;  %v203_v10 = vrot.slane %v202_v8, 1 }
  0xab   :  { %v173_v11 = vadd.f32 %v172_v9, %v171_v7  ;;  %v204_v12 = vadd.f32 %v203_v10, %v202_v8 }
  0xad   :  { %v227_v13 = vmul.f32 -1.442695, %v173_v11  ;;  %v228_v14 = vmul.f32 -1.442695, %v204_v12 }
  0xaf   :  { %232 = vpow2.f32 %v227_v13 }
  0xb0   :  { %234 = vpow2.f32 %v228_v14 }
  0xb9   :  { %v233_v15 = vpop.eup %232 }
  0xba   :  { %v235_v16 = vpop.eup %234  ;;  %v211_v17 = vadd.f32 1.0, %v233_v15 }
  0xbb   :  { %v212_v18 = vadd.f32 1.0, %v235_v16 }
  0xbc   :  { %236 = vrcp.f32 %v211_v17 }
  0xbd   :  { %238 = vrcp.f32 %v212_v18 }
  0xc6   :  { %v237_v19 = vpop.eup %236 }
  0xc7   :  { %v239_v20 = vpop.eup %238 }
  0xc8   :  { %v220_v21 = vsel %vm219_vm2, %v239_v20, %v237_v19 }
  0xc9   :  { %222 = vst.msk [vmem:[%s405_s2] sm:$0x3] %vm165_vm1, %v220_v21 }

// kernel: maniqa_forward.40
= control target key start
LH: loop header
LB: loop body
LE: loop exit
PB: predicated region body
PF: predicated region fallthrough
CT: control target
= control target key end

     0   :  { %s747_s24 = smov 0   ;;  %s749_s25 = smov 0   ;;  %s828_s0 = inlined_call_operand.vmem [shape: bf16[2,4,128], index: 0, kind: input, shape index: {}]   ;;  %s829_s1 = inlined_call_operand.vmem [shape: f32[2,1,128], index: 1, kind: input, shape index: {}]   ;;  %s830_s2 = inlined_call_operand.vmem [shape: f32[2,4,1], index: 2, kind: input, shape index: {}]   ;;  %s831_s3 = inlined_call_operand.vmem [shape: f32[1,128], index: 3, kind: input, shape index: {}]   ;;  %s832_s4 = inlined_call_operand.vmem [shape: f32[1,128], index: 4, kind: input, shape index: {}]   ;;  %s833_s5 = inlined_call_operand.vmem [shape: bf16[128,64], index: 5, kind: input, shape index: {}]   ;;  %s834_s6 = inlined_call_operand.vmem [shape: f32[1,64], index: 6, kind: input, shape index: {}]   ;;  %s835_s7 = inlined_call_operand.vmem [shape: f32[2,4,64], index: 7, kind: output, shape index: {}]  }
   0x1   :  { %s751_s26 = smov 0  }
   0x2 LB: > { %s29_s27 = sadd.s32 1, %s698_s25  ;;  %p597_p0 = scmp.ge.s32.totalorder %s702_s26, 1  ;;  %s702_s26 = sphi %s751_s26, %s17_s26   ;;  %s698_s25 = sphi %s749_s25, %s837_s25   ;;  %s694_s24 = sphi %s747_s24, %s836_s24  }
   0x3   : > { %p31_p1 = scmp.ge.s32.totalorder %s29_s27, 2  ;;  %p277_p2 = scmp.lt.s32.totalorder %s702_s26, 3 }
   0x5   : > { %s839_s27 = smov (%p31_p1, %s29_s27), 0  ;;  %p278_p3 = pnand %p597_p0, %p277_p2 }
   0x6   : > { %p323_p4 = scmp.lt.s32.totalorder (!%p278_p3), %s694_s24, 1  ;;  %v672_v0 = vld [vmem:[%s833_s5] sm:$0xff] (!%p278_p3)   ;;  %v704_v1 = vmov (!%p278_p3), 0   ;;  %v705_v2 = vmov (!%p278_p3), 0.0   ;;  %v673_v3 = vld [vmem:[%s833_s5 + $0x8] sm:$0xff] (!%p278_p3)   ;;  %v674_v5 = vld [vmem:[%s833_s5 + $0x10] sm:$0xff] (!%p278_p3)  }
   0x7   : > { %281 = sbr.rel (%p278_p3) target bundleno = 369 (0x171), region = 48  ;;  %671 = vset.pattern.permute.xlu0 (!%p278_p3), %v704_v1  ;;  %624 = vmatprep.subr.bf16.mxu0 (!%p278_p3), %v705_v2  ;;  %v675_v6 = vld [vmem:[%s833_s5 + $0x18] sm:$0xff] (!%p278_p3)   ;;  %vm706_vm0 = vmmov (!%p278_p3), 0   ;;  %v676_v7 = vld [vmem:[%s833_s5 + $0x20] sm:$0xff] (!%p278_p3)   ;;  %v677_v8 = vld [vmem:[%s833_s5 + $0x28] sm:$0xff] (!%p278_p3)   ;;  %vm493_vm1 = vcmask (!%p278_p3), 519168  }
   0x8   : > { %625 = vmatpush3.bf16.msra.mxu0 (!%p278_p3), %v672_v0  ;;  %640 = vmatprep.mubr.msk.bf16.mxu0 (!%p278_p3), %vm706_vm0, %v705_v2  ;;  %v678_v9 = vld [vmem:[%s833_s5 + $0x30] sm:$0xff] (!%p278_p3)   ;;  %v679_v10 = vld [vmem:[%s833_s5 + $0x38] sm:$0xff] (!%p278_p3)   ;;  %v602_v15 = vld [vmem:[%s831_s3] ss:$0 sm:$0xff] (!%p278_p3) }
   0x9   : > { %626 = vmatprep.subr.bf16.mxu0 (!%p278_p3), %v705_v2  ;;  %v603_v18 = vld [vmem:[%s832_s4] ss:$0 sm:$0xff] (!%p278_p3) }
   0xa   : > { %v604_v22 = vld [vmem:[%s834_s6] ss:$0 sm:$0xff] (!%p278_p3) }
   0xc   : > { %627 = vmatpush3.bf16.msra.mxu0 (!%p278_p3), %v673_v3 }
   0xd   : > { %628 = vmatprep.subr.bf16.mxu0 (!%p278_p3), %v705_v2 }
   0xe   : > { %s841_s24 = smov (!%p323_p4, %s694_s24), 1 }
   0xf   : > { %s599_s9 = sshll.u32 %s841_s24, 2  ;;  %s598_s29 = sshll.u32 %s841_s24, 1 }
  0x10   : > { %s339_s12 = scalar_lea.vmem %s830_s2, %s599_s9  ;;  %629 = vmatpush3.bf16.msra.mxu0 %v674_v5  ;;  %s329_s10 = scalar_lea.vmem %s828_s0, %s598_s29 }
  0x11   : > { %v358_v4 = vld [vmem:[%s339_s12] sm:$0xf]  ;;  %630 = vmatprep.subr.bf16.mxu0 %v705_v2  ;;  %s332_s13 = scalar_lea.vmem %s829_s1, %s841_s24  ;;  %s346_s22 = scalar_lea.vmem %s835_s7, %s599_s9 }
  0x12   : > { %361 = vperm.xlu0 %671, %v358_v4   ;;  %v348_v11 = vld [vmem:[%s329_s10] sm:$0x3] }
  0x13   : > { %v349_v12 = vunpack.c.l.bf16 %v348_v11  ;;  %v601_v13 = vld [vmem:[%s332_s13] ss:$0 sm:$0xff] }
  0x14   : > { %631 = vmatpush3.bf16.msra.mxu0 %v675_v6 }
  0x15   : > { %632 = vmatprep.subr.bf16.mxu0 %v705_v2  ;;  %v357_v14 = vmul.f32 %v601_v13, %v349_v12 }
  0x18   : > { %633 = vmatpush3.bf16.msra.mxu0 %v676_v7 }
  0x19   : > { %634 = vmatprep.subr.bf16.mxu0 %v705_v2 }
  0x1c   : > { %635 = vmatpush3.bf16.msra.mxu0 %v677_v8 }
  0x1d   : > { %636 = vmatprep.subr.bf16.mxu0 %v705_v2 }
  0x20   : > { %637 = vmatpush3.bf16.msra.mxu0 %v678_v9 }
  0x21   : > { %638 = vmatprep.subr.bf16.mxu0 %v705_v2 }
  0x24   : > { %639 = vmatpush3.bf16.msra.mxu0 %v679_v10 }
  0x91   : > { %v362_v16 = vpop.permute.xlu0 %361 }
  0x92   : > { %v364_v17 = vmul.f32 %v362_v16, %v357_v14 }
  0x94   : > { %v372_v19 = vmul.f32 %v602_v15, %v364_v17 }
  0x96   : > { %v380_v20 = vadd.f32 %v603_v18, %v372_v19 }
  0x98   : > { %v381_v21 = vpack.c.bf16 %v380_v20, %v380_v20 }
  0x9a   : > { %641 = vmatmul.mubr.bf16.vlgmr.msra.gmra.mrb[0].mxu0 %v381_v21 }
 0x16d   : > { %v487_v23 = vpop.f32.mrb[0].mxu0 }
 0x16e   : > { %v488_v24 = vadd.f32 %v604_v22, %v487_v23  ;;  %v642_v25 = vpop.f32.mrb[1].mxu0 }
 0x16f   : > { %v490_v26 = vpop.f32.mrb[2].mxu0 }
 0x170   : > { %494 = vst.msk [vmem:[%s346_s22] sm:$0xf] %vm493_vm1, %v488_v24  ;;  %v643_v27 = vpop.f32.mrb[3].mxu0 }
 0x171 PF: > { %s17_s26 = sadd.s32 1, %s702_s26   ;;  %s836_s24 = smov %s698_s25 }
 0x172   : > { %p14_p5 = scmp.ge.s32.totalorder %s17_s26, 4   ;;  %s837_s25 = smov %s839_s27 }
 0x174   :  { %16 = sbr.rel (!%p14_p5) target bundleno = 2 (0x2), region = 84 }

// kernel: maniqa_forward.41
= control target key start
LH: loop header
LB: loop body
LE: loop exit
PB: predicated region body
PF: predicated region fallthrough
CT: control target
= control target key end

     0   :  { %v3325_v21 = vmov 1966171168   ;;  %v126_v23 = vlaneseq  ;;  %v3326_v40 = vmov 0.0   ;;  %vm3327_vm0 = vmmov 0   ;;  %s4025_s1 = inlined_call_operand.vmem [shape: bf16[4,576,64], index: 1, kind: input, shape index: {}]   ;;  %s4026_s0 = inlined_call_operand.vmem [shape: bf16[4,2,576], index: 0, kind: input, shape index: {}]   ;;  %s4027_s3 = inlined_call_operand.vmem [shape: bf16[4,64,32], index: 3, kind: input, shape index: {}]   ;;  %s4028_s2 = inlined_call_operand.vmem [shape: f32[4,1,64], index: 2, kind: input, shape index: {}]   ;;  %s4029_s6 = inlined_call_operand.vmem [shape: bf16[32,16], index: 6, kind: input, shape index: {}]   ;;  %s4030_s4 = inlined_call_operand.vmem [shape: f32[1,32], index: 4, kind: input, shape index: {}]   ;;  %s4031_s5 = inlined_call_operand.vmem [shape: f32[1,32], index: 5, kind: input, shape index: {}]   ;;  %s4032_s9 = inlined_call_operand.vmem [shape: bf16[16,1], index: 9, kind: input, shape index: {}]   ;;  %s4033_s10 = inlined_call_operand.<no memory space> [shape: f32[1,1], index: 10, kind: input, shape index: {}]   ;;  %s4034_s7 = inlined_call_operand.vmem [shape: f32[1,16], index: 7, kind: input, shape index: {}]   ;;  %s4035_s8 = inlined_call_operand.vmem [shape: f32[1,16], index: 8, kind: input, shape index: {}]   ;;  %s4036_s11 = inlined_call_operand.vmem [shape: f32[2,1], index: 11, kind: output, shape index: {}]  }
   0x1   :  { %v3154_v0 = vld [vmem:[%s4025_s1 + $0x40] sm:$0xff]   ;;  %v3158_v4 = vld [vmem:[%s4025_s1 + $0x48] sm:$0xff]   ;;  %v3162_v8 = vld [vmem:[%s4025_s1 + $0x50] sm:$0xff]   ;;  %v124_v22 = vunpack.c.l.s4 %v3325_v21  ;;  %vm381_vm1 = vcmask 523264   ;;  %vm2246_vm2 = vcmask 261120   ;;  %vm2323_vm3 = vcmask 130048  }
   0x2   :  { %v3155_v1 = vld [vmem:[%s4025_s1] sm:$0xff]   ;;  %2808 = vmatprep.subr.bf16.mxu0 %v3154_v0  ;;  %v3159_v5 = vld [vmem:[%s4025_s1 + $0x8] sm:$0xff]   ;;  %v3163_v9 = vld [vmem:[%s4025_s1 + $0x10] sm:$0xff]   ;;  %v127_v29 = vshrl.u32 %v126_v23, 7  ;;  %vm2373_vm4 = vcmask 1024  }
   0x3   :  { %v3156_v2 = vld [vmem:[%s4025_s1 + $0xc0] sm:$0xff]   ;;  %2809 = vmatpush3.bf16.msra.mxu0 %v3155_v1  ;;  %v3160_v6 = vld [vmem:[%s4025_s1 + $0xc8] sm:$0xff]   ;;  %v3164_v10 = vld [vmem:[%s4025_s1 + $0xd0] sm:$0xff]   ;;  %v125_v28 = vunpack.c.0.s8 %v124_v22 }
   0x4   :  { %v3157_v3 = vld [vmem:[%s4025_s1 + $0x80] sm:$0xff]   ;;  %2830 = vmatprep.subr.bf16.mxu1 %v3156_v2  ;;  %2810 = vmatprep.subr.bf16.mxu0 %v3158_v4  ;;  %v3161_v7 = vld [vmem:[%s4025_s1 + $0x88] sm:$0xff]   ;;  %v3165_v11 = vld [vmem:[%s4025_s1 + $0x90] sm:$0xff]  }
   0x5   :  { %2831 = vmatpush3.bf16.msra.mxu1 %v3157_v3  ;;  %v3166_v12 = vld [vmem:[%s4025_s1 + $0x58] sm:$0xff]   ;;  %v3170_v16 = vld [vmem:[%s4025_s1 + $0x60] sm:$0xff]   ;;  %v3174_v20 = vld [vmem:[%s4025_s1 + $0x68] sm:$0xff]   ;;  %v3475_v34 = vsub.s32 %v125_v28, %v127_v29 }
   0x6   :  { %2832 = vmatprep.subr.bf16.mxu1 %v3160_v6  ;;  %v3167_v13 = vld [vmem:[%s4025_s1 + $0x18] sm:$0xff]   ;;  %v3171_v17 = vld [vmem:[%s4025_s1 + $0x20] sm:$0xff]   ;;  %v3175_v24 = vld [vmem:[%s4025_s1 + $0x28] sm:$0xff]  }
   0x7   :  { %2811 = vmatpush3.bf16.msra.mxu0 %v3159_v5  ;;  %v3168_v14 = vld [vmem:[%s4025_s1 + $0xd8] sm:$0xff]   ;;  %v3172_v18 = vld [vmem:[%s4025_s1 + $0xe0] sm:$0xff]   ;;  %v3176_v25 = vld [vmem:[%s4025_s1 + $0xe8] sm:$0xff]  }
   0x8   :  { %2812 = vmatprep.subr.bf16.mxu0 %v3162_v8  ;;  %v3169_v15 = vld [vmem:[%s4025_s1 + $0x98] sm:$0xff]   ;;  %v3173_v19 = vld [vmem:[%s4025_s1 + $0xa0] sm:$0xff]   ;;  %v3177_v26 = vld [vmem:[%s4025_s1 + $0xa8] sm:$0xff]  }
   0x9   :  { %2833 = vmatpush3.bf16.msra.mxu1 %v3161_v7  ;;  %v3178_v27 = vld [vmem:[%s4025_s1 + $0x70] sm:$0xff]   ;;  %v3182_v33 = vld [vmem:[%s4025_s1 + $0x78] sm:$0xff]   ;;  %v41_v37 = vld [vmem:[%s4026_s0] sm:$0x1f] }
   0xa   :  { %2834 = vmatprep.subr.bf16.mxu1 %v3164_v10  ;;  %v3179_v30 = vld [vmem:[%s4025_s1 + $0x30] sm:$0xff]   ;;  %v3183_v35 = vld [vmem:[%s4025_s1 + $0x38] sm:$0xff]   ;;  %v129_v38 = vrot.slane %v41_v37, %v3475_v34  ;;  %v3188_v43 = vld [vmem:[%s4025_s1 + $0x160] sm:$0xff]   ;;  %v122_v52 = vcombine.high %v41_v37, %v41_v37 }
   0xb   :  { %2813 = vmatpush3.bf16.msra.mxu0 %v3163_v9  ;;  %v3180_v31 = vld [vmem:[%s4025_s1 + $0xf0] sm:$0xff]   ;;  %v3184_v36 = vld [vmem:[%s4025_s1 + $0xf8] sm:$0xff]   ;;  %v3187_v45 = vld [vmem:[%s4025_s1 + $0x100] sm:$0xff]  }
   0xc   :  { %2814 = vmatprep.subr.bf16.mxu0 %v3166_v12  ;;  %v3181_v32 = vld [vmem:[%s4025_s1 + $0xb0] sm:$0xff]   ;;  %v3186_v39 = vld [vmem:[%s4025_s1 + $0xb8] sm:$0xff]   ;;  %v137_v41 = vcombine.high %v129_v38, %v129_v38  ;;  %v144_v42 = vrot.slane %v129_v38, %v3475_v34  ;;  %v3189_v48 = vld [vmem:[%s4025_s1 + $0x120] sm:$0xff]   ;;  %v136_v56 = vrot.slane %v122_v52, %v3475_v34 }
   0xd   :  { %2835 = vmatpush3.bf16.msra.mxu1 %v3165_v11  ;;  %v3191_v49 = vld [vmem:[%s4025_s1 + $0x168] sm:$0xff]   ;;  %v3194_v53 = vld [vmem:[%s4025_s1 + $0x170] sm:$0xff]   ;;  %v3197_v57 = vld [vmem:[%s4025_s1 + $0x178] sm:$0xff]  }
   0xe   :  { %2836 = vmatprep.subr.bf16.mxu1 %v3168_v14  ;;  %v158_v44 = vrot.slane %v137_v41, %v3475_v34  ;;  %v159_v46 = vcombine.high %v144_v42, %v144_v42  ;;  %v3190_v50 = vld [vmem:[%s4025_s1 + $0x108] sm:$0xff]   ;;  %v3193_v54 = vld [vmem:[%s4025_s1 + $0x110] sm:$0xff]   ;;  %v3196_v58 = vld [vmem:[%s4025_s1 + $0x118] sm:$0xff]   ;;  %v151_v61 = vrot.slane %v136_v56, %v3475_v34 }
   0xf   :  { %2815 = vmatpush3.bf16.msra.mxu0 %v3167_v13  ;;  %v3192_v51 = vld [vmem:[%s4025_s1 + $0x128] sm:$0xff]   ;;  %v3195_v55 = vld [vmem:[%s4025_s1 + $0x130] sm:$0xff]   ;;  %v3199_v59 = vld [vmem:[%s4025_s1 + $0x1e0] sm:$0xff]  }
  0x10   :  { %2816 = vmatprep.subr.bf16.mxu0 %v3170_v16  ;;  %417 = vmatprep.mubr.bf16.mxu0 %v158_v44  ;;  %v160_v47 = vcombine.high %v158_v44, %v158_v44  ;;  %v3198_v60 = vld [vmem:[%s4025_s1 + $0x138] sm:$0xff]   ;;  %v3201_v62 = vld [vmem:[%s4025_s1 + $0x180] sm:$0xff]   ;;  %v3203_v0 = vld [vmem:[%s4025_s1 + $0x1e8] sm:$0xff]  }
  0x11   :  { %2837 = vmatpush3.bf16.msra.mxu1 %v3169_v15  ;;  %v3200_v63 = vld [vmem:[%s4025_s1 + $0x1a0] sm:$0xff]   ;;  %v3205_v2 = vld [vmem:[%s4025_s1 + $0x188] sm:$0xff]   ;;  %v3207_v4 = vld [vmem:[%s4025_s1 + $0x1f0] sm:$0xff]  }
  0x12   :  { %2838 = vmatprep.subr.bf16.mxu1 %v3172_v18  ;;  %457 = vmatprep.mubr.bf16.mxu1 %v160_v47  ;;  %v3202_v1 = vld [vmem:[%s4025_s1 + $0x140] sm:$0xff]   ;;  %v3204_v3 = vld [vmem:[%s4025_s1 + $0x1a8] sm:$0xff]   ;;  %v3209_v6 = vld [vmem:[%s4025_s1 + $0x190] sm:$0xff]  }
  0x13   :  { %2817 = vmatpush3.bf16.msra.mxu0 %v3171_v17  ;;  %v3206_v5 = vld [vmem:[%s4025_s1 + $0x148] sm:$0xff]   ;;  %v3208_v7 = vld [vmem:[%s4025_s1 + $0x1b0] sm:$0xff]   ;;  %v3211_v8 = vld [vmem:[%s4025_s1 + $0x1f8] sm:$0xff]  }
  0x14   :  { %2818 = vmatprep.subr.bf16.mxu0 %v3174_v20  ;;  %v3210_v9 = vld [vmem:[%s4025_s1 + $0x150] sm:$0xff]   ;;  %v2417_v10 = vld [vmem:[%s4026_s0 + $0x5] sm:$0x1f]  ;;  %v3213_v11 = vld [vmem:[%s4025_s1 + $0x198] sm:$0xff]  }
  0x15   :  { %2839 = vmatpush3.bf16.msra.mxu1 %v3173_v19  ;;  %v605_v12 = vrot.slane %v2417_v10, %v3475_v34  ;;  %v3212_v13 = vld [vmem:[%s4025_s1 + $0x1b8] sm:$0xff]   ;;  %v3215_v14 = vld [vmem:[%s4025_s1 + $0x200] sm:$0xff]   ;;  %v3219_v20 = vld [vmem:[%s4025_s1 + $0x208] sm:$0xff]   ;;  %v598_v29 = vcombine.high %v2417_v10, %v2417_v10 }
  0x16   :  { %2840 = vmatprep.subr.bf16.mxu1 %v3176_v25  ;;  %v3214_v16 = vld [vmem:[%s4025_s1 + $0x158] sm:$0xff]   ;;  %v3216_v18 = vld [vmem:[%s4025_s1 + $0x1c0] sm:$0xff]   ;;  %v3220_v23 = vld [vmem:[%s4025_s1 + $0x1c8] sm:$0xff]  }
  0x17   :  { %2819 = vmatpush3.bf16.msra.mxu0 %v3175_v24  ;;  %v613_v15 = vcombine.high %v605_v12, %v605_v12  ;;  %v620_v19 = vrot.slane %v605_v12, %v3475_v34  ;;  %v3218_v22 = vld [vmem:[%s4025_s1 + $0x220] sm:$0xff]   ;;  %v3221_v24 = vld [vmem:[%s4025_s1 + $0x228] sm:$0xff]   ;;  %v3222_v25 = vld [vmem:[%s4025_s1 + $0x210] sm:$0xff]  }
  0x18   :  { %2820 = vmatprep.subr.bf16.mxu0 %v3178_v27  ;;  %v3225_v27 = vld [vmem:[%s4025_s1 + $0x218] sm:$0xff]   ;;  %v3224_v28 = vld [vmem:[%s4025_s1 + $0x230] sm:$0xff]   ;;  %v3229_v37 = vld [vmem:[%s4027_s3 + $0x28] sm:$0xff]  }
  0x19   :  { %2841 = vmatpush3.bf16.msra.mxu1 %v3177_v26  ;;  %v634_v17 = vrot.slane %v613_v15, %v3475_v34  ;;  %v3223_v26 = vld [vmem:[%s4025_s1 + $0x1d0] sm:$0xff]   ;;  %v3233_v41 = vld [vmem:[%s4025_s1 + $0x280] sm:$0xff]   ;;  %v3237_v44 = vld [vmem:[%s4025_s1 + $0x248] sm:$0xff]  }
  0x1a   :  { %2842 = vmatprep.subr.bf16.mxu1 %v3180_v31  ;;  %v3227_v31 = vld [vmem:[%s4025_s1 + $0x238] sm:$0xff]   ;;  %v3230_v38 = vld [vmem:[%s4027_s3 + $0x30] sm:$0xff]   ;;  %v3251_v52 = vld [vmem:[%s4025_s1 + $0x268] sm:$0xff]  }
  0x1b   :  { %2821 = vmatpush3.bf16.msra.mxu0 %v3179_v30  ;;  %v636_v21 = vcombine.high %v634_v17, %v634_v17  ;;  %v3226_v30 = vld [vmem:[%s4025_s1 + $0x1d8] sm:$0xff]  }
  0x1c   :  { %2822 = vmatprep.subr.bf16.mxu0 %v3182_v33  ;;  %v635_v33 = vcombine.high %v620_v19, %v620_v19  ;;  %v3242_v47 = vld [vmem:[%s4025_s1 + $0x298] sm:$0xff]  }
  0x1d   :  { %2843 = vmatpush3.bf16.msra.mxu1 %v3181_v32  ;;  %v612_v32 = vrot.slane %v598_v29, %v3475_v34  ;;  %v3258_v56 = vld [vmem:[%s4025_s1 + $0x2b8] sm:$0xff]  }
  0x1e   :  { %2844 = vmatprep.subr.bf16.mxu1 %v3184_v36  ;;  %v3228_v36 = vld [vmem:[%s4027_s3 + $0x20] sm:$0xff]  }
  0x1f   :  { %2823 = vmatpush3.bf16.msra.mxu0 %v3183_v35  ;;  %v627_v35 = vrot.slane %v612_v32, %v3475_v34 }
  0x20   :  { %3029 = vmatprep.subr.bf16.mxu0 %v3326_v40 }
  0x21   :  { %2845 = vmatpush3.bf16.msra.mxu1 %v3186_v39  ;;  %v3231_v39 = vld [vmem:[%s4027_s3 + $0x38] sm:$0xff]  }
  0x22   :  { %2857 = vmatprep.subr.bf16.mxu1 %v3188_v43  ;;  %418 = vmatmul.mubr.bf16.vlgmr.msra.gmra.mrb[0].mxu0 %v144_v42  ;;  %v3234_v42 = vld [vmem:[%s4025_s1 + $0x240] sm:$0xff]   ;;  %v3236_v43 = vld [vmem:[%s4025_s1 + $0x288] sm:$0xff]  }
  0x23   :  { %3030 = vmatpush3.bf16.msra.mxu0 %v3187_v45  ;;  %3037 = vmatprep.mubr.msk.bf16.mxu0 %vm3327_vm0, %v3326_v40  ;;  %v3239_v45 = vld [vmem:[%s4025_s1 + $0x290] sm:$0xff]  }
  0x24   :  { %458 = vmatmul.mubr.bf16.vlgmr.msra.gmra.mrb[0].mxu1 %v159_v46  ;;  %3031 = vmatprep.subr.bf16.mxu0 %v3326_v40  ;;  %v3240_v46 = vld [vmem:[%s4025_s1 + $0x250] sm:$0xff]  }
  0x25   :  { %2858 = vmatpush3.bf16.msra.mxu1 %v3189_v48  ;;  %892 = vmatprep.mubr.bf16.mxu1 %v634_v17  ;;  %v3243_v48 = vld [vmem:[%s4025_s1 + $0x258] sm:$0xff]  }
  0x26   :  { %2859 = vmatprep.subr.bf16.mxu1 %v3191_v49  ;;  %v3246_v49 = vld [vmem:[%s4025_s1 + $0x2a0] sm:$0xff]  }
  0x27   :  { %3032 = vmatpush3.bf16.msra.mxu0 %v3190_v50  ;;  %v3247_v50 = vld [vmem:[%s4025_s1 + $0x260] sm:$0xff]  }
  0x28   :  { %3033 = vmatprep.subr.bf16.mxu0 %v3326_v40 }
  0x29   :  { %2860 = vmatpush3.bf16.msra.mxu1 %v3192_v51  ;;  %v3250_v51 = vld [vmem:[%s4025_s1 + $0x2a8] sm:$0xff]  }
  0x2a   :  { %2861 = vmatprep.subr.bf16.mxu1 %v3194_v53  ;;  %v3254_v53 = vld [vmem:[%s4025_s1 + $0x2b0] sm:$0xff]  }
  0x2b   :  { %3034 = vmatpush3.bf16.msra.mxu0 %v3193_v54  ;;  %v3255_v54 = vld [vmem:[%s4025_s1 + $0x270] sm:$0xff]  }
  0x2c   :  { %3035 = vmatprep.subr.bf16.mxu0 %v3326_v40 }
  0x2d   :  { %2862 = vmatpush3.bf16.msra.mxu1 %v3195_v55  ;;  %v2547_v55 = vld [vmem:[%s4026_s0 + $0xa] sm:$0x1f] }
  0x2e   :  { %2863 = vmatprep.subr.bf16.mxu1 %v3197_v57  ;;  %v1215_v57 = vrot.slane %v2547_v55, %v3475_v34 }
  0x2f   :  { %3036 = vmatpush3.bf16.msra.mxu0 %v3196_v58  ;;  %v3259_v58 = vld [vmem:[%s4025_s1 + $0x278] sm:$0xff]  }
  0x30   :  { %2879 = vmatprep.subr.bf16.mxu0 %v3199_v59  ;;  %v1223_v59 = vcombine.high %v1215_v57, %v1215_v57 }
  0x31   :  { %2864 = vmatpush3.bf16.msra.mxu1 %v3198_v60 }
  0x32   :  { %3038 = vmatmul.mubr.msk.bf16.vlgmr.msra.gmra.mrb[4].mxu0 %vm381_vm1, %v151_v61  ;;  %2865 = vmatprep.subr.bf16.mxu1 %v3201_v62  ;;  %v3708_v60 = vrot.slane %v1223_v59, %v3475_v34  ;;  %v3712_v61 = vrot.slane %v1215_v57, %v3475_v34  ;;  %v3263_v62 = vld [vmem:[%s4025_s1 + $0x340] sm:$0xff]   ;;  %v3252_v57 = vld [vmem:[%s4025_s1 + $0x310] sm:$0xff]   ;;  %v3256_v59 = vld [vmem:[%s4025_s1 + $0x318] sm:$0xff]  }
  0x33   :  { %2880 = vmatpush3.bf16.msra.mxu0 %v3200_v63  ;;  %932 = vmatprep.mubr.bf16.mxu0 %v636_v21  ;;  %v3266_v63 = vld [vmem:[%s4025_s1 + $0x348] sm:$0xff]  }
  0x34   :  { %2881 = vmatprep.subr.bf16.mxu0 %v3203_v0  ;;  %v1208_v0 = vcombine.high %v2547_v55, %v2547_v55  ;;  %v3248_v55 = vld [vmem:[%s4025_s1 + $0x308] sm:$0xff]  }
  0x35   :  { %2866 = vmatpush3.bf16.msra.mxu1 %v3202_v1  ;;  %v3269_v1 = vld [vmem:[%s4025_s1 + $0x350] sm:$0xff]  }
  0x36   :  { %2867 = vmatprep.subr.bf16.mxu1 %v3205_v2  ;;  %v1222_v2 = vrot.slane %v1208_v0, %v3475_v34  ;;  %v3264_v0 = vld [vmem:[%s4025_s1 + $0x328] sm:$0xff]  }
  0x37   :  { %2882 = vmatpush3.bf16.msra.mxu0 %v3204_v3  ;;  %v3272_v3 = vld [vmem:[%s4025_s1 + $0x358] sm:$0xff]  }
  0x38   :  { %2883 = vmatprep.subr.bf16.mxu0 %v3207_v4  ;;  %v1237_v4 = vrot.slane %v1222_v2, %v3475_v34  ;;  %v3267_v2 = vld [vmem:[%s4025_s1 + $0x330] sm:$0xff]  }
  0x39   :  { %2868 = vmatpush3.bf16.msra.mxu1 %v3206_v5 }
  0x3a   :  { %2869 = vmatprep.subr.bf16.mxu1 %v3209_v6  ;;  %v2379_v6 = vld [vmem:[%s4028_s2] ss:$0 sm:$0xff] }
  0x3b   :  { %2884 = vmatpush3.bf16.msra.mxu0 %v3208_v7 }
  0x3c   :  { %2885 = vmatprep.subr.bf16.mxu0 %v3211_v8 }
  0x3d   :  { %2870 = vmatpush3.bf16.msra.mxu1 %v3210_v9 }
  0x3e   :  { %2871 = vmatprep.subr.bf16.mxu1 %v3213_v11 }
  0x3f   :  { %2886 = vmatpush3.bf16.msra.mxu0 %v3212_v13 }
  0x40   :  { %2887 = vmatprep.subr.bf16.mxu0 %v3215_v14 }
  0x41   :  { %2872 = vmatpush3.bf16.msra.mxu1 %v3214_v16 }
  0x42   :  { %3041 = vmatprep.subr.bf16.mxu1 %v3326_v40 }
  0x43   :  { %2888 = vmatpush3.bf16.msra.mxu0 %v3216_v18 }
  0x44   :  { %893 = vmatmul.mubr.bf16.vlgmr.msra.gmra.mrb[4].mxu1 %v620_v19  ;;  %2889 = vmatprep.subr.bf16.mxu0 %v3219_v20 }
  0x45   :  { %3042 = vmatpush3.bf16.msra.mxu1 %v3218_v22  ;;  %3049 = vmatprep.mubr.msk.bf16.mxu1 %vm3327_vm0, %v3326_v40 }
  0x46   :  { %3043 = vmatprep.subr.bf16.mxu1 %v3326_v40 }
  0x47   :  { %2890 = vmatpush3.bf16.msra.mxu0 %v3220_v23 }
  0x48   :  { %2891 = vmatprep.subr.bf16.mxu0 %v3222_v25 }
  0x49   :  { %3044 = vmatpush3.bf16.msra.mxu1 %v3221_v24 }
  0x4a   :  { %3045 = vmatprep.subr.bf16.mxu1 %v3326_v40 }
  0x4b   :  { %2892 = vmatpush3.bf16.msra.mxu0 %v3223_v26 }
  0x4c   :  { %2893 = vmatprep.subr.bf16.mxu0 %v3225_v27 }
  0x4d   :  { %3046 = vmatpush3.bf16.msra.mxu1 %v3224_v28  ;;  %v2491_v28 = vld [vmem:[%s4028_s2 + $0x1] ss:$0 sm:$0xff] }
  0x4e   :  { %3047 = vmatprep.subr.bf16.mxu1 %v3326_v40 }
  0x4f   :  { %2894 = vmatpush3.bf16.msra.mxu0 %v3226_v30 }
  0x50   :  { %3053 = vmatprep.subr.bf16.mxu0 %v3326_v40 }
  0x51   :  { %3048 = vmatpush3.bf16.msra.mxu1 %v3227_v31 }
  0x52   :  { %933 = vmatmul.mubr.bf16.vlgmr.msra.gmra.mrb[8].mxu0 %v635_v33  ;;  %2916 = vmatprep.subr.bf16.mxu1 %v3233_v41  ;;  %v3274_v41 = vld [vmem:[%s4025_s1 + $0x3a0] sm:$0xff]  }
  0x53   :  { %3061 = vmatprep.mubr.msk.bf16.mxu0 %vm3327_vm0, %v3326_v40  ;;  %3054 = vmatpush3.bf16.msra.mxu0 %v3228_v36 }
  0x54   :  { %3050 = vmatmul.mubr.msk.bf16.vlgmr.msra.gmra.mrb[8].mxu1 %vm381_vm1, %v627_v35  ;;  %3055 = vmatprep.subr.bf16.mxu0 %v3326_v40 }
  0x55   :  { %2917 = vmatpush3.bf16.msra.mxu1 %v3234_v42  ;;  %1502 = vmatprep.mubr.bf16.mxu1 %v3708_v60  ;;  %v3275_v42 = vld [vmem:[%s4025_s1 + $0x360] sm:$0xff]  }
  0x56   :  { %2918 = vmatprep.subr.bf16.mxu1 %v3236_v43 }
  0x57   :  { %3056 = vmatpush3.bf16.msra.mxu0 %v3229_v37 }
  0x58   :  { %3057 = vmatprep.subr.bf16.mxu0 %v3326_v40 }
  0x59   :  { %2919 = vmatpush3.bf16.msra.mxu1 %v3237_v44  ;;  %v3277_v44 = vld [vmem:[%s4025_s1 + $0x3a8] sm:$0xff]  }
  0x5a   :  { %2920 = vmatprep.subr.bf16.mxu1 %v3239_v45 }
  0x5b   :  { %3058 = vmatpush3.bf16.msra.mxu0 %v3230_v38 }
  0x5c   :  { %3059 = vmatprep.subr.bf16.mxu0 %v3326_v40 }
  0x5d   :  { %2921 = vmatpush3.bf16.msra.mxu1 %v3240_v46  ;;  %v3232_v46 = vld [vmem:[%s4027_s3] sm:$0xff]  }
  0x5e   :  { %2922 = vmatprep.subr.bf16.mxu1 %v3242_v47 }
  0x5f   :  { %3060 = vmatpush3.bf16.msra.mxu0 %v3231_v39 }
  0x60   :  { %3065 = vmatprep.subr.bf16.mxu0 %v3326_v40 }
  0x61   :  { %2923 = vmatpush3.bf16.msra.mxu1 %v3243_v48  ;;  %v3235_v48 = vld [vmem:[%s4027_s3 + $0x8] sm:$0xff]  }
  0x62   :  { %2924 = vmatprep.subr.bf16.mxu1 %v3246_v49  ;;  %v3238_v49 = vld [vmem:[%s4027_s3 + $0x10] sm:$0xff]  }
  0x65   :  { %2925 = vmatpush3.bf16.msra.mxu1 %v3247_v50  ;;  %v3241_v50 = vld [vmem:[%s4027_s3 + $0x18] sm:$0xff]  }
  0x66   :  { %2926 = vmatprep.subr.bf16.mxu1 %v3250_v51  ;;  %v3244_v51 = vld [vmem:[%s4025_s1 + $0x300] sm:$0xff]  }
  0x69   :  { %2927 = vmatpush3.bf16.msra.mxu1 %v3251_v52  ;;  %v3245_v52 = vld [vmem:[%s4025_s1 + $0x2c0] sm:$0xff]  }
  0x6a   :  { %2928 = vmatprep.subr.bf16.mxu1 %v3254_v53  ;;  %v1246_v53 = vcombine.high %v3708_v60, %v3708_v60  ;;  %v3257_v60 = vld [vmem:[%s4025_s1 + $0x2d8] sm:$0xff]  }
  0x6d   :  { %2929 = vmatpush3.bf16.msra.mxu1 %v3255_v54 }
  0x6e   :  { %2930 = vmatprep.subr.bf16.mxu1 %v3258_v56  ;;  %v3249_v56 = vld [vmem:[%s4025_s1 + $0x2c8] sm:$0xff]  }
  0x71   :  { %2931 = vmatpush3.bf16.msra.mxu1 %v3259_v58  ;;  %v3253_v58 = vld [vmem:[%s4025_s1 + $0x2d0] sm:$0xff]  }
  0x72   :  { %3077 = vmatprep.subr.bf16.mxu1 %v3326_v40 }
  0x74   :  { %1503 = vmatmul.mubr.bf16.vlgmr.msra.gmra.mrb[12].mxu1 %v3712_v61 }
  0x75   :  { %3078 = vmatpush3.bf16.msra.mxu1 %v3263_v62  ;;  %3085 = vmatprep.mubr.msk.bf16.mxu1 %vm3327_vm0, %v3326_v40  ;;  %v3260_v62 = vld [vmem:[%s4025_s1 + $0x320] sm:$0xff]  }
  0x76   :  { %3079 = vmatprep.subr.bf16.mxu1 %v3326_v40 }
  0x79   :  { %3080 = vmatpush3.bf16.msra.mxu1 %v3266_v63  ;;  %v3261_v63 = vld [vmem:[%s4025_s1 + $0x2e0] sm:$0xff]  }
  0x7a   :  { %3081 = vmatprep.subr.bf16.mxu1 %v3326_v40 }
  0x7d   :  { %3082 = vmatpush3.bf16.msra.mxu1 %v3269_v1  ;;  %v3265_v1 = vld [vmem:[%s4025_s1 + $0x2e8] sm:$0xff]  }
  0x7e   :  { %3083 = vmatprep.subr.bf16.mxu1 %v3326_v40 }
  0x81   :  { %3084 = vmatpush3.bf16.msra.mxu1 %v3272_v3  ;;  %v3268_v3 = vld [vmem:[%s4025_s1 + $0x2f0] sm:$0xff]  }
  0x82   :  { %2970 = vmatprep.subr.bf16.mxu1 %v3274_v41  ;;  %v3307_v41 = vld [vmem:[%s4025_s1 + $0x468] sm:$0xff]  }
  0x84   :  { %3086 = vmatmul.mubr.msk.bf16.vlgmr.msra.gmra.mrb[16].mxu1 %vm381_vm1, %v1237_v4  ;;  %v3270_v4 = vld [vmem:[%s4025_s1 + $0x338] sm:$0xff]  }
  0x85   :  { %2971 = vmatpush3.bf16.msra.mxu1 %v3275_v42 }
  0x86   :  { %2972 = vmatprep.subr.bf16.mxu1 %v3277_v44 }
  0xf5   :  { %v2824_v5 = vpop.f32.mrb[0].mxu0 }
  0xf6   :  { %v2825_v7 = vpop.f32.mrb[1].mxu0 }
  0xf7   :  { %v2826_v8 = vadd.f32 %v2825_v7, %v2824_v5  ;;  %v2827_v9 = vpop.f32.mrb[2].mxu0  ;;  %v2846_v10 = vpop.f32.mrb[0].mxu1  ;;  %v3271_v5 = vld [vmem:[%s4025_s1 + $0x2f8] sm:$0xff]   ;;  %v3273_v7 = vld [vmem:[%s4027_s3 + $0x40] sm:$0xff]  }
  0xf8   :  { %v2828_v11 = vpop.f32.mrb[3].mxu0  ;;  %v2847_v12 = vpop.f32.mrb[1].mxu1 }
  0xf9   :  { %v420_v13 = vadd.f32 %v2826_v8, %v2379_v6  ;;  %v2848_v14 = vadd.f32 %v2847_v12, %v2846_v10  ;;  %v2849_v15 = vpop.f32.mrb[2].mxu1  ;;  %v1245_v6 = vcombine.high %v3712_v61, %v3712_v61  ;;  %v3276_v8 = vld [vmem:[%s4027_s3 + $0x48] sm:$0xff]  }
  0xfa   :  { %v2850_v16 = vpop.f32.mrb[3].mxu1  ;;  %v3280_v15 = vld [vmem:[%s4025_s1 + $0x3b0] sm:$0xff]  }
  0xfb   :  { %v460_v17 = vadd.f32 %v2848_v14, %v420_v13  ;;  %v3278_v13 = vld [vmem:[%s4025_s1 + $0x368] sm:$0xff]   ;;  %v3279_v14 = vld [vmem:[%s4027_s3 + $0x50] sm:$0xff]  }
  0xfc   :  { %2973 = vmatpush3.bf16.msra.mxu1 %v3278_v13  ;;  %v3281_v16 = vld [vmem:[%s4025_s1 + $0x370] sm:$0xff]  }
  0xfd   :  { %2974 = vmatprep.subr.bf16.mxu1 %v3280_v15 }
 0x100   :  { %2975 = vmatpush3.bf16.msra.mxu1 %v3281_v16  ;;  %v3316_v16 = vld [vmem:[%s4027_s3 + $0x70] sm:$0xff]  }
 0x105   :  { %v499_v18 = vpop.f32.mrb[4].mxu0 }
 0x106   :  { %v500_v19 = vadd.f32 %v499_v18, %v460_v17  ;;  %v3039_v20 = vpop.f32.mrb[5].mxu0 }
 0x107   :  { %v502_v21 = vpop.f32.mrb[6].mxu0 }
 0x108   :  { %v3040_v22 = vpop.f32.mrb[7].mxu0  ;;  %v505_v54 = vpack.c.bf16 %v500_v19, %v500_v19  ;;  %v3282_v19 = vld [vmem:[%s4027_s3 + $0x58] sm:$0xff]  }
 0x109   :  { %v3283_v21 = vld [vmem:[%s4025_s1 + $0x3b8] sm:$0xff]  }
 0x10a   :  { %2976 = vmatprep.subr.bf16.mxu1 %v3283_v21 }
 0x117   :  { %v2873_v23 = vpop.f32.mrb[4].mxu1 }
 0x118   :  { %v2874_v24 = vpop.f32.mrb[5].mxu1 }
 0x119   :  { %v2875_v25 = vadd.f32 %v2874_v24, %v2873_v23  ;;  %v2876_v26 = vpop.f32.mrb[6].mxu1  ;;  %v3284_v23 = vld [vmem:[%s4025_s1 + $0x378] sm:$0xff]   ;;  %v3285_v24 = vld [vmem:[%s4025_s1 + $0x420] sm:$0xff]  }
 0x11a   :  { %v2877_v27 = vpop.f32.mrb[7].mxu1  ;;  %2977 = vmatpush3.bf16.msra.mxu1 %v3284_v23  ;;  %v3288_v26 = vld [vmem:[%s4025_s1 + $0x380] sm:$0xff]  }
 0x11b   :  { %v895_v31 = vadd.f32 %v2875_v25, %v2491_v28  ;;  %v3287_v25 = vld [vmem:[%s4025_s1 + $0x3c0] sm:$0xff]   ;;  %v3291_v27 = vld [vmem:[%s4025_s1 + $0x3c8] sm:$0xff]  }
 0x11c   :  { %2978 = vmatprep.subr.bf16.mxu1 %v3287_v25  ;;  %v3292_v28 = vld [vmem:[%s4025_s1 + $0x388] sm:$0xff]  }
 0x11e   :  { %2979 = vmatpush3.bf16.msra.mxu1 %v3288_v26 }
 0x11f   :  { %2980 = vmatprep.subr.bf16.mxu1 %v3291_v27 }
 0x122   :  { %2981 = vmatpush3.bf16.msra.mxu1 %v3292_v28 }
 0x125   :  { %v2895_v29 = vpop.f32.mrb[8].mxu0 }
 0x126   :  { %v2896_v30 = vpop.f32.mrb[9].mxu0 }
 0x127   :  { %v2897_v32 = vadd.f32 %v2896_v30, %v2895_v29  ;;  %v2898_v33 = vpop.f32.mrb[10].mxu0  ;;  %v974_v35 = vpop.f32.mrb[8].mxu1  ;;  %v3295_v29 = vld [vmem:[%s4025_s1 + $0x3d0] sm:$0xff]  }
 0x128   :  { %v2899_v36 = vpop.f32.mrb[11].mxu0  ;;  %v3051_v37 = vpop.f32.mrb[9].mxu1  ;;  %v3296_v30 = vld [vmem:[%s4025_s1 + $0x390] sm:$0xff]   ;;  %2982 = vmatprep.subr.bf16.mxu1 %v3295_v29 }
 0x129   :  { %v935_v38 = vadd.f32 %v2897_v32, %v895_v31  ;;  %v977_v39 = vpop.f32.mrb[10].mxu1  ;;  %2983 = vmatpush3.bf16.msra.mxu1 %v3296_v30  ;;  %v2672_v31 = vld [vmem:[%s4026_s0 + $0xf] sm:$0x1f]  ;;  %v3299_v32 = vld [vmem:[%s4025_s1 + $0x3d8] sm:$0xff]  }
 0x12a   :  { %v3052_v43 = vpop.f32.mrb[11].mxu1  ;;  %v1759_v33 = vrot.slane %v2672_v31, %v3475_v34  ;;  %2984 = vmatprep.subr.bf16.mxu1 %v3299_v32  ;;  %v3304_v39 = vld [vmem:[%s4025_s1 + $0x460] sm:$0xff]   ;;  %v1752_v42 = vcombine.high %v2672_v31, %v2672_v31 }
 0x12b   :  { %v975_v45 = vadd.f32 %v974_v35, %v935_v38  ;;  %v3300_v35 = vld [vmem:[%s4025_s1 + $0x398] sm:$0xff]   ;;  %v3310_v43 = vld [vmem:[%s4025_s1 + $0x470] sm:$0xff]   ;;  %v3318_v32 = vld [vmem:[%s4029_s6] sm:$0xff]  }
 0x12c   :  { %v1767_v36 = vcombine.high %v1759_v33, %v1759_v33  ;;  %v3893_v38 = vrot.slane %v1759_v33, %v3475_v34  ;;  %v1766_v44 = vrot.slane %v1752_v42, %v3475_v34  ;;  %v3319_v33 = vld [vmem:[%s4029_s6 + $0x8] sm:$0xff]  }
 0x12d   :  { %v980_v47 = vpack.c.bf16 %v975_v45, %v975_v45  ;;  %2985 = vmatpush3.bf16.msra.mxu1 %v3300_v35  ;;  %v3313_v45 = vld [vmem:[%s4025_s1 + $0x478] sm:$0xff]   ;;  %v2797_v35 = vld [vmem:[%s4030_s4] ss:$0 sm:$0xff] }
 0x12e   :  { %v1788_v37 = vrot.slane %v1767_v36, %v3475_v34  ;;  %3101 = vmatprep.subr.bf16.mxu1 %v3326_v40 }
 0x12f   :  { %3062 = vmatmul.mubr.msk.bf16.vlgmr.msra.gmra.mrb[12].mxu0 %vm381_vm1, %v980_v47  ;;  %v2621_v47 = vld [vmem:[%s4028_s2 + $0x2] ss:$0 sm:$0xff] }
 0x130   :  { %3066 = vmatpush3.bf16.msra.mxu0 %v3232_v46  ;;  %3073 = vmatprep.mubr.msk.bf16.mxu0 %vm3327_vm0, %v3326_v40  ;;  %v1781_v46 = vrot.slane %v1766_v44, %v3475_v34 }
 0x131   :  { %3067 = vmatprep.subr.bf16.mxu0 %v3326_v40  ;;  %2046 = vmatprep.mubr.bf16.mxu1 %v1788_v37 }
 0x132   :  { %2047 = vmatmul.mubr.bf16.vlgmr.msra.gmra.mrb[20].mxu1 %v3893_v38 }
 0x133   :  { %3102 = vmatpush3.bf16.msra.mxu1 %v3304_v39  ;;  %3109 = vmatprep.mubr.msk.bf16.mxu1 %vm3327_vm0, %v3326_v40 }
 0x134   :  { %3068 = vmatpush3.bf16.msra.mxu0 %v3235_v48  ;;  %3103 = vmatprep.subr.bf16.mxu1 %v3326_v40 }
 0x135   :  { %3069 = vmatprep.subr.bf16.mxu0 %v3326_v40 }
 0x137   :  { %3104 = vmatpush3.bf16.msra.mxu1 %v3307_v41 }
 0x138   :  { %3070 = vmatpush3.bf16.msra.mxu0 %v3238_v49  ;;  %3105 = vmatprep.subr.bf16.mxu1 %v3326_v40 }
 0x139   :  { %3071 = vmatprep.subr.bf16.mxu0 %v3326_v40 }
 0x13b   :  { %3106 = vmatpush3.bf16.msra.mxu1 %v3310_v43 }
 0x13c   :  { %3072 = vmatpush3.bf16.msra.mxu0 %v3241_v50  ;;  %3107 = vmatprep.subr.bf16.mxu1 %v3326_v40 }
 0x13d   :  { %2938 = vmatprep.subr.bf16.mxu0 %v3244_v51 }
 0x13f   :  { %3074 = vmatmul.mubr.msk.bf16.vlgmr.msra.gmra.mrb[12].mxu0 %vm381_vm1, %v505_v54  ;;  %3108 = vmatpush3.bf16.msra.mxu1 %v3313_v45 }
 0x140   :  { %2939 = vmatpush3.bf16.msra.mxu0 %v3245_v52  ;;  %1542 = vmatprep.mubr.bf16.mxu0 %v1246_v53 }
 0x141   :  { %2940 = vmatprep.subr.bf16.mxu0 %v3248_v55  ;;  %3125 = vmatprep.subr.bf16.mxu1 %v3326_v40  ;;  %v3286_v55 = vld [vmem:[%s4025_s1 + $0x3e0] sm:$0xff]  }
 0x142   :  { %3110 = vmatmul.mubr.msk.bf16.vlgmr.msra.gmra.mrb[24].mxu1 %vm381_vm1, %v1781_v46  ;;  %v3320_v46 = vld [vmem:[%s4032_s9] sm:$0xff]  }
 0x143   :  { %3129 = vmatprep.mubr.msk.bf16.mxu1 %vm3327_vm0, %v3326_v40  ;;  %3126 = vmatpush3.bf16.msra.mxu1 %v3318_v32 }
 0x144   :  { %2941 = vmatpush3.bf16.msra.mxu0 %v3249_v56  ;;  %v1790_v56 = vcombine.high %v1788_v37, %v1788_v37  ;;  %3127 = vmatprep.subr.bf16.mxu1 %v3326_v40  ;;  %v2798_v37 = vld [vmem:[%s4031_s5] ss:$0 sm:$0xff] }
 0x145   :  { %2942 = vmatprep.subr.bf16.mxu0 %v3252_v57 }
 0x147   :  { %v2932_v61 = vpop.f32.mrb[12].mxu1  ;;  %3128 = vmatpush3.bf16.msra.mxu1 %v3319_v33 }
 0x148   :  { %2943 = vmatpush3.bf16.msra.mxu0 %v3253_v58  ;;  %v2933_v9 = vpop.f32.mrb[13].mxu1  ;;  %v3289_v58 = vld [vmem:[%s4025_s1 + $0x428] sm:$0xff]   ;;  %3133 = vmatprep.subr.bf16.mxu1 %v3326_v40 }
 0x149   :  { %2944 = vmatprep.subr.bf16.mxu0 %v3256_v59  ;;  %v3833_v10 = vadd.f32 %v2933_v9, %v2932_v61  ;;  %v2935_v11 = vpop.f32.mrb[14].mxu1  ;;  %v3290_v59 = vld [vmem:[%s4025_s1 + $0x3e8] sm:$0xff]   ;;  %v1789_v61 = vcombine.high %v3893_v38, %v3893_v38  ;;  %v3314_v9 = vld [vmem:[%s4027_s3 + $0x60] sm:$0xff]  }
 0x14a   :  { %v2936_v12 = vpop.f32.mrb[15].mxu1 }
 0x14b   :  { %v1505_v50 = vadd.f32 %v3833_v10, %v2621_v47  ;;  %v3315_v10 = vld [vmem:[%s4027_s3 + $0x68] sm:$0xff]   ;;  %v16_v47 = vstv %s4033_s10 }
 0x14c   :  { %2945 = vmatpush3.bf16.msra.mxu0 %v3257_v60  ;;  %v3293_v60 = vld [vmem:[%s4025_s1 + $0x430] sm:$0xff]   ;;  %17 = vst [vmem:[#allocation2] sm:$0x1] %v16_v47 }
 0x14d   :  { %2946 = vmatprep.subr.bf16.mxu0 %v3260_v62  ;;  %v3294_v62 = vld [vmem:[%s4025_s1 + $0x3f0] sm:$0xff]  }
 0x150   :  { %2947 = vmatpush3.bf16.msra.mxu0 %v3261_v63  ;;  %v3297_v63 = vld [vmem:[%s4025_s1 + $0x438] sm:$0xff]  }
 0x151   :  { %2948 = vmatprep.subr.bf16.mxu0 %v3264_v0  ;;  %v3298_v0 = vld [vmem:[%s4025_s1 + $0x3f8] sm:$0xff]  }
 0x154   :  { %2949 = vmatpush3.bf16.msra.mxu0 %v3265_v1  ;;  %v3301_v1 = vld [vmem:[%s4025_s1 + $0x440] sm:$0xff]  }
 0x155   :  { %2950 = vmatprep.subr.bf16.mxu0 %v3267_v2  ;;  %v3302_v2 = vld [vmem:[%s4025_s1 + $0x400] sm:$0xff]  }
 0x157   :  { %v3847_v17 = vpop.f32.mrb[16].mxu1 }
 0x158   :  { %2951 = vmatpush3.bf16.msra.mxu0 %v3268_v3  ;;  %v3087_v18 = vpop.f32.mrb[17].mxu1  ;;  %v3305_v3 = vld [vmem:[%s4025_s1 + $0x448] sm:$0xff]  }
 0x159   :  { %2952 = vmatprep.subr.bf16.mxu0 %v3270_v4  ;;  %v1587_v20 = vpop.f32.mrb[18].mxu1  ;;  %v3306_v4 = vld [vmem:[%s4025_s1 + $0x408] sm:$0xff]  }
 0x15a   :  { %v3088_v22 = vpop.f32.mrb[19].mxu1  ;;  %v3317_v20 = vld [vmem:[%s4027_s3 + $0x78] sm:$0xff]  }
 0x15b   :  { %v2746_v22 = vld [vmem:[%s4028_s2 + $0x3] ss:$0 sm:$0xff] }
 0x15c   :  { %2953 = vmatpush3.bf16.msra.mxu0 %v3271_v5  ;;  %v3308_v5 = vld [vmem:[%s4025_s1 + $0x450] sm:$0xff]  }
 0x15d   :  { %3089 = vmatprep.subr.bf16.mxu0 %v3326_v40 }
 0x15f   :  { %1543 = vmatmul.mubr.bf16.vlgmr.msra.gmra.mrb[16].mxu0 %v1245_v6  ;;  %v3309_v6 = vld [vmem:[%s4025_s1 + $0x410] sm:$0xff]  }
 0x160   :  { %3090 = vmatpush3.bf16.msra.mxu0 %v3273_v7  ;;  %3097 = vmatprep.mubr.msk.bf16.mxu0 %vm3327_vm0, %v3326_v40  ;;  %v3311_v7 = vld [vmem:[%s4025_s1 + $0x458] sm:$0xff]  }
 0x161   :  { %3091 = vmatprep.subr.bf16.mxu0 %v3326_v40 }
 0x164   :  { %3092 = vmatpush3.bf16.msra.mxu0 %v3276_v8  ;;  %v3312_v8 = vld [vmem:[%s4025_s1 + $0x418] sm:$0xff]  }
 0x165   :  { %3093 = vmatprep.subr.bf16.mxu0 %v3326_v40 }
 0x168   :  { %3094 = vmatpush3.bf16.msra.mxu0 %v3279_v14 }
 0x169   :  { %3095 = vmatprep.subr.bf16.mxu0 %v3326_v40 }
 0x16c   :  { %3096 = vmatpush3.bf16.msra.mxu0 %v3282_v19 }
 0x16d   :  { %2992 = vmatprep.subr.bf16.mxu0 %v3285_v24 }
 0x205   :  { %v2986_v11 = vpop.f32.mrb[20].mxu1 }
 0x206   :  { %v2987_v12 = vpop.f32.mrb[21].mxu1 }
 0x207   :  { %v2988_v13 = vadd.f32 %v2987_v12, %v2986_v11  ;;  %v2989_v14 = vpop.f32.mrb[22].mxu1 }
 0x208   :  { %v2990_v15 = vpop.f32.mrb[23].mxu1 }
 0x209   :  { %v2049_v25 = vadd.f32 %v2988_v13, %v2746_v22 }
 0x232   :  { %v2954_v48 = vpop.f32.mrb[16].mxu0 }
 0x233   :  { %v2955_v49 = vpop.f32.mrb[17].mxu0 }
 0x234   :  { %v2956_v51 = vadd.f32 %v2955_v49, %v2954_v48  ;;  %v2957_v52 = vpop.f32.mrb[18].mxu0  ;;  %v2802_v48 = vld [vmem:[%s4034_s7] ss:$0 sm:$0xff] }
 0x235   :  { %v2958_v53 = vpop.f32.mrb[19].mxu0 }
 0x236   :  { %v1545_v54 = vadd.f32 %v2956_v51, %v1505_v50  ;;  %v2803_v50 = vld [vmem:[%s4035_s8] ss:$0 sm:$0xff] }
 0x238   :  { %v1585_v34 = vadd.f32 %v3847_v17, %v1545_v54  ;;  %v2128_v17 = vpop.f32.mrb[24].mxu1 }
 0x239   :  { %v3111_v18 = vpop.f32.mrb[25].mxu1 }
 0x23a   :  { %v1590_v57 = vpack.c.bf16 %v1585_v34, %v1585_v34  ;;  %v2131_v19 = vpop.f32.mrb[26].mxu1 }
 0x23b   :  { %v3112_v21 = vpop.f32.mrb[27].mxu1 }
 0x23c   :  { %3098 = vmatmul.mubr.msk.bf16.vlgmr.msra.gmra.mrb[12].mxu0 %vm381_vm1, %v1590_v57 }
 0x23d   :  { %2993 = vmatpush3.bf16.msra.mxu0 %v3286_v55  ;;  %2086 = vmatprep.mubr.bf16.mxu0 %v1790_v56  ;;  %v2804_v56 = vld [vmem:[#allocation2] ss:$0 sm:$0xff] }
 0x23e   :  { %2994 = vmatprep.subr.bf16.mxu0 %v3289_v58 }
 0x241   :  { %2995 = vmatpush3.bf16.msra.mxu0 %v3290_v59 }
 0x242   :  { %2996 = vmatprep.subr.bf16.mxu0 %v3293_v60 }
 0x245   :  { %2997 = vmatpush3.bf16.msra.mxu0 %v3294_v62 }
 0x246   :  { %2998 = vmatprep.subr.bf16.mxu0 %v3297_v63 }
 0x249   :  { %2999 = vmatpush3.bf16.msra.mxu0 %v3298_v0 }
 0x24a   :  { %3000 = vmatprep.subr.bf16.mxu0 %v3301_v1 }
 0x24d   :  { %3001 = vmatpush3.bf16.msra.mxu0 %v3302_v2 }
 0x24e   :  { %3002 = vmatprep.subr.bf16.mxu0 %v3305_v3 }
 0x251   :  { %3003 = vmatpush3.bf16.msra.mxu0 %v3306_v4 }
 0x252   :  { %3004 = vmatprep.subr.bf16.mxu0 %v3308_v5 }
 0x255   :  { %3005 = vmatpush3.bf16.msra.mxu0 %v3309_v6 }
 0x256   :  { %3006 = vmatprep.subr.bf16.mxu0 %v3311_v7 }
 0x259   :  { %3007 = vmatpush3.bf16.msra.mxu0 %v3312_v8 }
 0x25a   :  { %3113 = vmatprep.subr.bf16.mxu0 %v3326_v40 }
 0x25c   :  { %2087 = vmatmul.mubr.bf16.vlgmr.msra.gmra.mrb[20].mxu0 %v1789_v61 }
 0x25d   :  { %3114 = vmatpush3.bf16.msra.mxu0 %v3314_v9  ;;  %3121 = vmatprep.mubr.msk.bf16.mxu0 %vm3327_vm0, %v3326_v40 }
 0x25e   :  { %3115 = vmatprep.subr.bf16.mxu0 %v3326_v40 }
 0x261   :  { %3116 = vmatpush3.bf16.msra.mxu0 %v3315_v10 }
 0x262   :  { %3117 = vmatprep.subr.bf16.mxu0 %v3326_v40 }
 0x265   :  { %3118 = vmatpush3.bf16.msra.mxu0 %v3316_v16 }
 0x266   :  { %3119 = vmatprep.subr.bf16.mxu0 %v3326_v40 }
 0x269   :  { %3120 = vmatpush3.bf16.msra.mxu0 %v3317_v20 }
 0x32f   :  { %v3008_v23 = vpop.f32.mrb[20].mxu0 }
 0x330   :  { %v3009_v24 = vpop.f32.mrb[21].mxu0 }
 0x331   :  { %v3010_v26 = vadd.f32 %v3009_v24, %v3008_v23  ;;  %v3011_v27 = vpop.f32.mrb[22].mxu0 }
 0x332   :  { %v3012_v28 = vpop.f32.mrb[23].mxu0 }
 0x333   :  { %v2089_v29 = vadd.f32 %v3010_v26, %v2049_v25 }
 0x335   :  { %v2129_v30 = vadd.f32 %v2128_v17, %v2089_v29 }
 0x337   :  { %v2134_v31 = vpack.c.bf16 %v2129_v30, %v2129_v30 }
 0x339   :  { %3122 = vmatmul.mubr.msk.bf16.vlgmr.msra.gmra.mrb[12].mxu0 %vm381_vm1, %v2134_v31 }
 0x40c   :  { %v2205_v36 = vpop.f32.mrb[12].mxu0 }
 0x40d   :  { %v2219_v38 = vmul.f32 %v2797_v35, %v2205_v36  ;;  %v3123_v39 = vpop.f32.mrb[13].mxu0 }
 0x40e   :  { %v2208_v41 = vpop.f32.mrb[14].mxu0 }
 0x40f   :  { %v2227_v42 = vadd.f32 %v2798_v37, %v2219_v38  ;;  %v3124_v43 = vpop.f32.mrb[15].mxu0 }
 0x411   :  { %v2228_v44 = vmax.f32 %v2227_v42, 0.0 }
 0x413   :  { %v2229_v45 = vpack.c.bf16 %v2228_v44, %v2228_v44 }
 0x415   :  { %3130 = vmatmul.mubr.msk.bf16.vlgmr.msra.gmra.mrb[28].mxu1 %vm2246_vm2, %v2229_v45 }
 0x416   :  { %3135 = vmatprep.mubr.msk.bf16.mxu1 %vm3327_vm0, %v3326_v40  ;;  %3134 = vmatpush3.bf16.msra.mxu1 %v3320_v46 }
 0x4e8   :  { %v2284_v49 = vpop.f32.mrb[28].mxu1 }
 0x4e9   :  { %v2297_v40 = vmul.f32 %v2802_v48, %v2284_v49  ;;  %v3131_v51 = vpop.f32.mrb[29].mxu1 }
 0x4ea   :  { %v2287_v52 = vpop.f32.mrb[30].mxu1 }
 0x4eb   :  { %v2305_v53 = vadd.f32 %v2803_v50, %v2297_v40  ;;  %v3132_v54 = vpop.f32.mrb[31].mxu1 }
 0x4ed   :  { %v2306_v34 = vmax.f32 %v2305_v53, 0.0 }
 0x4ef   :  { %v2307_v55 = vpack.c.bf16 %v2306_v34, %v2306_v34 }
 0x4f1   :  { %3136 = vmatmul.mubr.msk.bf16.vlgmr.msra.gmra.mrb[32].mxu1 %vm2323_vm3, %v2307_v55 }
 0x5c4   :  { %v2361_v57 = vpop.f32.mrb[32].mxu1 }
 0x5c5   :  { %v2362_v58 = vadd.f32 %v2804_v56, %v2361_v57  ;;  %v3137_v59 = vpop.f32.mrb[33].mxu1 }
 0x5c6   :  { %v2364_v60 = vpop.f32.mrb[34].mxu1 }
 0x5c7   :  { %v2807_v62 = vmul.f32 -1.442695, %v2362_v58  ;;  %v3138_v63 = vpop.f32.mrb[35].mxu1 }
 0x5c9   :  { %3321 = vpow2.f32 %v2807_v62 }
 0x5d3   :  { %v3322_v0 = vpop.eup %3321 }
 0x5d4   :  { %v2370_v1 = vadd.f32 1.0, %v3322_v0 }
 0x5d6   :  { %3323 = vrcp.f32 %v2370_v1 }
 0x5e0   :  { %v3324_v2 = vpop.eup %3323 }
 0x5e1   :  { %2374 = vst.msk [vmem:[%s4036_s11] sm:$0x3] %vm2373_vm4, %v3324_v2 }

</bundles_post_ra>
